<compile_context>
chip_gen: v6e
topology: v6e:2x2x1
jax: 0.10.0
libtpu: 0.0.40
codegen_flags: <defaults>
</compile_context>

<pallas_src>
import jax
import jax.numpy as jnp
from jax import lax
from jax.experimental import pallas as pl
from jax.experimental.pallas import tpu as pltpu

BN_EPS = 1e-5
_K = 5      # conv kernel size
_PAD = 2    # conv padding ("same")


def _batchnorm(z, gamma, beta):
    # Training-mode BN fused into one scale+shift pass; (z - mu) is reused for
    # both the variance and the normalization (one mul + one add per element).
    mu = jnp.mean(z, axis=0, keepdims=True)
    d = z - mu
    var = jnp.mean(d * d, axis=0, keepdims=True)
    return d * (gamma * lax.rsqrt(var + BN_EPS)) + beta


def _fill_padded(xp_ref, interior, h, w):
    """Write `interior` (N,h,w,C) into the padded scratch, zeroing only the 4 halo
    strips (interior is stored exactly once)."""
    n, hp, wp, c = xp_ref.shape
    z_tb = jnp.zeros((n, _PAD, wp, c), xp_ref.dtype)
    z_lr = jnp.zeros((n, h, _PAD, c), xp_ref.dtype)
    xp_ref[:, pl.ds(0, _PAD), :, :] = z_tb                      # top rows
    xp_ref[:, pl.ds(_PAD + h, _PAD), :, :] = z_tb               # bottom rows
    xp_ref[:, pl.ds(_PAD, h), pl.ds(0, _PAD), :] = z_lr         # left cols
    xp_ref[:, pl.ds(_PAD, h), pl.ds(_PAD + w, _PAD), :] = z_lr  # right cols
    xp_ref[:, pl.ds(_PAD, h), pl.ds(_PAD, w), :] = interior


def _im2col(xp_ref, h, w):
    """Padded NHWC ref (N, h+4, w+4, Cin) -> (N*h*w, K*K*Cin) patch matrix.

    Column order is (kh, kw, ci), matching the HWIO-flattened conv weights.
    The final reshape only collapses leading dims (minor dim unchanged)."""
    n, _, _, cin = xp_ref.shape
    rows = jnp.concatenate(
        [xp_ref[:, :, pl.ds(kw, w), :] for kw in range(_K)], axis=3)   # (n, h+4, w, K*cin)
    patches = jnp.concatenate(
        [rows[:, kh:kh + h] for kh in range(_K)], axis=3)              # (n, h, w, K*K*cin)
    return patches.reshape(n * h * w, _K * _K * cin)


def _pool_h(a, n, h, w, c):
    """h-pair max on values: (n*h*w, c) rows in (n,h,w) order -> (n*(h//2)*w, c).

    Both reshapes keep the minor dim and map vregs 1:1 (W a multiple of 8), so
    this is essentially free vreg selection + max -- no scratch round-trip."""
    t = a.reshape(n * (h // 2), 2, w, c)
    return jnp.maximum(t[:, 0], t[:, 1]).reshape(n * (h // 2) * w, c)


def _lenet_kernel(x_ref, w1_ref, g1_ref, bt1_ref, w2_ref, g2_ref, bt2_ref,
                  wl1_hbm, g3_ref, bt3_ref, wl2_ref, bl2_ref,
                  o_ref,
                  xp1_ref, xp2_ref, pbuf1_ref, pbuf2_ref, wl1_vmem, wl1_sem):
    N, H1, W1, _ = x_ref.shape
    H2, W2 = H1 // 2, W1 // 2
    H3, W3 = H2 // 2, W2 // 2
    C2 = w1_ref.shape[1]
    C3 = w2_ref.shape[1]
    KF = wl1_vmem.shape[0]
    KH = KF // 2

    # ---- split prefetch of the big FC1 weight (HBM -> VMEM) behind the convs.
    cp_lo = pltpu.make_async_copy(wl1_hbm.at[pl.ds(0, KH), :],
                                  wl1_vmem.at[pl.ds(0, KH), :], wl1_sem.at[0])
    cp_hi = pltpu.make_async_copy(wl1_hbm.at[pl.ds(KH, KF - KH), :],
                                  wl1_vmem.at[pl.ds(KH, KF - KH), :], wl1_sem.at[1])
    cp_lo.start()
    cp_hi.start()

    # ---------------- conv1 (5x5, pad 2) + BN2d + ReLU ------------------------
    _fill_padded(xp1_ref, x_ref[...], H1, W1)
    z1 = jnp.dot(_im2col(xp1_ref, H1, W1), w1_ref[...],
                 preferred_element_type=jnp.float32)                   # (N*H1*W1, C2)
    a1 = jnp.maximum(_batchnorm(z1, g1_ref[...], bt1_ref[...]), 0.0)

    # ---------------- maxpool1 2x2/2 ------------------------------------------
    # h-pairs on values (free reshape); w-pairs via one small scratch + native
    # sublane-stride-2 loads (half the traffic of the old full-activation buffer).
    hm1 = _pool_h(a1, N, H1, W1, C2)                                   # (N*H2*W1, C2)
    pbuf1_ref[...] = hm1
    pool1 = jnp.maximum(pbuf1_ref[pl.ds(0, N * H2 * W2, stride=2), :],
                        pbuf1_ref[pl.ds(1, N * H2 * W2, stride=2), :])  # (N*H2*W2, C2)

    # ---------------- conv2 (5x5, pad 2) + BN2d + ReLU ------------------------
    _fill_padded(xp2_ref, pool1.reshape(N, H2, W2, C2), H2, W2)
    z2 = jnp.dot(_im2col(xp2_ref, H2, W2), w2_ref[...],
                 preferred_element_type=jnp.float32)                   # (N*H2*W2, C3)
    a2 = jnp.maximum(_batchnorm(z2, g2_ref[...], bt2_ref[...]), 0.0)

    # ---------------- maxpool2 -------------------------------------------------
    hm2 = _pool_h(a2, N, H2, W2, C3)                                   # (N*H3*W2, C3)
    pbuf2_ref[...] = hm2
    pool2 = jnp.maximum(pbuf2_ref[pl.ds(0, N * H3 * W3, stride=2), :],
                        pbuf2_ref[pl.ds(1, N * H3 * W3, stride=2), :])  # (N*H3*W3, C3)

    # ---------------- flatten in (h, w, c) order --------------------------------
    # (wl1 rows were permuted to (h, w, c) order once on the host, so the flatten
    #  is 16 cheap sublane slices + one lane concat -- no strided gathers.)
    pool2v = pool2.reshape(N, H3 * W3, C3)                             # leading split only
    feats = jnp.concatenate([pool2v[:, p, :] for p in range(H3 * W3)],
                            axis=-1)                                   # (N, H3*W3*C3)

    # ---------------- linear(n_feat,500) + BN1d(500) + linear(500,out) ----------
    cp_lo.wait()
    h = jnp.dot(feats[:, :KH], wl1_vmem[pl.ds(0, KH), :],
                preferred_element_type=jnp.float32)
    cp_hi.wait()
    h = h + jnp.dot(feats[:, KH:], wl1_vmem[pl.ds(KH, KF - KH), :],
                    preferred_element_type=jnp.float32)
    h = _batchnorm(h, g3_ref[...], bt3_ref[...])
    o_ref[...] = jnp.dot(h, wl2_ref[...],
                         preferred_element_type=jnp.float32) + bl2_ref[...]


def lenet_forward(x_nchw, kp):
    """Forward pass of LeNet_copy as one fused Pallas TPU kernel."""
    x = jnp.transpose(x_nchw, (0, 2, 3, 1))                # NCHW -> NHWC (tiny, 8 KB)
    N, H1, W1, C1 = x.shape
    # Two 2x2/2 pools require H, W multiples of 4; W multiples of 8 additionally
    # keep the in-kernel pool reshapes layout-preserving (true for img_sz=16).
    assert H1 % 4 == 0 and W1 % 4 == 0
    C2 = kp["w1"].shape[1]
    C3 = kp["w2"].shape[1]
    n_feat, HID = kp["wl1"].shape
    OUT = kp["wl2"].shape[1]
    H2, W2 = H1 // 2, W1 // 2
    H3, W3 = H2 // 2, W2 // 2
    assert n_feat == H3 * W3 * C3

    full = lambda s: pl.BlockSpec(s, lambda i: (0,) * len(s))
    return pl.pallas_call(
        _lenet_kernel,
        out_shape=jax.ShapeDtypeStruct((N, OUT), jnp.float32),
        grid=(1,),
        in_specs=[
            full(x.shape),
            full(kp["w1"].shape), full((1, C2)), full((1, C2)),
            full(kp["w2"].shape), full((1, C3)), full((1, C3)),
            pl.BlockSpec(memory_space=pl.ANY),   # wl1 stays in HBM; manual split prefetch
            full((1, HID)), full((1, HID)),
            full(kp["wl2"].shape), full((1, OUT)),
        ],
        out_specs=full((N, OUT)),
        scratch_shapes=[
            pltpu.VMEM((N, H1 + 2 * _PAD, W1 + 2 * _PAD, C1), jnp.float32),  # padded in1
            pltpu.VMEM((N, H2 + 2 * _PAD, W2 + 2 * _PAD, C2), jnp.float32),  # padded in2
            pltpu.VMEM((N * H2 * W1, C2), jnp.float32),   # pool1 h-maxed rows
            pltpu.VMEM((N * H3 * W2, C3), jnp.float32),   # pool2 h-maxed rows
            pltpu.VMEM(kp["wl1"].shape, jnp.float32),     # prefetched FC1 weight
            pltpu.SemaphoreType.DMA((2,)),                # one sem per prefetch half
        ],
        # NOTE(v7x): grid=(1,) leaves the second TensorCore idle; fine at N=2.
        # If the batch grows, add a leading "parallel" axis over N -- but the
        # training-mode BN then needs a cross-core partial-sum exchange, and the
        # lane-padded scratch sizes must be rechecked against the 64 MiB VMEM.
        compiler_params=pltpu.CompilerParams(dimension_semantics=("arbitrary",)),
    )(x, kp["w1"], kp["g1"], kp["bt1"], kp["w2"], kp["g2"], kp["bt2"],
      kp["wl1"], kp["g3"], kp["bt3"], kp["wl2"], kp["bl2"])


def init_params(key, in_channel=4, img_sz=16, out_dim=10):
    """Parameters in the PyTorch module's native layouts (OIHW conv, (out,in) FC)."""
    feat = img_sz // 4
    n_feat = 50 * feat * feat
    ks = jax.random.split(key, 14)
    nrm = lambda k, s, sc=0.1: sc * jax.random.normal(k, s, jnp.float32)
    return dict(
        conv1_w=nrm(ks[0], (20, in_channel, 5, 5)), conv1_b=nrm(ks[1], (20,)),
        bn1_g=1.0 + nrm(ks[2], (20,)), bn1_b=nrm(ks[3], (20,)),
        conv2_w=nrm(ks[4], (50, 20, 5, 5)), conv2_b=nrm(ks[5], (50,)),
        bn2_g=1.0 + nrm(ks[6], (50,)), bn2_b=nrm(ks[7], (50,)),
        fc1_w=nrm(ks[8], (500, n_feat), 0.05), fc1_b=nrm(ks[9], (500,)),
        bn3_g=1.0 + nrm(ks[10], (500,)), bn3_b=nrm(ks[11], (500,)),
        fc2_w=nrm(ks[12], (out_dim, 500)), fc2_b=nrm(ks[13], (out_dim,)),
    )


def prepare_params(p):
    """One-time host-side conversion of PyTorch-layout params to kernel layouts."""
    co1, ci, k, _ = p["conv1_w"].shape
    co2 = p["conv2_w"].shape[0]
    hid, n_feat = p["fc1_w"].shape
    fm = int(round((n_feat / co2) ** 0.5))
    # conv weights: OIHW -> HWIO -> (K*K*Cin, Cout); rows ordered (kh, kw, ci).
    w1 = p["conv1_w"].transpose(2, 3, 1, 0).reshape(k * k * ci, co1)
    w2 = p["conv2_w"].transpose(2, 3, 1, 0).reshape(k * k * co1, co2)
    # FC1: torch does view(N, C*H*W) @ W.T; the kernel flattens in (h, w, c)
    # order, so permute the rows of W.T from (c, h, w) to (h, w, c) once here.
    wl1 = (p["fc1_w"].T.reshape(co2, fm, fm, hid)
           .transpose(1, 2, 0, 3).reshape(n_feat, hid))
    wl2 = p["fc2_w"].T
    r2 = lambda a: a.reshape(1, -1)
    # NOTE: conv1_b / conv2_b / fc1_b are intentionally dropped: the
    # training-mode BatchNorm that follows each of them subtracts the batch
    # mean, so a per-channel constant added before it cancels exactly.
    return dict(w1=w1, g1=r2(p["bn1_g"]), bt1=r2(p["bn1_b"]),
                w2=w2, g2=r2(p["bn2_g"]), bt2=r2(p["bn2_b"]),
                wl1=wl1, g3=r2(p["bn3_g"]), bt3=r2(p["bn3_b"]),
                wl2=wl2, bl2=r2(p["fc2_b"]))


if __name__ == "__main__":
    key = jax.random.PRNGKey(0)
    pkey, xkey = jax.random.split(key)
    # LeNet_copy(out_dim=10, in_channel=4, img_sz=16), batch=2 (NCHW input)
    params = init_params(pkey, in_channel=4, img_sz=16, out_dim=10)
    kparams = prepare_params(params)
    x = jax.random.normal(xkey, (2, 4, 16, 16), jnp.float32)
    out = jax.jit(lenet_forward)(x, kparams)
    jax.block_until_ready(out)
    assert out.shape == (2, 10) and out.dtype == jnp.float32
    print("KERNEL_OK")
</pallas_src>

<mosaic_0001>
module attributes {stable_mosaic.version = 11 : i64} {
  func.func @_lenet_kernel(%arg0: i32, %arg1: memref<2x16x16x4xf32, #tpu.memory_space<vmem>>, %arg2: memref<100x20xf32, #tpu.memory_space<vmem>>, %arg3: memref<1x20xf32, #tpu.memory_space<vmem>>, %arg4: memref<1x20xf32, #tpu.memory_space<vmem>>, %arg5: memref<500x50xf32, #tpu.memory_space<vmem>>, %arg6: memref<1x50xf32, #tpu.memory_space<vmem>>, %arg7: memref<1x50xf32, #tpu.memory_space<vmem>>, %arg8: memref<800x500xf32, #tpu.memory_space<any>>, %arg9: memref<1x500xf32, #tpu.memory_space<vmem>>, %arg10: memref<1x500xf32, #tpu.memory_space<vmem>>, %arg11: memref<500x10xf32, #tpu.memory_space<vmem>>, %arg12: memref<1x10xf32, #tpu.memory_space<vmem>>, %arg13: memref<2x10xf32, #tpu.memory_space<vmem>>, %arg14: memref<2x20x20x4xf32, #tpu.memory_space<vmem>>, %arg15: memref<2x12x12x20xf32, #tpu.memory_space<vmem>>, %arg16: memref<256x20xf32, #tpu.memory_space<vmem>>, %arg17: memref<64x50xf32, #tpu.memory_space<vmem>>, %arg18: memref<800x500xf32, #tpu.memory_space<vmem>>, %arg19: memref<2x!tpu.dma_semaphore, #tpu.memory_space<semaphore_mem>>) attributes {dimension_semantics = [#tpu.dimension_semantics<arbitrary>], iteration_bounds = array<i64: 1>, scalar_prefetch = 0 : i64, scratch_operands = 6 : i64, tpu.core_type = #tpu.core_type<tc>, window_params = [{pipeline_mode = #tpu.pipeline_mode<synchronous>, transform_indices = @transform_0, window_bounds = array<i64: 2, 16, 16, 4>}, {pipeline_mode = #tpu.pipeline_mode<synchronous>, transform_indices = @transform_1, window_bounds = array<i64: 100, 20>}, {pipeline_mode = #tpu.pipeline_mode<synchronous>, transform_indices = @transform_2, window_bounds = array<i64: 1, 20>}, {pipeline_mode = #tpu.pipeline_mode<synchronous>, transform_indices = @transform_3, window_bounds = array<i64: 1, 20>}, {pipeline_mode = #tpu.pipeline_mode<synchronous>, transform_indices = @transform_4, window_bounds = array<i64: 500, 50>}, {pipeline_mode = #tpu.pipeline_mode<synchronous>, transform_indices = @transform_5, window_bounds = array<i64: 1, 50>}, {pipeline_mode = #tpu.pipeline_mode<synchronous>, transform_indices = @transform_6, window_bounds = array<i64: 1, 50>}, {}, {pipeline_mode = #tpu.pipeline_mode<synchronous>, transform_indices = @transform_8, window_bounds = array<i64: 1, 500>}, {pipeline_mode = #tpu.pipeline_mode<synchronous>, transform_indices = @transform_9, window_bounds = array<i64: 1, 500>}, {pipeline_mode = #tpu.pipeline_mode<synchronous>, transform_indices = @transform_10, window_bounds = array<i64: 500, 10>}, {pipeline_mode = #tpu.pipeline_mode<synchronous>, transform_indices = @transform_11, window_bounds = array<i64: 1, 10>}, {pipeline_mode = #tpu.pipeline_mode<synchronous>, transform_indices = @transform_12, window_bounds = array<i64: 2, 10>}]} {
    %c0_i32 = arith.constant 0 : i32
    %c0_i32_0 = arith.constant 0 : i32
    %c0_i32_1 = arith.constant 0 : i32
    %0 = tpu.memref_slice %arg8[%c0_i32_0, %c0_i32_1] : memref<800x500xf32, #tpu.memory_space<any>> -> memref<400x500xf32, #tpu.memory_space<any>>
    %c0_i32_2 = arith.constant 0 : i32
    %c0_i32_3 = arith.constant 0 : i32
    %1 = tpu.memref_slice %arg18[%c0_i32_2, %c0_i32_3] : memref<800x500xf32, #tpu.memory_space<vmem>> -> memref<400x500xf32, #tpu.memory_space<vmem>>
    %2 = tpu.memref_slice %arg19[%c0_i32] : memref<2x!tpu.dma_semaphore, #tpu.memory_space<semaphore_mem>> -> memref<1x!tpu.dma_semaphore, #tpu.memory_space<semaphore_mem>>
    %3 = tpu.memref_squeeze %2 : memref<1x!tpu.dma_semaphore, #tpu.memory_space<semaphore_mem>> -> memref<!tpu.dma_semaphore, #tpu.memory_space<semaphore_mem>>
    tpu.enqueue_dma source(%0 : memref<400x500xf32, #tpu.memory_space<any>>) target(%1 : memref<400x500xf32, #tpu.memory_space<vmem>>) target_semaphore(%3 : memref<!tpu.dma_semaphore, #tpu.memory_space<semaphore_mem>>)
    %c1_i32 = arith.constant 1 : i32
    %c400_i32 = arith.constant 400 : i32
    %c0_i32_4 = arith.constant 0 : i32
    %4 = tpu.memref_slice %arg8[%c400_i32, %c0_i32_4] : memref<800x500xf32, #tpu.memory_space<any>> -> memref<400x500xf32, #tpu.memory_space<any>>
    %c400_i32_5 = arith.constant 400 : i32
    %c0_i32_6 = arith.constant 0 : i32
    %5 = tpu.memref_slice %arg18[%c400_i32_5, %c0_i32_6] : memref<800x500xf32, #tpu.memory_space<vmem>> -> memref<400x500xf32, #tpu.memory_space<vmem>>
    %6 = tpu.memref_slice %arg19[%c1_i32] : memref<2x!tpu.dma_semaphore, #tpu.memory_space<semaphore_mem>> -> memref<1x!tpu.dma_semaphore, #tpu.memory_space<semaphore_mem>>
    %7 = tpu.memref_squeeze %6 : memref<1x!tpu.dma_semaphore, #tpu.memory_space<semaphore_mem>> -> memref<!tpu.dma_semaphore, #tpu.memory_space<semaphore_mem>>
    tpu.enqueue_dma source(%4 : memref<400x500xf32, #tpu.memory_space<any>>) target(%5 : memref<400x500xf32, #tpu.memory_space<vmem>>) target_semaphore(%7 : memref<!tpu.dma_semaphore, #tpu.memory_space<semaphore_mem>>)
    %c0 = arith.constant 0 : index
    %c0_7 = arith.constant 0 : index
    %c0_8 = arith.constant 0 : index
    %c0_9 = arith.constant 0 : index
    %8 = vector.load %arg1[%c0, %c0_7, %c0_8, %c0_9] : memref<2x16x16x4xf32, #tpu.memory_space<vmem>>, vector<2x16x16x4xf32>
    %cst = arith.constant 0.000000e+00 : f32
    %9 = vector.broadcast %cst : f32 to vector<2x2x20x4xf32>
    %cst_10 = arith.constant 0.000000e+00 : f32
    %10 = vector.broadcast %cst_10 : f32 to vector<2x16x2x4xf32>
    %c0_11 = arith.constant 0 : index
    %c0_12 = arith.constant 0 : index
    %c0_13 = arith.constant 0 : index
    %c0_14 = arith.constant 0 : index
    %11 = vector.load %arg14[%c0_11, %c0_12, %c0_13, %c0_14] : memref<2x20x20x4xf32, #tpu.memory_space<vmem>>, vector<2x2x20x4xf32>
    tpu.vector_store %arg14[%c0_11, %c0_12, %c0_13, %c0_14], %9 {strides = array<i32>} : memref<2x20x20x4xf32, #tpu.memory_space<vmem>>, vector<2x2x20x4xf32>,
    %c0_15 = arith.constant 0 : index
    %c18 = arith.constant 18 : index
    %c0_16 = arith.constant 0 : index
    %c0_17 = arith.constant 0 : index
    %12 = vector.load %arg14[%c0_15, %c18, %c0_16, %c0_17] : memref<2x20x20x4xf32, #tpu.memory_space<vmem>>, vector<2x2x20x4xf32>
    tpu.vector_store %arg14[%c0_15, %c18, %c0_16, %c0_17], %9 {strides = array<i32>} : memref<2x20x20x4xf32, #tpu.memory_space<vmem>>, vector<2x2x20x4xf32>,
    %c0_18 = arith.constant 0 : index
    %c2 = arith.constant 2 : index
    %c0_19 = arith.constant 0 : index
    %c0_20 = arith.constant 0 : index
    %13 = vector.load %arg14[%c0_18, %c2, %c0_19, %c0_20] : memref<2x20x20x4xf32, #tpu.memory_space<vmem>>, vector<2x16x2x4xf32>
    tpu.vector_store %arg14[%c0_18, %c2, %c0_19, %c0_20], %10 {strides = array<i32>} : memref<2x20x20x4xf32, #tpu.memory_space<vmem>>, vector<2x16x2x4xf32>,
    %c0_21 = arith.constant 0 : index
    %c2_22 = arith.constant 2 : index
    %c18_23 = arith.constant 18 : index
    %c0_24 = arith.constant 0 : index
    %14 = vector.load %arg14[%c0_21, %c2_22, %c18_23, %c0_24] : memref<2x20x20x4xf32, #tpu.memory_space<vmem>>, vector<2x16x2x4xf32>
    tpu.vector_store %arg14[%c0_21, %c2_22, %c18_23, %c0_24], %10 {strides = array<i32>} : memref<2x20x20x4xf32, #tpu.memory_space<vmem>>, vector<2x16x2x4xf32>,
    %c0_25 = arith.constant 0 : index
    %c2_26 = arith.constant 2 : index
    %c2_27 = arith.constant 2 : index
    %c0_28 = arith.constant 0 : index
    %15 = vector.load %arg14[%c0_25, %c2_26, %c2_27, %c0_28] : memref<2x20x20x4xf32, #tpu.memory_space<vmem>>, vector<2x16x16x4xf32>
    tpu.vector_store %arg14[%c0_25, %c2_26, %c2_27, %c0_28], %8 {strides = array<i32>} : memref<2x20x20x4xf32, #tpu.memory_space<vmem>>, vector<2x16x16x4xf32>,
    %c0_29 = arith.constant 0 : index
    %c0_30 = arith.constant 0 : index
    %c0_31 = arith.constant 0 : index
    %c0_32 = arith.constant 0 : index
    %16 = vector.load %arg14[%c0_29, %c0_30, %c0_31, %c0_32] : memref<2x20x20x4xf32, #tpu.memory_space<vmem>>, vector<2x20x16x4xf32>
    %c0_33 = arith.constant 0 : index
    %c0_34 = arith.constant 0 : index
    %c1 = arith.constant 1 : index
    %c0_35 = arith.constant 0 : index
    %17 = vector.load %arg14[%c0_33, %c0_34, %c1, %c0_35] : memref<2x20x20x4xf32, #tpu.memory_space<vmem>>, vector<2x20x16x4xf32>
    %c0_36 = arith.constant 0 : index
    %c0_37 = arith.constant 0 : index
    %c2_38 = arith.constant 2 : index
    %c0_39 = arith.constant 0 : index
    %18 = vector.load %arg14[%c0_36, %c0_37, %c2_38, %c0_39] : memref<2x20x20x4xf32, #tpu.memory_space<vmem>>, vector<2x20x16x4xf32>
    %c0_40 = arith.constant 0 : index
    %c0_41 = arith.constant 0 : index
    %c3 = arith.constant 3 : index
    %c0_42 = arith.constant 0 : index
    %19 = vector.load %arg14[%c0_40, %c0_41, %c3, %c0_42] : memref<2x20x20x4xf32, #tpu.memory_space<vmem>>, vector<2x20x16x4xf32>
    %c0_43 = arith.constant 0 : index
    %c0_44 = arith.constant 0 : index
    %c4 = arith.constant 4 : index
    %c0_45 = arith.constant 0 : index
    %20 = vector.load %arg14[%c0_43, %c0_44, %c4, %c0_45] : memref<2x20x20x4xf32, #tpu.memory_space<vmem>>, vector<2x20x16x4xf32>
    %21 = tpu.concatenate %16, %17, %18, %19, %20 in 3 : vector<2x20x16x4xf32>, vector<2x20x16x4xf32>, vector<2x20x16x4xf32>, vector<2x20x16x4xf32>, vector<2x20x16x4xf32> -> vector<2x20x16x20xf32>
    %22 = vector.extract_strided_slice %21 {offsets = [0, 0, 0, 0], sizes = [2, 16, 16, 20], strides = [1, 1, 1, 1]} : vector<2x20x16x20xf32> to vector<2x16x16x20xf32>
    %23 = vector.extract_strided_slice %21 {offsets = [0, 1, 0, 0], sizes = [2, 16, 16, 20], strides = [1, 1, 1, 1]} : vector<2x20x16x20xf32> to vector<2x16x16x20xf32>
    %24 = vector.extract_strided_slice %21 {offsets = [0, 2, 0, 0], sizes = [2, 16, 16, 20], strides = [1, 1, 1, 1]} : vector<2x20x16x20xf32> to vector<2x16x16x20xf32>
    %25 = vector.extract_strided_slice %21 {offsets = [0, 3, 0, 0], sizes = [2, 16, 16, 20], strides = [1, 1, 1, 1]} : vector<2x20x16x20xf32> to vector<2x16x16x20xf32>
    %26 = vector.extract_strided_slice %21 {offsets = [0, 4, 0, 0], sizes = [2, 16, 16, 20], strides = [1, 1, 1, 1]} : vector<2x20x16x20xf32> to vector<2x16x16x20xf32>
    %27 = tpu.concatenate %22, %23, %24, %25, %26 in 3 : vector<2x16x16x20xf32>, vector<2x16x16x20xf32>, vector<2x16x16x20xf32>, vector<2x16x16x20xf32>, vector<2x16x16x20xf32> -> vector<2x16x16x100xf32>
    %28 = vector.shape_cast %27 : vector<2x16x16x100xf32> to vector<512x100xf32>
    %c0_46 = arith.constant 0 : index
    %c0_47 = arith.constant 0 : index
    %29 = vector.load %arg2[%c0_46, %c0_47] : memref<100x20xf32, #tpu.memory_space<vmem>>, vector<100x20xf32>
    %cst_48 = arith.constant dense<0.000000e+00> : vector<512x20xf32>
    %30 = tpu.matmul %28, %29, %cst_48 {dimension_numbers = #tpu.dot_dimension_numbers<[1], [0], [0], [1], [0, 0, 1, 1], [], []>} : vector<512x100xf32>, vector<100x20xf32>, vector<512x20xf32> -> vector<512x20xf32>
    %c0_49 = arith.constant 0 : index
    %c0_50 = arith.constant 0 : index
    %31 = vector.load %arg3[%c0_49, %c0_50] : memref<1x20xf32, #tpu.memory_space<vmem>>, vector<1x20xf32>
    %c0_51 = arith.constant 0 : index
    %c0_52 = arith.constant 0 : index
    %32 = vector.load %arg4[%c0_51, %c0_52] : memref<1x20xf32, #tpu.memory_space<vmem>>, vector<1x20xf32>
    %cst_53 = arith.constant dense<0.000000e+00> : vector<20xf32>
    %33 = vector.multi_reduction <add>, %30, %cst_53 [0] : vector<512x20xf32> to vector<20xf32>
    %34 = vector.shape_cast %33 : vector<20xf32> to vector<1x20xf32>
    %cst_54 = arith.constant 5.120000e+02 : f32
    %35 = vector.broadcast %cst_54 : f32 to vector<1x20xf32>
    %36 = arith.divf %34, %35 : vector<1x20xf32>
    %37 = vector.broadcast %36 : vector<1x20xf32> to vector<512x20xf32>
    %38 = arith.subf %30, %37 : vector<512x20xf32>
    %39 = arith.mulf %38, %38 : vector<512x20xf32>
    %cst_55 = arith.constant dense<0.000000e+00> : vector<20xf32>
    %40 = vector.multi_reduction <add>, %39, %cst_55 [0] : vector<512x20xf32> to vector<20xf32>
    %41 = vector.shape_cast %40 : vector<20xf32> to vector<1x20xf32>
    %cst_56 = arith.constant 5.120000e+02 : f32
    %42 = vector.broadcast %cst_56 : f32 to vector<1x20xf32>
    %43 = arith.divf %41, %42 : vector<1x20xf32>
    %cst_57 = arith.constant 9.99999974E-6 : f32
    %44 = vector.broadcast %cst_57 : f32 to vector<1x20xf32>
    %45 = arith.addf %43, %44 : vector<1x20xf32>
    %46 = math.rsqrt %45 : vector<1x20xf32>
    %47 = arith.mulf %31, %46 : vector<1x20xf32>
    %48 = vector.broadcast %47 : vector<1x20xf32> to vector<512x20xf32>
    %49 = arith.mulf %38, %48 : vector<512x20xf32>
    %50 = vector.broadcast %32 : vector<1x20xf32> to vector<512x20xf32>
    %51 = arith.addf %49, %50 : vector<512x20xf32>
    %cst_58 = arith.constant 0.000000e+00 : f32
    %52 = vector.broadcast %cst_58 : f32 to vector<512x20xf32>
    %53 = arith.maximumf %51, %52 : vector<512x20xf32>
    %54 = vector.shape_cast %53 : vector<512x20xf32> to vector<16x2x16x20xf32>
    %55 = vector.extract_strided_slice %54 {offsets = [0, 0, 0, 0], sizes = [16, 1, 16, 20], strides = [1, 1, 1, 1]} : vector<16x2x16x20xf32> to vector<16x1x16x20xf32>
    %56 = vector.shape_cast %55 : vector<16x1x16x20xf32> to vector<16x16x20xf32>
    %57 = vector.extract_strided_slice %54 {offsets = [0, 1, 0, 0], sizes = [16, 1, 16, 20], strides = [1, 1, 1, 1]} : vector<16x2x16x20xf32> to vector<16x1x16x20xf32>
    %58 = vector.shape_cast %57 : vector<16x1x16x20xf32> to vector<16x16x20xf32>
    %59 = arith.maximumf %56, %58 : vector<16x16x20xf32>
    %60 = vector.shape_cast %59 : vector<16x16x20xf32> to vector<256x20xf32>
    %c0_59 = arith.constant 0 : index
    %c0_60 = arith.constant 0 : index
    %61 = vector.load %arg16[%c0_59, %c0_60] : memref<256x20xf32, #tpu.memory_space<vmem>>, vector<256x20xf32>
    tpu.vector_store %arg16[%c0_59, %c0_60], %60 {strides = array<i32>} : memref<256x20xf32, #tpu.memory_space<vmem>>, vector<256x20xf32>,
    %c0_61 = arith.constant 0 : index
    %c0_62 = arith.constant 0 : index
    %62 = tpu.strided_load %arg16[%c0_61, %c0_62] {strides = array<i32: 2, 1>} : memref<256x20xf32, #tpu.memory_space<vmem>>, vector<128x20xf32>
    %c1_63 = arith.constant 1 : index
    %c0_64 = arith.constant 0 : index
    %63 = tpu.strided_load %arg16[%c1_63, %c0_64] {strides = array<i32: 2, 1>} : memref<256x20xf32, #tpu.memory_space<vmem>>, vector<128x20xf32>
    %64 = arith.maximumf %62, %63 : vector<128x20xf32>
    %65 = vector.shape_cast %64 : vector<128x20xf32> to vector<2x8x8x20xf32>
    %cst_65 = arith.constant 0.000000e+00 : f32
    %66 = vector.broadcast %cst_65 : f32 to vector<2x2x12x20xf32>
    %cst_66 = arith.constant 0.000000e+00 : f32
    %67 = vector.broadcast %cst_66 : f32 to vector<2x8x2x20xf32>
    %c0_67 = arith.constant 0 : index
    %c0_68 = arith.constant 0 : index
    %c0_69 = arith.constant 0 : index
    %c0_70 = arith.constant 0 : index
    %68 = vector.load %arg15[%c0_67, %c0_68, %c0_69, %c0_70] : memref<2x12x12x20xf32, #tpu.memory_space<vmem>>, vector<2x2x12x20xf32>
    tpu.vector_store %arg15[%c0_67, %c0_68, %c0_69, %c0_70], %66 {strides = array<i32>} : memref<2x12x12x20xf32, #tpu.memory_space<vmem>>, vector<2x2x12x20xf32>,
    %c0_71 = arith.constant 0 : index
    %c10 = arith.constant 10 : index
    %c0_72 = arith.constant 0 : index
    %c0_73 = arith.constant 0 : index
    %69 = vector.load %arg15[%c0_71, %c10, %c0_72, %c0_73] : memref<2x12x12x20xf32, #tpu.memory_space<vmem>>, vector<2x2x12x20xf32>
    tpu.vector_store %arg15[%c0_71, %c10, %c0_72, %c0_73], %66 {strides = array<i32>} : memref<2x12x12x20xf32, #tpu.memory_space<vmem>>, vector<2x2x12x20xf32>,
    %c0_74 = arith.constant 0 : index
    %c2_75 = arith.constant 2 : index
    %c0_76 = arith.constant 0 : index
    %c0_77 = arith.constant 0 : index
    %70 = vector.load %arg15[%c0_74, %c2_75, %c0_76, %c0_77] : memref<2x12x12x20xf32, #tpu.memory_space<vmem>>, vector<2x8x2x20xf32>
    tpu.vector_store %arg15[%c0_74, %c2_75, %c0_76, %c0_77], %67 {strides = array<i32>} : memref<2x12x12x20xf32, #tpu.memory_space<vmem>>, vector<2x8x2x20xf32>,
    %c0_78 = arith.constant 0 : index
    %c2_79 = arith.constant 2 : index
    %c10_80 = arith.constant 10 : index
    %c0_81 = arith.constant 0 : index
    %71 = vector.load %arg15[%c0_78, %c2_79, %c10_80, %c0_81] : memref<2x12x12x20xf32, #tpu.memory_space<vmem>>, vector<2x8x2x20xf32>
    tpu.vector_store %arg15[%c0_78, %c2_79, %c10_80, %c0_81], %67 {strides = array<i32>} : memref<2x12x12x20xf32, #tpu.memory_space<vmem>>, vector<2x8x2x20xf32>,
    %c0_82 = arith.constant 0 : index
    %c2_83 = arith.constant 2 : index
    %c2_84 = arith.constant 2 : index
    %c0_85 = arith.constant 0 : index
    %72 = vector.load %arg15[%c0_82, %c2_83, %c2_84, %c0_85] : memref<2x12x12x20xf32, #tpu.memory_space<vmem>>, vector<2x8x8x20xf32>
    tpu.vector_store %arg15[%c0_82, %c2_83, %c2_84, %c0_85], %65 {strides = array<i32>} : memref<2x12x12x20xf32, #tpu.memory_space<vmem>>, vector<2x8x8x20xf32>,
    %c0_86 = arith.constant 0 : index
    %c0_87 = arith.constant 0 : index
    %c0_88 = arith.constant 0 : index
    %c0_89 = arith.constant 0 : index
    %73 = vector.load %arg15[%c0_86, %c0_87, %c0_88, %c0_89] : memref<2x12x12x20xf32, #tpu.memory_space<vmem>>, vector<2x12x8x20xf32>
    %c0_90 = arith.constant 0 : index
    %c0_91 = arith.constant 0 : index
    %c1_92 = arith.constant 1 : index
    %c0_93 = arith.constant 0 : index
    %74 = vector.load %arg15[%c0_90, %c0_91, %c1_92, %c0_93] : memref<2x12x12x20xf32, #tpu.memory_space<vmem>>, vector<2x12x8x20xf32>
    %c0_94 = arith.constant 0 : index
    %c0_95 = arith.constant 0 : index
    %c2_96 = arith.constant 2 : index
    %c0_97 = arith.constant 0 : index
    %75 = vector.load %arg15[%c0_94, %c0_95, %c2_96, %c0_97] : memref<2x12x12x20xf32, #tpu.memory_space<vmem>>, vector<2x12x8x20xf32>
    %c0_98 = arith.constant 0 : index
    %c0_99 = arith.constant 0 : index
    %c3_100 = arith.constant 3 : index
    %c0_101 = arith.constant 0 : index
    %76 = vector.load %arg15[%c0_98, %c0_99, %c3_100, %c0_101] : memref<2x12x12x20xf32, #tpu.memory_space<vmem>>, vector<2x12x8x20xf32>
    %c0_102 = arith.constant 0 : index
    %c0_103 = arith.constant 0 : index
    %c4_104 = arith.constant 4 : index
    %c0_105 = arith.constant 0 : index
    %77 = vector.load %arg15[%c0_102, %c0_103, %c4_104, %c0_105] : memref<2x12x12x20xf32, #tpu.memory_space<vmem>>, vector<2x12x8x20xf32>
    %78 = tpu.concatenate %73, %74, %75, %76, %77 in 3 : vector<2x12x8x20xf32>, vector<2x12x8x20xf32>, vector<2x12x8x20xf32>, vector<2x12x8x20xf32>, vector<2x12x8x20xf32> -> vector<2x12x8x100xf32>
    %79 = vector.extract_strided_slice %78 {offsets = [0, 0, 0, 0], sizes = [2, 8, 8, 100], strides = [1, 1, 1, 1]} : vector<2x12x8x100xf32> to vector<2x8x8x100xf32>
    %80 = vector.extract_strided_slice %78 {offsets = [0, 1, 0, 0], sizes = [2, 8, 8, 100], strides = [1, 1, 1, 1]} : vector<2x12x8x100xf32> to vector<2x8x8x100xf32>
    %81 = vector.extract_strided_slice %78 {offsets = [0, 2, 0, 0], sizes = [2, 8, 8, 100], strides = [1, 1, 1, 1]} : vector<2x12x8x100xf32> to vector<2x8x8x100xf32>
    %82 = vector.extract_strided_slice %78 {offsets = [0, 3, 0, 0], sizes = [2, 8, 8, 100], strides = [1, 1, 1, 1]} : vector<2x12x8x100xf32> to vector<2x8x8x100xf32>
    %83 = vector.extract_strided_slice %78 {offsets = [0, 4, 0, 0], sizes = [2, 8, 8, 100], strides = [1, 1, 1, 1]} : vector<2x12x8x100xf32> to vector<2x8x8x100xf32>
    %84 = tpu.concatenate %79, %80, %81, %82, %83 in 3 : vector<2x8x8x100xf32>, vector<2x8x8x100xf32>, vector<2x8x8x100xf32>, vector<2x8x8x100xf32>, vector<2x8x8x100xf32> -> vector<2x8x8x500xf32>
    %85 = vector.shape_cast %84 : vector<2x8x8x500xf32> to vector<128x500xf32>
    %c0_106 = arith.constant 0 : index
    %c0_107 = arith.constant 0 : index
    %86 = vector.load %arg5[%c0_106, %c0_107] : memref<500x50xf32, #tpu.memory_space<vmem>>, vector<500x50xf32>
    %cst_108 = arith.constant dense<0.000000e+00> : vector<128x50xf32>
    %87 = tpu.matmul %85, %86, %cst_108 {dimension_numbers = #tpu.dot_dimension_numbers<[1], [0], [0], [1], [0, 0, 1, 1], [], []>} : vector<128x500xf32>, vector<500x50xf32>, vector<128x50xf32> -> vector<128x50xf32>
    %c0_109 = arith.constant 0 : index
    %c0_110 = arith.constant 0 : index
    %88 = vector.load %arg6[%c0_109, %c0_110] : memref<1x50xf32, #tpu.memory_space<vmem>>, vector<1x50xf32>
    %c0_111 = arith.constant 0 : index
    %c0_112 = arith.constant 0 : index
    %89 = vector.load %arg7[%c0_111, %c0_112] : memref<1x50xf32, #tpu.memory_space<vmem>>, vector<1x50xf32>
    %cst_113 = arith.constant dense<0.000000e+00> : vector<50xf32>
    %90 = vector.multi_reduction <add>, %87, %cst_113 [0] : vector<128x50xf32> to vector<50xf32>
    %91 = vector.shape_cast %90 : vector<50xf32> to vector<1x50xf32>
    %cst_114 = arith.constant 1.280000e+02 : f32
    %92 = vector.broadcast %cst_114 : f32 to vector<1x50xf32>
    %93 = arith.divf %91, %92 : vector<1x50xf32>
    %94 = vector.broadcast %93 : vector<1x50xf32> to vector<128x50xf32>
    %95 = arith.subf %87, %94 : vector<128x50xf32>
    %96 = arith.mulf %95, %95 : vector<128x50xf32>
    %cst_115 = arith.constant dense<0.000000e+00> : vector<50xf32>
    %97 = vector.multi_reduction <add>, %96, %cst_115 [0] : vector<128x50xf32> to vector<50xf32>
    %98 = vector.shape_cast %97 : vector<50xf32> to vector<1x50xf32>
    %cst_116 = arith.constant 1.280000e+02 : f32
    %99 = vector.broadcast %cst_116 : f32 to vector<1x50xf32>
    %100 = arith.divf %98, %99 : vector<1x50xf32>
    %cst_117 = arith.constant 9.99999974E-6 : f32
    %101 = vector.broadcast %cst_117 : f32 to vector<1x50xf32>
    %102 = arith.addf %100, %101 : vector<1x50xf32>
    %103 = math.rsqrt %102 : vector<1x50xf32>
    %104 = arith.mulf %88, %103 : vector<1x50xf32>
    %105 = vector.broadcast %104 : vector<1x50xf32> to vector<128x50xf32>
    %106 = arith.mulf %95, %105 : vector<128x50xf32>
    %107 = vector.broadcast %89 : vector<1x50xf32> to vector<128x50xf32>
    %108 = arith.addf %106, %107 : vector<128x50xf32>
    %cst_118 = arith.constant 0.000000e+00 : f32
    %109 = vector.broadcast %cst_118 : f32 to vector<128x50xf32>
    %110 = arith.maximumf %108, %109 : vector<128x50xf32>
    %111 = vector.shape_cast %110 : vector<128x50xf32> to vector<8x2x8x50xf32>
    %112 = vector.extract_strided_slice %111 {offsets = [0, 0, 0, 0], sizes = [8, 1, 8, 50], strides = [1, 1, 1, 1]} : vector<8x2x8x50xf32> to vector<8x1x8x50xf32>
    %113 = vector.shape_cast %112 : vector<8x1x8x50xf32> to vector<8x8x50xf32>
    %114 = vector.extract_strided_slice %111 {offsets = [0, 1, 0, 0], sizes = [8, 1, 8, 50], strides = [1, 1, 1, 1]} : vector<8x2x8x50xf32> to vector<8x1x8x50xf32>
    %115 = vector.shape_cast %114 : vector<8x1x8x50xf32> to vector<8x8x50xf32>
    %116 = arith.maximumf %113, %115 : vector<8x8x50xf32>
    %117 = vector.shape_cast %116 : vector<8x8x50xf32> to vector<64x50xf32>
    %c0_119 = arith.constant 0 : index
    %c0_120 = arith.constant 0 : index
    %118 = vector.load %arg17[%c0_119, %c0_120] : memref<64x50xf32, #tpu.memory_space<vmem>>, vector<64x50xf32>
    tpu.vector_store %arg17[%c0_119, %c0_120], %117 {strides = array<i32>} : memref<64x50xf32, #tpu.memory_space<vmem>>, vector<64x50xf32>,
    %c0_121 = arith.constant 0 : index
    %c0_122 = arith.constant 0 : index
    %119 = tpu.strided_load %arg17[%c0_121, %c0_122] {strides = array<i32: 2, 1>} : memref<64x50xf32, #tpu.memory_space<vmem>>, vector<32x50xf32>
    %c1_123 = arith.constant 1 : index
    %c0_124 = arith.constant 0 : index
    %120 = tpu.strided_load %arg17[%c1_123, %c0_124] {strides = array<i32: 2, 1>} : memref<64x50xf32, #tpu.memory_space<vmem>>, vector<32x50xf32>
    %121 = arith.maximumf %119, %120 : vector<32x50xf32>
    %122 = vector.shape_cast %121 : vector<32x50xf32> to vector<2x16x50xf32>
    %123 = vector.extract_strided_slice %122 {offsets = [0, 0, 0], sizes = [2, 1, 50], strides = [1, 1, 1]} : vector<2x16x50xf32> to vector<2x1x50xf32>
    %124 = vector.shape_cast %123 : vector<2x1x50xf32> to vector<2x50xf32>
    %125 = vector.extract_strided_slice %122 {offsets = [0, 1, 0], sizes = [2, 1, 50], strides = [1, 1, 1]} : vector<2x16x50xf32> to vector<2x1x50xf32>
    %126 = vector.shape_cast %125 : vector<2x1x50xf32> to vector<2x50xf32>
    %127 = vector.extract_strided_slice %122 {offsets = [0, 2, 0], sizes = [2, 1, 50], strides = [1, 1, 1]} : vector<2x16x50xf32> to vector<2x1x50xf32>
    %128 = vector.shape_cast %127 : vector<2x1x50xf32> to vector<2x50xf32>
    %129 = vector.extract_strided_slice %122 {offsets = [0, 3, 0], sizes = [2, 1, 50], strides = [1, 1, 1]} : vector<2x16x50xf32> to vector<2x1x50xf32>
    %130 = vector.shape_cast %129 : vector<2x1x50xf32> to vector<2x50xf32>
    %131 = vector.extract_strided_slice %122 {offsets = [0, 4, 0], sizes = [2, 1, 50], strides = [1, 1, 1]} : vector<2x16x50xf32> to vector<2x1x50xf32>
    %132 = vector.shape_cast %131 : vector<2x1x50xf32> to vector<2x50xf32>
    %133 = vector.extract_strided_slice %122 {offsets = [0, 5, 0], sizes = [2, 1, 50], strides = [1, 1, 1]} : vector<2x16x50xf32> to vector<2x1x50xf32>
    %134 = vector.shape_cast %133 : vector<2x1x50xf32> to vector<2x50xf32>
    %135 = vector.extract_strided_slice %122 {offsets = [0, 6, 0], sizes = [2, 1, 50], strides = [1, 1, 1]} : vector<2x16x50xf32> to vector<2x1x50xf32>
    %136 = vector.shape_cast %135 : vector<2x1x50xf32> to vector<2x50xf32>
    %137 = vector.extract_strided_slice %122 {offsets = [0, 7, 0], sizes = [2, 1, 50], strides = [1, 1, 1]} : vector<2x16x50xf32> to vector<2x1x50xf32>
    %138 = vector.shape_cast %137 : vector<2x1x50xf32> to vector<2x50xf32>
    %139 = vector.extract_strided_slice %122 {offsets = [0, 8, 0], sizes = [2, 1, 50], strides = [1, 1, 1]} : vector<2x16x50xf32> to vector<2x1x50xf32>
    %140 = vector.shape_cast %139 : vector<2x1x50xf32> to vector<2x50xf32>
    %141 = vector.extract_strided_slice %122 {offsets = [0, 9, 0], sizes = [2, 1, 50], strides = [1, 1, 1]} : vector<2x16x50xf32> to vector<2x1x50xf32>
    %142 = vector.shape_cast %141 : vector<2x1x50xf32> to vector<2x50xf32>
    %143 = vector.extract_strided_slice %122 {offsets = [0, 10, 0], sizes = [2, 1, 50], strides = [1, 1, 1]} : vector<2x16x50xf32> to vector<2x1x50xf32>
    %144 = vector.shape_cast %143 : vector<2x1x50xf32> to vector<2x50xf32>
    %145 = vector.extract_strided_slice %122 {offsets = [0, 11, 0], sizes = [2, 1, 50], strides = [1, 1, 1]} : vector<2x16x50xf32> to vector<2x1x50xf32>
    %146 = vector.shape_cast %145 : vector<2x1x50xf32> to vector<2x50xf32>
    %147 = vector.extract_strided_slice %122 {offsets = [0, 12, 0], sizes = [2, 1, 50], strides = [1, 1, 1]} : vector<2x16x50xf32> to vector<2x1x50xf32>
    %148 = vector.shape_cast %147 : vector<2x1x50xf32> to vector<2x50xf32>
    %149 = vector.extract_strided_slice %122 {offsets = [0, 13, 0], sizes = [2, 1, 50], strides = [1, 1, 1]} : vector<2x16x50xf32> to vector<2x1x50xf32>
    %150 = vector.shape_cast %149 : vector<2x1x50xf32> to vector<2x50xf32>
    %151 = vector.extract_strided_slice %122 {offsets = [0, 14, 0], sizes = [2, 1, 50], strides = [1, 1, 1]} : vector<2x16x50xf32> to vector<2x1x50xf32>
    %152 = vector.shape_cast %151 : vector<2x1x50xf32> to vector<2x50xf32>
    %153 = vector.extract_strided_slice %122 {offsets = [0, 15, 0], sizes = [2, 1, 50], strides = [1, 1, 1]} : vector<2x16x50xf32> to vector<2x1x50xf32>
    %154 = vector.shape_cast %153 : vector<2x1x50xf32> to vector<2x50xf32>
    %155 = tpu.concatenate %124, %126, %128, %130, %132, %134, %136, %138, %140, %142, %144, %146, %148, %150, %152, %154 in 1 : vector<2x50xf32>, vector<2x50xf32>, vector<2x50xf32>, vector<2x50xf32>, vector<2x50xf32>, vector<2x50xf32>, vector<2x50xf32>, vector<2x50xf32>, vector<2x50xf32>, vector<2x50xf32>, vector<2x50xf32>, vector<2x50xf32>, vector<2x50xf32>, vector<2x50xf32>, vector<2x50xf32>, vector<2x50xf32> -> vector<2x800xf32>
    %c0_i32_125 = arith.constant 0 : i32
    %c0_i32_126 = arith.constant 0 : i32
    %c0_i32_127 = arith.constant 0 : i32
    %156 = tpu.memref_slice %arg8[%c0_i32_126, %c0_i32_127] : memref<800x500xf32, #tpu.memory_space<any>> -> memref<400x500xf32, #tpu.memory_space<any>>
    %c0_i32_128 = arith.constant 0 : i32
    %c0_i32_129 = arith.constant 0 : i32
    %157 = tpu.memref_slice %arg18[%c0_i32_128, %c0_i32_129] : memref<800x500xf32, #tpu.memory_space<vmem>> -> memref<400x500xf32, #tpu.memory_space<vmem>>
    %158 = tpu.memref_slice %arg19[%c0_i32_125] : memref<2x!tpu.dma_semaphore, #tpu.memory_space<semaphore_mem>> -> memref<1x!tpu.dma_semaphore, #tpu.memory_space<semaphore_mem>>
    %159 = tpu.memref_squeeze %158 : memref<1x!tpu.dma_semaphore, #tpu.memory_space<semaphore_mem>> -> memref<!tpu.dma_semaphore, #tpu.memory_space<semaphore_mem>>
    tpu.wait_dma2 semaphore(%159 : memref<!tpu.dma_semaphore, #tpu.memory_space<semaphore_mem>>) src(%156 : memref<400x500xf32, #tpu.memory_space<any>>) dst(%157 : memref<400x500xf32, #tpu.memory_space<vmem>>)
    %160 = vector.extract_strided_slice %155 {offsets = [0, 0], sizes = [2, 400], strides = [1, 1]} : vector<2x800xf32> to vector<2x400xf32>
    %c0_130 = arith.constant 0 : index
    %c0_131 = arith.constant 0 : index
    %161 = vector.load %arg18[%c0_130, %c0_131] : memref<800x500xf32, #tpu.memory_space<vmem>>, vector<400x500xf32>
    %cst_132 = arith.constant dense<0.000000e+00> : vector<2x500xf32>
    %162 = tpu.matmul %160, %161, %cst_132 {dimension_numbers = #tpu.dot_dimension_numbers<[1], [0], [0], [1], [0, 0, 1, 1], [], []>} : vector<2x400xf32>, vector<400x500xf32>, vector<2x500xf32> -> vector<2x500xf32>
    %c1_i32_133 = arith.constant 1 : i32
    %c400_i32_134 = arith.constant 400 : i32
    %c0_i32_135 = arith.constant 0 : i32
    %163 = tpu.memref_slice %arg8[%c400_i32_134, %c0_i32_135] : memref<800x500xf32, #tpu.memory_space<any>> -> memref<400x500xf32, #tpu.memory_space<any>>
    %c400_i32_136 = arith.constant 400 : i32
    %c0_i32_137 = arith.constant 0 : i32
    %164 = tpu.memref_slice %arg18[%c400_i32_136, %c0_i32_137] : memref<800x500xf32, #tpu.memory_space<vmem>> -> memref<400x500xf32, #tpu.memory_space<vmem>>
    %165 = tpu.memref_slice %arg19[%c1_i32_133] : memref<2x!tpu.dma_semaphore, #tpu.memory_space<semaphore_mem>> -> memref<1x!tpu.dma_semaphore, #tpu.memory_space<semaphore_mem>>
    %166 = tpu.memref_squeeze %165 : memref<1x!tpu.dma_semaphore, #tpu.memory_space<semaphore_mem>> -> memref<!tpu.dma_semaphore, #tpu.memory_space<semaphore_mem>>
    tpu.wait_dma2 semaphore(%166 : memref<!tpu.dma_semaphore, #tpu.memory_space<semaphore_mem>>) src(%163 : memref<400x500xf32, #tpu.memory_space<any>>) dst(%164 : memref<400x500xf32, #tpu.memory_space<vmem>>)
    %167 = vector.extract_strided_slice %155 {offsets = [0, 400], sizes = [2, 400], strides = [1, 1]} : vector<2x800xf32> to vector<2x400xf32>
    %c400 = arith.constant 400 : index
    %c0_138 = arith.constant 0 : index
    %168 = vector.load %arg18[%c400, %c0_138] : memref<800x500xf32, #tpu.memory_space<vmem>>, vector<400x500xf32>
    %cst_139 = arith.constant dense<0.000000e+00> : vector<2x500xf32>
    %169 = tpu.matmul %167, %168, %cst_139 {dimension_numbers = #tpu.dot_dimension_numbers<[1], [0], [0], [1], [0, 0, 1, 1], [], []>} : vector<2x400xf32>, vector<400x500xf32>, vector<2x500xf32> -> vector<2x500xf32>
    %170 = arith.addf %162, %169 : vector<2x500xf32>
    %c0_140 = arith.constant 0 : index
    %c0_141 = arith.constant 0 : index
    %171 = vector.load %arg9[%c0_140, %c0_141] : memref<1x500xf32, #tpu.memory_space<vmem>>, vector<1x500xf32>
    %c0_142 = arith.constant 0 : index
    %c0_143 = arith.constant 0 : index
    %172 = vector.load %arg10[%c0_142, %c0_143] : memref<1x500xf32, #tpu.memory_space<vmem>>, vector<1x500xf32>
    %cst_144 = arith.constant dense<0.000000e+00> : vector<500xf32>
    %173 = vector.multi_reduction <add>, %170, %cst_144 [0] : vector<2x500xf32> to vector<500xf32>
    %174 = vector.shape_cast %173 : vector<500xf32> to vector<1x500xf32>
    %cst_145 = arith.constant 2.000000e+00 : f32
    %175 = vector.broadcast %cst_145 : f32 to vector<1x500xf32>
    %176 = arith.divf %174, %175 : vector<1x500xf32>
    %177 = vector.broadcast %176 : vector<1x500xf32> to vector<2x500xf32>
    %178 = arith.subf %170, %177 : vector<2x500xf32>
    %179 = arith.mulf %178, %178 : vector<2x500xf32>
    %cst_146 = arith.constant dense<0.000000e+00> : vector<500xf32>
    %180 = vector.multi_reduction <add>, %179, %cst_146 [0] : vector<2x500xf32> to vector<500xf32>
    %181 = vector.shape_cast %180 : vector<500xf32> to vector<1x500xf32>
    %cst_147 = arith.constant 2.000000e+00 : f32
    %182 = vector.broadcast %cst_147 : f32 to vector<1x500xf32>
    %183 = arith.divf %181, %182 : vector<1x500xf32>
    %cst_148 = arith.constant 9.99999974E-6 : f32
    %184 = vector.broadcast %cst_148 : f32 to vector<1x500xf32>
    %185 = arith.addf %183, %184 : vector<1x500xf32>
    %186 = math.rsqrt %185 : vector<1x500xf32>
    %187 = arith.mulf %171, %186 : vector<1x500xf32>
    %188 = vector.broadcast %187 : vector<1x500xf32> to vector<2x500xf32>
    %189 = arith.mulf %178, %188 : vector<2x500xf32>
    %190 = vector.broadcast %172 : vector<1x500xf32> to vector<2x500xf32>
    %191 = arith.addf %189, %190 : vector<2x500xf32>
    %c0_149 = arith.constant 0 : index
    %c0_150 = arith.constant 0 : index
    %192 = vector.load %arg11[%c0_149, %c0_150] : memref<500x10xf32, #tpu.memory_space<vmem>>, vector<500x10xf32>
    %cst_151 = arith.constant dense<0.000000e+00> : vector<2x10xf32>
    %193 = tpu.matmul %191, %192, %cst_151 {dimension_numbers = #tpu.dot_dimension_numbers<[1], [0], [0], [1], [0, 0, 1, 1], [], []>} : vector<2x500xf32>, vector<500x10xf32>, vector<2x10xf32> -> vector<2x10xf32>
    %c0_152 = arith.constant 0 : index
    %c0_153 = arith.constant 0 : index
    %194 = vector.load %arg12[%c0_152, %c0_153] : memref<1x10xf32, #tpu.memory_space<vmem>>, vector<1x10xf32>
    %195 = vector.broadcast %194 : vector<1x10xf32> to vector<2x10xf32>
    %196 = arith.addf %193, %195 : vector<2x10xf32>
    %c0_154 = arith.constant 0 : index
    %c0_155 = arith.constant 0 : index
    %197 = vector.load %arg13[%c0_154, %c0_155] : memref<2x10xf32, #tpu.memory_space<vmem>>, vector<2x10xf32>
    tpu.vector_store %arg13[%c0_154, %c0_155], %196 {strides = array<i32>} : memref<2x10xf32, #tpu.memory_space<vmem>>, vector<2x10xf32>,
    return
  }
  func.func @transform_0(%arg0: i32) -> (i32, i32, i32, i32) {
    %c0_i32 = arith.constant 0 : i32
    %c0_i32_0 = arith.constant 0 : i32
    %c0_i32_1 = arith.constant 0 : i32
    %c0_i32_2 = arith.constant 0 : i32
    %c0_i32_3 = arith.constant 0 : i32
    return %c0_i32, %c0_i32_0, %c0_i32_1, %c0_i32_2 : i32, i32, i32, i32
  }
  func.func @transform_1(%arg0: i32) -> (i32, i32) {
    %c0_i32 = arith.constant 0 : i32
    %c0_i32_0 = arith.constant 0 : i32
    %c0_i32_1 = arith.constant 0 : i32
    return %c0_i32, %c0_i32_0 : i32, i32
  }
  func.func @transform_2(%arg0: i32) -> (i32, i32) {
    %c0_i32 = arith.constant 0 : i32
    %c0_i32_0 = arith.constant 0 : i32
    %c0_i32_1 = arith.constant 0 : i32
    return %c0_i32, %c0_i32_0 : i32, i32
  }
  func.func @transform_3(%arg0: i32) -> (i32, i32) {
    %c0_i32 = arith.constant 0 : i32
    %c0_i32_0 = arith.constant 0 : i32
    %c0_i32_1 = arith.constant 0 : i32
    return %c0_i32, %c0_i32_0 : i32, i32
  }
  func.func @transform_4(%arg0: i32) -> (i32, i32) {
    %c0_i32 = arith.constant 0 : i32
    %c0_i32_0 = arith.constant 0 : i32
    %c0_i32_1 = arith.constant 0 : i32
    return %c0_i32, %c0_i32_0 : i32, i32
  }
  func.func @transform_5(%arg0: i32) -> (i32, i32) {
    %c0_i32 = arith.constant 0 : i32
    %c0_i32_0 = arith.constant 0 : i32
    %c0_i32_1 = arith.constant 0 : i32
    return %c0_i32, %c0_i32_0 : i32, i32
  }
  func.func @transform_6(%arg0: i32) -> (i32, i32) {
    %c0_i32 = arith.constant 0 : i32
    %c0_i32_0 = arith.constant 0 : i32
    %c0_i32_1 = arith.constant 0 : i32
    return %c0_i32, %c0_i32_0 : i32, i32
  }
  func.func @transform_8(%arg0: i32) -> (i32, i32) {
    %c0_i32 = arith.constant 0 : i32
    %c0_i32_0 = arith.constant 0 : i32
    %c0_i32_1 = arith.constant 0 : i32
    return %c0_i32, %c0_i32_0 : i32, i32
  }
  func.func @transform_9(%arg0: i32) -> (i32, i32) {
    %c0_i32 = arith.constant 0 : i32
    %c0_i32_0 = arith.constant 0 : i32
    %c0_i32_1 = arith.constant 0 : i32
    return %c0_i32, %c0_i32_0 : i32, i32
  }
  func.func @transform_10(%arg0: i32) -> (i32, i32) {
    %c0_i32 = arith.constant 0 : i32
    %c0_i32_0 = arith.constant 0 : i32
    %c0_i32_1 = arith.constant 0 : i32
    return %c0_i32, %c0_i32_0 : i32, i32
  }
  func.func @transform_11(%arg0: i32) -> (i32, i32) {
    %c0_i32 = arith.constant 0 : i32
    %c0_i32_0 = arith.constant 0 : i32
    %c0_i32_1 = arith.constant 0 : i32
    return %c0_i32, %c0_i32_0 : i32, i32
  }
  func.func @transform_12(%arg0: i32) -> (i32, i32) {
    %c0_i32 = arith.constant 0 : i32
    %c0_i32_0 = arith.constant 0 : i32
    %c0_i32_1 = arith.constant 0 : i32
    return %c0_i32, %c0_i32_0 : i32, i32
  }
}

</mosaic_0001>

<bundles_post_ra>
// kernel: lenet_forward.1
= control target key start
LH: loop header
LB: loop body
LE: loop exit
PB: predicated region body
PF: predicated region fallthrough
CT: control target
= control target key end

     0   :  { %17 = vsyncpa [#allocation9], 0  ;;  %s15231_s0 = inlined_call_operand.vmem [shape: f32[2,16,16,4], index: 0, kind: input, shape index: {}]   ;;  %s15232_s1 = inlined_call_operand.vmem [shape: f32[100,20], index: 1, kind: input, shape index: {}]   ;;  %s15233_s2 = inlined_call_operand.hbm [shape: f32[1,20], index: 2, kind: input, shape index: {}]   ;;  %s15234_s3 = inlined_call_operand.hbm [shape: f32[1,20], index: 3, kind: input, shape index: {}]   ;;  %s15235_s4 = inlined_call_operand.vmem [shape: f32[500,50], index: 4, kind: input, shape index: {}]   ;;  %s15236_s5 = inlined_call_operand.hbm [shape: f32[1,50], index: 5, kind: input, shape index: {}]   ;;  %s15237_s6 = inlined_call_operand.hbm [shape: f32[1,50], index: 6, kind: input, shape index: {}]   ;;  %s15238_s7 = inlined_call_operand.hbm [shape: f32[800,500], index: 7, kind: input, shape index: {}]   ;;  %s15239_s8 = inlined_call_operand.hbm [shape: f32[1,500], index: 8, kind: input, shape index: {}]   ;;  %s15240_s9 = inlined_call_operand.hbm [shape: f32[1,500], index: 9, kind: input, shape index: {}]   ;;  %s15241_s10 = inlined_call_operand.vmem [shape: f32[500,10], index: 10, kind: input, shape index: {}]   ;;  %s15242_s11 = inlined_call_operand.hbm [shape: f32[1,10], index: 11, kind: input, shape index: {}]   ;;  %s15243_s12 = inlined_call_operand.hbm [shape: f32[2,10], index: 12, kind: output, shape index: {}]  }
   0x1   :  { %18 = vsyncpa [#allocation12], 0 }
   0x2   :  { %19 = vsyncpa [#allocation15], 0 }
   0x3   :  { %20 = vsyncpa [#allocation18], 0 }
   0x4   :  { %21 = vsyncpa [#allocation10], 0  ;;  %s8709_s21 = smov [#allocation11]   ;;  %s8710_s23 = smov [#allocation14]  }
   0x5   :  { %s42_s22 = sshll.u32 %s8709_s21, 4  ;;  %s64_s24 = sshll.u32 %s8710_s23, 4  ;;  %s43_s22 = int_to_ptr.vmem [resolvable:$true] %s42_s22  ;;  %s65_s24 = int_to_ptr.vmem [resolvable:$true] %s64_s24 }
   0x6   :  { %s8500_s25 = scalar_lea.vmem %s43_s22, 16  ;;  %s8504_s26 = scalar_lea.vmem %s43_s22, 32 }
   0x7   :  { %p8501_p0 = scmp.ne.s32.totalorder %s43_s22, %s8500_s25  ;;  %p8505_p1 = scmp.lt.s32.totalorder %s43_s22, %s43_s22 }
   0x8   :  { %p8506_p2 = scmp.lt.s32.totalorder %s8504_s26, %s8500_s25 }
   0xa   :  { %p8507_p3 = por %p8506_p2, %p8505_p1 }
   0xc   :  { %p8508_p4 = pnand %p8507_p3, %p8501_p0 }
   0xe   :  { %8511 = shalt.err (!%p8508_p4)
}
   0xf   :  { %45 = dma.hbm_to_vmem [thread:$0]  %s15234_s3, 16, %s43_s22, [#allocation12]  }
  0x10   :  { %s8520_s29 = scalar_lea.vmem %s65_s24, 16  ;;  %s8524_s30 = scalar_lea.vmem %s65_s24, 32 }
  0x11   :  { %p8521_p5 = scmp.ne.s32.totalorder %s65_s24, %s8520_s29  ;;  %p8525_p6 = scmp.lt.s32.totalorder %s65_s24, %s65_s24 }
  0x12   :  { %p8526_p7 = scmp.lt.s32.totalorder %s8524_s30, %s8520_s29 }
  0x14   :  { %p8527_p8 = por %p8526_p7, %p8525_p6 }
  0x16   :  { %p8528_p9 = pnand %p8527_p8, %p8521_p5 }
  0x18   :  { %8531 = shalt.err (!%p8528_p9)
}
  0x19   :  { %67 = dma.hbm_to_vmem [thread:$0]  %s15237_s6, 16, %s65_s24, [#allocation15]  }
  0x1a   :  { %s8711_s15 = smov [#allocation17]   ;;  %s8712_s17 = smov [#allocation8]  }
  0x1b   :  { %s84_s16 = sshll.u32 %s8711_s15, 4  ;;  %s32_s18 = sshll.u32 %s8712_s17, 4  ;;  %s85_s16 = int_to_ptr.vmem [resolvable:$true] %s84_s16  ;;  %s33_s18 = int_to_ptr.vmem [resolvable:$true] %s32_s18 }
  0x1c   :  { %s8540_s19 = scalar_lea.vmem %s85_s16, 64  ;;  %p8545_p11 = scmp.lt.s32.totalorder %s85_s16, %s85_s16 }
  0x1d   :  { %p8541_p10 = scmp.ne.s32.totalorder %s85_s16, %s8540_s19  ;;  %p8546_p12 = scmp.lt.s32.totalorder %s8540_s19, %s8540_s19 }
  0x1f   :  { %p8547_p13 = por %p8546_p12, %p8545_p11 }
  0x21   :  { %p8548_p0 = pnand %p8547_p13, %p8541_p10 }
  0x23   :  { %8551 = shalt.err (!%p8548_p0)
}
  0x24   :  { %87 = dma.hbm_to_vmem [thread:$0]  %s15240_s9, 64, %s85_s16, [#allocation18]  }
  0x25   :  { %s8560_s21 = scalar_lea.vmem %s33_s18, 16  ;;  %s8564_s6 = scalar_lea.vmem %s33_s18, 32 }
  0x26   :  { %p8561_p1 = scmp.ne.s32.totalorder %s33_s18, %s8560_s21  ;;  %p8565_p2 = scmp.lt.s32.totalorder %s33_s18, %s33_s18 }
  0x27   :  { %p8566_p3 = scmp.lt.s32.totalorder %s8564_s6, %s8560_s21 }
  0x29   :  { %p8567_p4 = por %p8566_p3, %p8565_p2 }
  0x2b   :  { %p8568_p5 = pnand %p8567_p4, %p8561_p1 }
  0x2d   :  { %8571 = shalt.err (!%p8568_p5)
}
  0x2e   :  { %35 = dma.hbm_to_vmem [thread:$0]  %s15233_s2, 16, %s33_s18, [#allocation9]  }
  0x2f   :  { %s8713_s24 = smov [#allocation13]   ;;  %s8714_s26 = smov [#allocation16]  }
  0x30   :  { %s54_s25 = sshll.u32 %s8713_s24, 4  ;;  %s74_s27 = sshll.u32 %s8714_s26, 4  ;;  %s55_s25 = int_to_ptr.vmem [resolvable:$true] %s54_s25  ;;  %s75_s27 = int_to_ptr.vmem [resolvable:$true] %s74_s27 }
  0x31   :  { %s8580_s28 = scalar_lea.vmem %s55_s25, 16  ;;  %s8584_s9 = scalar_lea.vmem %s55_s25, 32 }
  0x32   :  { %p8581_p6 = scmp.ne.s32.totalorder %s55_s25, %s8580_s28  ;;  %p8585_p7 = scmp.lt.s32.totalorder %s55_s25, %s55_s25 }
  0x33   :  { %p8586_p8 = scmp.lt.s32.totalorder %s8584_s9, %s8580_s28 }
  0x35   :  { %p8587_p9 = por %p8586_p8, %p8585_p7 }
  0x37   :  { %p8588_p10 = pnand %p8587_p9, %p8581_p6 }
  0x39   :  { %8591 = shalt.err (!%p8588_p10)
}
  0x3a   :  { %57 = dma.hbm_to_vmem [thread:$0]  %s15236_s5, 16, %s55_s25, [#allocation12]  }
  0x3b   :  { %s8600_s13 = scalar_lea.vmem %s75_s27, 64  ;;  %p8605_p12 = scmp.lt.s32.totalorder %s75_s27, %s75_s27 }
  0x3c   :  { %p8601_p11 = scmp.ne.s32.totalorder %s75_s27, %s8600_s13  ;;  %p8606_p13 = scmp.lt.s32.totalorder %s8600_s13, %s8600_s13 }
  0x3e   :  { %p8607_p0 = por %p8606_p13, %p8605_p12 }
  0x40   :  { %p8608_p1 = pnand %p8607_p0, %p8601_p11 }
  0x42   :  { %8611 = shalt.err (!%p8608_p1)
}
  0x43   :  { %77 = dma.hbm_to_vmem [thread:$0]  %s15239_s8, 64, %s75_s27, [#allocation15]  }
  0x44   :  { %s8715_s15 = smov [#allocation19]  }
  0x45   :  { %s96_s16 = sshll.u32 %s8715_s15, 4  ;;  %s97_s16 = int_to_ptr.vmem [resolvable:$true] %s96_s16 }
  0x46   :  { %s8620_s17 = scalar_lea.vmem %s97_s16, 16  ;;  %s8624_s18 = scalar_lea.vmem %s97_s16, 32 }
  0x47   :  { %p8621_p2 = scmp.ne.s32.totalorder %s97_s16, %s8620_s17  ;;  %p8625_p3 = scmp.lt.s32.totalorder %s97_s16, %s97_s16 }
  0x48   :  { %p8626_p4 = scmp.lt.s32.totalorder %s8624_s18, %s8620_s17 }
  0x4a   :  { %p8627_p5 = por %p8626_p4, %p8625_p3 }
  0x4c   :  { %p8628_p6 = pnand %p8627_p5, %p8621_p2 }
  0x4e   :  { %8631 = shalt.err (!%p8628_p6)
}
  0x4f   :  { %99 = dma.hbm_to_vmem [thread:$0]  %s15242_s11, 16, %s97_s16, [#allocation18]  }
  0x50   :  { %8695 = dma.done.wait [#allocation9], 16  }
  0x51   :  { %8696 = vsyncadd [#allocation9], 4294967280 }
  0x52   :  { %8697 = dma.done.wait [#allocation12], 32  }
  0x53   :  { %8698 = vsyncadd [#allocation12], 4294967264 }
  0x54   :  { %8699 = dma.done.wait [#allocation15], 80  }
  0x55   :  { %8700 = vsyncadd [#allocation15], 4294967216 }
  0x56   :  { %8701 = dma.done.wait [#allocation18], 80  }
  0x57   :  { %8702 = vsyncadd [#allocation18], 4294967216  ;;  %vm210_vm0 = vcmask 31744   ;;  %vm213_vm1 = vcmask 27648   ;;  %v15244_v0 = vmov 0.0   ;;  %vm238_vm2 = vcmask 25600  }
  0x58   :  { %215 = vst.msk [vmem:[#allocation2 + $0x18] sm:$0xff] %vm210_vm0, %v15244_v0  ;;  %216 = vst.msk [vmem:[#allocation2 + $0x20] sm:$0xff] %vm210_vm0, %v15244_v0  ;;  %v146_v1 = vld [vmem:[%s15231_s0] sm:$0xff]  ;;  %v147_v2 = vld [vmem:[%s15231_s0 + $0x8] sm:$0xff]  ;;  %s8717_s22 = smov 4   ;;  %s8720_s25 = smov 16  }
  0x59   :  { %211 = vst.msk [vmem:[#allocation2] sm:$0xff] %vm210_vm0, %v15244_v0  ;;  %212 = vst.msk [vmem:[#allocation2 + $0x8] sm:$0xff] %vm210_vm0, %v15244_v0  ;;  %v148_v3 = vld [vmem:[%s15231_s0 + $0x10] sm:$0xff]  ;;  %v149_v8 = vld [vmem:[%s15231_s0 + $0x18] sm:$0xff]  ;;  %vm3214_vm3 = vcmask 162816   ;;  %vm3680_vm4 = vcmask 1043456  }
  0x5a   :  { %218 = vst.msk [vmem:[#allocation2 + $0x1e0] sm:$0xff] %vm210_vm0, %v15244_v0  ;;  %219 = vst.msk [vmem:[#allocation2 + $0x1e8] sm:$0xff] %vm210_vm0, %v15244_v0  ;;  %v150_v9 = vld [vmem:[%s15231_s0 + $0x20] sm:$0xff]  ;;  %v151_v10 = vld [vmem:[%s15231_s0 + $0x28] sm:$0xff]  ;;  %vm2208_vm5 = vcmask 97280   ;;  %vm2127_vm6 = vcmask 64512  }
  0x5b   :  { %221 = vst.msk [vmem:[#allocation2 + $0x1f8] sm:$0xff] %vm210_vm0, %v15244_v0  ;;  %222 = vst.msk [vmem:[#allocation2 + $0x200] sm:$0xff] %vm210_vm0, %v15244_v0  ;;  %v152_v11 = vld [vmem:[%s15231_s0 + $0x30] sm:$0xff]  ;;  %v153_v12 = vld [vmem:[%s15231_s0 + $0x38] sm:$0xff]  ;;  %vm2289_vm7 = vcmask 130048   ;;  %s8721_s14 = smov 20  }
  0x5c   :  { %225 = vst.msk [vmem:[#allocation2 + $0x1b0] sm:$0xff] %vm210_vm0, %v15244_v0  ;;  %226 = vst.msk [vmem:[#allocation2 + $0x1b8] sm:$0xff] %vm210_vm0, %v15244_v0  ;;  %v154_v13 = vld [vmem:[%s15231_s0 + $0x40] sm:$0xff]  ;;  %v155_v14 = vld [vmem:[%s15231_s0 + $0x48] sm:$0xff]  ;;  %s8722_s17 = smov 40   ;;  %s8723_s11 = smov 60  }
  0x5d   :  { %228 = vst.msk [vmem:[#allocation2 + $0x1c8] sm:$0xff] %vm210_vm0, %v15244_v0  ;;  %229 = vst.msk [vmem:[#allocation2 + $0x1d0] sm:$0xff] %vm210_vm0, %v15244_v0  ;;  %v156_v15 = vld [vmem:[%s15231_s0 + $0x50] sm:$0xff]  ;;  %v157_v16 = vld [vmem:[%s15231_s0 + $0x58] sm:$0xff]  ;;  %s8724_s26 = smov 80   ;;  %vm3279_vm8 = vcmask 326656  }
  0x5e   :  { %231 = vst.msk [vmem:[#allocation2 + $0x390] sm:$0xff] %vm210_vm0, %v15244_v0  ;;  %232 = vst.msk [vmem:[#allocation2 + $0x398] sm:$0xff] %vm210_vm0, %v15244_v0  ;;  %v158_v17 = vld [vmem:[%s15231_s0 + $0x60] sm:$0xff]  ;;  %v159_v18 = vld [vmem:[%s15231_s0 + $0x68] sm:$0xff]  ;;  %vm3344_vm9 = vcmask 490496   ;;  %vm3409_vm10 = vcmask 654336  }
  0x5f   :  { %234 = vst.msk [vmem:[#allocation2 + $0x3a8] sm:$0xff] %vm210_vm0, %v15244_v0  ;;  %235 = vst.msk [vmem:[#allocation2 + $0x3b0] sm:$0xff] %vm210_vm0, %v15244_v0  ;;  %v449_v4 = vld [vmem:[#allocation2 + $0x19] sm:$0xff]  ;;  %v160_v19 = vld [vmem:[%s15231_s0 + $0x70] sm:$0xff]  ;;  %vm3487_vm11 = vcmask 818176   ;;  %vm4819_vm12 = vcmask 158720  }
  0x60   :  { %217 = vst.msk [vmem:[#allocation2 + $0x28] sm:$0xf] %vm213_vm1, %v15244_v0  ;;  %214 = vst.msk [vmem:[#allocation2 + $0x10] sm:$0xf] %vm213_vm1, %v15244_v0  ;;  %v447_v5 = vld [vmem:[#allocation2 + $0x1] sm:$0xff]  ;;  %851 = vrot.lane.b32.xlu1 %v449_v4, %s8717_s22  ;;  %v161_v20 = vld [vmem:[%s15231_s0 + $0x78] sm:$0xff] }
  0x61   :  { %220 = vst.msk [vmem:[#allocation2 + $0x1f0] sm:$0xf] %vm213_vm1, %v15244_v0  ;;  %223 = vst.msk [vmem:[#allocation2 + $0x208] sm:$0xf] %vm213_vm1, %v15244_v0  ;;  %847 = vrot.lane.b32.xlu0 %v447_v5, %s8717_s22  ;;  %v162_v21 = vld [vmem:[%s15231_s0 + $0x80] sm:$0xff]  ;;  %v163_v22 = vld [vmem:[%s15231_s0 + $0x88] sm:$0xff] }
  0x62   :  { %227 = vst.msk [vmem:[#allocation2 + $0x1c0] sm:$0xf] %vm213_vm1, %v15244_v0  ;;  %230 = vst.msk [vmem:[#allocation2 + $0x1d8] sm:$0xf] %vm213_vm1, %v15244_v0  ;;  %v164_v23 = vld [vmem:[%s15231_s0 + $0x90] sm:$0xff]  ;;  %v165_v26 = vld [vmem:[%s15231_s0 + $0x98] sm:$0xff] }
  0x63   :  { %233 = vst.msk [vmem:[#allocation2 + $0x3a0] sm:$0xf] %vm213_vm1, %v15244_v0  ;;  %236 = vst.msk [vmem:[#allocation2 + $0x3b8] sm:$0xf] %vm213_vm1, %v15244_v0  ;;  %v166_v27 = vld [vmem:[%s15231_s0 + $0xa0] sm:$0xff]  ;;  %v167_v28 = vld [vmem:[%s15231_s0 + $0xa8] sm:$0xff] }
  0x64   :  { %239 = vst.msk [vmem:[#allocation2 + $0x30] sm:$0x3] %vm238_vm2, %v15244_v0  ;;  %240 = vst.msk [vmem:[#allocation2 + $0x48] sm:$0x3] %vm238_vm2, %v15244_v0  ;;  %v168_v29 = vld [vmem:[%s15231_s0 + $0xb0] sm:$0xff]  ;;  %v169_v32 = vld [vmem:[%s15231_s0 + $0xb8] sm:$0xff] }
  0x65   :  { %241 = vst.msk [vmem:[#allocation2 + $0x60] sm:$0x3] %vm238_vm2, %v15244_v0  ;;  %242 = vst.msk [vmem:[#allocation2 + $0x78] sm:$0x3] %vm238_vm2, %v15244_v0  ;;  %v170_v35 = vld [vmem:[%s15231_s0 + $0xc0] sm:$0xff]  ;;  %v171_v36 = vld [vmem:[%s15231_s0 + $0xc8] sm:$0xff] }
  0x66   :  { %243 = vst.msk [vmem:[#allocation2 + $0x90] sm:$0x3] %vm238_vm2, %v15244_v0  ;;  %244 = vst.msk [vmem:[#allocation2 + $0xa8] sm:$0x3] %vm238_vm2, %v15244_v0  ;;  %v172_v37 = vld [vmem:[%s15231_s0 + $0xd0] sm:$0xff]  ;;  %v173_v40 = vld [vmem:[%s15231_s0 + $0xd8] sm:$0xff] }
  0x67   :  { %245 = vst.msk [vmem:[#allocation2 + $0xc0] sm:$0x3] %vm238_vm2, %v15244_v0  ;;  %246 = vst.msk [vmem:[#allocation2 + $0xd8] sm:$0x3] %vm238_vm2, %v15244_v0  ;;  %v450_v6 = vld [vmem:[#allocation2 + $0x21] sm:$0xff]  ;;  %v448_v7 = vld [vmem:[#allocation2 + $0x9] sm:$0xff] }
  0x68   :  { %247 = vst.msk [vmem:[#allocation2 + $0xf0] sm:$0x3] %vm238_vm2, %v15244_v0  ;;  %248 = vst.msk [vmem:[#allocation2 + $0x108] sm:$0x3] %vm238_vm2, %v15244_v0  ;;  %853 = vrot.lane.b32.xlu1 %v450_v6, %s8717_s22  ;;  %849 = vrot.lane.b32.xlu0 %v448_v7, %s8717_s22  ;;  %v174_v41 = vld [vmem:[%s15231_s0 + $0xe0] sm:$0xff]  ;;  %v175_v42 = vld [vmem:[%s15231_s0 + $0xe8] sm:$0xff] }
  0x69   :  { %249 = vst.msk [vmem:[#allocation2 + $0x120] sm:$0x3] %vm238_vm2, %v15244_v0  ;;  %250 = vst.msk [vmem:[#allocation2 + $0x138] sm:$0x3] %vm238_vm2, %v15244_v0  ;;  %v176_v43 = vld [vmem:[%s15231_s0 + $0xf0] sm:$0xff]  ;;  %v177_v44 = vld [vmem:[%s15231_s0 + $0xf8] sm:$0xff] }
  0x6a   :  { %251 = vst.msk [vmem:[#allocation2 + $0x150] sm:$0x3] %vm238_vm2, %v15244_v0  ;;  %252 = vst.msk [vmem:[#allocation2 + $0x168] sm:$0x3] %vm238_vm2, %v15244_v0  ;;  %v178_v47 = vld [vmem:[%s15231_s0 + $0x100] sm:$0xff]  ;;  %v179_v48 = vld [vmem:[%s15231_s0 + $0x108] sm:$0xff] }
  0x6b   :  { %253 = vst.msk [vmem:[#allocation2 + $0x180] sm:$0x3] %vm238_vm2, %v15244_v0  ;;  %254 = vst.msk [vmem:[#allocation2 + $0x198] sm:$0x3] %vm238_vm2, %v15244_v0  ;;  %v180_v49 = vld [vmem:[%s15231_s0 + $0x110] sm:$0xff]  ;;  %v181_v50 = vld [vmem:[%s15231_s0 + $0x118] sm:$0xff] }
  0x6c   :  { %255 = vst.msk [vmem:[#allocation2 + $0x210] sm:$0x3] %vm238_vm2, %v15244_v0  ;;  %256 = vst.msk [vmem:[#allocation2 + $0x228] sm:$0x3] %vm238_vm2, %v15244_v0  ;;  %v182_v51 = vld [vmem:[%s15231_s0 + $0x120] sm:$0xff]  ;;  %v183_v52 = vld [vmem:[%s15231_s0 + $0x128] sm:$0xff] }
  0x6d   :  { %257 = vst.msk [vmem:[#allocation2 + $0x240] sm:$0x3] %vm238_vm2, %v15244_v0  ;;  %258 = vst.msk [vmem:[#allocation2 + $0x258] sm:$0x3] %vm238_vm2, %v15244_v0  ;;  %v184_v53 = vld [vmem:[%s15231_s0 + $0x130] sm:$0xff]  ;;  %v185_v54 = vld [vmem:[%s15231_s0 + $0x138] sm:$0xff] }
  0x6e   :  { %259 = vst.msk [vmem:[#allocation2 + $0x270] sm:$0x3] %vm238_vm2, %v15244_v0  ;;  %260 = vst.msk [vmem:[#allocation2 + $0x288] sm:$0x3] %vm238_vm2, %v15244_v0  ;;  %v186_v57 = vld [vmem:[%s15231_s0 + $0x140] sm:$0xff]  ;;  %v187_v58 = vld [vmem:[%s15231_s0 + $0x148] sm:$0xff] }
  0x6f   :  { %261 = vst.msk [vmem:[#allocation2 + $0x2a0] sm:$0x3] %vm238_vm2, %v15244_v0  ;;  %262 = vst.msk [vmem:[#allocation2 + $0x2b8] sm:$0x3] %vm238_vm2, %v15244_v0  ;;  %v188_v59 = vld [vmem:[%s15231_s0 + $0x150] sm:$0xff]  ;;  %v189_v60 = vld [vmem:[%s15231_s0 + $0x158] sm:$0xff] }
  0x70   :  { %263 = vst.msk [vmem:[#allocation2 + $0x2d0] sm:$0x3] %vm238_vm2, %v15244_v0  ;;  %264 = vst.msk [vmem:[#allocation2 + $0x2e8] sm:$0x3] %vm238_vm2, %v15244_v0  ;;  %v190_v61 = vld [vmem:[%s15231_s0 + $0x160] sm:$0xff]  ;;  %v191_v62 = vld [vmem:[%s15231_s0 + $0x168] sm:$0xff] }
  0x71   :  { %265 = vst.msk [vmem:[#allocation2 + $0x300] sm:$0x3] %vm238_vm2, %v15244_v0  ;;  %266 = vst.msk [vmem:[#allocation2 + $0x318] sm:$0x3] %vm238_vm2, %v15244_v0  ;;  %v194_v4 = vld [vmem:[%s15231_s0 + $0x180] sm:$0xff]  ;;  %v195_v7 = vld [vmem:[%s15231_s0 + $0x188] sm:$0xff] }
  0x72   :  { %267 = vst.msk [vmem:[#allocation2 + $0x330] sm:$0x3] %vm238_vm2, %v15244_v0  ;;  %268 = vst.msk [vmem:[#allocation2 + $0x348] sm:$0x3] %vm238_vm2, %v15244_v0  ;;  %vm4837_vm13 = vcmask 156672   ;;  %s8725_s23 = smov 100  }
  0x73   :  { %269 = vst.msk [vmem:[#allocation2 + $0x360] sm:$0x3] %vm238_vm2, %v15244_v0  ;;  %270 = vst.msk [vmem:[#allocation2 + $0x378] sm:$0x3] %vm238_vm2, %v15244_v0  ;;  %s8726_s13 = smov 72   ;;  %vm5716_vm14 = vcmask 588800  }
  0x74   :  { %271 = vst.msk [vmem:[#allocation2 + $0x42] sm:$0x3] %vm238_vm2, %v15244_v0  ;;  %272 = vst.msk [vmem:[#allocation2 + $0x5a] sm:$0x3] %vm238_vm2, %v15244_v0  ;;  %s8727_s16 = smov 44   ;;  %vm5829_vm15 = vcmask 949248  }
  0x75   :  { %273 = vst.msk [vmem:[#allocation2 + $0x72] sm:$0x3] %vm238_vm2, %v15244_v0  ;;  %274 = vst.msk [vmem:[#allocation2 + $0x8a] sm:$0x3] %vm238_vm2, %v15244_v0  ;;  %vm6173_vm1 = vcmask 408576   ;;  %s8729_s28 = smov 94  }
  0x76   :  { %275 = vst.msk [vmem:[#allocation2 + $0xa2] sm:$0x3] %vm238_vm2, %v15244_v0  ;;  %276 = vst.msk [vmem:[#allocation2 + $0xba] sm:$0x3] %vm238_vm2, %v15244_v0  ;;  %s8731_s9 = smov 88  }
  0x77   :  { %277 = vst.msk [vmem:[#allocation2 + $0xd2] sm:$0x3] %vm238_vm2, %v15244_v0  ;;  %278 = vst.msk [vmem:[#allocation2 + $0xea] sm:$0x3] %vm238_vm2, %v15244_v0 }
  0x78   :  { %279 = vst.msk [vmem:[#allocation2 + $0x102] sm:$0x3] %vm238_vm2, %v15244_v0  ;;  %280 = vst.msk [vmem:[#allocation2 + $0x11a] sm:$0x3] %vm238_vm2, %v15244_v0 }
  0x79   :  { %281 = vst.msk [vmem:[#allocation2 + $0x132] sm:$0x3] %vm238_vm2, %v15244_v0  ;;  %282 = vst.msk [vmem:[#allocation2 + $0x14a] sm:$0x3] %vm238_vm2, %v15244_v0 }
  0x7a   :  { %283 = vst.msk [vmem:[#allocation2 + $0x162] sm:$0x3] %vm238_vm2, %v15244_v0  ;;  %284 = vst.msk [vmem:[#allocation2 + $0x17a] sm:$0x3] %vm238_vm2, %v15244_v0 }
  0x7b   :  { %285 = vst.msk [vmem:[#allocation2 + $0x192] sm:$0x3] %vm238_vm2, %v15244_v0  ;;  %286 = vst.msk [vmem:[#allocation2 + $0x1aa] sm:$0x3] %vm238_vm2, %v15244_v0 }
  0x7c   :  { %287 = vst.msk [vmem:[#allocation2 + $0x222] sm:$0x3] %vm238_vm2, %v15244_v0  ;;  %288 = vst.msk [vmem:[#allocation2 + $0x23a] sm:$0x3] %vm238_vm2, %v15244_v0 }
  0x7d   :  { %289 = vst.msk [vmem:[#allocation2 + $0x252] sm:$0x3] %vm238_vm2, %v15244_v0  ;;  %290 = vst.msk [vmem:[#allocation2 + $0x26a] sm:$0x3] %vm238_vm2, %v15244_v0 }
  0x7e   :  { %291 = vst.msk [vmem:[#allocation2 + $0x282] sm:$0x3] %vm238_vm2, %v15244_v0  ;;  %292 = vst.msk [vmem:[#allocation2 + $0x29a] sm:$0x3] %vm238_vm2, %v15244_v0 }
  0x7f   :  { %293 = vst.msk [vmem:[#allocation2 + $0x2b2] sm:$0x3] %vm238_vm2, %v15244_v0  ;;  %294 = vst.msk [vmem:[#allocation2 + $0x2ca] sm:$0x3] %vm238_vm2, %v15244_v0 }
  0x80   :  { %295 = vst.msk [vmem:[#allocation2 + $0x2e2] sm:$0x3] %vm238_vm2, %v15244_v0  ;;  %296 = vst.msk [vmem:[#allocation2 + $0x2fa] sm:$0x3] %vm238_vm2, %v15244_v0 }
  0x81   :  { %297 = vst.msk [vmem:[#allocation2 + $0x312] sm:$0x3] %vm238_vm2, %v15244_v0  ;;  %298 = vst.msk [vmem:[#allocation2 + $0x32a] sm:$0x3] %vm238_vm2, %v15244_v0 }
  0x82   :  { %299 = vst.msk [vmem:[#allocation2 + $0x342] sm:$0x3] %vm238_vm2, %v15244_v0  ;;  %300 = vst.msk [vmem:[#allocation2 + $0x35a] sm:$0x3] %vm238_vm2, %v15244_v0 }
  0x83   :  { %301 = vst.msk [vmem:[#allocation2 + $0x372] sm:$0x3] %vm238_vm2, %v15244_v0  ;;  %302 = vst.msk [vmem:[#allocation2 + $0x38a] sm:$0x3] %vm238_vm2, %v15244_v0  ;;  %vm6384_vm2 = vcmask 1041409  }
  0x84   :  { %303 = vst.msk [vmem:[#allocation2 + $0x32] sm:$0xff] %vm210_vm0, %v146_v1  ;;  %304 = vst.msk [vmem:[#allocation2 + $0x3a] sm:$0xff] %vm210_vm0, %v147_v2  ;;  %v192_v2 = vld [vmem:[%s15231_s0 + $0x170] sm:$0xff] }
  0x85   :  { %305 = vst.msk [vmem:[#allocation2 + $0x4a] sm:$0xff] %vm210_vm0, %v148_v3  ;;  %306 = vst.msk [vmem:[#allocation2 + $0x52] sm:$0xff] %vm210_vm0, %v149_v8  ;;  %v193_v3 = vld [vmem:[%s15231_s0 + $0x178] sm:$0xff] }
  0x86   :  { %307 = vst.msk [vmem:[#allocation2 + $0x62] sm:$0xff] %vm210_vm0, %v150_v9  ;;  %308 = vst.msk [vmem:[#allocation2 + $0x6a] sm:$0xff] %vm210_vm0, %v151_v10  ;;  %v196_v9 = vld [vmem:[%s15231_s0 + $0x190] sm:$0xff]  ;;  %v197_v10 = vld [vmem:[%s15231_s0 + $0x198] sm:$0xff] }
  0x87   :  { %309 = vst.msk [vmem:[#allocation2 + $0x7a] sm:$0xff] %vm210_vm0, %v152_v11  ;;  %310 = vst.msk [vmem:[#allocation2 + $0x82] sm:$0xff] %vm210_vm0, %v153_v12  ;;  %v198_v12 = vld [vmem:[%s15231_s0 + $0x1a0] sm:$0xff] }
  0x88   :  { %311 = vst.msk [vmem:[#allocation2 + $0x92] sm:$0xff] %vm210_vm0, %v154_v13  ;;  %312 = vst.msk [vmem:[#allocation2 + $0x9a] sm:$0xff] %vm210_vm0, %v155_v14  ;;  %v199_v13 = vld [vmem:[%s15231_s0 + $0x1a8] sm:$0xff]  ;;  %v200_v14 = vld [vmem:[%s15231_s0 + $0x1b0] sm:$0xff] }
  0x89   :  { %313 = vst.msk [vmem:[#allocation2 + $0xaa] sm:$0xff] %vm210_vm0, %v156_v15  ;;  %314 = vst.msk [vmem:[#allocation2 + $0xb2] sm:$0xff] %vm210_vm0, %v157_v16  ;;  %v201_v15 = vld [vmem:[%s15231_s0 + $0x1b8] sm:$0xff] }
  0x8a   :  { %315 = vst.msk [vmem:[#allocation2 + $0xc2] sm:$0xff] %vm210_vm0, %v158_v17  ;;  %316 = vst.msk [vmem:[#allocation2 + $0xca] sm:$0xff] %vm210_vm0, %v159_v18  ;;  %v202_v18 = vld [vmem:[%s15231_s0 + $0x1c0] sm:$0xff] }
  0x8b   :  { %317 = vst.msk [vmem:[#allocation2 + $0xda] sm:$0xff] %vm210_vm0, %v160_v19  ;;  %318 = vst.msk [vmem:[#allocation2 + $0xe2] sm:$0xff] %vm210_vm0, %v161_v20  ;;  %v452_v24 = vld [vmem:[#allocation2 + $0x39] sm:$0xff]  ;;  %v451_v25 = vld [vmem:[#allocation2 + $0x31] sm:$0xff] }
  0x8c   :  { %319 = vst.msk [vmem:[#allocation2 + $0xf2] sm:$0xff] %vm210_vm0, %v162_v21  ;;  %320 = vst.msk [vmem:[#allocation2 + $0xfa] sm:$0xff] %vm210_vm0, %v163_v22  ;;  %857 = vrot.lane.b32.xlu1 %v452_v24, %s8717_s22  ;;  %855 = vrot.lane.b32.xlu0 %v451_v25, %s8717_s22  ;;  %v454_v30 = vld [vmem:[#allocation2 + $0x51] sm:$0xff]  ;;  %v453_v31 = vld [vmem:[#allocation2 + $0x49] sm:$0xff] }
  0x8d   :  { %321 = vst.msk [vmem:[#allocation2 + $0x10a] sm:$0xff] %vm210_vm0, %v164_v23  ;;  %322 = vst.msk [vmem:[#allocation2 + $0x112] sm:$0xff] %vm210_vm0, %v165_v26  ;;  %v456_v33 = vld [vmem:[#allocation2 + $0x69] sm:$0xff]  ;;  %v455_v34 = vld [vmem:[#allocation2 + $0x61] sm:$0xff] }
  0x8e   :  { %323 = vst.msk [vmem:[#allocation2 + $0x122] sm:$0xff] %vm210_vm0, %v166_v27  ;;  %324 = vst.msk [vmem:[#allocation2 + $0x12a] sm:$0xff] %vm210_vm0, %v167_v28  ;;  %v458_v38 = vld [vmem:[#allocation2 + $0x81] sm:$0xff]  ;;  %v457_v39 = vld [vmem:[#allocation2 + $0x79] sm:$0xff] }
  0x8f   :  { %325 = vst.msk [vmem:[#allocation2 + $0x13a] sm:$0xff] %vm210_vm0, %v168_v29  ;;  %326 = vst.msk [vmem:[#allocation2 + $0x142] sm:$0xff] %vm210_vm0, %v169_v32  ;;  %v460_v45 = vld [vmem:[#allocation2 + $0x99] sm:$0xff]  ;;  %v459_v46 = vld [vmem:[#allocation2 + $0x91] sm:$0xff] }
  0x90   :  { %861 = vrot.lane.b32.xlu1 %v454_v30, %s8717_s22  ;;  %859 = vrot.lane.b32.xlu0 %v453_v31, %s8717_s22  ;;  %327 = vst.msk [vmem:[#allocation2 + $0x152] sm:$0xff] %vm210_vm0, %v170_v35  ;;  %328 = vst.msk [vmem:[#allocation2 + $0x15a] sm:$0xff] %vm210_vm0, %v171_v36  ;;  %v462_v55 = vld [vmem:[#allocation2 + $0xb1] sm:$0xff]  ;;  %v461_v56 = vld [vmem:[#allocation2 + $0xa9] sm:$0xff] }
  0x91   :  { %329 = vst.msk [vmem:[#allocation2 + $0x16a] sm:$0xff] %vm210_vm0, %v172_v37  ;;  %330 = vst.msk [vmem:[#allocation2 + $0x172] sm:$0xff] %vm210_vm0, %v173_v40  ;;  %v464_v63 = vld [vmem:[#allocation2 + $0xc9] sm:$0xff]  ;;  %v463_v1 = vld [vmem:[#allocation2 + $0xc1] sm:$0xff] }
  0x92   :  { %331 = vst.msk [vmem:[#allocation2 + $0x182] sm:$0xff] %vm210_vm0, %v174_v41  ;;  %332 = vst.msk [vmem:[#allocation2 + $0x18a] sm:$0xff] %vm210_vm0, %v175_v42  ;;  %v466_v5 = vld [vmem:[#allocation2 + $0xe1] sm:$0xff]  ;;  %v465_v6 = vld [vmem:[#allocation2 + $0xd9] sm:$0xff] }
  0x93   :  { %333 = vst.msk [vmem:[#allocation2 + $0x19a] sm:$0xff] %vm210_vm0, %v176_v43  ;;  %334 = vst.msk [vmem:[#allocation2 + $0x1a2] sm:$0xff] %vm210_vm0, %v177_v44  ;;  %v468_v8 = vld [vmem:[#allocation2 + $0xf9] sm:$0xff]  ;;  %v467_v11 = vld [vmem:[#allocation2 + $0xf1] sm:$0xff] }
  0x94   :  { %865 = vrot.lane.b32.xlu1 %v456_v33, %s8717_s22  ;;  %863 = vrot.lane.b32.xlu0 %v455_v34, %s8717_s22  ;;  %335 = vst.msk [vmem:[#allocation2 + $0x212] sm:$0xff] %vm210_vm0, %v178_v47  ;;  %336 = vst.msk [vmem:[#allocation2 + $0x21a] sm:$0xff] %vm210_vm0, %v179_v48  ;;  %v469_v16 = vld [vmem:[#allocation2 + $0x109] sm:$0xff]  ;;  %v470_v17 = vld [vmem:[#allocation2 + $0x111] sm:$0xff] }
  0x95   :  { %337 = vst.msk [vmem:[#allocation2 + $0x22a] sm:$0xff] %vm210_vm0, %v180_v49  ;;  %338 = vst.msk [vmem:[#allocation2 + $0x232] sm:$0xff] %vm210_vm0, %v181_v50  ;;  %v203_v19 = vld [vmem:[%s15231_s0 + $0x1c8] sm:$0xff]  ;;  %v204_v20 = vld [vmem:[%s15231_s0 + $0x1d0] sm:$0xff] }
  0x96   :  { %339 = vst.msk [vmem:[#allocation2 + $0x242] sm:$0xff] %vm210_vm0, %v182_v51  ;;  %340 = vst.msk [vmem:[#allocation2 + $0x24a] sm:$0xff] %vm210_vm0, %v183_v52  ;;  %v205_v21 = vld [vmem:[%s15231_s0 + $0x1d8] sm:$0xff]  ;;  %v206_v22 = vld [vmem:[%s15231_s0 + $0x1e0] sm:$0xff] }
  0x97   :  { %341 = vst.msk [vmem:[#allocation2 + $0x25a] sm:$0xff] %vm210_vm0, %v184_v53  ;;  %342 = vst.msk [vmem:[#allocation2 + $0x262] sm:$0xff] %vm210_vm0, %v185_v54  ;;  %v472_v23 = vld [vmem:[#allocation2 + $0x129] sm:$0xff]  ;;  %v471_v24 = vld [vmem:[#allocation2 + $0x121] sm:$0xff] }
  0x98   :  { %869 = vrot.lane.b32.xlu1 %v458_v38, %s8717_s22  ;;  %867 = vrot.lane.b32.xlu0 %v457_v39, %s8717_s22  ;;  %343 = vst.msk [vmem:[#allocation2 + $0x272] sm:$0xff] %vm210_vm0, %v186_v57  ;;  %344 = vst.msk [vmem:[#allocation2 + $0x27a] sm:$0xff] %vm210_vm0, %v187_v58  ;;  %v207_v25 = vld [vmem:[%s15231_s0 + $0x1e8] sm:$0xff]  ;;  %v208_v26 = vld [vmem:[%s15231_s0 + $0x1f0] sm:$0xff] }
  0x99   :  { %345 = vst.msk [vmem:[#allocation2 + $0x28a] sm:$0xff] %vm210_vm0, %v188_v59  ;;  %346 = vst.msk [vmem:[#allocation2 + $0x292] sm:$0xff] %vm210_vm0, %v189_v60  ;;  %v209_v27 = vld [vmem:[%s15231_s0 + $0x1f8] sm:$0xff]  ;;  %v474_v28 = vld [vmem:[#allocation2 + $0x141] sm:$0xff]  ;;  %s8718_s0 = smov 8  }
  0x9a   :  { %347 = vst.msk [vmem:[#allocation2 + $0x2a2] sm:$0xff] %vm210_vm0, %v190_v61  ;;  %348 = vst.msk [vmem:[#allocation2 + $0x2aa] sm:$0xff] %vm210_vm0, %v191_v62  ;;  %v473_v29 = vld [vmem:[#allocation2 + $0x139] sm:$0xff]  ;;  %v475_v31 = vld [vmem:[#allocation2 + $0x151] sm:$0xff] }
  0x9b   :  { %349 = vst.msk [vmem:[#allocation2 + $0x2ba] sm:$0xff] %vm210_vm0, %v192_v2  ;;  %350 = vst.msk [vmem:[#allocation2 + $0x2c2] sm:$0xff] %vm210_vm0, %v193_v3  ;;  %v476_v30 = vld [vmem:[#allocation2 + $0x159] sm:$0xff]  ;;  %v478_v32 = vld [vmem:[#allocation2 + $0x171] sm:$0xff] }
  0x9c   :  { %873 = vrot.lane.b32.xlu1 %v460_v45, %s8717_s22  ;;  %871 = vrot.lane.b32.xlu0 %v459_v46, %s8717_s22  ;;  %351 = vst.msk [vmem:[#allocation2 + $0x2d2] sm:$0xff] %vm210_vm0, %v194_v4  ;;  %352 = vst.msk [vmem:[#allocation2 + $0x2da] sm:$0xff] %vm210_vm0, %v195_v7  ;;  %v477_v33 = vld [vmem:[#allocation2 + $0x169] sm:$0xff]  ;;  %v479_v35 = vld [vmem:[#allocation2 + $0x181] sm:$0xff] }
  0x9d   :  { %353 = vst.msk [vmem:[#allocation2 + $0x2ea] sm:$0xff] %vm210_vm0, %v196_v9  ;;  %354 = vst.msk [vmem:[#allocation2 + $0x2f2] sm:$0xff] %vm210_vm0, %v197_v10  ;;  %v480_v34 = vld [vmem:[#allocation2 + $0x189] sm:$0xff]  ;;  %v482_v36 = vld [vmem:[#allocation2 + $0x1a1] sm:$0xff] }
  0x9e   :  { %355 = vst.msk [vmem:[#allocation2 + $0x302] sm:$0xff] %vm210_vm0, %v198_v12  ;;  %356 = vst.msk [vmem:[#allocation2 + $0x30a] sm:$0xff] %vm210_vm0, %v199_v13  ;;  %v481_v37 = vld [vmem:[#allocation2 + $0x199] sm:$0xff]  ;;  %v483_v39 = vld [vmem:[#allocation2 + $0x1b1] sm:$0xff] }
  0x9f   :  { %357 = vst.msk [vmem:[#allocation2 + $0x31a] sm:$0xff] %vm210_vm0, %v200_v14  ;;  %358 = vst.msk [vmem:[#allocation2 + $0x322] sm:$0xff] %vm210_vm0, %v201_v15  ;;  %v484_v38 = vld [vmem:[#allocation2 + $0x1b9] sm:$0xff]  ;;  %v486_v40 = vld [vmem:[#allocation2 + $0x1d1] sm:$0xff] }
  0xa0   :  { %877 = vrot.lane.b32.xlu1 %v462_v55, %s8717_s22  ;;  %875 = vrot.lane.b32.xlu0 %v461_v56, %s8717_s22  ;;  %359 = vst.msk [vmem:[#allocation2 + $0x332] sm:$0xff] %vm210_vm0, %v202_v18  ;;  %360 = vst.msk [vmem:[#allocation2 + $0x33a] sm:$0xff] %vm210_vm0, %v203_v19  ;;  %v485_v41 = vld [vmem:[#allocation2 + $0x1c9] sm:$0xff]  ;;  %v487_v43 = vld [vmem:[#allocation2 + $0x1e1] sm:$0xff] }
  0xa1   :  { %361 = vst.msk [vmem:[#allocation2 + $0x34a] sm:$0xff] %vm210_vm0, %v204_v20  ;;  %362 = vst.msk [vmem:[#allocation2 + $0x352] sm:$0xff] %vm210_vm0, %v205_v21  ;;  %v488_v42 = vld [vmem:[#allocation2 + $0x1e9] sm:$0xff]  ;;  %v490_v44 = vld [vmem:[#allocation2 + $0x201] sm:$0xff] }
  0xa2   :  { %363 = vst.msk [vmem:[#allocation2 + $0x362] sm:$0xff] %vm210_vm0, %v206_v22  ;;  %364 = vst.msk [vmem:[#allocation2 + $0x36a] sm:$0xff] %vm210_vm0, %v207_v25  ;;  %v489_v45 = vld [vmem:[#allocation2 + $0x1f9] sm:$0xff]  ;;  %v491_v47 = vld [vmem:[#allocation2 + $0x211] sm:$0xff] }
  0xa3   :  { %365 = vst.msk [vmem:[#allocation2 + $0x37a] sm:$0xff] %vm210_vm0, %v208_v26  ;;  %366 = vst.msk [vmem:[#allocation2 + $0x382] sm:$0xff] %vm210_vm0, %v209_v27  ;;  %v492_v46 = vld [vmem:[#allocation2 + $0x219] sm:$0xff]  ;;  %v494_v48 = vld [vmem:[#allocation2 + $0x231] sm:$0xff] }
  0xa4   :  { %881 = vrot.lane.b32.xlu1 %v464_v63, %s8717_s22  ;;  %879 = vrot.lane.b32.xlu0 %v463_v1, %s8717_s22  ;;  %v493_v49 = vld [vmem:[#allocation2 + $0x229] sm:$0xff]  ;;  %v495_v51 = vld [vmem:[#allocation2 + $0x241] sm:$0xff]  ;;  %v497_v53 = vld [vmem:[#allocation2 + $0x259] sm:$0xff] }
  0xa5   :  { %v496_v50 = vld [vmem:[#allocation2 + $0x249] sm:$0xff]  ;;  %v498_v52 = vld [vmem:[#allocation2 + $0x261] sm:$0xff]  ;;  %v500_v54 = vld [vmem:[#allocation2 + $0x279] sm:$0xff] }
  0xa6   :  { %v499_v55 = vld [vmem:[#allocation2 + $0x271] sm:$0xff]  ;;  %v501_v57 = vld [vmem:[#allocation2 + $0x289] sm:$0xff]  ;;  %v503_v59 = vld [vmem:[#allocation2 + $0x2a1] sm:$0xff] }
  0xa7   :  { %v502_v56 = vld [vmem:[#allocation2 + $0x291] sm:$0xff]  ;;  %v504_v58 = vld [vmem:[#allocation2 + $0x2a9] sm:$0xff]  ;;  %v506_v60 = vld [vmem:[#allocation2 + $0x2c1] sm:$0xff] }
  0xa8   :  { %885 = vrot.lane.b32.xlu1 %v466_v5, %s8717_s22  ;;  %883 = vrot.lane.b32.xlu0 %v465_v6, %s8717_s22  ;;  %v505_v61 = vld [vmem:[#allocation2 + $0x2b9] sm:$0xff]  ;;  %v507_v2 = vld [vmem:[#allocation2 + $0x2d1] sm:$0xff]  ;;  %v509_v6 = vld [vmem:[#allocation2 + $0x2e9] sm:$0xff] }
  0xa9   :  { %v508_v1 = vld [vmem:[#allocation2 + $0x2d9] sm:$0xff]  ;;  %v510_v5 = vld [vmem:[#allocation2 + $0x2f1] sm:$0xff]  ;;  %v512_v9 = vld [vmem:[#allocation2 + $0x309] sm:$0xff] }
  0xaa   :  { %v511_v10 = vld [vmem:[#allocation2 + $0x301] sm:$0xff]  ;;  %v513_v14 = vld [vmem:[#allocation2 + $0x319] sm:$0xff]  ;;  %v515_v18 = vld [vmem:[#allocation2 + $0x331] sm:$0xff] }
  0xab   :  { %v514_v13 = vld [vmem:[#allocation2 + $0x321] sm:$0xff]  ;;  %v518_v21 = vld [vmem:[#allocation2 + $0x351] sm:$0xff]  ;;  %v517_v22 = vld [vmem:[#allocation2 + $0x349] sm:$0xff] }
  0xac   :  { %889 = vrot.lane.b32.xlu1 %v468_v8, %s8717_s22  ;;  %887 = vrot.lane.b32.xlu0 %v467_v11, %s8717_s22  ;;  %v520_v25 = vld [vmem:[#allocation2 + $0x369] sm:$0xff]  ;;  %v519_v26 = vld [vmem:[#allocation2 + $0x361] sm:$0xff] }
  0xb0   :  { %893 = vrot.lane.b32.xlu1 %v470_v17, %s8717_s22  ;;  %891 = vrot.lane.b32.xlu0 %v469_v16, %s8717_s22  ;;  %v516_v17 = vld [vmem:[#allocation2 + $0x339] sm:$0xff] }
  0xb4   :  { %897 = vrot.lane.b32.xlu1 %v472_v23, %s8717_s22  ;;  %895 = vrot.lane.b32.xlu0 %v471_v24, %s8717_s22 }
  0xb8   :  { %901 = vrot.lane.b32.xlu1 %v474_v28, %s8717_s22  ;;  %899 = vrot.lane.b32.xlu0 %v473_v29, %s8717_s22  ;;  %v522_v29 = vld [vmem:[#allocation2 + $0x381] sm:$0xff] }
  0xbc   :  { %905 = vrot.lane.b32.xlu1 %v476_v30, %s8717_s22  ;;  %903 = vrot.lane.b32.xlu0 %v475_v31, %s8717_s22  ;;  %v521_v30 = vld [vmem:[#allocation2 + $0x379] sm:$0xff] }
  0xc0   :  { %909 = vrot.lane.b32.xlu1 %v478_v32, %s8717_s22  ;;  %907 = vrot.lane.b32.xlu0 %v477_v33, %s8717_s22  ;;  %v524_v33 = vld [vmem:[#allocation2 + $0x399] sm:$0xff] }
  0xc4   :  { %913 = vrot.lane.b32.xlu1 %v480_v34, %s8717_s22  ;;  %911 = vrot.lane.b32.xlu0 %v479_v35, %s8717_s22  ;;  %v523_v34 = vld [vmem:[#allocation2 + $0x391] sm:$0xff] }
  0xc8   :  { %917 = vrot.lane.b32.xlu1 %v482_v36, %s8717_s22  ;;  %915 = vrot.lane.b32.xlu0 %v481_v37, %s8717_s22  ;;  %v526_v37 = vld [vmem:[#allocation2 + $0x3b1] sm:$0xff] }
  0xcc   :  { %921 = vrot.lane.b32.xlu1 %v484_v38, %s8717_s22  ;;  %919 = vrot.lane.b32.xlu0 %v483_v39, %s8717_s22  ;;  %v525_v38 = vld [vmem:[#allocation2 + $0x3a9] sm:$0xff] }
  0xd0   :  { %925 = vrot.lane.b32.xlu1 %v486_v40, %s8717_s22  ;;  %923 = vrot.lane.b32.xlu0 %v485_v41, %s8717_s22  ;;  %v528_v41 = vld [vmem:[#allocation2 + $0xa] sm:$0xff] }
  0xd2   :  { %v9319_v62 = vpop.permute.xlu1 %851 }
  0xd3   :  { %v9321_v63 = vpop.permute.xlu0 %847 }
  0xd4   :  { %929 = vrot.lane.b32.xlu1 %v488_v42, %s8717_s22  ;;  %927 = vrot.lane.b32.xlu0 %v487_v43, %s8717_s22  ;;  %v527_v42 = vld [vmem:[#allocation2 + $0x2] sm:$0xff] }
  0xd8   :  { %933 = vrot.lane.b32.xlu1 %v490_v44, %s8717_s22  ;;  %931 = vrot.lane.b32.xlu0 %v489_v45, %s8717_s22  ;;  %v530_v45 = vld [vmem:[#allocation2 + $0x22] sm:$0xff] }
  0xda   :  { %v9325_v3 = vpop.permute.xlu1 %853  ;;  %v9327_v4 = vpop.permute.xlu0 %849 }
  0xdc   :  { %937 = vrot.lane.b32.xlu1 %v492_v46, %s8717_s22  ;;  %935 = vrot.lane.b32.xlu0 %v491_v47, %s8717_s22  ;;  %v529_v46 = vld [vmem:[#allocation2 + $0x1a] sm:$0xff] }
  0xe0   :  { %941 = vrot.lane.b32.xlu1 %v494_v48, %s8717_s22  ;;  %939 = vrot.lane.b32.xlu0 %v493_v49, %s8717_s22  ;;  %v532_v49 = vld [vmem:[#allocation2 + $0x3a] sm:$0xff] }
  0xe4   :  { %945 = vrot.lane.b32.xlu1 %v496_v50, %s8717_s22  ;;  %943 = vrot.lane.b32.xlu0 %v495_v51, %s8717_s22  ;;  %v531_v50 = vld [vmem:[#allocation2 + $0x32] sm:$0xff] }
  0xe8   :  { %949 = vrot.lane.b32.xlu1 %v498_v52, %s8717_s22  ;;  %947 = vrot.lane.b32.xlu0 %v497_v53, %s8717_s22  ;;  %v534_v53 = vld [vmem:[#allocation2 + $0x52] sm:$0xff] }
  0xec   :  { %953 = vrot.lane.b32.xlu1 %v500_v54, %s8717_s22  ;;  %951 = vrot.lane.b32.xlu0 %v499_v55, %s8717_s22  ;;  %v533_v54 = vld [vmem:[#allocation2 + $0x4a] sm:$0xff] }
  0xf0   :  { %957 = vrot.lane.b32.xlu1 %v502_v56, %s8717_s22  ;;  %955 = vrot.lane.b32.xlu0 %v501_v57, %s8717_s22  ;;  %v536_v57 = vld [vmem:[#allocation2 + $0x6a] sm:$0xff] }
  0xf4   :  { %961 = vrot.lane.b32.xlu1 %v504_v58, %s8717_s22  ;;  %959 = vrot.lane.b32.xlu0 %v503_v59, %s8717_s22  ;;  %v535_v58 = vld [vmem:[#allocation2 + $0x62] sm:$0xff] }
  0xf8   :  { %965 = vrot.lane.b32.xlu1 %v506_v60, %s8717_s22  ;;  %963 = vrot.lane.b32.xlu0 %v505_v61, %s8717_s22  ;;  %v538_v61 = vld [vmem:[#allocation2 + $0x82] sm:$0xff] }
  0xfc   :  { %969 = vrot.lane.b32.xlu1 %v508_v1, %s8717_s22  ;;  %967 = vrot.lane.b32.xlu0 %v507_v2, %s8717_s22  ;;  %v537_v1 = vld [vmem:[#allocation2 + $0x7a] sm:$0xff] }
  0xfe   :  { %v9331_v7 = vpop.permute.xlu1 %857  ;;  %v9333_v8 = vpop.permute.xlu0 %855 }
 0x100   :  { %973 = vrot.lane.b32.xlu1 %v510_v5, %s8717_s22  ;;  %971 = vrot.lane.b32.xlu0 %v509_v6, %s8717_s22  ;;  %v540_v6 = vld [vmem:[#allocation2 + $0x9a] sm:$0xff] }
 0x102   :  { %v9337_v11 = vpop.permute.xlu1 %861  ;;  %v9339_v12 = vpop.permute.xlu0 %859 }
 0x104   :  { %977 = vrot.lane.b32.xlu1 %v512_v9, %s8717_s22  ;;  %975 = vrot.lane.b32.xlu0 %v511_v10, %s8717_s22  ;;  %v539_v9 = vld [vmem:[#allocation2 + $0x92] sm:$0xff] }
 0x106   :  { %v9343_v15 = vpop.permute.xlu1 %865  ;;  %v9345_v16 = vpop.permute.xlu0 %863 }
 0x108   :  { %981 = vrot.lane.b32.xlu1 %v514_v13, %s8717_s22  ;;  %979 = vrot.lane.b32.xlu0 %v513_v14, %s8717_s22  ;;  %v542_v14 = vld [vmem:[#allocation2 + $0xb2] sm:$0xff] }
 0x10a   :  { %v9349_v19 = vpop.permute.xlu1 %869  ;;  %v9351_v20 = vpop.permute.xlu0 %867 }
 0x10c   :  { %985 = vrot.lane.b32.xlu1 %v516_v17, %s8717_s22  ;;  %983 = vrot.lane.b32.xlu0 %v515_v18, %s8717_s22  ;;  %v541_v17 = vld [vmem:[#allocation2 + $0xaa] sm:$0xff] }
 0x10e   :  { %v9355_v23 = vpop.permute.xlu1 %873  ;;  %v9357_v24 = vpop.permute.xlu0 %871 }
 0x110   :  { %989 = vrot.lane.b32.xlu1 %v518_v21, %s8717_s22  ;;  %987 = vrot.lane.b32.xlu0 %v517_v22, %s8717_s22  ;;  %v544_v22 = vld [vmem:[#allocation2 + $0xca] sm:$0xff] }
 0x112   :  { %v9361_v27 = vpop.permute.xlu1 %877  ;;  %v9363_v28 = vpop.permute.xlu0 %875 }
 0x114   :  { %993 = vrot.lane.b32.xlu1 %v520_v25, %s8717_s22  ;;  %991 = vrot.lane.b32.xlu0 %v519_v26, %s8717_s22  ;;  %v543_v25 = vld [vmem:[#allocation2 + $0xc2] sm:$0xff] }
 0x116   :  { %v9367_v31 = vpop.permute.xlu1 %881  ;;  %v9369_v32 = vpop.permute.xlu0 %879 }
 0x118   :  { %997 = vrot.lane.b32.xlu1 %v522_v29, %s8717_s22  ;;  %995 = vrot.lane.b32.xlu0 %v521_v30, %s8717_s22  ;;  %v546_v30 = vld [vmem:[#allocation2 + $0xe2] sm:$0xff] }
 0x11a   :  { %v9373_v35 = vpop.permute.xlu1 %885  ;;  %v9375_v36 = vpop.permute.xlu0 %883 }
 0x11b   :  { %15309 = vst [vmem:[#allocation34_spill] sm:$0xff] %v9373_v35  ;;  %15310 = vst [vmem:[#allocation35_spill] sm:$0xff] %v9375_v36 }
 0x11c   :  { %1001 = vrot.lane.b32.xlu1 %v524_v33, %s8717_s22  ;;  %999 = vrot.lane.b32.xlu0 %v523_v34, %s8717_s22  ;;  %v545_v33 = vld [vmem:[#allocation2 + $0xda] sm:$0xff] }
 0x11e   :  { %v9379_v39 = vpop.permute.xlu1 %889  ;;  %v9381_v40 = vpop.permute.xlu0 %887 }
 0x11f   :  { %15311 = vst [vmem:[#allocation36_spill] sm:$0xff] %v9379_v39  ;;  %15312 = vst [vmem:[#allocation37_spill] sm:$0xff] %v9381_v40  ;;  %v723_v39 = vld [vmem:[#allocation2 + $0x1b4] sm:$0xff] }
 0x120   :  { %1005 = vrot.lane.b32.xlu1 %v526_v37, %s8717_s22  ;;  %1003 = vrot.lane.b32.xlu0 %v525_v38, %s8717_s22  ;;  %v548_v38 = vld [vmem:[#allocation2 + $0xfa] sm:$0xff]  ;;  %s8719_s22 = smov 12   ;;  %v3484_v40 = vld [vmem:[%s15232_s1 + $0x50] sm:$0xff] }
 0x122   :  { %v9385_v43 = vpop.permute.xlu1 %893  ;;  %v9387_v44 = vpop.permute.xlu0 %891 }
 0x123   :  { %15313 = vst [vmem:[#allocation38_spill] sm:$0xff] %v9385_v43  ;;  %15314 = vst [vmem:[#allocation39_spill] sm:$0xff] %v9387_v44 }
 0x124   :  { %1169 = vrot.lane.b32.xlu1 %v528_v41, %s8718_s0  ;;  %1167 = vrot.lane.b32.xlu0 %v527_v42, %s8718_s0  ;;  %v547_v41 = vld [vmem:[#allocation2 + $0xf2] sm:$0xff] }
 0x126   :  { %v9391_v47 = vpop.permute.xlu1 %897  ;;  %v9393_v48 = vpop.permute.xlu0 %895 }
 0x127   :  { %15315 = vst [vmem:[#allocation40_spill] sm:$0xff] %v9391_v47  ;;  %15316 = vst [vmem:[#allocation41_spill] sm:$0xff] %v9393_v48 }
 0x128   :  { %1173 = vrot.lane.b32.xlu1 %v530_v45, %s8718_s0  ;;  %1171 = vrot.lane.b32.xlu0 %v529_v46, %s8718_s0  ;;  %v550_v46 = vld [vmem:[#allocation2 + $0x112] sm:$0xff] }
 0x12a   :  { %v9397_v51 = vpop.permute.xlu1 %901  ;;  %v9399_v52 = vpop.permute.xlu0 %899 }
 0x12b   :  { %15317 = vst [vmem:[#allocation42_spill] sm:$0xff] %v9397_v51  ;;  %15318 = vst [vmem:[#allocation43_spill] sm:$0xff] %v9399_v52 }
 0x12c   :  { %1177 = vrot.lane.b32.xlu1 %v532_v49, %s8718_s0  ;;  %1175 = vrot.lane.b32.xlu0 %v531_v50, %s8718_s0  ;;  %v549_v49 = vld [vmem:[#allocation2 + $0x10a] sm:$0xff] }
 0x12e   :  { %v9403_v55 = vpop.permute.xlu1 %905  ;;  %v9405_v56 = vpop.permute.xlu0 %903 }
 0x12f   :  { %15319 = vst [vmem:[#allocation44_spill] sm:$0xff] %v9403_v55  ;;  %15320 = vst [vmem:[#allocation45_spill] sm:$0xff] %v9405_v56 }
 0x130   :  { %1181 = vrot.lane.b32.xlu1 %v534_v53, %s8718_s0  ;;  %1179 = vrot.lane.b32.xlu0 %v533_v54, %s8718_s0  ;;  %v552_v54 = vld [vmem:[#allocation2 + $0x12a] sm:$0xff] }
 0x132   :  { %v9409_v59 = vpop.permute.xlu1 %909  ;;  %v9411_v60 = vpop.permute.xlu0 %907 }
 0x133   :  { %15321 = vst [vmem:[#allocation46_spill] sm:$0xff] %v9409_v59  ;;  %15322 = vst [vmem:[#allocation47_spill] sm:$0xff] %v9411_v60 }
 0x134   :  { %1185 = vrot.lane.b32.xlu1 %v536_v57, %s8718_s0  ;;  %1183 = vrot.lane.b32.xlu0 %v535_v58, %s8718_s0  ;;  %v551_v57 = vld [vmem:[#allocation2 + $0x122] sm:$0xff] }
 0x136   :  { %v9415_v2 = vpop.permute.xlu1 %913  ;;  %v9417_v5 = vpop.permute.xlu0 %911 }
 0x137   :  { %15323 = vst [vmem:[#allocation48_spill] sm:$0xff] %v9415_v2  ;;  %15324 = vst [vmem:[#allocation49_spill] sm:$0xff] %v9417_v5 }
 0x138   :  { %1189 = vrot.lane.b32.xlu1 %v538_v61, %s8718_s0  ;;  %1187 = vrot.lane.b32.xlu0 %v537_v1, %s8718_s0  ;;  %v554_v1 = vld [vmem:[#allocation2 + $0x142] sm:$0xff] }
 0x13a   :  { %v9421_v10 = vpop.permute.xlu1 %917  ;;  %v9423_v13 = vpop.permute.xlu0 %915 }
 0x13b   :  { %15325 = vst [vmem:[#allocation50_spill] sm:$0xff] %v9421_v10  ;;  %15326 = vst [vmem:[#allocation51_spill] sm:$0xff] %v9423_v13 }
 0x13c   :  { %1193 = vrot.lane.b32.xlu1 %v540_v6, %s8718_s0  ;;  %1191 = vrot.lane.b32.xlu0 %v539_v9, %s8718_s0  ;;  %v553_v6 = vld [vmem:[#allocation2 + $0x13a] sm:$0xff] }
 0x13e   :  { %v9427_v18 = vpop.permute.xlu1 %921  ;;  %v9429_v21 = vpop.permute.xlu0 %919 }
 0x13f   :  { %15327 = vst [vmem:[#allocation52_spill] sm:$0xff] %v9427_v18  ;;  %15328 = vst [vmem:[#allocation53_spill] sm:$0xff] %v9429_v21 }
 0x140   :  { %1197 = vrot.lane.b32.xlu1 %v542_v14, %s8718_s0  ;;  %1195 = vrot.lane.b32.xlu0 %v541_v17, %s8718_s0  ;;  %v556_v17 = vld [vmem:[#allocation2 + $0x15a] sm:$0xff] }
 0x142   :  { %v9433_v26 = vpop.permute.xlu1 %925  ;;  %v9435_v29 = vpop.permute.xlu0 %923 }
 0x143   :  { %15329 = vst [vmem:[#allocation54_spill] sm:$0xff] %v9433_v26  ;;  %15330 = vst [vmem:[#allocation55_spill] sm:$0xff] %v9435_v29 }
 0x144   :  { %1201 = vrot.lane.b32.xlu1 %v544_v22, %s8718_s0  ;;  %1199 = vrot.lane.b32.xlu0 %v543_v25, %s8718_s0  ;;  %v555_v22 = vld [vmem:[#allocation2 + $0x152] sm:$0xff] }
 0x146   :  { %v9439_v34 = vpop.permute.xlu1 %929  ;;  %v9441_v37 = vpop.permute.xlu0 %927 }
 0x147   :  { %15331 = vst [vmem:[#allocation56_spill] sm:$0xff] %v9439_v34  ;;  %15332 = vst [vmem:[#allocation57_spill] sm:$0xff] %v9441_v37 }
 0x148   :  { %1205 = vrot.lane.b32.xlu1 %v546_v30, %s8718_s0  ;;  %1203 = vrot.lane.b32.xlu0 %v545_v33, %s8718_s0  ;;  %v558_v33 = vld [vmem:[#allocation2 + $0x172] sm:$0xff] }
 0x14a   :  { %v9445_v42 = vpop.permute.xlu1 %933  ;;  %v9447_v45 = vpop.permute.xlu0 %931 }
 0x14b   :  { %15333 = vst [vmem:[#allocation58_spill] sm:$0xff] %v9445_v42  ;;  %15334 = vst [vmem:[#allocation59_spill] sm:$0xff] %v9447_v45 }
 0x14c   :  { %1209 = vrot.lane.b32.xlu1 %v548_v38, %s8718_s0  ;;  %1207 = vrot.lane.b32.xlu0 %v547_v41, %s8718_s0  ;;  %v557_v38 = vld [vmem:[#allocation2 + $0x16a] sm:$0xff] }
 0x14e   :  { %v9451_v50 = vpop.permute.xlu1 %937  ;;  %v9453_v53 = vpop.permute.xlu0 %935 }
 0x14f   :  { %15335 = vst [vmem:[#allocation60_spill] sm:$0xff] %v9451_v50  ;;  %15336 = vst [vmem:[#allocation61_spill] sm:$0xff] %v9453_v53 }
 0x150   :  { %1213 = vrot.lane.b32.xlu1 %v550_v46, %s8718_s0  ;;  %1211 = vrot.lane.b32.xlu0 %v549_v49, %s8718_s0  ;;  %v560_v49 = vld [vmem:[#allocation2 + $0x18a] sm:$0xff] }
 0x152   :  { %v9457_v58 = vpop.permute.xlu1 %941  ;;  %v9459_v61 = vpop.permute.xlu0 %939 }
 0x153   :  { %15337 = vst [vmem:[#allocation62_spill] sm:$0xff] %v9457_v58  ;;  %15338 = vst [vmem:[#allocation63_spill] sm:$0xff] %v9459_v61 }
 0x154   :  { %1217 = vrot.lane.b32.xlu1 %v552_v54, %s8718_s0  ;;  %1215 = vrot.lane.b32.xlu0 %v551_v57, %s8718_s0  ;;  %v559_v54 = vld [vmem:[#allocation2 + $0x182] sm:$0xff] }
 0x156   :  { %v9463_v9 = vpop.permute.xlu1 %945  ;;  %v9465_v14 = vpop.permute.xlu0 %943 }
 0x157   :  { %15339 = vst [vmem:[#allocation64_spill] sm:$0xff] %v9463_v9  ;;  %15340 = vst [vmem:[#allocation65_spill] sm:$0xff] %v9465_v14 }
 0x158   :  { %1221 = vrot.lane.b32.xlu1 %v554_v1, %s8718_s0  ;;  %1219 = vrot.lane.b32.xlu0 %v553_v6, %s8718_s0  ;;  %v562_v6 = vld [vmem:[#allocation2 + $0x1a2] sm:$0xff] }
 0x15a   :  { %v9469_v25 = vpop.permute.xlu1 %949  ;;  %v9471_v30 = vpop.permute.xlu0 %947 }
 0x15b   :  { %15341 = vst [vmem:[#allocation66_spill] sm:$0xff] %v9469_v25  ;;  %15342 = vst [vmem:[#allocation67_spill] sm:$0xff] %v9471_v30 }
 0x15c   :  { %1225 = vrot.lane.b32.xlu1 %v556_v17, %s8718_s0  ;;  %1223 = vrot.lane.b32.xlu0 %v555_v22, %s8718_s0  ;;  %v561_v17 = vld [vmem:[#allocation2 + $0x19a] sm:$0xff] }
 0x15e   :  { %v9475_v41 = vpop.permute.xlu1 %953  ;;  %v9477_v46 = vpop.permute.xlu0 %951 }
 0x15f   :  { %15343 = vst [vmem:[#allocation68_spill] sm:$0xff] %v9475_v41  ;;  %15344 = vst [vmem:[#allocation69_spill] sm:$0xff] %v9477_v46 }
 0x160   :  { %1229 = vrot.lane.b32.xlu1 %v558_v33, %s8718_s0  ;;  %1227 = vrot.lane.b32.xlu0 %v557_v38, %s8718_s0  ;;  %v564_v33 = vld [vmem:[#allocation2 + $0x1ba] sm:$0xff]  ;;  %v563_v38 = vld [vmem:[#allocation2 + $0x1b2] sm:$0xff] }
 0x162   :  { %v9481_v57 = vpop.permute.xlu1 %957  ;;  %v9483_v1 = vpop.permute.xlu0 %955 }
 0x163   :  { %15345 = vst [vmem:[#allocation70_spill] sm:$0xff] %v9481_v57  ;;  %15346 = vst [vmem:[#allocation71_spill] sm:$0xff] %v9483_v1 }
 0x164   :  { %1233 = vrot.lane.b32.xlu1 %v560_v49, %s8718_s0  ;;  %1231 = vrot.lane.b32.xlu0 %v559_v54, %s8718_s0  ;;  %v566_v49 = vld [vmem:[#allocation2 + $0x1d2] sm:$0xff]  ;;  %v565_v54 = vld [vmem:[#allocation2 + $0x1ca] sm:$0xff] }
 0x166   :  { %v9487_v22 = vpop.permute.xlu1 %961  ;;  %v9489_v0 = vpop.permute.xlu0 %959 }
 0x167   :  { %15347 = vst [vmem:[#allocation72_spill] sm:$0xff] %v9487_v22  ;;  %15348 = vst [vmem:[#allocation73_spill] sm:$0xff] %v9489_v0 }
 0x168   :  { %1237 = vrot.lane.b32.xlu1 %v562_v6, %s8718_s0  ;;  %1235 = vrot.lane.b32.xlu0 %v561_v17, %s8718_s0  ;;  %v609_v6 = vld [vmem:[#allocation2 + $0x1b] sm:$0xff] }
 0x169   :  { %v567_v17 = vld [vmem:[#allocation2 + $0x1e2] sm:$0xff] }
 0x16a   :  { %v9493_v34 = vpop.permute.xlu1 %965  ;;  %v9495_v37 = vpop.permute.xlu0 %963 }
 0x16b   :  { %15349 = vst [vmem:[#allocation74_spill] sm:$0xff] %v9493_v34  ;;  %15350 = vst [vmem:[#allocation75_spill] sm:$0xff] %v9495_v37 }
 0x16c   :  { %1241 = vrot.lane.b32.xlu1 %v564_v33, %s8718_s0  ;;  %1239 = vrot.lane.b32.xlu0 %v563_v38, %s8718_s0  ;;  %v611_v33 = vld [vmem:[#allocation2 + $0x33] sm:$0xff]  ;;  %v610_v38 = vld [vmem:[#allocation2 + $0x23] sm:$0xff] }
 0x16e   :  { %v9499_v57 = vpop.permute.xlu1 %969  ;;  %v9501_v22 = vpop.permute.xlu0 %967 }
 0x16f   :  { %15351 = vst [vmem:[#allocation76_spill] sm:$0xff] %v9499_v57  ;;  %15352 = vst [vmem:[#allocation77_spill] sm:$0xff] %v9501_v22 }
 0x170   :  { %1245 = vrot.lane.b32.xlu1 %v566_v49, %s8718_s0  ;;  %1243 = vrot.lane.b32.xlu0 %v565_v54, %s8718_s0  ;;  %v612_v49 = vld [vmem:[#allocation2 + $0x3b] sm:$0xff] }
 0x171   :  { %v689_v54 = vld [vmem:[#allocation2 + $0x1c] sm:$0xff] }
 0x172   :  { %v9505_v0 = vpop.permute.xlu1 %973  ;;  %v9507_v34 = vpop.permute.xlu0 %971 }
 0x173   :  { %15353 = vst [vmem:[#allocation78_spill] sm:$0xff] %v9505_v0  ;;  %15354 = vst [vmem:[#allocation79_spill] sm:$0xff] %v9507_v34 }
 0x174   :  { %1491 = vrot.lane.b32.xlu1 %v609_v6, %s8719_s22  ;;  %1247 = vrot.lane.b32.xlu0 %v567_v17, %s8718_s0  ;;  %v690_v6 = vld [vmem:[#allocation2 + $0x24] sm:$0xff] }
 0x175   :  { %v613_v17 = vld [vmem:[#allocation2 + $0x4b] sm:$0xff] }
 0x176   :  { %v9511_v57 = vpop.permute.xlu1 %977  ;;  %v9513_v22 = vpop.permute.xlu0 %975 }
 0x177   :  { %15355 = vst [vmem:[#allocation80_spill] sm:$0xff] %v9511_v57  ;;  %15356 = vst [vmem:[#allocation81_spill] sm:$0xff] %v9513_v22 }
 0x178   :  { %1495 = vrot.lane.b32.xlu1 %v611_v33, %s8719_s22  ;;  %1493 = vrot.lane.b32.xlu0 %v610_v38, %s8719_s22  ;;  %v614_v33 = vld [vmem:[#allocation2 + $0x53] sm:$0xff] }
 0x179   :  { %v691_v38 = vld [vmem:[#allocation2 + $0x34] sm:$0xff] }
 0x17a   :  { %v9517_v0 = vpop.permute.xlu1 %981  ;;  %v9519_v34 = vpop.permute.xlu0 %979 }
 0x17b   :  { %15357 = vst [vmem:[#allocation82_spill] sm:$0xff] %v9517_v0  ;;  %15358 = vst [vmem:[#allocation83_spill] sm:$0xff] %v9519_v34 }
 0x17c   :  { %1497 = vrot.lane.b32.xlu1 %v612_v49, %s8719_s22  ;;  %1811 = vrot.lane.b32.xlu0 %v689_v54, %s8720_s25  ;;  %v692_v49 = vld [vmem:[#allocation2 + $0x3c] sm:$0xff] }
 0x17d   :  { %v615_v54 = vld [vmem:[#allocation2 + $0x63] sm:$0xff] }
 0x17e   :  { %v9523_v57 = vpop.permute.xlu1 %985  ;;  %v9525_v22 = vpop.permute.xlu0 %983 }
 0x17f   :  { %15359 = vst [vmem:[#allocation84_spill] sm:$0xff] %v9523_v57  ;;  %15360 = vst [vmem:[#allocation85_spill] sm:$0xff] %v9525_v22 }
 0x180   :  { %1813 = vrot.lane.b32.xlu1 %v690_v6, %s8720_s25  ;;  %1499 = vrot.lane.b32.xlu0 %v613_v17, %s8719_s22  ;;  %v616_v6 = vld [vmem:[#allocation2 + $0x6b] sm:$0xff] }
 0x181   :  { %v693_v17 = vld [vmem:[#allocation2 + $0x4c] sm:$0xff] }
 0x182   :  { %v9529_v0 = vpop.permute.xlu1 %989  ;;  %v9531_v34 = vpop.permute.xlu0 %987 }
 0x183   :  { %15361 = vst [vmem:[#allocation86_spill] sm:$0xff] %v9529_v0  ;;  %15362 = vst [vmem:[#allocation87_spill] sm:$0xff] %v9531_v34 }
 0x184   :  { %1501 = vrot.lane.b32.xlu1 %v614_v33, %s8719_s22  ;;  %1815 = vrot.lane.b32.xlu0 %v691_v38, %s8720_s25  ;;  %v695_v33 = vld [vmem:[#allocation2 + $0x64] sm:$0xff]  ;;  %v694_v38 = vld [vmem:[#allocation2 + $0x54] sm:$0xff] }
 0x186   :  { %v9535_v37 = vpop.permute.xlu1 %993  ;;  %v9537_v57 = vpop.permute.xlu0 %991 }
 0x187   :  { %15363 = vst [vmem:[#allocation88_spill] sm:$0xff] %v9535_v37  ;;  %15364 = vst [vmem:[#allocation89_spill] sm:$0xff] %v9537_v57 }
 0x188   :  { %1817 = vrot.lane.b32.xlu1 %v692_v49, %s8720_s25  ;;  %1503 = vrot.lane.b32.xlu0 %v615_v54, %s8719_s22  ;;  %v617_v49 = vld [vmem:[#allocation2 + $0x7b] sm:$0xff]  ;;  %v696_v54 = vld [vmem:[#allocation2 + $0x6c] sm:$0xff] }
 0x18a   :  { %v9541_v22 = vpop.permute.xlu1 %997  ;;  %v9543_v0 = vpop.permute.xlu0 %995 }
 0x18b   :  { %15365 = vst [vmem:[#allocation90_spill] sm:$0xff] %v9541_v22  ;;  %15366 = vst [vmem:[#allocation91_spill] sm:$0xff] %v9543_v0 }
 0x18c   :  { %1505 = vrot.lane.b32.xlu1 %v616_v6, %s8719_s22  ;;  %1819 = vrot.lane.b32.xlu0 %v693_v17, %s8720_s25  ;;  %v697_v6 = vld [vmem:[#allocation2 + $0x7c] sm:$0xff] }
 0x18d   :  { %v618_v17 = vld [vmem:[#allocation2 + $0x83] sm:$0xff] }
 0x18e   :  { %v9547_v34 = vpop.permute.xlu1 %1001  ;;  %v9549_v37 = vpop.permute.xlu0 %999 }
 0x18f   :  { %15367 = vst [vmem:[#allocation92_spill] sm:$0xff] %v9547_v34  ;;  %15368 = vst [vmem:[#allocation93_spill] sm:$0xff] %v9549_v37 }
 0x190   :  { %1823 = vrot.lane.b32.xlu1 %v695_v33, %s8720_s25  ;;  %1821 = vrot.lane.b32.xlu0 %v694_v38, %s8720_s25  ;;  %v619_v33 = vld [vmem:[#allocation2 + $0x93] sm:$0xff]  ;;  %v698_v38 = vld [vmem:[#allocation2 + $0x84] sm:$0xff] }
 0x192   :  { %v9553_v57 = vpop.permute.xlu1 %1005  ;;  %v9555_v22 = vpop.permute.xlu0 %1003 }
 0x193   :  { %15369 = vst [vmem:[#allocation94_spill] sm:$0xff] %v9553_v57  ;;  %15370 = vst [vmem:[#allocation95_spill] sm:$0xff] %v9555_v22 }
 0x194   :  { %1507 = vrot.lane.b32.xlu1 %v617_v49, %s8719_s22  ;;  %1825 = vrot.lane.b32.xlu0 %v696_v54, %s8720_s25  ;;  %v699_v49 = vld [vmem:[#allocation2 + $0x94] sm:$0xff] }
 0x195   :  { %v620_v54 = vld [vmem:[#allocation2 + $0x9b] sm:$0xff] }
 0x196   :  { %v9559_v0 = vpop.permute.xlu1 %1169  ;;  %v9561_v34 = vpop.permute.xlu0 %1167 }
 0x198   :  { %1827 = vrot.lane.b32.xlu1 %v697_v6, %s8720_s25  ;;  %1509 = vrot.lane.b32.xlu0 %v618_v17, %s8719_s22  ;;  %v621_v6 = vld [vmem:[#allocation2 + $0xab] sm:$0xff]  ;;  %v700_v17 = vld [vmem:[#allocation2 + $0x9c] sm:$0xff] }
 0x19a   :  { %v9565_v37 = vpop.permute.xlu1 %1173  ;;  %v9567_v57 = vpop.permute.xlu0 %1171 }
 0x19c   :  { %1511 = vrot.lane.b32.xlu1 %v619_v33, %s8719_s22  ;;  %1829 = vrot.lane.b32.xlu0 %v698_v38, %s8720_s25  ;;  %v701_v33 = vld [vmem:[#allocation2 + $0xac] sm:$0xff] }
 0x19d   :  { %v622_v38 = vld [vmem:[#allocation2 + $0xb3] sm:$0xff] }
 0x19e   :  { %v9571_v22 = vpop.permute.xlu1 %1177  ;;  %v9573_v1 = vpop.permute.xlu0 %1175 }
 0x1a0   :  { %1831 = vrot.lane.b32.xlu1 %v699_v49, %s8720_s25  ;;  %1513 = vrot.lane.b32.xlu0 %v620_v54, %s8719_s22  ;;  %v623_v49 = vld [vmem:[#allocation2 + $0xc3] sm:$0xff]  ;;  %v702_v54 = vld [vmem:[#allocation2 + $0xb4] sm:$0xff] }
 0x1a2   :  { %v9577_v41 = vpop.permute.xlu1 %1181  ;;  %v9579_v46 = vpop.permute.xlu0 %1179 }
 0x1a4   :  { %1515 = vrot.lane.b32.xlu1 %v621_v6, %s8719_s22  ;;  %1833 = vrot.lane.b32.xlu0 %v700_v17, %s8720_s25  ;;  %v703_v6 = vld [vmem:[#allocation2 + $0xc4] sm:$0xff] }
 0x1a5   :  { %v624_v17 = vld [vmem:[#allocation2 + $0xcb] sm:$0xff] }
 0x1a6   :  { %v9583_v25 = vpop.permute.xlu1 %1185  ;;  %v9585_v30 = vpop.permute.xlu0 %1183 }
 0x1a8   :  { %1835 = vrot.lane.b32.xlu1 %v701_v33, %s8720_s25  ;;  %1517 = vrot.lane.b32.xlu0 %v622_v38, %s8719_s22  ;;  %v625_v33 = vld [vmem:[#allocation2 + $0xdb] sm:$0xff]  ;;  %v704_v38 = vld [vmem:[#allocation2 + $0xcc] sm:$0xff] }
 0x1aa   :  { %v9589_v9 = vpop.permute.xlu1 %1189  ;;  %v9591_v14 = vpop.permute.xlu0 %1187 }
 0x1ac   :  { %1519 = vrot.lane.b32.xlu1 %v623_v49, %s8719_s22  ;;  %1837 = vrot.lane.b32.xlu0 %v702_v54, %s8720_s25  ;;  %v705_v49 = vld [vmem:[#allocation2 + $0xdc] sm:$0xff] }
 0x1ad   :  { %v626_v54 = vld [vmem:[#allocation2 + $0xe3] sm:$0xff] }
 0x1ae   :  { %v9595_v58 = vpop.permute.xlu1 %1193  ;;  %v9597_v61 = vpop.permute.xlu0 %1191 }
 0x1b0   :  { %1839 = vrot.lane.b32.xlu1 %v703_v6, %s8720_s25  ;;  %1521 = vrot.lane.b32.xlu0 %v624_v17, %s8719_s22  ;;  %v627_v6 = vld [vmem:[#allocation2 + $0xf3] sm:$0xff]  ;;  %v706_v17 = vld [vmem:[#allocation2 + $0xe4] sm:$0xff] }
 0x1b2   :  { %v9601_v50 = vpop.permute.xlu1 %1197  ;;  %v9603_v53 = vpop.permute.xlu0 %1195 }
 0x1b4   :  { %1523 = vrot.lane.b32.xlu1 %v625_v33, %s8719_s22  ;;  %1841 = vrot.lane.b32.xlu0 %v704_v38, %s8720_s25  ;;  %v707_v33 = vld [vmem:[#allocation2 + $0xf4] sm:$0xff] }
 0x1b5   :  { %v628_v38 = vld [vmem:[#allocation2 + $0xfb] sm:$0xff] }
 0x1b6   :  { %v9607_v42 = vpop.permute.xlu1 %1201  ;;  %v9609_v45 = vpop.permute.xlu0 %1199 }
 0x1b8   :  { %1843 = vrot.lane.b32.xlu1 %v705_v49, %s8720_s25  ;;  %1525 = vrot.lane.b32.xlu0 %v626_v54, %s8719_s22  ;;  %v629_v49 = vld [vmem:[#allocation2 + $0x10b] sm:$0xff]  ;;  %v708_v54 = vld [vmem:[#allocation2 + $0xfc] sm:$0xff] }
 0x1ba   :  { %v9613_v26 = vpop.permute.xlu1 %1205  ;;  %v9615_v29 = vpop.permute.xlu0 %1203 }
 0x1bb   :  { %15371 = vst [vmem:[#allocation96_spill] sm:$0xff] %v9613_v26  ;;  %15372 = vst [vmem:[#allocation97_spill] sm:$0xff] %v9615_v29  ;;  %v370_v26 = vld [vmem:[#allocation2 + $0x20] sm:$0xff] }
 0x1bc   :  { %1527 = vrot.lane.b32.xlu1 %v627_v6, %s8719_s22  ;;  %1845 = vrot.lane.b32.xlu0 %v706_v17, %s8720_s25  ;;  %v709_v6 = vld [vmem:[#allocation2 + $0x10c] sm:$0xff]  ;;  %v724_v29 = vld [vmem:[#allocation2 + $0x1bc] sm:$0xff] }
 0x1bd   :  { %v630_v17 = vld [vmem:[#allocation2 + $0x113] sm:$0xff] }
 0x1be   :  { %v9619_v18 = vpop.permute.xlu1 %1209  ;;  %v9621_v21 = vpop.permute.xlu0 %1207 }
 0x1bf   :  { %15373 = vst [vmem:[#allocation98_spill] sm:$0xff] %v9619_v18  ;;  %15374 = vst [vmem:[#allocation99_spill] sm:$0xff] %v9621_v21  ;;  %v3486_v18 = vld [vmem:[%s15232_s1 + $0x60] sm:$0xf] }
 0x1c0   :  { %1847 = vrot.lane.b32.xlu1 %v707_v33, %s8720_s25  ;;  %1529 = vrot.lane.b32.xlu0 %v628_v38, %s8719_s22  ;;  %v631_v33 = vld [vmem:[#allocation2 + $0x123] sm:$0xff]  ;;  %v710_v38 = vld [vmem:[#allocation2 + $0x114] sm:$0xff] }
 0x1c1   :  { %8194 = vmatprep.subr.msk.mxu0 %vm3680_vm4, %v3486_v18 }
 0x1c2   :  { %v9625_v10 = vpop.permute.xlu1 %1213  ;;  %v9627_v13 = vpop.permute.xlu0 %1211  ;;  %8195 = vmatpush3.msk.msra.mxu0 %vm3680_vm4, %v3486_v18  ;;  %v371_v18 = vld [vmem:[#allocation2 + $0x30] sm:$0xff] }
 0x1c3   :  { %15375 = vst [vmem:[#allocation100_spill] sm:$0xff] %v9625_v10  ;;  %15376 = vst [vmem:[#allocation101_spill] sm:$0xff] %v9627_v13 }
 0x1c4   :  { %1531 = vrot.lane.b32.xlu1 %v629_v49, %s8719_s22  ;;  %1849 = vrot.lane.b32.xlu0 %v708_v54, %s8720_s25  ;;  %v711_v49 = vld [vmem:[#allocation2 + $0x124] sm:$0xff] }
 0x1c5   :  { %v632_v54 = vld [vmem:[#allocation2 + $0x12b] sm:$0xff] }
 0x1c6   :  { %v9631_v2 = vpop.permute.xlu1 %1217  ;;  %v9633_v5 = vpop.permute.xlu0 %1215 }
 0x1c7   :  { %15377 = vst [vmem:[#allocation102_spill] sm:$0xff] %v9631_v2  ;;  %15378 = vst [vmem:[#allocation103_spill] sm:$0xff] %v9633_v5 }
 0x1c8   :  { %1851 = vrot.lane.b32.xlu1 %v709_v6, %s8720_s25  ;;  %1533 = vrot.lane.b32.xlu0 %v630_v17, %s8719_s22  ;;  %v633_v6 = vld [vmem:[#allocation2 + $0x13b] sm:$0xff]  ;;  %v712_v17 = vld [vmem:[#allocation2 + $0x12c] sm:$0xff] }
 0x1ca   :  { %v9637_v59 = vpop.permute.xlu1 %1221  ;;  %v9639_v60 = vpop.permute.xlu0 %1219 }
 0x1cb   :  { %15379 = vst [vmem:[#allocation104_spill] sm:$0xff] %v9637_v59  ;;  %15380 = vst [vmem:[#allocation105_spill] sm:$0xff] %v9639_v60 }
 0x1cc   :  { %1535 = vrot.lane.b32.xlu1 %v631_v33, %s8719_s22  ;;  %1853 = vrot.lane.b32.xlu0 %v710_v38, %s8720_s25  ;;  %v713_v33 = vld [vmem:[#allocation2 + $0x13c] sm:$0xff] }
 0x1cd   :  { %v634_v38 = vld [vmem:[#allocation2 + $0x143] sm:$0xff] }
 0x1ce   :  { %v9643_v55 = vpop.permute.xlu1 %1225  ;;  %v9645_v56 = vpop.permute.xlu0 %1223 }
 0x1cf   :  { %15381 = vst [vmem:[#allocation106_spill] sm:$0xff] %v9643_v55  ;;  %15382 = vst [vmem:[#allocation107_spill] sm:$0xff] %v9645_v56 }
 0x1d0   :  { %1855 = vrot.lane.b32.xlu1 %v711_v49, %s8720_s25  ;;  %1537 = vrot.lane.b32.xlu0 %v632_v54, %s8719_s22  ;;  %v635_v49 = vld [vmem:[#allocation2 + $0x153] sm:$0xff]  ;;  %v714_v54 = vld [vmem:[#allocation2 + $0x144] sm:$0xff] }
 0x1d2   :  { %v9649_v51 = vpop.permute.xlu1 %1229  ;;  %v9651_v59 = vpop.permute.xlu0 %1227 }
 0x1d3   :  { %15383 = vst [vmem:[#allocation108_spill] sm:$0xff] %v9649_v51  ;;  %15384 = vst [vmem:[#allocation109_spill] sm:$0xff] %v9651_v59 }
 0x1d4   :  { %1539 = vrot.lane.b32.xlu1 %v633_v6, %s8719_s22  ;;  %1857 = vrot.lane.b32.xlu0 %v712_v17, %s8720_s25  ;;  %v715_v6 = vld [vmem:[#allocation2 + $0x154] sm:$0xff] }
 0x1d5   :  { %v636_v17 = vld [vmem:[#allocation2 + $0x15b] sm:$0xff] }
 0x1d6   :  { %v9655_v60 = vpop.permute.xlu1 %1233  ;;  %v9657_v55 = vpop.permute.xlu0 %1231 }
 0x1d7   :  { %15385 = vst [vmem:[#allocation110_spill] sm:$0xff] %v9655_v60  ;;  %15386 = vst [vmem:[#allocation111_spill] sm:$0xff] %v9657_v55 }
 0x1d8   :  { %1859 = vrot.lane.b32.xlu1 %v713_v33, %s8720_s25  ;;  %1541 = vrot.lane.b32.xlu0 %v634_v38, %s8719_s22  ;;  %v637_v33 = vld [vmem:[#allocation2 + $0x16b] sm:$0xff]  ;;  %v716_v38 = vld [vmem:[#allocation2 + $0x15c] sm:$0xff] }
 0x1da   :  { %v9661_v56 = vpop.permute.xlu1 %1237  ;;  %v9663_v51 = vpop.permute.xlu0 %1235 }
 0x1db   :  { %15387 = vst [vmem:[#allocation112_spill] sm:$0xff] %v9661_v56  ;;  %15388 = vst [vmem:[#allocation113_spill] sm:$0xff] %v9663_v51 }
 0x1dc   :  { %1543 = vrot.lane.b32.xlu1 %v635_v49, %s8719_s22  ;;  %1861 = vrot.lane.b32.xlu0 %v714_v54, %s8720_s25  ;;  %v717_v49 = vld [vmem:[#allocation2 + $0x16c] sm:$0xff] }
 0x1dd   :  { %v638_v54 = vld [vmem:[#allocation2 + $0x173] sm:$0xff] }
 0x1de   :  { %v9667_v59 = vpop.permute.xlu1 %1241  ;;  %v9669_v60 = vpop.permute.xlu0 %1239 }
 0x1df   :  { %15389 = vst [vmem:[#allocation114_spill] sm:$0xff] %v9667_v59  ;;  %15390 = vst [vmem:[#allocation115_spill] sm:$0xff] %v9669_v60 }
 0x1e0   :  { %1863 = vrot.lane.b32.xlu1 %v715_v6, %s8720_s25  ;;  %1545 = vrot.lane.b32.xlu0 %v636_v17, %s8719_s22  ;;  %v639_v6 = vld [vmem:[#allocation2 + $0x183] sm:$0xff]  ;;  %v718_v17 = vld [vmem:[#allocation2 + $0x174] sm:$0xff] }
 0x1e2   :  { %v9673_v55 = vpop.permute.xlu1 %1245  ;;  %v9675_v56 = vpop.permute.xlu0 %1243 }
 0x1e3   :  { %15391 = vst [vmem:[#allocation116_spill] sm:$0xff] %v9673_v55  ;;  %15392 = vst [vmem:[#allocation117_spill] sm:$0xff] %v9675_v56 }
 0x1e4   :  { %1547 = vrot.lane.b32.xlu1 %v637_v33, %s8719_s22  ;;  %1865 = vrot.lane.b32.xlu0 %v716_v38, %s8720_s25  ;;  %v719_v33 = vld [vmem:[#allocation2 + $0x184] sm:$0xff] }
 0x1e5   :  { %v640_v38 = vld [vmem:[#allocation2 + $0x18b] sm:$0xff] }
 0x1e6   :  { %v9679_v51 = vpop.permute.xlu1 %1491  ;;  %v9681_v59 = vpop.permute.xlu0 %1247 }
 0x1e7   :  { %15393 = vst [vmem:[#allocation118_spill] sm:$0xff] %v9681_v59 }
 0x1e8   :  { %1867 = vrot.lane.b32.xlu1 %v717_v49, %s8720_s25  ;;  %1549 = vrot.lane.b32.xlu0 %v638_v54, %s8719_s22  ;;  %v641_v49 = vld [vmem:[#allocation2 + $0x19b] sm:$0xff]  ;;  %v720_v54 = vld [vmem:[#allocation2 + $0x18c] sm:$0xff] }
 0x1ea   :  { %v9685_v60 = vpop.permute.xlu1 %1495  ;;  %v9687_v55 = vpop.permute.xlu0 %1493 }
 0x1ec   :  { %1551 = vrot.lane.b32.xlu1 %v639_v6, %s8719_s22  ;;  %1869 = vrot.lane.b32.xlu0 %v718_v17, %s8720_s25  ;;  %v721_v6 = vld [vmem:[#allocation2 + $0x19c] sm:$0xff] }
 0x1ed   :  { %v642_v17 = vld [vmem:[#allocation2 + $0x1a3] sm:$0xff] }
 0x1ee   :  { %v9691_v56 = vpop.permute.xlu1 %1497  ;;  %v9693_v52 = vpop.permute.xlu0 %1811 }
 0x1f0   :  { %1871 = vrot.lane.b32.xlu1 %v719_v33, %s8720_s25  ;;  %1553 = vrot.lane.b32.xlu0 %v640_v38, %s8719_s22  ;;  %v607_v33 = vld [vmem:[#allocation2 + $0x3] sm:$0xff] }
 0x1f1   :  { %v722_v38 = vld [vmem:[#allocation2 + $0x1a4] sm:$0xff] }
 0x1f2   :  { %v9697_v59 = vpop.permute.xlu1 %1813  ;;  %v9699_v2 = vpop.permute.xlu0 %1499 }
 0x1f4   :  { %1555 = vrot.lane.b32.xlu1 %v641_v49, %s8719_s22  ;;  %1873 = vrot.lane.b32.xlu0 %v720_v54, %s8720_s25  ;;  %v643_v49 = vld [vmem:[#allocation2 + $0x1b3] sm:$0xff]  ;;  %v608_v54 = vld [vmem:[#allocation2 + $0xb] sm:$0xff] }
 0x1f6   :  { %v9703_v47 = vpop.permute.xlu1 %1501  ;;  %v9705_v5 = vpop.permute.xlu0 %1815 }
 0x1f8   :  { %1875 = vrot.lane.b32.xlu1 %v721_v6, %s8720_s25  ;;  %1557 = vrot.lane.b32.xlu0 %v642_v17, %s8719_s22  ;;  %v15394_v6 = vmov 0.0   ;;  %v644_v17 = vld [vmem:[#allocation2 + $0x1bb] sm:$0xff] }
 0x1f9   :  { %4818 = vst.msk [vmem:[#allocation3] sm:$0xff] %vm3214_vm3, %v15394_v6  ;;  %4821 = vst.msk [vmem:[#allocation3 + $0x10] sm:$0xff] %vm3214_vm3, %v15394_v6 }
 0x1fa   :  { %v9709_v48 = vpop.permute.xlu1 %1817  ;;  %v9711_v10 = vpop.permute.xlu0 %1503  ;;  %4823 = vst.msk [vmem:[#allocation3 + $0xc0] sm:$0xff] %vm3214_vm3, %v15394_v6  ;;  %4825 = vst.msk [vmem:[#allocation3 + $0xd0] sm:$0xff] %vm3214_vm3, %v15394_v6 }
 0x1fb   :  { %4828 = vst.msk [vmem:[#allocation3 + $0xa0] sm:$0xff] %vm3214_vm3, %v15394_v6  ;;  %4830 = vst.msk [vmem:[#allocation3 + $0xb0] sm:$0xff] %vm3214_vm3, %v15394_v6 }
 0x1fc   :  { %1487 = vrot.lane.b32.xlu1 %v607_v33, %s8719_s22  ;;  %1877 = vrot.lane.b32.xlu0 %v722_v38, %s8720_s25  ;;  %4832 = vst.msk [vmem:[#allocation3 + $0x160] sm:$0xff] %vm3214_vm3, %v15394_v6  ;;  %4834 = vst.msk [vmem:[#allocation3 + $0x170] sm:$0xff] %vm3214_vm3, %v15394_v6  ;;  %v687_v33 = vld [vmem:[#allocation2 + $0x4] sm:$0xff]  ;;  %v369_v6 = vld [vmem:[#allocation2 + $0x18] sm:$0xff] }
 0x1fe   :  { %v9715_v43 = vpop.permute.xlu1 %1505  ;;  %v9717_v13 = vpop.permute.xlu0 %1819 }
 0x200   :  { %1559 = vrot.lane.b32.xlu1 %v643_v49, %s8719_s22  ;;  %1489 = vrot.lane.b32.xlu0 %v608_v54, %s8719_s22  ;;  %v688_v49 = vld [vmem:[#allocation2 + $0xc] sm:$0xff] }
 0x202   :  { %v9737_v38 = vpop.permute.xlu1 %1823  ;;  %v9739_v44 = vpop.permute.xlu0 %1821 }
 0x204   :  { %1561 = vrot.lane.b32.xlu1 %v644_v17, %s8719_s22  ;;  %1807 = vrot.lane.b32.xlu0 %v687_v33, %s8720_s25  ;;  %v3485_v17 = vld [vmem:[%s15232_s1 + $0x58] sm:$0xff]  ;;  %v2049_v33 = vsel %vm210_vm0, %v369_v6, %v9319_v62 }
 0x205   :  { %v2130_v35 = vsel %vm2127_vm6, %v2049_v33, %v9567_v57  ;;  %8196 = vmatprep.subr.mxu0 %v3485_v17  ;;  %v2050_v57 = vsel %vm210_vm0, %v370_v26, %v9325_v3 }
 0x206   :  { %v9747_v54 = vpop.permute.xlu1 %1507  ;;  %v9749_v21 = vpop.permute.xlu0 %1825  ;;  %v2211_v62 = vsel %vm2208_vm5, %v2130_v35, %v9679_v51  ;;  %8197 = vmatpush3.msra.mxu0 %v3485_v17  ;;  %v2051_v35 = vsel %vm210_vm0, %v371_v18, %v9333_v8  ;;  %v372_v51 = vld [vmem:[#allocation2 + $0x38] sm:$0xff]  ;;  %v2131_v17 = vsel %vm2127_vm6, %v2050_v57, %v9565_v37  ;;  %v3482_v18 = vld [vmem:[%s15232_s1 + $0x40] sm:$0xff] }
 0x207   :  { %8198 = vmatprep.subr.mxu0 %v3484_v40  ;;  %v2132_v33 = vsel %vm2127_vm6, %v2051_v35, %v9573_v1  ;;  %v2212_v8 = vsel %vm2208_vm5, %v2131_v17, %v9687_v55  ;;  %v2052_v55 = vsel %vm210_vm0, %v372_v51, %v9331_v7  ;;  %v645_v35 = vld [vmem:[#allocation2 + $0x1cb] sm:$0xff] }
 0x208   :  { %1879 = vrot.lane.b32.xlu1 %v723_v39, %s8720_s25  ;;  %1809 = vrot.lane.b32.xlu0 %v688_v49, %s8720_s25  ;;  %v9772_v39 = vsel %vm2289_vm7, %v2211_v62, %v9693_v52  ;;  %v3483_v49 = vld [vmem:[%s15232_s1 + $0x48] sm:$0xff]  ;;  %v2213_v3 = vsel %vm2208_vm5, %v2132_v33, %v9685_v60  ;;  %v9801_v37 = vsel %vm2289_vm7, %v2212_v8, %v9697_v59  ;;  %v3481_v59 = vld [vmem:[%s15232_s1 + $0x38] sm:$0xff] }
 0x209   :  { %v373_v52 = vld [vmem:[#allocation2 + $0x48] sm:$0xff]  ;;  %8199 = vmatpush3.msra.mxu0 %v3484_v40  ;;  %v9805_v40 = vsel %vm2289_vm7, %v2213_v3, %v9705_v5  ;;  %v2133_v5 = vsel %vm2127_vm6, %v2052_v55, %v9571_v22  ;;  %v3478_v3 = vld [vmem:[%s15232_s1 + $0x20] sm:$0xff] }
 0x20a   :  { %v9766_v6 = vpop.permute.xlu1 %1827  ;;  %v9768_v36 = vpop.permute.xlu0 %1509  ;;  %8200 = vmatprep.subr.mxu0 %v3483_v49  ;;  %v2053_v60 = vsel %vm210_vm0, %v373_v52, %v9339_v12  ;;  %v2214_v12 = vsel %vm2208_vm5, %v2133_v5, %v9691_v56  ;;  %v3480_v56 = vld [vmem:[%s15232_s1 + $0x30] sm:$0xff]  ;;  %v3479_v52 = vld [vmem:[%s15232_s1 + $0x28] sm:$0xff] }
 0x20b   :  { %8201 = vmatpush3.msra.mxu0 %v3483_v49  ;;  %v2134_v7 = vsel %vm2127_vm6, %v2053_v60, %v9579_v46  ;;  %v9832_v57 = vsel %vm2289_vm7, %v2214_v12, %v9709_v48  ;;  %v374_v46 = vld [vmem:[#allocation2 + $0x50] sm:$0xff]  ;;  %v569_v48 = vld [vmem:[#allocation2 + $0x1fa] sm:$0xff] }
 0x20c   :  { %1881 = vrot.lane.b32.xlu1 %v724_v29, %s8720_s25  ;;  %2434 = vrot.lane.b32.xlu0 %v9772_v39, %s8721_s14  ;;  %v2215_v1 = vsel %vm2208_vm5, %v2134_v7, %v9699_v2  ;;  %v375_v2 = vld [vmem:[#allocation2 + $0x60] sm:$0xff]  ;;  %v2054_v17 = vsel %vm210_vm0, %v374_v46, %v9337_v11  ;;  %v3475_v7 = vld [vmem:[%s15232_s1 + $0x8] sm:$0xff]  ;;  %v646_v12 = vld [vmem:[#allocation2 + $0x1d3] sm:$0xff] }
 0x20d   :  { %8202 = vmatprep.subr.mxu0 %v3482_v18  ;;  %v9836_v22 = vsel %vm2289_vm7, %v2215_v1, %v9717_v13  ;;  %v2055_v33 = vsel %vm210_vm0, %v375_v2, %v9345_v16  ;;  %v2135_v8 = vsel %vm2127_vm6, %v2054_v17, %v9577_v41  ;;  %v649_v1 = vld [vmem:[#allocation2 + $0x1fb] sm:$0xff] }
 0x20e   :  { %v9792_v26 = vpop.permute.xlu1 %1511  ;;  %v9794_v29 = vpop.permute.xlu0 %1829  ;;  %8203 = vmatpush3.msra.mxu0 %v3482_v18  ;;  %v2136_v18 = vsel %vm2127_vm6, %v2055_v33, %v9585_v30  ;;  %v2216_v11 = vsel %vm2208_vm5, %v2135_v8, %v9703_v47  ;;  %v3477_v47 = vld [vmem:[%s15232_s1 + $0x18] sm:$0xff]  ;;  %v3474_v2 = vld [vmem:[%s15232_s1] sm:$0xff] }
 0x20f   :  { %8204 = vmatprep.subr.mxu0 %v3481_v59  ;;  %v2217_v16 = vsel %vm2208_vm5, %v2136_v18, %v9711_v10  ;;  %v9879_v41 = vsel %vm2289_vm7, %v2216_v11, %v9739_v44  ;;  %v570_v10 = vld [vmem:[#allocation2 + $0x202] sm:$0xff]  ;;  %v571_v30 = vld [vmem:[#allocation2 + $0x212] sm:$0xff]  ;;  %v572_v8 = vld [vmem:[#allocation2 + $0x21a] sm:$0xff] }
 0x210   :  { %2436 = vrot.lane.b32.xlu0 %v9801_v37, %s8721_s14  ;;  %2630 = vrot.lane.b32.xlu1 %v9805_v40, %s8722_s17  ;;  %v3476_v44 = vld [vmem:[%s15232_s1 + $0x10] sm:$0xff]  ;;  %s8733_s1 = smov 122  }
 0x211   :  { %8205 = vmatpush3.msra.mxu0 %v3481_v59  ;;  %v9875_v59 = vsel %vm2289_vm7, %v2217_v16, %v9737_v38 }
 0x212   :  { %v9826_v62 = vpop.permute.xlu1 %1831  ;;  %v9828_v49 = vpop.permute.xlu0 %1513  ;;  %8206 = vmatprep.subr.mxu0 %v3480_v56 }
 0x213   :  { %8207 = vmatpush3.msra.mxu0 %v3480_v56 }
 0x214   :  { %2632 = vrot.lane.b32.xlu0 %v9832_v57, %s8722_s17  ;;  %2826 = vrot.lane.b32.xlu1 %v9836_v22, %s8723_s11 }
 0x215   :  { %8208 = vmatprep.subr.mxu0 %v3479_v52 }
 0x216   :  { %v9845_v51 = vpop.permute.xlu1 %1515  ;;  %v9847_v13 = vpop.permute.xlu0 %1833  ;;  %8209 = vmatpush3.msra.mxu0 %v3479_v52 }
 0x217   :  { %8210 = vmatprep.subr.mxu0 %v3478_v3 }
 0x218   :  { %1251 = vrot.lane.b32.xlu0 %v569_v48, %s8718_s0  ;;  %1563 = vrot.lane.b32.xlu1 %v645_v35, %s8719_s22  ;;  %v376_v48 = vld [vmem:[#allocation2 + $0x68] sm:$0xff] }
 0x219   :  { %8211 = vmatpush3.msra.mxu0 %v3478_v3  ;;  %v725_v35 = vld [vmem:[#allocation2 + $0x1cc] sm:$0xff]  ;;  %v2056_v33 = vsel %vm210_vm0, %v376_v48, %v9343_v15 }
 0x21a   :  { %v9869_v55 = vpop.permute.xlu1 %1835  ;;  %v9871_v60 = vpop.permute.xlu0 %1517  ;;  %8212 = vmatprep.subr.mxu0 %v3477_v47  ;;  %v2137_v3 = vsel %vm2127_vm6, %v2056_v33, %v9583_v25  ;;  %v573_v15 = vld [vmem:[#allocation2 + $0x22a] sm:$0xff]  ;;  %v574_v48 = vld [vmem:[#allocation2 + $0x232] sm:$0xff] }
 0x21b   :  { %8213 = vmatpush3.msra.mxu0 %v3477_v47  ;;  %v2218_v18 = vsel %vm2208_vm5, %v2137_v3, %v9715_v43  ;;  %v651_v43 = vld [vmem:[#allocation2 + $0x213] sm:$0xff]  ;;  %v575_v3 = vld [vmem:[#allocation2 + $0x242] sm:$0xff] }
 0x21c   :  { %2828 = vrot.lane.b32.xlu0 %v9879_v41, %s8723_s11  ;;  %3022 = vrot.lane.b32.xlu1 %v9875_v59, %s8724_s26  ;;  %v9928_v47 = vsel %vm2289_vm7, %v2218_v18, %v9749_v21 }
 0x21d   :  { %8214 = vmatprep.subr.mxu0 %v3476_v44 }
 0x21e   :  { %v9888_v38 = vpop.permute.xlu1 %1519  ;;  %v9890_v5 = vpop.permute.xlu0 %1837  ;;  %8215 = vmatpush3.msra.mxu0 %v3476_v44  ;;  %v726_v44 = vld [vmem:[#allocation2 + $0x1d4] sm:$0xff] }
 0x21f   :  { %8216 = vmatprep.subr.mxu0 %v3475_v7 }
 0x220   :  { %1253 = vrot.lane.b32.xlu0 %v570_v10, %s8718_s0  ;;  %1255 = vrot.lane.b32.xlu1 %v571_v30, %s8718_s0  ;;  %v650_v10 = vld [vmem:[#allocation2 + $0x203] sm:$0xff] }
 0x221   :  { %8217 = vmatpush3.msra.mxu0 %v3475_v7 }
 0x222   :  { %v9900_v56 = vpop.permute.xlu1 %1839  ;;  %v9902_v46 = vpop.permute.xlu0 %1521  ;;  %8218 = vmatprep.subr.mxu0 %v3474_v2 }
 0x223   :  { %8219 = vmatpush3.msra.mxu0 %v3474_v2 }
 0x224   :  { %1565 = vrot.lane.b32.xlu0 %v646_v12, %s8719_s22  ;;  %1571 = vrot.lane.b32.xlu1 %v649_v1, %s8719_s22  ;;  %v729_v12 = vld [vmem:[#allocation2 + $0x1fc] sm:$0xff] }
 0x226   :  { %v9909_v52 = vpop.permute.xlu1 %1523  ;;  %v9911_v17 = vpop.permute.xlu0 %1841 }
 0x228   :  { %1883 = vrot.lane.b32.xlu0 %v725_v35, %s8720_s25  ;;  %2438 = vrot.lane.b32.xlu1 %v9805_v40, %s8721_s14 }
 0x22a   :  { %v9922_v11 = vpop.permute.xlu1 %1843  ;;  %v9924_v16 = vpop.permute.xlu0 %1525 }
 0x22c   :  { %3024 = vrot.lane.b32.xlu0 %v9928_v47, %s8724_s26  ;;  %1257 = vrot.lane.b32.xlu1 %v572_v8, %s8718_s0  ;;  %v652_v8 = vld [vmem:[#allocation2 + $0x21b] sm:$0xff] }
 0x22e   :  { %v9933_v25 = vpop.permute.xlu1 %1527  ;;  %v9935_v30 = vpop.permute.xlu0 %1845 }
 0x230   :  { %1259 = vrot.lane.b32.xlu0 %v573_v15, %s8718_s0  ;;  %1573 = vrot.lane.b32.xlu1 %v650_v10, %s8719_s22  ;;  %v653_v10 = vld [vmem:[#allocation2 + $0x22b] sm:$0xff] }
 0x232   :  { %v9939_v7 = vpop.permute.xlu1 %1847  ;;  %v9941_v21 = vpop.permute.xlu0 %1529 }
 0x234   :  { %1575 = vrot.lane.b32.xlu0 %v651_v43, %s8719_s22  ;;  %1885 = vrot.lane.b32.xlu1 %v726_v44, %s8720_s25  ;;  %v730_v43 = vld [vmem:[#allocation2 + $0x204] sm:$0xff] }
 0x236   :  { %v9945_v1 = vpop.permute.xlu1 %1531  ;;  %v9947_v2 = vpop.permute.xlu0 %1849 }
 0x238   :  { %1891 = vrot.lane.b32.xlu0 %v729_v12, %s8720_s25  ;;  %2440 = vrot.lane.b32.xlu1 %v9832_v57, %s8721_s14 }
 0x23a   :  { %v9952_v35 = vpop.permute.xlu1 %1851  ;;  %v9954_v33 = vpop.permute.xlu0 %1533 }
 0x23b   :  { %15395 = vst [vmem:[#allocation119_spill] sm:$0xff] %v9954_v33 }
 0x23c   :  { %2634 = vrot.lane.b32.xlu0 %v9836_v22, %s8722_s17  ;;  %1261 = vrot.lane.b32.xlu1 %v574_v48, %s8718_s0  ;;  %v731_v48 = vld [vmem:[#allocation2 + $0x214] sm:$0xff] }
 0x23e   :  { %v9959_v18 = vpop.permute.xlu1 %1535  ;;  %v9961_v15 = vpop.permute.xlu0 %1853 }
 0x23f   :  { %15396 = vst [vmem:[#allocation120_spill] sm:$0xff] %v9959_v18  ;;  %15397 = vst [vmem:[#allocation121_spill] sm:$0xff] %v9961_v15 }
 0x240   :  { %1263 = vrot.lane.b32.xlu0 %v575_v3, %s8718_s0  ;;  %1577 = vrot.lane.b32.xlu1 %v652_v8, %s8719_s22  ;;  %v576_v3 = vld [vmem:[#allocation2 + $0x24a] sm:$0xff] }
 0x242   :  { %v9965_v44 = vpop.permute.xlu1 %1855  ;;  %v9967_v12 = vpop.permute.xlu0 %1537 }
 0x243   :  { %15398 = vst [vmem:[#allocation122_spill] sm:$0xff] %v9965_v44  ;;  %15399 = vst [vmem:[#allocation123_spill] sm:$0xff] %v9967_v12  ;;  %v732_v12 = vld [vmem:[#allocation2 + $0x21c] sm:$0xff] }
 0x244   :  { %1579 = vrot.lane.b32.xlu0 %v653_v10, %s8719_s22  ;;  %1893 = vrot.lane.b32.xlu1 %v730_v43, %s8720_s25  ;;  %v654_v10 = vld [vmem:[#allocation2 + $0x233] sm:$0xff]  ;;  %v655_v43 = vld [vmem:[#allocation2 + $0x243] sm:$0xff] }
 0x246   :  { %v9971_v33 = vpop.permute.xlu1 %1539  ;;  %v9973_v18 = vpop.permute.xlu0 %1857 }
 0x247   :  { %15400 = vst [vmem:[#allocation124_spill] sm:$0xff] %v9971_v33  ;;  %15401 = vst [vmem:[#allocation125_spill] sm:$0xff] %v9973_v18 }
 0x248   :  { %1895 = vrot.lane.b32.xlu0 %v731_v48, %s8720_s25  ;;  %2636 = vrot.lane.b32.xlu1 %v9879_v41, %s8722_s17  ;;  %v377_v48 = vld [vmem:[#allocation2 + $0x78] sm:$0xff] }
 0x24a   :  { %v9978_v8 = vpop.permute.xlu1 %1859  ;;  %v9980_v44 = vpop.permute.xlu0 %1541 }
 0x24b   :  { %15402 = vst [vmem:[#allocation126_spill] sm:$0xff] %v9978_v8  ;;  %15403 = vst [vmem:[#allocation127_spill] sm:$0xff] %v9980_v44  ;;  %v733_v8 = vld [vmem:[#allocation2 + $0x22c] sm:$0xff] }
 0x24c   :  { %2830 = vrot.lane.b32.xlu0 %v9875_v59, %s8723_s11  ;;  %1265 = vrot.lane.b32.xlu1 %v576_v3, %s8718_s0  ;;  %v2057_v3 = vsel %vm210_vm0, %v377_v48, %v9351_v20  ;;  %v656_v20 = vld [vmem:[#allocation2 + $0x24b] sm:$0xff] }
 0x24e   :  { %v9985_v33 = vpop.permute.xlu1 %1543  ;;  %v9987_v18 = vpop.permute.xlu0 %1861 }
 0x24f   :  { %15404 = vst [vmem:[#allocation128_spill] sm:$0xff] %v9985_v33  ;;  %15405 = vst [vmem:[#allocation129_spill] sm:$0xff] %v9987_v18  ;;  %v2138_v33 = vsel %vm2127_vm6, %v2057_v3, %v9591_v14 }
 0x250   :  { %1581 = vrot.lane.b32.xlu0 %v654_v10, %s8719_s22  ;;  %1583 = vrot.lane.b32.xlu1 %v655_v43, %s8719_s22  ;;  %v2219_v10 = vsel %vm2208_vm5, %v2138_v33, %v9747_v54  ;;  %v378_v54 = vld [vmem:[#allocation2 + $0x80] sm:$0xff] }
 0x251   :  { %v735_v33 = vld [vmem:[#allocation2 + $0x244] sm:$0xff]  ;;  %v2058_v3 = vsel %vm210_vm0, %v378_v54, %v9349_v19 }
 0x252   :  { %v9991_v15 = vpop.permute.xlu1 %1863  ;;  %v9993_v44 = vpop.permute.xlu0 %1545 }
 0x253   :  { %15406 = vst [vmem:[#allocation130_spill] sm:$0xff] %v9993_v44  ;;  %v10009_v44 = vsel %vm2289_vm7, %v2219_v10, %v9766_v6  ;;  %v2139_v10 = vsel %vm2127_vm6, %v2058_v3, %v9589_v9 }
 0x254   :  { %1897 = vrot.lane.b32.xlu0 %v732_v12, %s8720_s25  ;;  %1899 = vrot.lane.b32.xlu1 %v733_v8, %s8720_s25  ;;  %v734_v12 = vld [vmem:[#allocation2 + $0x234] sm:$0xff] }
 0x256   :  { %v10003_v43 = vpop.permute.xlu1 %1547  ;;  %v10005_v18 = vpop.permute.xlu0 %1865 }
 0x258   :  { %2832 = vrot.lane.b32.xlu0 %v9928_v47, %s8723_s11  ;;  %3026 = vrot.lane.b32.xlu1 %v10009_v44, %s8724_s26 }
 0x25a   :  { %v10015_v14 = vpop.permute.xlu1 %1867  ;;  %v10017_v8 = vpop.permute.xlu0 %1549 }
 0x25b   :  { %15407 = vst [vmem:[#allocation131_spill] sm:$0xff] %v10017_v8 }
 0x25c   :  { %1585 = vrot.lane.b32.xlu0 %v656_v20, %s8719_s22  ;;  %1901 = vrot.lane.b32.xlu1 %v734_v12, %s8720_s25  ;;  %v736_v20 = vld [vmem:[#allocation2 + $0x24c] sm:$0xff]  ;;  %v2220_v12 = vsel %vm2208_vm5, %v2139_v10, %v9768_v36  ;;  %v577_v36 = vld [vmem:[#allocation2 + $0x25a] sm:$0xff] }
 0x25e   :  { %v10021_v6 = vpop.permute.xlu1 %1551  ;;  %v10023_v48 = vpop.permute.xlu0 %1869 }
 0x25f   :  { %15408 = vst [vmem:[#allocation132_spill] sm:$0xff] %v10021_v6  ;;  %15409 = vst [vmem:[#allocation133_spill] sm:$0xff] %v10023_v48  ;;  %v10040_v48 = vsel %vm2289_vm7, %v2220_v12, %v9794_v29  ;;  %v657_v12 = vld [vmem:[#allocation2 + $0x25b] sm:$0xff] }
 0x260   :  { %1903 = vrot.lane.b32.xlu0 %v735_v33, %s8720_s25  ;;  %2442 = vrot.lane.b32.xlu1 %v9836_v22, %s8721_s14  ;;  %v578_v33 = vld [vmem:[#allocation2 + $0x262] sm:$0xff] }
 0x262   :  { %v10034_v8 = vpop.permute.xlu1 %1871  ;;  %v10036_v6 = vpop.permute.xlu0 %1553 }
 0x263   :  { %15410 = vst [vmem:[#allocation134_spill] sm:$0xff] %v10034_v8  ;;  %15411 = vst [vmem:[#allocation135_spill] sm:$0xff] %v10036_v6 }
 0x264   :  { %3028 = vrot.lane.b32.xlu0 %v10040_v48, %s8724_s26  ;;  %1905 = vrot.lane.b32.xlu1 %v736_v20, %s8720_s25  ;;  %v379_v20 = vld [vmem:[#allocation2 + $0x90] sm:$0xff] }
 0x266   :  { %v10045_v19 = vpop.permute.xlu1 %1555  ;;  %v10047_v9 = vpop.permute.xlu0 %1873 }
 0x267   :  { %15412 = vst [vmem:[#allocation136_spill] sm:$0xff] %v10045_v19  ;;  %15413 = vst [vmem:[#allocation137_spill] sm:$0xff] %v10047_v9 }
 0x268   :  { %2444 = vrot.lane.b32.xlu0 %v9879_v41, %s8721_s14  ;;  %2638 = vrot.lane.b32.xlu1 %v9875_v59, %s8722_s17 }
 0x26a   :  { %v10053_v54 = vpop.permute.xlu1 %1875  ;;  %v10055_v29 = vpop.permute.xlu0 %1557 }
 0x26b   :  { %15414 = vst [vmem:[#allocation138_spill] sm:$0xff] %v10053_v54  ;;  %15415 = vst [vmem:[#allocation139_spill] sm:$0xff] %v10055_v29  ;;  %v658_v29 = vld [vmem:[#allocation2 + $0x263] sm:$0xff] }
 0x26c   :  { %1267 = vrot.lane.b32.xlu0 %v577_v36, %s8718_s0  ;;  %2640 = vrot.lane.b32.xlu1 %v9928_v47, %s8722_s17  ;;  %v2059_v36 = vsel %vm210_vm0, %v379_v20, %v9357_v24  ;;  %v380_v24 = vld [vmem:[#allocation2 + $0x98] sm:$0xff] }
 0x26d   :  { %v737_v20 = vld [vmem:[#allocation2 + $0x25c] sm:$0xff] }
 0x26e   :  { %v1488_v3 = vpop.permute.xlu1 %1487  ;;  %v10060_v10 = vpop.permute.xlu0 %1877 }
 0x26f   :  { %15416 = vst [vmem:[#allocation140_spill] sm:$0xff] %v10060_v10  ;;  %v2140_v10 = vsel %vm2127_vm6, %v2059_v36, %v9597_v61 }
 0x270   :  { %2834 = vrot.lane.b32.xlu0 %v10009_v44, %s8723_s11  ;;  %1269 = vrot.lane.b32.xlu1 %v578_v33, %s8718_s0  ;;  %v2221_v33 = vsel %vm2208_vm5, %v2140_v10, %v9792_v26  ;;  %v2060_v26 = vsel %vm210_vm0, %v380_v24, %v9355_v23  ;;  %v738_v10 = vld [vmem:[#allocation2 + $0x264] sm:$0xff] }
 0x271   :  { %v10082_v6 = vsel %vm2289_vm7, %v2221_v33, %v9826_v62  ;;  %v2141_v62 = vsel %vm2127_vm6, %v2060_v26, %v9595_v58  ;;  %v367_v58 = vld [vmem:[#allocation2] sm:$0xff] }
 0x272   :  { %v10065_v19 = vpop.permute.xlu1 %1559  ;;  %v10067_v54 = vpop.permute.xlu0 %1489 }
 0x273   :  { %15417 = vst [vmem:[#allocation141_spill] sm:$0xff] %v10065_v19 }
 0x274   :  { %1587 = vrot.lane.b32.xlu0 %v657_v12, %s8719_s22  ;;  %2836 = vrot.lane.b32.xlu1 %v10040_v48, %s8723_s11 }
 0x276   :  { %v10078_v9 = vpop.permute.xlu1 %1561  ;;  %v1808_v19 = vpop.permute.xlu0 %1807 }
 0x277   :  { %15418 = vst [vmem:[#allocation142_spill] sm:$0xff] %v10078_v9 }
 0x278   :  { %3030 = vrot.lane.b32.xlu0 %v10082_v6, %s8724_s26  ;;  %1589 = vrot.lane.b32.xlu1 %v658_v29, %s8719_s22  ;;  %v2222_v29 = vsel %vm2208_vm5, %v2141_v62, %v9828_v49  ;;  %v579_v49 = vld [vmem:[#allocation2 + $0x272] sm:$0xff] }
 0x279   :  { %v10104_v9 = vsel %vm2289_vm7, %v2222_v29, %v9847_v13  ;;  %v2047_v13 = vsel %vm210_vm0, %v367_v58, %v9321_v63 }
 0x27a   :  { %v10087_v12 = vpop.permute.xlu1 %1879  ;;  %v10089_v61 = vpop.permute.xlu0 %1809  ;;  %v2128_v62 = vsel %vm2127_vm6, %v2047_v13, %v9561_v34  ;;  %v381_v34 = vld [vmem:[#allocation2 + $0xa8] sm:$0xff] }
 0x27b   :  { %15419 = vst [vmem:[#allocation143_spill] sm:$0xff] %v10087_v12  ;;  %v2209_v29 = vsel %vm2208_vm5, %v2128_v62, %v1488_v3  ;;  %v659_v3 = vld [vmem:[#allocation2 + $0x273] sm:$0xff] }
 0x27c   :  { %1907 = vrot.lane.b32.xlu0 %v737_v20, %s8720_s25  ;;  %2446 = vrot.lane.b32.xlu1 %v9875_v59, %s8721_s14  ;;  %v2290_v8 = vsel %vm2289_vm7, %v2209_v29, %v1808_v19 }
 0x27e   :  { %v10100_v36 = vpop.permute.xlu1 %1881  ;;  %v2435_v33 = vpop.permute.xlu0 %2434 }
 0x27f   :  { %15420 = vst [vmem:[#allocation144_spill] sm:$0xff] %v10100_v36  ;;  %v3215_v63 = vsel %vm3214_vm3, %v2290_v8, %v2435_v33  ;;  %v2061_v8 = vsel %vm210_vm0, %v381_v34, %v9363_v28  ;;  %v739_v34 = vld [vmem:[#allocation2 + $0x274] sm:$0xff] }
 0x280   :  { %3032 = vrot.lane.b32.xlu0 %v10104_v9, %s8724_s26  ;;  %1909 = vrot.lane.b32.xlu1 %v738_v10, %s8720_s25  ;;  %v580_v10 = vld [vmem:[#allocation2 + $0x27a] sm:$0xff]  ;;  %v2142_v33 = vsel %vm2127_vm6, %v2061_v8, %v9603_v53  ;;  %v368_v53 = vld [vmem:[#allocation2 + $0x8] sm:$0xff] }
 0x282   :  { %v2437_v23 = vpop.permute.xlu0 %2436  ;;  %v2631_v24 = vpop.permute.xlu1 %2630 }
 0x283   :  { %v3280_v58 = vsel %vm3279_vm8, %v3215_v63, %v2631_v24  ;;  %v660_v24 = vld [vmem:[#allocation2 + $0x27b] sm:$0xff]  ;;  %v382_v63 = vld [vmem:[#allocation2 + $0xb0] sm:$0xff] }
 0x284   :  { %2448 = vrot.lane.b32.xlu0 %v9928_v47, %s8721_s14  ;;  %2642 = vrot.lane.b32.xlu1 %v10009_v44, %s8722_s17 }
 0x286   :  { %v2633_v20 = vpop.permute.xlu0 %2632  ;;  %v2827_v26 = vpop.permute.xlu1 %2826 }
 0x288   :  { %1271 = vrot.lane.b32.xlu0 %v579_v49, %s8718_s0  ;;  %2644 = vrot.lane.b32.xlu1 %v10040_v48, %s8722_s17  ;;  %v3345_v49 = vsel %vm3344_vm9, %v3280_v58, %v2827_v26  ;;  %v2223_v26 = vsel %vm2208_vm5, %v2142_v33, %v9845_v51  ;;  %v2048_v51 = vsel %vm210_vm0, %v368_v53, %v9327_v4 }
 0x289   :  { %v10149_v28 = vsel %vm2289_vm7, %v2223_v26, %v9869_v55  ;;  %v2129_v55 = vsel %vm2127_vm6, %v2048_v51, %v9559_v0  ;;  %v383_v51 = vld [vmem:[#allocation2 + $0xc0] sm:$0xff] }
 0x28a   :  { %v10121_v36 = vpop.permute.xlu0 %1251  ;;  %v10123_v12 = vpop.permute.xlu1 %1563  ;;  %v2210_v4 = vsel %vm2208_vm5, %v2129_v55, %v10067_v54 }
 0x28b   :  { %v2291_v0 = vsel %vm2289_vm7, %v2210_v4, %v10089_v61  ;;  %v581_v61 = vld [vmem:[#allocation2 + $0x28a] sm:$0xff]  ;;  %v662_v4 = vld [vmem:[#allocation2 + $0x293] sm:$0xff] }
 0x28c   :  { %2838 = vrot.lane.b32.xlu0 %v10082_v6, %s8723_s11  ;;  %1273 = vrot.lane.b32.xlu1 %v580_v10, %s8718_s0 }
 0x28e   :  { %v2829_v13 = vpop.permute.xlu0 %2828  ;;  %v3023_v62 = vpop.permute.xlu1 %3022 }
 0x28f   :  { %v3410_v19 = vsel %vm3409_vm10, %v3345_v49, %v3023_v62  ;;  %v2062_v49 = vsel %vm210_vm0, %v382_v63, %v9361_v27 }
 0x290   :  { %1591 = vrot.lane.b32.xlu0 %v659_v3, %s8719_s22  ;;  %2840 = vrot.lane.b32.xlu1 %v10104_v9, %s8723_s11  ;;  %v2143_v62 = vsel %vm2127_vm6, %v2062_v49, %v9601_v50  ;;  %v3216_v50 = vsel %vm3214_vm3, %v2291_v0, %v2437_v23  ;;  %v661_v49 = vld [vmem:[#allocation2 + $0x28b] sm:$0xff] }
 0x291   :  { %8220 = vmatprep.mubr.msk.f32.mxu0 %vm3487_vm11, %v3410_v19  ;;  %v740_v19 = vld [vmem:[#allocation2 + $0x27c] sm:$0xff]  ;;  %v2224_v8 = vsel %vm2208_vm5, %v2143_v62, %v9871_v60  ;;  %v3281_v60 = vsel %vm3279_vm8, %v3216_v50, %v2633_v20  ;;  %v582_v20 = vld [vmem:[#allocation2 + $0x292] sm:$0xff] }
 0x292   :  { %v10143_v10 = vpop.permute.xlu0 %1253  ;;  %v10145_v29 = vpop.permute.xlu1 %1255  ;;  %v3346_v54 = vsel %vm3344_vm9, %v3281_v60, %v2829_v13 }
 0x294   :  { %3034 = vrot.lane.b32.xlu0 %v10149_v28, %s8724_s26  ;;  %1593 = vrot.lane.b32.xlu1 %v660_v24, %s8719_s22  ;;  %v10179_v24 = vsel %vm2289_vm7, %v2224_v8, %v9890_v5 }
 0x296   :  { %v10154_v58 = vpop.permute.xlu0 %1565  ;;  %v10156_v3 = vpop.permute.xlu1 %1571 }
 0x298   :  { %1911 = vrot.lane.b32.xlu0 %v739_v34, %s8720_s25  ;;  %2450 = vrot.lane.b32.xlu1 %v10009_v44, %s8721_s14 }
 0x29a   :  { %v10173_v33 = vpop.permute.xlu0 %1883  ;;  %v10175_v27 = vpop.permute.xlu1 %2438 }
 0x29c   :  { %3036 = vrot.lane.b32.xlu0 %v10179_v24, %s8724_s26  ;;  %1913 = vrot.lane.b32.xlu1 %v740_v19, %s8720_s25  ;;  %v2063_v19 = vsel %vm210_vm0, %v383_v51, %v9369_v32  ;;  %v384_v32 = vld [vmem:[#allocation2 + $0xc8] sm:$0xff] }
 0x29d   :  { %v2144_v8 = vsel %vm2127_vm6, %v2063_v19, %v9609_v45 }
 0x29e   :  { %v3025_v26 = vpop.permute.xlu0 %3024  ;;  %v10189_v53 = vpop.permute.xlu1 %1257  ;;  %v2225_v0 = vsel %vm2208_vm5, %v2144_v8, %v9888_v38  ;;  %v2064_v38 = vsel %vm210_vm0, %v384_v32, %v9367_v31 }
 0x29f   :  { %v3411_v5 = vsel %vm3409_vm10, %v3346_v54, %v3025_v26  ;;  %v10228_v54 = vsel %vm2289_vm7, %v2225_v0, %v9900_v56  ;;  %v741_v26 = vld [vmem:[#allocation2 + $0x28c] sm:$0xff]  ;;  %v2145_v56 = vsel %vm2127_vm6, %v2064_v38, %v9607_v42  ;;  %v663_v38 = vld [vmem:[#allocation2 + $0x2a3] sm:$0xff] }
 0x2a0   :  { %2452 = vrot.lane.b32.xlu0 %v10040_v48, %s8721_s14  ;;  %2646 = vrot.lane.b32.xlu1 %v10082_v6, %s8722_s17 }
 0x2a1   :  { %8221 = vmatmul.mubr.msk.f32.vlgmr.msra.gmra.mxu0 %vm3487_vm11, %v3411_v5 }
 0x2a2   :  { %v10197_v23 = vpop.permute.xlu0 %1259  ;;  %v10199_v63 = vpop.permute.xlu1 %1573 }
 0x2a4   :  { %1275 = vrot.lane.b32.xlu0 %v581_v61, %s8718_s0  ;;  %2648 = vrot.lane.b32.xlu1 %v10104_v9, %s8722_s17  ;;  %v742_v61 = vld [vmem:[#allocation2 + $0x294] sm:$0xff] }
 0x2a6   :  { %v10204_v13 = vpop.permute.xlu0 %1575  ;;  %v10206_v34 = vpop.permute.xlu1 %1885 }
 0x2a8   :  { %2842 = vrot.lane.b32.xlu0 %v10149_v28, %s8723_s11  ;;  %1277 = vrot.lane.b32.xlu1 %v582_v20, %s8718_s0  ;;  %v2226_v20 = vsel %vm2208_vm5, %v2145_v56, %v9902_v46  ;;  %v583_v46 = vld [vmem:[#allocation2 + $0x2a2] sm:$0xff] }
 0x2a9   :  { %v10252_v19 = vsel %vm2289_vm7, %v2226_v20, %v9911_v17  ;;  %v584_v17 = vld [vmem:[#allocation2 + $0x2aa] sm:$0xff]  ;;  %v15427_v20 = vld [vmem:[#allocation35_spill] sm:$0xff] }
 0x2aa   :  { %v10211_v55 = vpop.permute.xlu0 %1891  ;;  %v10213_v62 = vpop.permute.xlu1 %2440 }
 0x2ac   :  { %1595 = vrot.lane.b32.xlu0 %v661_v49, %s8719_s22  ;;  %2844 = vrot.lane.b32.xlu1 %v10179_v24, %s8723_s11 }
 0x2ae   :  { %v2635_v50 = vpop.permute.xlu0 %2634  ;;  %v10224_v60 = vpop.permute.xlu1 %1261 }
 0x2af   :  { %15421 = vst [vmem:[#allocation145_spill] sm:$0xff] %v10224_v60 }
 0x2b0   :  { %3038 = vrot.lane.b32.xlu0 %v10228_v54, %s8724_s26  ;;  %1597 = vrot.lane.b32.xlu1 %v662_v4, %s8719_s22 }
 0x2b2   :  { %v10233_v5 = vpop.permute.xlu0 %1263  ;;  %v10235_v45 = vpop.permute.xlu1 %1577 }
 0x2b3   :  { %15422 = vst [vmem:[#allocation146_spill] sm:$0xff] %v10233_v5  ;;  %v664_v5 = vld [vmem:[#allocation2 + $0x2ab] sm:$0xff] }
 0x2b4   :  { %1915 = vrot.lane.b32.xlu0 %v741_v26, %s8720_s25  ;;  %2454 = vrot.lane.b32.xlu1 %v10082_v6, %s8721_s14  ;;  %v385_v26 = vld [vmem:[#allocation2 + $0xd8] sm:$0xff] }
 0x2b6   :  { %v10246_v51 = vpop.permute.xlu0 %1579  ;;  %v10248_v49 = vpop.permute.xlu1 %1893 }
 0x2b8   :  { %3040 = vrot.lane.b32.xlu0 %v10252_v19, %s8724_s26  ;;  %1917 = vrot.lane.b32.xlu1 %v742_v61, %s8720_s25 }
 0x2ba   :  { %v10257_v31 = vpop.permute.xlu0 %1895  ;;  %v2637_v42 = vpop.permute.xlu1 %2636 }
 0x2bc   :  { %2456 = vrot.lane.b32.xlu0 %v10104_v9, %s8721_s14  ;;  %2650 = vrot.lane.b32.xlu1 %v10149_v28, %s8722_s17 }
 0x2be   :  { %v2831_v8 = vpop.permute.xlu0 %2830  ;;  %v10263_v4 = vpop.permute.xlu1 %1265 }
 0x2bf   :  { %15423 = vst [vmem:[#allocation147_spill] sm:$0xff] %v10263_v4  ;;  %v3217_v4 = vsel %vm3214_vm3, %v9772_v39, %v10175_v27 }
 0x2c0   :  { %1279 = vrot.lane.b32.xlu0 %v583_v46, %s8718_s0  ;;  %2652 = vrot.lane.b32.xlu1 %v10179_v24, %s8722_s17  ;;  %v2065_v46 = vsel %vm210_vm0, %v385_v26, %v15427_v20 }
 0x2c2   :  { %v10268_v0 = vpop.permute.xlu0 %1581  ;;  %v10270_v32 = vpop.permute.xlu1 %1583 }
 0x2c3   :  { %15424 = vst [vmem:[#allocation148_spill] sm:$0xff] %v10268_v0  ;;  %15425 = vst [vmem:[#allocation149_spill] sm:$0xff] %v10270_v32  ;;  %v15428_v32 = vld [vmem:[#allocation97_spill] sm:$0xff]  ;;  %v3282_v0 = vsel %vm3279_vm8, %v3217_v4, %v2635_v50  ;;  %v386_v50 = vld [vmem:[#allocation2 + $0xe0] sm:$0xff] }
 0x2c4   :  { %2846 = vrot.lane.b32.xlu0 %v10228_v54, %s8723_s11  ;;  %1281 = vrot.lane.b32.xlu1 %v584_v17, %s8718_s0  ;;  %v2146_v17 = vsel %vm2127_vm6, %v2065_v46, %v15428_v32  ;;  %v3347_v26 = vsel %vm3344_vm9, %v3282_v0, %v2831_v8  ;;  %v743_v4 = vld [vmem:[#allocation2 + $0x2a4] sm:$0xff]  ;;  %v15429_v0 = vld [vmem:[#allocation34_spill] sm:$0xff] }
 0x2c5   :  { %v2227_v60 = vsel %vm2208_vm5, %v2146_v17, %v9909_v52  ;;  %v2066_v32 = vsel %vm210_vm0, %v386_v50, %v15429_v0 }
 0x2c6   :  { %v10275_v56 = vpop.permute.xlu0 %1897  ;;  %v10277_v61 = vpop.permute.xlu1 %1899  ;;  %v10295_v39 = vsel %vm2289_vm7, %v2227_v60, %v9922_v11  ;;  %v15430_v11 = vld [vmem:[#allocation96_spill] sm:$0xff] }
 0x2c7   :  { %15426 = vst [vmem:[#allocation150_spill] sm:$0xff] %v10277_v61  ;;  %v2147_v60 = vsel %vm2127_vm6, %v2066_v32, %v15430_v11  ;;  %v387_v11 = vld [vmem:[#allocation2 + $0xf0] sm:$0xff] }
 0x2c8   :  { %1599 = vrot.lane.b32.xlu0 %v663_v38, %s8719_s22  ;;  %2848 = vrot.lane.b32.xlu1 %v10252_v19, %s8723_s11  ;;  %v2228_v38 = vsel %vm2208_vm5, %v2147_v60, %v9924_v16  ;;  %v665_v60 = vld [vmem:[#allocation2 + $0x2bb] sm:$0xff] }
 0x2c9   :  { %v10319_v17 = vsel %vm2289_vm7, %v2228_v38, %v9935_v30 }
 0x2ca   :  { %v2833_v20 = vpop.permute.xlu0 %2832  ;;  %v3027_v61 = vpop.permute.xlu1 %3026 }
 0x2cb   :  { %v3412_v27 = vsel %vm3409_vm10, %v3347_v26, %v3027_v61  ;;  %v3218_v26 = vsel %vm3214_vm3, %v9801_v37, %v10213_v62  ;;  %v585_v37 = vld [vmem:[#allocation2 + $0x2ba] sm:$0xff] }
 0x2cc   :  { %3042 = vrot.lane.b32.xlu0 %v10295_v39, %s8724_s26  ;;  %1601 = vrot.lane.b32.xlu1 %v664_v5, %s8719_s22  ;;  %v744_v5 = vld [vmem:[#allocation2 + $0x2ac] sm:$0xff] }
 0x2cd   :  { %8223 = vmatprep.mubr.msk.f32.mxu0 %vm3487_vm11, %v3412_v27  ;;  %v3283_v27 = vsel %vm3279_vm8, %v3218_v26, %v2637_v42  ;;  %v586_v42 = vld [vmem:[#allocation2 + $0x2c2] sm:$0xff]  ;;  %v15433_v26 = vld [vmem:[#allocation37_spill] sm:$0xff] }
 0x2ce   :  { %v10302_v52 = vpop.permute.xlu0 %1585  ;;  %v10304_v8 = vpop.permute.xlu1 %1901  ;;  %v3348_v16 = vsel %vm3344_vm9, %v3283_v27, %v2833_v20  ;;  %v2067_v27 = vsel %vm210_vm0, %v387_v11, %v15433_v26 }
 0x2d0   :  { %1919 = vrot.lane.b32.xlu0 %v743_v4, %s8720_s25  ;;  %2458 = vrot.lane.b32.xlu1 %v10149_v28, %s8721_s14 }
 0x2d2   :  { %v10315_v61 = vpop.permute.xlu0 %1903  ;;  %v2443_v46 = vpop.permute.xlu1 %2442 }
 0x2d3   :  { %v3219_v11 = vsel %vm3214_vm3, %v9805_v40, %v2443_v46  ;;  %v15437_v40 = vld [vmem:[#allocation98_spill] sm:$0xff] }
 0x2d4   :  { %3044 = vrot.lane.b32.xlu0 %v10319_v17, %s8724_s26  ;;  %1921 = vrot.lane.b32.xlu1 %v744_v5, %s8720_s25 }
 0x2d6   :  { %v3029_v50 = vpop.permute.xlu0 %3028  ;;  %v10329_v4 = vpop.permute.xlu1 %1905 }
 0x2d7   :  { %v3413_v0 = vsel %vm3409_vm10, %v3348_v16, %v3029_v50  ;;  %v15434_v16 = vld [vmem:[#allocation99_spill] sm:$0xff] }
 0x2d8   :  { %2460 = vrot.lane.b32.xlu0 %v10179_v24, %s8721_s14  ;;  %2654 = vrot.lane.b32.xlu1 %v10228_v54, %s8722_s17  ;;  %v2148_v50 = vsel %vm2127_vm6, %v2067_v27, %v15434_v16  ;;  %v745_v27 = vld [vmem:[#allocation2 + $0x2bc] sm:$0xff] }
 0x2d9   :  { %8224 = vmatmul.mubr.msk.f32.gmra.mxu0 %vm3487_vm11, %v3413_v0  ;;  %v666_v0 = vld [vmem:[#allocation2 + $0x2c3] sm:$0xff] }
 0x2da   :  { %v2445_v30 = vpop.permute.xlu0 %2444  ;;  %v2639_v62 = vpop.permute.xlu1 %2638 }
 0x2db   :  { %v3284_v26 = vsel %vm3279_vm8, %v3219_v11, %v2639_v62  ;;  %v746_v62 = vld [vmem:[#allocation2 + $0x2c4] sm:$0xff] }
 0x2dc   :  { %1283 = vrot.lane.b32.xlu0 %v585_v37, %s8718_s0  ;;  %2656 = vrot.lane.b32.xlu1 %v10252_v19, %s8722_s17  ;;  %v2229_v37 = vsel %vm2208_vm5, %v2148_v50, %v9933_v25 }
 0x2de   :  { %v10340_v20 = vpop.permute.xlu0 %1267  ;;  %v2641_v32 = vpop.permute.xlu1 %2640 }
 0x2df   :  { %15431 = vst [vmem:[#allocation35_spill] sm:$0xff] %v10340_v20 }
 0x2e0   :  { %2850 = vrot.lane.b32.xlu0 %v10295_v39, %s8723_s11  ;;  %1285 = vrot.lane.b32.xlu1 %v586_v42, %s8718_s0 }
 0x2e2   :  { %v2835_v5 = vpop.permute.xlu0 %2834  ;;  %v10345_v38 = vpop.permute.xlu1 %1269 }
 0x2e3   :  { %15432 = vst [vmem:[#allocation97_spill] sm:$0xff] %v10345_v38  ;;  %v10360_v38 = vsel %vm2289_vm7, %v2229_v37, %v9939_v7  ;;  %v3349_v25 = vsel %vm3344_vm9, %v3284_v26, %v2835_v5  ;;  %v15436_v37 = vld [vmem:[#allocation36_spill] sm:$0xff]  ;;  %v3220_v26 = vsel %vm3214_vm3, %v9832_v57, %v2445_v30  ;;  %v587_v57 = vld [vmem:[#allocation2 + $0x2d2] sm:$0xff] }
 0x2e4   :  { %1603 = vrot.lane.b32.xlu0 %v665_v60, %s8719_s22  ;;  %2852 = vrot.lane.b32.xlu1 %v10319_v17, %s8723_s11  ;;  %v388_v60 = vld [vmem:[#allocation2 + $0xf8] sm:$0xff] }
 0x2e6   :  { %v10356_v42 = vpop.permute.xlu0 %1587  ;;  %v2837_v20 = vpop.permute.xlu1 %2836 }
 0x2e7   :  { %15435 = vst [vmem:[#allocation34_spill] sm:$0xff] %v10356_v42  ;;  %v2068_v42 = vsel %vm210_vm0, %v388_v60, %v15436_v37  ;;  %v389_v37 = vld [vmem:[#allocation2 + $0x108] sm:$0xff] }
 0x2e8   :  { %3046 = vrot.lane.b32.xlu0 %v10360_v38, %s8724_s26  ;;  %1605 = vrot.lane.b32.xlu1 %v666_v0, %s8719_s22  ;;  %v2149_v46 = vsel %vm2127_vm6, %v2068_v42, %v15437_v40  ;;  %v3285_v42 = vsel %vm3279_vm8, %v3220_v26, %v2641_v32  ;;  %v667_v40 = vld [vmem:[#allocation2 + $0x2d3] sm:$0xff] }
 0x2e9   :  { %v2230_v5 = vsel %vm2208_vm5, %v2149_v46, %v9941_v21 }
 0x2ea   :  { %v3031_v16 = vpop.permute.xlu0 %3030  ;;  %v10369_v50 = vpop.permute.xlu1 %1589  ;;  %v10386_v60 = vsel %vm2289_vm7, %v2230_v5, %v9947_v2  ;;  %v15439_v5 = vld [vmem:[#allocation39_spill] sm:$0xff] }
 0x2eb   :  { %v3414_v7 = vsel %vm3409_vm10, %v3349_v25, %v3031_v16  ;;  %v2069_v26 = vsel %vm210_vm0, %v389_v37, %v15439_v5 }
 0x2ec   :  { %1923 = vrot.lane.b32.xlu0 %v745_v27, %s8720_s25  ;;  %2462 = vrot.lane.b32.xlu1 %v10228_v54, %s8721_s14  ;;  %v3350_v27 = vsel %vm3344_vm9, %v3285_v42, %v2837_v20  ;;  %v588_v20 = vld [vmem:[#allocation2 + $0x2da] sm:$0xff]  ;;  %v15440_v42 = vld [vmem:[#allocation101_spill] sm:$0xff] }
 0x2ed   :  { %8226 = vmatprep.mubr.msk.f32.mxu0 %vm3487_vm11, %v3414_v7 }
 0x2ee   :  { %v10382_v0 = vpop.permute.xlu0 %1907  ;;  %v2447_v11 = vpop.permute.xlu1 %2446 }
 0x2ef   :  { %v3221_v37 = vsel %vm3214_vm3, %v9836_v22, %v2447_v11  ;;  %v15444_v22 = vld [vmem:[#allocation100_spill] sm:$0xff] }
 0x2f0   :  { %3048 = vrot.lane.b32.xlu0 %v10386_v60, %s8724_s26  ;;  %1925 = vrot.lane.b32.xlu1 %v746_v62, %s8720_s25 }
 0x2f2   :  { %v3033_v21 = vpop.permute.xlu0 %3032  ;;  %v10395_v25 = vpop.permute.xlu1 %1909 }
 0x2f3   :  { %v3415_v16 = vsel %vm3409_vm10, %v3350_v27, %v3033_v21  ;;  %v2150_v27 = vsel %vm2127_vm6, %v2069_v26, %v15440_v42  ;;  %v668_v21 = vld [vmem:[#allocation2 + $0x2db] sm:$0xff] }
 0x2f4   :  { %2464 = vrot.lane.b32.xlu0 %v10252_v19, %s8721_s14  ;;  %2658 = vrot.lane.b32.xlu1 %v10295_v39, %s8722_s17  ;;  %v747_v26 = vld [vmem:[#allocation2 + $0x2d4] sm:$0xff] }
 0x2f5   :  { %8227 = vmatmul.mubr.msk.f32.gmra.mxu0 %vm3487_vm11, %v3415_v16  ;;  %v2231_v16 = vsel %vm2208_vm5, %v2150_v27, %v9945_v1 }
 0x2f6   :  { %v2449_v2 = vpop.permute.xlu0 %2448  ;;  %v2643_v30 = vpop.permute.xlu1 %2642 }
 0x2f7   :  { %v3286_v5 = vsel %vm3279_vm8, %v3221_v37, %v2643_v30  ;;  %v748_v30 = vld [vmem:[#allocation2 + $0x2dc] sm:$0xff] }
 0x2f8   :  { %1287 = vrot.lane.b32.xlu0 %v587_v57, %s8718_s0  ;;  %2660 = vrot.lane.b32.xlu1 %v10319_v17, %s8722_s17 }
 0x2fa   :  { %v10406_v32 = vpop.permute.xlu0 %1271  ;;  %v2645_v7 = vpop.permute.xlu1 %2644 }
 0x2fc   :  { %2854 = vrot.lane.b32.xlu0 %v10360_v38, %s8723_s11  ;;  %1289 = vrot.lane.b32.xlu1 %v588_v20, %s8718_s0 }
 0x2fe   :  { %v2839_v46 = vpop.permute.xlu0 %2838  ;;  %v10411_v62 = vpop.permute.xlu1 %1273 }
 0x2ff   :  { %15438 = vst [vmem:[#allocation96_spill] sm:$0xff] %v10411_v62  ;;  %v10426_v62 = vsel %vm2289_vm7, %v2231_v16, %v9952_v35  ;;  %v3351_v1 = vsel %vm3344_vm9, %v3286_v5, %v2839_v46  ;;  %v15443_v16 = vld [vmem:[#allocation38_spill] sm:$0xff]  ;;  %v15445_v46 = vld [vmem:[#allocation119_spill] sm:$0xff] }
 0x300   :  { %1607 = vrot.lane.b32.xlu0 %v667_v40, %s8719_s22  ;;  %2856 = vrot.lane.b32.xlu1 %v10386_v60, %s8723_s11  ;;  %v390_v40 = vld [vmem:[#allocation2 + $0x110] sm:$0xff] }
 0x302   :  { %v10422_v57 = vpop.permute.xlu0 %1591  ;;  %v2841_v20 = vpop.permute.xlu1 %2840 }
 0x303   :  { %15441 = vst [vmem:[#allocation37_spill] sm:$0xff] %v10422_v57  ;;  %v2070_v57 = vsel %vm210_vm0, %v390_v40, %v15443_v16 }
 0x304   :  { %3050 = vrot.lane.b32.xlu0 %v10426_v62, %s8724_s26  ;;  %1609 = vrot.lane.b32.xlu1 %v668_v21, %s8719_s22  ;;  %v2151_v11 = vsel %vm2127_vm6, %v2070_v57, %v15444_v22 }
 0x305   :  { %v2232_v21 = vsel %vm2208_vm5, %v2151_v11, %v15445_v46  ;;  %v391_v46 = vld [vmem:[#allocation2 + $0x120] sm:$0xff] }
 0x306   :  { %v3035_v42 = vpop.permute.xlu0 %3034  ;;  %v10435_v27 = vpop.permute.xlu1 %1593 }
 0x307   :  { %15442 = vst [vmem:[#allocation99_spill] sm:$0xff] %v10435_v27  ;;  %v3416_v35 = vsel %vm3409_vm10, %v3351_v1, %v3035_v42  ;;  %v15447_v1 = vld [vmem:[#allocation121_spill] sm:$0xff] }
 0x308   :  { %1927 = vrot.lane.b32.xlu0 %v747_v26, %s8720_s25  ;;  %2466 = vrot.lane.b32.xlu1 %v10295_v39, %s8721_s14  ;;  %v10452_v40 = vsel %vm2289_vm7, %v2232_v21, %v15447_v1  ;;  %v3222_v26 = vsel %vm3214_vm3, %v9879_v41, %v2449_v2  ;;  %v589_v41 = vld [vmem:[#allocation2 + $0x2ea] sm:$0xff] }
 0x309   :  { %8229 = vmatprep.mubr.msk.f32.mxu0 %vm3487_vm11, %v3416_v35  ;;  %v3287_v57 = vsel %vm3279_vm8, %v3222_v26, %v2645_v7  ;;  %v590_v7 = vld [vmem:[#allocation2 + $0x2f2] sm:$0xff] }
 0x30a   :  { %v10448_v37 = vpop.permute.xlu0 %1911  ;;  %v2451_v5 = vpop.permute.xlu1 %2450  ;;  %v3352_v42 = vsel %vm3344_vm9, %v3287_v57, %v2841_v20  ;;  %v669_v21 = vld [vmem:[#allocation2 + $0x2eb] sm:$0xff] }
 0x30b   :  { %15446 = vst [vmem:[#allocation36_spill] sm:$0xff] %v10448_v37  ;;  %v15451_v57 = vld [vmem:[#allocation41_spill] sm:$0xff]  ;;  %v15455_v37 = vld [vmem:[#allocation122_spill] sm:$0xff] }
 0x30c   :  { %3052 = vrot.lane.b32.xlu0 %v10452_v40, %s8724_s26  ;;  %1929 = vrot.lane.b32.xlu1 %v748_v30, %s8720_s25 }
 0x30e   :  { %v3037_v35 = vpop.permute.xlu0 %3036  ;;  %v10461_v16 = vpop.permute.xlu1 %1913 }
 0x30f   :  { %15448 = vst [vmem:[#allocation98_spill] sm:$0xff] %v10461_v16  ;;  %v3417_v22 = vsel %vm3409_vm10, %v3352_v42, %v3037_v35  ;;  %v2071_v42 = vsel %vm210_vm0, %v391_v46, %v15451_v57  ;;  %v15452_v35 = vld [vmem:[#allocation103_spill] sm:$0xff]  ;;  %v3223_v46 = vsel %vm3214_vm3, %v9875_v59, %v2451_v5  ;;  %v15458_v59 = vld [vmem:[#allocation102_spill] sm:$0xff] }
 0x310   :  { %2468 = vrot.lane.b32.xlu0 %v10319_v17, %s8721_s14  ;;  %2662 = vrot.lane.b32.xlu1 %v10360_v38, %s8722_s17 }
 0x311   :  { %8230 = vmatmul.mubr.msk.f32.gmra.mxu0 %vm3487_vm11, %v3417_v22  ;;  %v2152_v22 = vsel %vm2127_vm6, %v2071_v42, %v15452_v35  ;;  %v749_v42 = vld [vmem:[#allocation2 + $0x2ec] sm:$0xff] }
 0x312   :  { %v2453_v2 = vpop.permute.xlu0 %2452  ;;  %v2647_v11 = vpop.permute.xlu1 %2646 }
 0x313   :  { %v3288_v57 = vsel %vm3279_vm8, %v3223_v46, %v2647_v11  ;;  %v750_v11 = vld [vmem:[#allocation2 + $0x2f4] sm:$0xff] }
 0x314   :  { %1291 = vrot.lane.b32.xlu0 %v589_v41, %s8718_s0  ;;  %2664 = vrot.lane.b32.xlu1 %v10386_v60, %s8722_s17  ;;  %v670_v41 = vld [vmem:[#allocation2 + $0x2f3] sm:$0xff] }
 0x316   :  { %v10472_v20 = vpop.permute.xlu0 %1275  ;;  %v2649_v30 = vpop.permute.xlu1 %2648 }
 0x317   :  { %15449 = vst [vmem:[#allocation39_spill] sm:$0xff] %v10472_v20  ;;  %v15453_v20 = vld [vmem:[#allocation120_spill] sm:$0xff] }
 0x318   :  { %2858 = vrot.lane.b32.xlu0 %v10426_v62, %s8723_s11  ;;  %1293 = vrot.lane.b32.xlu1 %v590_v7, %s8718_s0  ;;  %v2233_v7 = vsel %vm2208_vm5, %v2152_v22, %v15453_v20 }
 0x31a   :  { %v2843_v1 = vpop.permute.xlu0 %2842  ;;  %v10477_v26 = vpop.permute.xlu1 %1277 }
 0x31b   :  { %15450 = vst [vmem:[#allocation101_spill] sm:$0xff] %v10477_v26  ;;  %v10492_v26 = vsel %vm2289_vm7, %v2233_v7, %v15455_v37  ;;  %v3353_v20 = vsel %vm3344_vm9, %v3288_v57, %v2843_v1  ;;  %v15457_v7 = vld [vmem:[#allocation40_spill] sm:$0xff]  ;;  %v15459_v1 = vld [vmem:[#allocation123_spill] sm:$0xff] }
 0x31c   :  { %1611 = vrot.lane.b32.xlu0 %v669_v21, %s8719_s22  ;;  %2860 = vrot.lane.b32.xlu1 %v10452_v40, %s8723_s11  ;;  %v392_v21 = vld [vmem:[#allocation2 + $0x128] sm:$0xff] }
 0x31e   :  { %v10488_v16 = vpop.permute.xlu0 %1595  ;;  %v2845_v27 = vpop.permute.xlu1 %2844 }
 0x31f   :  { %15454 = vst [vmem:[#allocation38_spill] sm:$0xff] %v10488_v16  ;;  %v2072_v16 = vsel %vm210_vm0, %v392_v21, %v15457_v7 }
 0x320   :  { %3054 = vrot.lane.b32.xlu0 %v10492_v26, %s8724_s26  ;;  %1613 = vrot.lane.b32.xlu1 %v670_v41, %s8719_s22  ;;  %v2153_v5 = vsel %vm2127_vm6, %v2072_v16, %v15458_v59 }
 0x321   :  { %v2234_v41 = vsel %vm2208_vm5, %v2153_v5, %v15459_v1  ;;  %v393_v1 = vld [vmem:[#allocation2 + $0x138] sm:$0xff] }
 0x322   :  { %v3039_v35 = vpop.permute.xlu0 %3038  ;;  %v10501_v22 = vpop.permute.xlu1 %1597 }
 0x323   :  { %15456 = vst [vmem:[#allocation100_spill] sm:$0xff] %v10501_v22  ;;  %v3418_v37 = vsel %vm3409_vm10, %v3353_v20, %v3039_v35  ;;  %v15461_v20 = vld [vmem:[#allocation125_spill] sm:$0xff] }
 0x324   :  { %1931 = vrot.lane.b32.xlu0 %v749_v42, %s8720_s25  ;;  %2470 = vrot.lane.b32.xlu1 %v10360_v38, %s8721_s14  ;;  %v10518_v21 = vsel %vm2289_vm7, %v2234_v41, %v15461_v20  ;;  %v3224_v42 = vsel %vm3214_vm3, %v9928_v47, %v2453_v2  ;;  %v591_v47 = vld [vmem:[#allocation2 + $0x302] sm:$0xff] }
 0x325   :  { %8232 = vmatprep.mubr.msk.f32.mxu0 %vm3487_vm11, %v3418_v37  ;;  %v3289_v16 = vsel %vm3279_vm8, %v3224_v42, %v2649_v30  ;;  %v671_v41 = vld [vmem:[#allocation2 + $0x303] sm:$0xff] }
 0x326   :  { %v10514_v46 = vpop.permute.xlu0 %1915  ;;  %v2455_v57 = vpop.permute.xlu1 %2454  ;;  %v3354_v35 = vsel %vm3344_vm9, %v3289_v16, %v2845_v27  ;;  %v592_v27 = vld [vmem:[#allocation2 + $0x30a] sm:$0xff]  ;;  %v15465_v16 = vld [vmem:[#allocation43_spill] sm:$0xff] }
 0x327   :  { %15460 = vst [vmem:[#allocation119_spill] sm:$0xff] %v10514_v46  ;;  %v15469_v46 = vld [vmem:[#allocation126_spill] sm:$0xff] }
 0x328   :  { %3056 = vrot.lane.b32.xlu0 %v10518_v21, %s8724_s26  ;;  %1933 = vrot.lane.b32.xlu1 %v750_v11, %s8720_s25 }
 0x32a   :  { %v3041_v37 = vpop.permute.xlu0 %3040  ;;  %v10527_v7 = vpop.permute.xlu1 %1917 }
 0x32b   :  { %15462 = vst [vmem:[#allocation121_spill] sm:$0xff] %v10527_v7  ;;  %v3419_v59 = vsel %vm3409_vm10, %v3354_v35, %v3041_v37  ;;  %v2073_v35 = vsel %vm210_vm0, %v393_v1, %v15465_v16  ;;  %v15466_v37 = vld [vmem:[#allocation105_spill] sm:$0xff]  ;;  %v3225_v1 = vsel %vm3214_vm3, %v10009_v44, %v2455_v57  ;;  %v15472_v44 = vld [vmem:[#allocation104_spill] sm:$0xff] }
 0x32c   :  { %2472 = vrot.lane.b32.xlu0 %v10386_v60, %s8721_s14  ;;  %2666 = vrot.lane.b32.xlu1 %v10426_v62, %s8722_s17 }
 0x32d   :  { %8233 = vmatmul.mubr.msk.f32.gmra.mxu0 %vm3487_vm11, %v3419_v59  ;;  %v2154_v59 = vsel %vm2127_vm6, %v2073_v35, %v15466_v37  ;;  %v751_v35 = vld [vmem:[#allocation2 + $0x304] sm:$0xff] }
 0x32e   :  { %v2457_v2 = vpop.permute.xlu0 %2456  ;;  %v2651_v5 = vpop.permute.xlu1 %2650 }
 0x32f   :  { %v3290_v16 = vsel %vm3279_vm8, %v3225_v1, %v2651_v5  ;;  %v752_v5 = vld [vmem:[#allocation2 + $0x30c] sm:$0xff] }
 0x330   :  { %1295 = vrot.lane.b32.xlu0 %v591_v47, %s8718_s0  ;;  %2668 = vrot.lane.b32.xlu1 %v10452_v40, %s8722_s17  ;;  %v672_v47 = vld [vmem:[#allocation2 + $0x30b] sm:$0xff] }
 0x332   :  { %v10538_v30 = vpop.permute.xlu0 %1279  ;;  %v2653_v11 = vpop.permute.xlu1 %2652 }
 0x333   :  { %15463 = vst [vmem:[#allocation41_spill] sm:$0xff] %v10538_v30  ;;  %v15467_v30 = vld [vmem:[#allocation124_spill] sm:$0xff] }
 0x334   :  { %2862 = vrot.lane.b32.xlu0 %v10492_v26, %s8723_s11  ;;  %1297 = vrot.lane.b32.xlu1 %v592_v27, %s8718_s0  ;;  %v2235_v27 = vsel %vm2208_vm5, %v2154_v59, %v15467_v30 }
 0x336   :  { %v2847_v20 = vpop.permute.xlu0 %2846  ;;  %v10543_v42 = vpop.permute.xlu1 %1281 }
 0x337   :  { %15464 = vst [vmem:[#allocation103_spill] sm:$0xff] %v10543_v42  ;;  %v10558_v42 = vsel %vm2289_vm7, %v2235_v27, %v15469_v46  ;;  %v3355_v30 = vsel %vm3344_vm9, %v3290_v16, %v2847_v20  ;;  %v15471_v27 = vld [vmem:[#allocation42_spill] sm:$0xff]  ;;  %v15473_v20 = vld [vmem:[#allocation127_spill] sm:$0xff] }
 0x338   :  { %1615 = vrot.lane.b32.xlu0 %v671_v41, %s8719_s22  ;;  %2864 = vrot.lane.b32.xlu1 %v10518_v21, %s8723_s11  ;;  %v394_v41 = vld [vmem:[#allocation2 + $0x140] sm:$0xff] }
 0x33a   :  { %v10554_v7 = vpop.permute.xlu0 %1599  ;;  %v2849_v22 = vpop.permute.xlu1 %2848 }
 0x33b   :  { %15468 = vst [vmem:[#allocation120_spill] sm:$0xff] %v10554_v7  ;;  %v2074_v7 = vsel %vm210_vm0, %v394_v41, %v15471_v27 }
 0x33c   :  { %3058 = vrot.lane.b32.xlu0 %v10558_v42, %s8724_s26  ;;  %1617 = vrot.lane.b32.xlu1 %v672_v47, %s8719_s22  ;;  %v2155_v57 = vsel %vm2127_vm6, %v2074_v7, %v15472_v44 }
 0x33d   :  { %v2236_v47 = vsel %vm2208_vm5, %v2155_v57, %v15473_v20  ;;  %v395_v20 = vld [vmem:[#allocation2 + $0x150] sm:$0xff] }
 0x33e   :  { %v3043_v37 = vpop.permute.xlu0 %3042  ;;  %v10567_v59 = vpop.permute.xlu1 %1601 }
 0x33f   :  { %15470 = vst [vmem:[#allocation122_spill] sm:$0xff] %v10567_v59  ;;  %v3420_v46 = vsel %vm3409_vm10, %v3355_v30, %v3043_v37  ;;  %v15474_v30 = vld [vmem:[#allocation129_spill] sm:$0xff] }
 0x340   :  { %1935 = vrot.lane.b32.xlu0 %v751_v35, %s8720_s25  ;;  %2474 = vrot.lane.b32.xlu1 %v10426_v62, %s8721_s14  ;;  %v10584_v41 = vsel %vm2289_vm7, %v2236_v47, %v15474_v30  ;;  %v3226_v35 = vsel %vm3214_vm3, %v10040_v48, %v2457_v2  ;;  %v593_v48 = vld [vmem:[#allocation2 + $0x31a] sm:$0xff] }
 0x341   :  { %8235 = vmatprep.mubr.msk.f32.mxu0 %vm3487_vm11, %v3420_v46  ;;  %v3291_v7 = vsel %vm3279_vm8, %v3226_v35, %v2653_v11  ;;  %v673_v47 = vld [vmem:[#allocation2 + $0x31b] sm:$0xff] }
 0x342   :  { %v10580_v1 = vpop.permute.xlu0 %1919  ;;  %v2459_v16 = vpop.permute.xlu1 %2458  ;;  %v3356_v37 = vsel %vm3344_vm9, %v3291_v7, %v2849_v22  ;;  %v594_v22 = vld [vmem:[#allocation2 + $0x322] sm:$0xff]  ;;  %v15478_v7 = vld [vmem:[#allocation45_spill] sm:$0xff] }
 0x344   :  { %3060 = vrot.lane.b32.xlu0 %v10584_v41, %s8724_s26  ;;  %1937 = vrot.lane.b32.xlu1 %v752_v5, %s8720_s25 }
 0x346   :  { %v3045_v46 = vpop.permute.xlu0 %3044  ;;  %v10593_v27 = vpop.permute.xlu1 %1921 }
 0x347   :  { %15475 = vst [vmem:[#allocation40_spill] sm:$0xff] %v10593_v27  ;;  %v3421_v44 = vsel %vm3409_vm10, %v3356_v37, %v3045_v46  ;;  %v2075_v37 = vsel %vm210_vm0, %v395_v20, %v15478_v7  ;;  %v15479_v46 = vld [vmem:[#allocation107_spill] sm:$0xff]  ;;  %v3227_v20 = vsel %vm3214_vm3, %v10082_v6, %v2459_v16  ;;  %v15483_v6 = vld [vmem:[#allocation106_spill] sm:$0xff] }
 0x348   :  { %2476 = vrot.lane.b32.xlu0 %v10452_v40, %s8721_s14  ;;  %2670 = vrot.lane.b32.xlu1 %v10492_v26, %s8722_s17 }
 0x349   :  { %8236 = vmatmul.mubr.msk.f32.gmra.mxu0 %vm3487_vm11, %v3421_v44  ;;  %v2156_v44 = vsel %vm2127_vm6, %v2075_v37, %v15479_v46  ;;  %v753_v37 = vld [vmem:[#allocation2 + $0x31c] sm:$0xff] }
 0x34a   :  { %v2461_v2 = vpop.permute.xlu0 %2460  ;;  %v2655_v57 = vpop.permute.xlu1 %2654 }
 0x34b   :  { %v3292_v7 = vsel %vm3279_vm8, %v3227_v20, %v2655_v57  ;;  %v754_v57 = vld [vmem:[#allocation2 + $0x324] sm:$0xff] }
 0x34c   :  { %1299 = vrot.lane.b32.xlu0 %v593_v48, %s8718_s0  ;;  %2672 = vrot.lane.b32.xlu1 %v10518_v21, %s8722_s17  ;;  %v674_v48 = vld [vmem:[#allocation2 + $0x323] sm:$0xff] }
 0x34e   :  { %v10604_v11 = vpop.permute.xlu0 %1283  ;;  %v2657_v5 = vpop.permute.xlu1 %2656 }
 0x34f   :  { %15476 = vst [vmem:[#allocation102_spill] sm:$0xff] %v10604_v11  ;;  %v15480_v11 = vld [vmem:[#allocation128_spill] sm:$0xff] }
 0x350   :  { %2866 = vrot.lane.b32.xlu0 %v10558_v42, %s8723_s11  ;;  %1301 = vrot.lane.b32.xlu1 %v594_v22, %s8718_s0  ;;  %v2237_v22 = vsel %vm2208_vm5, %v2156_v44, %v15480_v11 }
 0x352   :  { %v2851_v30 = vpop.permute.xlu0 %2850  ;;  %v10609_v35 = vpop.permute.xlu1 %1285 }
 0x353   :  { %15477 = vst [vmem:[#allocation123_spill] sm:$0xff] %v10609_v35  ;;  %v10624_v35 = vsel %vm2289_vm7, %v2237_v22, %v9991_v15  ;;  %v3357_v11 = vsel %vm3344_vm9, %v3292_v7, %v2851_v30  ;;  %v15482_v22 = vld [vmem:[#allocation44_spill] sm:$0xff]  ;;  %v15484_v30 = vld [vmem:[#allocation130_spill] sm:$0xff] }
 0x354   :  { %1619 = vrot.lane.b32.xlu0 %v673_v47, %s8719_s22  ;;  %2868 = vrot.lane.b32.xlu1 %v10584_v41, %s8723_s11  ;;  %v396_v47 = vld [vmem:[#allocation2 + $0x158] sm:$0xff] }
 0x356   :  { %v10620_v27 = vpop.permute.xlu0 %1603  ;;  %v2853_v59 = vpop.permute.xlu1 %2852 }
 0x357   :  { %15481 = vst [vmem:[#allocation125_spill] sm:$0xff] %v10620_v27  ;;  %v2076_v27 = vsel %vm210_vm0, %v396_v47, %v15482_v22 }
 0x358   :  { %3062 = vrot.lane.b32.xlu0 %v10624_v35, %s8724_s26  ;;  %1621 = vrot.lane.b32.xlu1 %v674_v48, %s8719_s22  ;;  %v2157_v16 = vsel %vm2127_vm6, %v2076_v27, %v15483_v6 }
 0x359   :  { %v2238_v48 = vsel %vm2208_vm5, %v2157_v16, %v15484_v30  ;;  %v397_v16 = vld [vmem:[#allocation2 + $0x168] sm:$0xff] }
 0x35a   :  { %v3047_v46 = vpop.permute.xlu0 %3046  ;;  %v10633_v44 = vpop.permute.xlu1 %1605  ;;  %v10650_v47 = vsel %vm2289_vm7, %v2238_v48, %v10005_v18  ;;  %v595_v18 = vld [vmem:[#allocation2 + $0x332] sm:$0xff] }
 0x35b   :  { %v3422_v15 = vsel %vm3409_vm10, %v3357_v11, %v3047_v46 }
 0x35c   :  { %1939 = vrot.lane.b32.xlu0 %v753_v37, %s8720_s25  ;;  %2478 = vrot.lane.b32.xlu1 %v10492_v26, %s8721_s14  ;;  %v3228_v37 = vsel %vm3214_vm3, %v10104_v9, %v2461_v2 }
 0x35d   :  { %8238 = vmatprep.mubr.msk.f32.mxu0 %vm3487_vm11, %v3422_v15  ;;  %v3293_v27 = vsel %vm3279_vm8, %v3228_v37, %v2657_v5  ;;  %v15487_v37 = vld [vmem:[#allocation47_spill] sm:$0xff] }
 0x35e   :  { %v10646_v20 = vpop.permute.xlu0 %1923  ;;  %v2463_v7 = vpop.permute.xlu1 %2462  ;;  %v3358_v11 = vsel %vm3344_vm9, %v3293_v27, %v2853_v59  ;;  %v596_v59 = vld [vmem:[#allocation2 + $0x33a] sm:$0xff]  ;;  %v2077_v27 = vsel %vm210_vm0, %v397_v16, %v15487_v37 }
 0x35f   :  { %v3229_v16 = vsel %vm3214_vm3, %v10149_v28, %v2463_v7  ;;  %v15492_v28 = vld [vmem:[#allocation108_spill] sm:$0xff] }
 0x360   :  { %3064 = vrot.lane.b32.xlu0 %v10650_v47, %s8724_s26  ;;  %1941 = vrot.lane.b32.xlu1 %v754_v57, %s8720_s25  ;;  %v675_v57 = vld [vmem:[#allocation2 + $0x333] sm:$0xff] }
 0x362   :  { %v3049_v46 = vpop.permute.xlu0 %3048  ;;  %v10659_v15 = vpop.permute.xlu1 %1925 }
 0x363   :  { %v3423_v22 = vsel %vm3409_vm10, %v3358_v11, %v3049_v46  ;;  %v15488_v11 = vld [vmem:[#allocation109_spill] sm:$0xff] }
 0x364   :  { %2480 = vrot.lane.b32.xlu0 %v10518_v21, %s8721_s14  ;;  %2674 = vrot.lane.b32.xlu1 %v10558_v42, %s8722_s17  ;;  %v2158_v46 = vsel %vm2127_vm6, %v2077_v27, %v15488_v11  ;;  %v755_v27 = vld [vmem:[#allocation2 + $0x334] sm:$0xff] }
 0x365   :  { %8239 = vmatmul.mubr.msk.f32.gmra.mxu0 %vm3487_vm11, %v3423_v22  ;;  %v676_v22 = vld [vmem:[#allocation2 + $0x33b] sm:$0xff] }
 0x366   :  { %v2465_v9 = vpop.permute.xlu0 %2464  ;;  %v2659_v2 = vpop.permute.xlu1 %2658 }
 0x367   :  { %v3294_v37 = vsel %vm3279_vm8, %v3229_v16, %v2659_v2  ;;  %v756_v2 = vld [vmem:[#allocation2 + $0x33c] sm:$0xff] }
 0x368   :  { %1303 = vrot.lane.b32.xlu0 %v595_v18, %s8718_s0  ;;  %2676 = vrot.lane.b32.xlu1 %v10584_v41, %s8722_s17  ;;  %v2239_v18 = vsel %vm2208_vm5, %v2158_v46, %v10003_v43 }
 0x36a   :  { %v10670_v5 = vpop.permute.xlu0 %1287  ;;  %v2661_v6 = vpop.permute.xlu1 %2660 }
 0x36b   :  { %15485 = vst [vmem:[#allocation43_spill] sm:$0xff] %v10670_v5 }
 0x36c   :  { %2870 = vrot.lane.b32.xlu0 %v10624_v35, %s8723_s11  ;;  %1305 = vrot.lane.b32.xlu1 %v596_v59, %s8718_s0 }
 0x36e   :  { %v2855_v30 = vpop.permute.xlu0 %2854  ;;  %v10675_v48 = vpop.permute.xlu1 %1289 }
 0x36f   :  { %15486 = vst [vmem:[#allocation105_spill] sm:$0xff] %v10675_v48  ;;  %v10690_v48 = vsel %vm2289_vm7, %v2239_v18, %v10015_v14  ;;  %v3359_v43 = vsel %vm3344_vm9, %v3294_v37, %v2855_v30  ;;  %v15491_v18 = vld [vmem:[#allocation46_spill] sm:$0xff]  ;;  %v15493_v30 = vld [vmem:[#allocation131_spill] sm:$0xff] }
 0x370   :  { %1623 = vrot.lane.b32.xlu0 %v675_v57, %s8719_s22  ;;  %2872 = vrot.lane.b32.xlu1 %v10650_v47, %s8723_s11  ;;  %v398_v57 = vld [vmem:[#allocation2 + $0x170] sm:$0xff] }
 0x372   :  { %v10686_v59 = vpop.permute.xlu0 %1607  ;;  %v2857_v5 = vpop.permute.xlu1 %2856 }
 0x373   :  { %15489 = vst [vmem:[#allocation124_spill] sm:$0xff] %v10686_v59  ;;  %v2078_v59 = vsel %vm210_vm0, %v398_v57, %v15491_v18 }
 0x374   :  { %3066 = vrot.lane.b32.xlu0 %v10690_v48, %s8724_s26  ;;  %1625 = vrot.lane.b32.xlu1 %v676_v22, %s8719_s22  ;;  %v2159_v7 = vsel %vm2127_vm6, %v2078_v59, %v15492_v28 }
 0x375   :  { %v2240_v22 = vsel %vm2208_vm5, %v2159_v7, %v15493_v30  ;;  %v399_v30 = vld [vmem:[#allocation2 + $0x180] sm:$0xff] }
 0x376   :  { %v3051_v11 = vpop.permute.xlu0 %3050  ;;  %v10699_v46 = vpop.permute.xlu1 %1609 }
 0x377   :  { %15490 = vst [vmem:[#allocation126_spill] sm:$0xff] %v10699_v46  ;;  %v3424_v14 = vsel %vm3409_vm10, %v3359_v43, %v3051_v11  ;;  %v15495_v43 = vld [vmem:[#allocation133_spill] sm:$0xff] }
 0x378   :  { %1943 = vrot.lane.b32.xlu0 %v755_v27, %s8720_s25  ;;  %2482 = vrot.lane.b32.xlu1 %v10558_v42, %s8721_s14  ;;  %v10716_v57 = vsel %vm2289_vm7, %v2240_v22, %v15495_v43  ;;  %v3230_v27 = vsel %vm3214_vm3, %v10179_v24, %v2465_v9  ;;  %v597_v24 = vld [vmem:[#allocation2 + $0x34a] sm:$0xff] }
 0x379   :  { %8241 = vmatprep.mubr.msk.f32.mxu0 %vm3487_vm11, %v3424_v14  ;;  %15496 = vst [vmem:[#allocation104_spill] sm:$0xff] %v10716_v57  ;;  %v3295_v59 = vsel %vm3279_vm8, %v3230_v27, %v2661_v6  ;;  %v677_v22 = vld [vmem:[#allocation2 + $0x34b] sm:$0xff] }
 0x37a   :  { %v10712_v16 = vpop.permute.xlu0 %1927  ;;  %v2467_v37 = vpop.permute.xlu1 %2466  ;;  %v3360_v11 = vsel %vm3344_vm9, %v3295_v59, %v2857_v5  ;;  %v598_v5 = vld [vmem:[#allocation2 + $0x352] sm:$0xff] }
 0x37b   :  { %15494 = vst [vmem:[#allocation42_spill] sm:$0xff] %v10712_v16  ;;  %v15500_v59 = vld [vmem:[#allocation49_spill] sm:$0xff]  ;;  %v15504_v16 = vld [vmem:[#allocation134_spill] sm:$0xff] }
 0x37c   :  { %3068 = vrot.lane.b32.xlu0 %v10716_v57, %s8724_s26  ;;  %1945 = vrot.lane.b32.xlu1 %v756_v2, %s8720_s25 }
 0x37e   :  { %v3053_v14 = vpop.permute.xlu0 %3052  ;;  %v10725_v18 = vpop.permute.xlu1 %1929 }
 0x37f   :  { %15497 = vst [vmem:[#allocation127_spill] sm:$0xff] %v10725_v18  ;;  %v3425_v28 = vsel %vm3409_vm10, %v3360_v11, %v3053_v14  ;;  %v2079_v11 = vsel %vm210_vm0, %v399_v30, %v15500_v59  ;;  %v15501_v14 = vld [vmem:[#allocation111_spill] sm:$0xff]  ;;  %v3231_v30 = vsel %vm3214_vm3, %v10228_v54, %v2467_v37  ;;  %v15507_v54 = vld [vmem:[#allocation110_spill] sm:$0xff] }
 0x380   :  { %2484 = vrot.lane.b32.xlu0 %v10584_v41, %s8721_s14  ;;  %2678 = vrot.lane.b32.xlu1 %v10624_v35, %s8722_s17 }
 0x381   :  { %8242 = vmatmul.mubr.msk.f32.gmra.mxu0 %vm3487_vm11, %v3425_v28  ;;  %v2160_v28 = vsel %vm2127_vm6, %v2079_v11, %v15501_v14  ;;  %v757_v11 = vld [vmem:[#allocation2 + $0x34c] sm:$0xff] }
 0x382   :  { %v2469_v9 = vpop.permute.xlu0 %2468  ;;  %v2663_v7 = vpop.permute.xlu1 %2662 }
 0x383   :  { %v3296_v59 = vsel %vm3279_vm8, %v3231_v30, %v2663_v7  ;;  %v758_v7 = vld [vmem:[#allocation2 + $0x354] sm:$0xff] }
 0x384   :  { %1307 = vrot.lane.b32.xlu0 %v597_v24, %s8718_s0  ;;  %2680 = vrot.lane.b32.xlu1 %v10650_v47, %s8722_s17  ;;  %v678_v24 = vld [vmem:[#allocation2 + $0x353] sm:$0xff] }
 0x386   :  { %v10736_v6 = vpop.permute.xlu0 %1291  ;;  %v2665_v2 = vpop.permute.xlu1 %2664 }
 0x387   :  { %15498 = vst [vmem:[#allocation129_spill] sm:$0xff] %v10736_v6  ;;  %v15502_v6 = vld [vmem:[#allocation132_spill] sm:$0xff] }
 0x388   :  { %2874 = vrot.lane.b32.xlu0 %v10690_v48, %s8723_s11  ;;  %1309 = vrot.lane.b32.xlu1 %v598_v5, %s8718_s0  ;;  %v2241_v5 = vsel %vm2208_vm5, %v2160_v28, %v15502_v6 }
 0x38a   :  { %v2859_v43 = vpop.permute.xlu0 %2858  ;;  %v10741_v27 = vpop.permute.xlu1 %1293 }
 0x38b   :  { %15499 = vst [vmem:[#allocation45_spill] sm:$0xff] %v10741_v27  ;;  %v10756_v27 = vsel %vm2289_vm7, %v2241_v5, %v15504_v16  ;;  %v3361_v6 = vsel %vm3344_vm9, %v3296_v59, %v2859_v43  ;;  %v15506_v5 = vld [vmem:[#allocation48_spill] sm:$0xff]  ;;  %v15508_v43 = vld [vmem:[#allocation135_spill] sm:$0xff] }
 0x38c   :  { %1627 = vrot.lane.b32.xlu0 %v677_v22, %s8719_s22  ;;  %2876 = vrot.lane.b32.xlu1 %v10716_v57, %s8723_s11  ;;  %v400_v22 = vld [vmem:[#allocation2 + $0x188] sm:$0xff] }
 0x38e   :  { %v10752_v18 = vpop.permute.xlu0 %1611  ;;  %v2861_v46 = vpop.permute.xlu1 %2860 }
 0x38f   :  { %15503 = vst [vmem:[#allocation107_spill] sm:$0xff] %v10752_v18  ;;  %v2080_v18 = vsel %vm210_vm0, %v400_v22, %v15506_v5 }
 0x390   :  { %3070 = vrot.lane.b32.xlu0 %v10756_v27, %s8724_s26  ;;  %1629 = vrot.lane.b32.xlu1 %v678_v24, %s8719_s22  ;;  %v2161_v37 = vsel %vm2127_vm6, %v2080_v18, %v15507_v54 }
 0x391   :  { %v2242_v24 = vsel %vm2208_vm5, %v2161_v37, %v15508_v43  ;;  %v401_v43 = vld [vmem:[#allocation2 + $0x198] sm:$0xff] }
 0x392   :  { %v3055_v14 = vpop.permute.xlu0 %3054  ;;  %v10765_v28 = vpop.permute.xlu1 %1613 }
 0x393   :  { %15505 = vst [vmem:[#allocation128_spill] sm:$0xff] %v10765_v28  ;;  %v3426_v16 = vsel %vm3409_vm10, %v3361_v6, %v3055_v14  ;;  %v15510_v6 = vld [vmem:[#allocation137_spill] sm:$0xff] }
 0x394   :  { %1947 = vrot.lane.b32.xlu0 %v757_v11, %s8720_s25  ;;  %2486 = vrot.lane.b32.xlu1 %v10624_v35, %s8721_s14  ;;  %v10782_v22 = vsel %vm2289_vm7, %v2242_v24, %v15510_v6  ;;  %v3232_v11 = vsel %vm3214_vm3, %v10252_v19, %v2469_v9  ;;  %v599_v19 = vld [vmem:[#allocation2 + $0x362] sm:$0xff] }
 0x395   :  { %8244 = vmatprep.mubr.msk.f32.mxu0 %vm3487_vm11, %v3426_v16  ;;  %v3297_v18 = vsel %vm3279_vm8, %v3232_v11, %v2665_v2  ;;  %v679_v24 = vld [vmem:[#allocation2 + $0x363] sm:$0xff] }
 0x396   :  { %v10778_v30 = vpop.permute.xlu0 %1931  ;;  %v2471_v59 = vpop.permute.xlu1 %2470  ;;  %v3362_v14 = vsel %vm3344_vm9, %v3297_v18, %v2861_v46  ;;  %v600_v46 = vld [vmem:[#allocation2 + $0x36a] sm:$0xff]  ;;  %v15514_v18 = vld [vmem:[#allocation51_spill] sm:$0xff] }
 0x397   :  { %15509 = vst [vmem:[#allocation44_spill] sm:$0xff] %v10778_v30  ;;  %v15518_v30 = vld [vmem:[#allocation138_spill] sm:$0xff] }
 0x398   :  { %3072 = vrot.lane.b32.xlu0 %v10782_v22, %s8724_s26  ;;  %1949 = vrot.lane.b32.xlu1 %v758_v7, %s8720_s25 }
 0x39a   :  { %v3057_v16 = vpop.permute.xlu0 %3056  ;;  %v10791_v5 = vpop.permute.xlu1 %1933 }
 0x39b   :  { %15511 = vst [vmem:[#allocation106_spill] sm:$0xff] %v10791_v5  ;;  %v3427_v54 = vsel %vm3409_vm10, %v3362_v14, %v3057_v16  ;;  %v2081_v14 = vsel %vm210_vm0, %v401_v43, %v15514_v18  ;;  %v15515_v16 = vld [vmem:[#allocation113_spill] sm:$0xff]  ;;  %v3233_v43 = vsel %vm3214_vm3, %v10295_v39, %v2471_v59  ;;  %v15521_v39 = vld [vmem:[#allocation112_spill] sm:$0xff] }
 0x39c   :  { %2488 = vrot.lane.b32.xlu0 %v10650_v47, %s8721_s14  ;;  %2682 = vrot.lane.b32.xlu1 %v10690_v48, %s8722_s17 }
 0x39d   :  { %8245 = vmatmul.mubr.msk.f32.gmra.mxu0 %vm3487_vm11, %v3427_v54  ;;  %v2162_v54 = vsel %vm2127_vm6, %v2081_v14, %v15515_v16  ;;  %v759_v14 = vld [vmem:[#allocation2 + $0x364] sm:$0xff] }
 0x39e   :  { %v2473_v9 = vpop.permute.xlu0 %2472  ;;  %v2667_v37 = vpop.permute.xlu1 %2666 }
 0x39f   :  { %v3298_v18 = vsel %vm3279_vm8, %v3233_v43, %v2667_v37  ;;  %v760_v37 = vld [vmem:[#allocation2 + $0x36c] sm:$0xff] }
 0x3a0   :  { %1311 = vrot.lane.b32.xlu0 %v599_v19, %s8718_s0  ;;  %2684 = vrot.lane.b32.xlu1 %v10716_v57, %s8722_s17  ;;  %v680_v19 = vld [vmem:[#allocation2 + $0x36b] sm:$0xff] }
 0x3a2   :  { %v10802_v2 = vpop.permute.xlu0 %1295  ;;  %v2669_v7 = vpop.permute.xlu1 %2668 }
 0x3a3   :  { %15512 = vst [vmem:[#allocation130_spill] sm:$0xff] %v10802_v2  ;;  %v15516_v2 = vld [vmem:[#allocation136_spill] sm:$0xff] }
 0x3a4   :  { %2878 = vrot.lane.b32.xlu0 %v10756_v27, %s8723_s11  ;;  %1313 = vrot.lane.b32.xlu1 %v600_v46, %s8718_s0  ;;  %v2243_v46 = vsel %vm2208_vm5, %v2162_v54, %v15516_v2 }
 0x3a6   :  { %v2863_v6 = vpop.permute.xlu0 %2862  ;;  %v10807_v11 = vpop.permute.xlu1 %1297 }
 0x3a7   :  { %15513 = vst [vmem:[#allocation47_spill] sm:$0xff] %v10807_v11  ;;  %v10822_v11 = vsel %vm2289_vm7, %v2243_v46, %v15518_v30  ;;  %v3363_v2 = vsel %vm3344_vm9, %v3298_v18, %v2863_v6  ;;  %v15520_v46 = vld [vmem:[#allocation50_spill] sm:$0xff]  ;;  %v15522_v6 = vld [vmem:[#allocation139_spill] sm:$0xff] }
 0x3a8   :  { %1631 = vrot.lane.b32.xlu0 %v679_v24, %s8719_s22  ;;  %2880 = vrot.lane.b32.xlu1 %v10782_v22, %s8723_s11  ;;  %v402_v24 = vld [vmem:[#allocation2 + $0x1a0] sm:$0xff] }
 0x3aa   :  { %v10818_v5 = vpop.permute.xlu0 %1615  ;;  %v2865_v28 = vpop.permute.xlu1 %2864 }
 0x3ab   :  { %15517 = vst [vmem:[#allocation109_spill] sm:$0xff] %v10818_v5  ;;  %v2082_v5 = vsel %vm210_vm0, %v402_v24, %v15520_v46 }
 0x3ac   :  { %3074 = vrot.lane.b32.xlu0 %v10822_v11, %s8724_s26  ;;  %1633 = vrot.lane.b32.xlu1 %v680_v19, %s8719_s22  ;;  %v2163_v59 = vsel %vm2127_vm6, %v2082_v5, %v15521_v39 }
 0x3ad   :  { %v2244_v19 = vsel %vm2208_vm5, %v2163_v59, %v15522_v6  ;;  %v403_v6 = vld [vmem:[#allocation2 + $0x1b0] sm:$0xff] }
 0x3ae   :  { %v3059_v16 = vpop.permute.xlu0 %3058  ;;  %v10831_v54 = vpop.permute.xlu1 %1617 }
 0x3af   :  { %15519 = vst [vmem:[#allocation46_spill] sm:$0xff] %v10831_v54  ;;  %v3428_v30 = vsel %vm3409_vm10, %v3363_v2, %v3059_v16  ;;  %v15524_v2 = vld [vmem:[#allocation140_spill] sm:$0xff] }
 0x3b0   :  { %1951 = vrot.lane.b32.xlu0 %v759_v14, %s8720_s25  ;;  %2490 = vrot.lane.b32.xlu1 %v10690_v48, %s8721_s14  ;;  %v10848_v24 = vsel %vm2289_vm7, %v2244_v19, %v15524_v2  ;;  %v3234_v14 = vsel %vm3214_vm3, %v10319_v17, %v2473_v9  ;;  %v601_v17 = vld [vmem:[#allocation2 + $0x37a] sm:$0xff] }
 0x3b1   :  { %8247 = vmatprep.mubr.msk.f32.mxu0 %vm3487_vm11, %v3428_v30  ;;  %v3299_v5 = vsel %vm3279_vm8, %v3234_v14, %v2669_v7  ;;  %v681_v19 = vld [vmem:[#allocation2 + $0x37b] sm:$0xff] }
 0x3b2   :  { %v10844_v43 = vpop.permute.xlu0 %1935  ;;  %v2475_v18 = vpop.permute.xlu1 %2474  ;;  %v3364_v16 = vsel %vm3344_vm9, %v3299_v5, %v2865_v28  ;;  %v602_v28 = vld [vmem:[#allocation2 + $0x382] sm:$0xff]  ;;  %v15528_v5 = vld [vmem:[#allocation53_spill] sm:$0xff] }
 0x3b3   :  { %15523 = vst [vmem:[#allocation108_spill] sm:$0xff] %v10844_v43  ;;  %v15532_v43 = vld [vmem:[#allocation143_spill] sm:$0xff] }
 0x3b4   :  { %3076 = vrot.lane.b32.xlu0 %v10848_v24, %s8724_s26  ;;  %1953 = vrot.lane.b32.xlu1 %v760_v37, %s8720_s25 }
 0x3b6   :  { %v3061_v30 = vpop.permute.xlu0 %3060  ;;  %v10857_v46 = vpop.permute.xlu1 %1937 }
 0x3b7   :  { %15525 = vst [vmem:[#allocation131_spill] sm:$0xff] %v10857_v46  ;;  %v3429_v39 = vsel %vm3409_vm10, %v3364_v16, %v3061_v30  ;;  %v2083_v16 = vsel %vm210_vm0, %v403_v6, %v15528_v5  ;;  %v15529_v30 = vld [vmem:[#allocation115_spill] sm:$0xff]  ;;  %v3235_v6 = vsel %vm3214_vm3, %v10360_v38, %v2475_v18  ;;  %v15534_v38 = vld [vmem:[#allocation114_spill] sm:$0xff] }
 0x3b8   :  { %2492 = vrot.lane.b32.xlu0 %v10716_v57, %s8721_s14  ;;  %2686 = vrot.lane.b32.xlu1 %v10756_v27, %s8722_s17  ;;  %v15533_v57 = vld [vmem:[#allocation52_spill] sm:$0xff] }
 0x3b9   :  { %8248 = vmatmul.mubr.msk.f32.gmra.mxu0 %vm3487_vm11, %v3429_v39  ;;  %v2164_v39 = vsel %vm2127_vm6, %v2083_v16, %v15529_v30  ;;  %v761_v16 = vld [vmem:[#allocation2 + $0x37c] sm:$0xff] }
 0x3ba   :  { %v2477_v9 = vpop.permute.xlu0 %2476  ;;  %v2671_v59 = vpop.permute.xlu1 %2670 }
 0x3bb   :  { %v3300_v5 = vsel %vm3279_vm8, %v3235_v6, %v2671_v59  ;;  %v762_v59 = vld [vmem:[#allocation2 + $0x384] sm:$0xff] }
 0x3bc   :  { %1315 = vrot.lane.b32.xlu0 %v601_v17, %s8718_s0  ;;  %2688 = vrot.lane.b32.xlu1 %v10782_v22, %s8722_s17  ;;  %v682_v17 = vld [vmem:[#allocation2 + $0x383] sm:$0xff] }
 0x3be   :  { %v10868_v7 = vpop.permute.xlu0 %1299  ;;  %v2673_v37 = vpop.permute.xlu1 %2672 }
 0x3bf   :  { %15526 = vst [vmem:[#allocation133_spill] sm:$0xff] %v10868_v7  ;;  %v15530_v7 = vld [vmem:[#allocation141_spill] sm:$0xff] }
 0x3c0   :  { %2882 = vrot.lane.b32.xlu0 %v10822_v11, %s8723_s11  ;;  %1317 = vrot.lane.b32.xlu1 %v602_v28, %s8718_s0  ;;  %v2245_v28 = vsel %vm2208_vm5, %v2164_v39, %v15530_v7 }
 0x3c2   :  { %v2867_v2 = vpop.permute.xlu0 %2866  ;;  %v10873_v14 = vpop.permute.xlu1 %1301 }
 0x3c3   :  { %15527 = vst [vmem:[#allocation49_spill] sm:$0xff] %v10873_v14  ;;  %v2326_v14 = vsel %vm2289_vm7, %v2245_v28, %v15532_v43  ;;  %v3365_v30 = vsel %vm3344_vm9, %v3300_v5, %v2867_v2  ;;  %v15535_v2 = vld [vmem:[#allocation142_spill] sm:$0xff]  ;;  %v15536_v5 = vld [vmem:[#allocation144_spill] sm:$0xff] }
 0x3c4   :  { %1635 = vrot.lane.b32.xlu0 %v681_v19, %s8719_s22  ;;  %2884 = vrot.lane.b32.xlu1 %v10848_v24, %s8723_s11  ;;  %v404_v19 = vld [vmem:[#allocation2 + $0x1b8] sm:$0xff] }
 0x3c5   :  { %v2084_v43 = vsel %vm210_vm0, %v404_v19, %v15533_v57  ;;  %v3236_v19 = vsel %vm3214_vm3, %v10386_v60, %v2477_v9  ;;  %v568_v60 = vld [vmem:[#allocation2 + $0x1ea] sm:$0xff]  ;;  %v603_v9 = vld [vmem:[#allocation2 + $0x392] sm:$0xff] }
 0x3c6   :  { %v10884_v46 = vpop.permute.xlu0 %1619  ;;  %v2869_v54 = vpop.permute.xlu1 %2868  ;;  %v2165_v18 = vsel %vm2127_vm6, %v2084_v43, %v15534_v38 }
 0x3c7   :  { %15531 = vst [vmem:[#allocation111_spill] sm:$0xff] %v10884_v46 }
 0x3c8   :  { %3078 = vrot.lane.b32.xlu0 %v2326_v14, %s8724_s26  ;;  %1637 = vrot.lane.b32.xlu1 %v682_v17, %s8719_s22  ;;  %v2246_v17 = vsel %vm2208_vm5, %v2165_v18, %v15535_v2  ;;  %v648_v2 = vld [vmem:[#allocation2 + $0x1eb] sm:$0xff] }
 0x3c9   :  { %v2327_v57 = vsel %vm2289_vm7, %v2246_v17, %v15536_v5  ;;  %v683_v17 = vld [vmem:[#allocation2 + $0x393] sm:$0xff] }
 0x3ca   :  { %v3063_v7 = vpop.permute.xlu0 %3062  ;;  %v10894_v39 = vpop.permute.xlu1 %1621 }
 0x3cb   :  { %v3430_v46 = vsel %vm3409_vm10, %v3365_v30, %v3063_v7 }
 0x3cc   :  { %1955 = vrot.lane.b32.xlu0 %v761_v16, %s8720_s25  ;;  %2494 = vrot.lane.b32.xlu1 %v10756_v27, %s8721_s14  ;;  %v3301_v27 = vsel %vm3279_vm8, %v3236_v19, %v2673_v37 }
 0x3cd   :  { %8250 = vmatprep.mubr.msk.f32.mxu0 %vm3487_vm11, %v3430_v46  ;;  %v3366_v46 = vsel %vm3344_vm9, %v3301_v27, %v2869_v54  ;;  %v647_v54 = vld [vmem:[#allocation2 + $0x1e3] sm:$0xff] }
 0x3ce   :  { %v10907_v28 = vpop.permute.xlu0 %1939  ;;  %v2479_v6 = vpop.permute.xlu1 %2478 }
 0x3cf   :  { %v3237_v27 = vsel %vm3214_vm3, %v10426_v62, %v2479_v6  ;;  %v15538_v62 = vld [vmem:[#allocation117_spill] sm:$0xff] }
 0x3d0   :  { %3080 = vrot.lane.b32.xlu0 %v2327_v57, %s8724_s26  ;;  %1957 = vrot.lane.b32.xlu1 %v762_v59, %s8720_s25 }
 0x3d2   :  { %v3065_v16 = vpop.permute.xlu0 %3064  ;;  %v10917_v30 = vpop.permute.xlu1 %1941 }
 0x3d3   :  { %v3431_v7 = vsel %vm3409_vm10, %v3366_v46, %v3065_v16  ;;  %v727_v16 = vld [vmem:[#allocation2 + $0x1e4] sm:$0xff] }
 0x3d4   :  { %2496 = vrot.lane.b32.xlu0 %v10782_v22, %s8721_s14  ;;  %2690 = vrot.lane.b32.xlu1 %v10822_v11, %s8722_s17  ;;  %v604_v22 = vld [vmem:[#allocation2 + $0x39a] sm:$0xff] }
 0x3d5   :  { %8251 = vmatmul.mubr.msk.f32.gmra.mxu0 %vm3487_vm11, %v3431_v7 }
 0x3d6   :  { %v2481_v43 = vpop.permute.xlu0 %2480  ;;  %v2675_v38 = vpop.permute.xlu1 %2674 }
 0x3d7   :  { %v3302_v46 = vsel %vm3279_vm8, %v3237_v27, %v2675_v38  ;;  %v684_v38 = vld [vmem:[#allocation2 + $0x39b] sm:$0xff] }
 0x3d8   :  { %1249 = vrot.lane.b32.xlu0 %v568_v60, %s8718_s0  ;;  %1319 = vrot.lane.b32.xlu1 %v603_v9, %s8718_s0 }
 0x3da   :  { %v10927_v37 = vpop.permute.xlu0 %1303  ;;  %v2677_v18 = vpop.permute.xlu1 %2676 }
 0x3dc   :  { %1567 = vrot.lane.b32.xlu0 %v647_v54, %s8719_s22  ;;  %2692 = vrot.lane.b32.xlu1 %v10848_v24, %s8722_s17  ;;  %v405_v24 = vld [vmem:[#allocation2 + $0x1c8] sm:$0xff]  ;;  %v15537_v54 = vld [vmem:[#allocation55_spill] sm:$0xff] }
 0x3de   :  { %v2871_v11 = vpop.permute.xlu0 %2870  ;;  %v10932_v59 = vpop.permute.xlu1 %1305 }
 0x3e0   :  { %2886 = vrot.lane.b32.xlu0 %v2326_v14, %s8723_s11  ;;  %1321 = vrot.lane.b32.xlu1 %v604_v22, %s8718_s0  ;;  %v3367_v14 = vsel %vm3344_vm9, %v3302_v46, %v2871_v11  ;;  %v2085_v22 = vsel %vm210_vm0, %v405_v24, %v15537_v54  ;;  %v406_v24 = vld [vmem:[#allocation2 + $0x1d0] sm:$0xff]  ;;  %v409_v46 = vld [vmem:[#allocation2 + $0x1f8] sm:$0xff] }
 0x3e1   :  { %v2166_v6 = vsel %vm2127_vm6, %v2085_v22, %v15538_v62  ;;  %v15539_v22 = vld [vmem:[#allocation54_spill] sm:$0xff] }
 0x3e2   :  { %v10936_v5 = vpop.permute.xlu0 %1623  ;;  %v2873_v19 = vpop.permute.xlu1 %2872  ;;  %v2247_v11 = vsel %vm2208_vm5, %v2166_v6, %v10123_v12  ;;  %v763_v12 = vld [vmem:[#allocation2 + $0x394] sm:$0xff]  ;;  %v2086_v62 = vsel %vm210_vm0, %v406_v24, %v15539_v22  ;;  %v15541_v6 = vld [vmem:[#allocation116_spill] sm:$0xff] }
 0x3e3   :  { %v2328_v27 = vsel %vm2289_vm7, %v2247_v11, %v10173_v33 }
 0x3e4   :  { %1569 = vrot.lane.b32.xlu0 %v648_v2, %s8719_s22  ;;  %1639 = vrot.lane.b32.xlu1 %v683_v17, %s8719_s22 }
 0x3e6   :  { %v3067_v7 = vpop.permute.xlu0 %3066  ;;  %v10944_v60 = vpop.permute.xlu1 %1625 }
 0x3e7   :  { %v3432_v9 = vsel %vm3409_vm10, %v3367_v14, %v3067_v7  ;;  %v728_v14 = vld [vmem:[#allocation2 + $0x1ec] sm:$0xff] }
 0x3e8   :  { %1887 = vrot.lane.b32.xlu0 %v727_v16, %s8720_s25  ;;  %2888 = vrot.lane.b32.xlu1 %v2327_v57, %s8723_s11  ;;  %v3238_v57 = vsel %vm3214_vm3, %v10452_v40, %v2481_v43  ;;  %v15540_v40 = vld [vmem:[#allocation59_spill] sm:$0xff] }
 0x3e9   :  { %8253 = vmatprep.mubr.msk.f32.mxu0 %vm3487_vm11, %v3432_v9  ;;  %v3303_v16 = vsel %vm3279_vm8, %v3238_v57, %v2677_v18  ;;  %v2089_v43 = vsel %vm210_vm0, %v409_v46, %v15540_v40  ;;  %v410_v18 = vld [vmem:[#allocation2 + $0x200] sm:$0xff]  ;;  %v605_v40 = vld [vmem:[#allocation2 + $0x3aa] sm:$0xff] }
 0x3ea   :  { %v10956_v2 = vpop.permute.xlu0 %1943  ;;  %v10958_v17 = vpop.permute.xlu1 %2482  ;;  %v3368_v7 = vsel %vm3344_vm9, %v3303_v16, %v2873_v19  ;;  %v2170_v19 = vsel %vm2127_vm6, %v2089_v43, %v10121_v36 }
 0x3ec   :  { %3082 = vrot.lane.b32.xlu0 %v2328_v27, %s8724_s26  ;;  %1641 = vrot.lane.b32.xlu1 %v684_v38, %s8719_s22  ;;  %v2167_v38 = vsel %vm2127_vm6, %v2086_v62, %v15541_v6  ;;  %v2251_v27 = vsel %vm2208_vm5, %v2170_v19, %v10156_v3  ;;  %v413_v62 = vld [vmem:[#allocation2 + $0x228] sm:$0xff] }
 0x3ed   :  { %v2248_v11 = vsel %vm2208_vm5, %v2167_v38, %v10154_v58  ;;  %v10992_v16 = vsel %vm2289_vm7, %v2251_v27, %v10211_v55  ;;  %v411_v58 = vld [vmem:[#allocation2 + $0x210] sm:$0xff]  ;;  %v15544_v38 = vld [vmem:[#allocation60_spill] sm:$0xff] }
 0x3ee   :  { %v3069_v9 = vpop.permute.xlu0 %3068  ;;  %v10968_v54 = vpop.permute.xlu1 %1945  ;;  %v2329_v46 = vsel %vm2289_vm7, %v2248_v11, %v10206_v34  ;;  %v15545_v11 = vld [vmem:[#allocation63_spill] sm:$0xff] }
 0x3ef   :  { %v3433_v33 = vsel %vm3409_vm10, %v3368_v7, %v3069_v9  ;;  %v2093_v27 = vsel %vm210_vm0, %v413_v62, %v15545_v11 }
 0x3f0   :  { %1889 = vrot.lane.b32.xlu0 %v728_v14, %s8720_s25  ;;  %1959 = vrot.lane.b32.xlu1 %v763_v12, %s8720_s25  ;;  %v15542_v14 = vld [vmem:[#allocation58_spill] sm:$0xff]  ;;  %v764_v12 = vld [vmem:[#allocation2 + $0x39c] sm:$0xff] }
 0x3f1   :  { %8254 = vmatmul.mubr.msk.f32.gmra.mxu0 %vm3487_vm11, %v3433_v33  ;;  %v2090_v36 = vsel %vm210_vm0, %v410_v18, %v15542_v14  ;;  %v15543_v33 = vld [vmem:[#allocation61_spill] sm:$0xff] }
 0x3f2   :  { %v10986_v24 = vpop.permute.xlu0 %2484  ;;  %v2679_v57 = vpop.permute.xlu1 %2678  ;;  %v2171_v3 = vsel %vm2127_vm6, %v2090_v36, %v10143_v10  ;;  %v2091_v22 = vsel %vm210_vm0, %v411_v58, %v15543_v33  ;;  %v412_v10 = vld [vmem:[#allocation2 + $0x218] sm:$0xff] }
 0x3f3   :  { %v2252_v34 = vsel %vm2208_vm5, %v2171_v3, %v10199_v63  ;;  %v2172_v63 = vsel %vm2127_vm6, %v2091_v22, %v10145_v29  ;;  %v2092_v19 = vsel %vm210_vm0, %v412_v10, %v15544_v38  ;;  %v15546_v3 = vld [vmem:[#allocation150_spill] sm:$0xff] }
 0x3f4   :  { %2498 = vrot.lane.b32.xlu0 %v10992_v16, %s8721_s14  ;;  %3084 = vrot.lane.b32.xlu1 %v2329_v46, %s8724_s26  ;;  %v11007_v9 = vsel %vm2289_vm7, %v2252_v34, %v10248_v49  ;;  %v2253_v43 = vsel %vm2208_vm5, %v2172_v63, %v10204_v13  ;;  %v2173_v29 = vsel %vm2127_vm6, %v2092_v19, %v10189_v53  ;;  %v414_v53 = vld [vmem:[#allocation2 + $0x230] sm:$0xff]  ;;  %v15551_v19 = vld [vmem:[#allocation148_spill] sm:$0xff] }
 0x3f5   :  { %v11022_v6 = vsel %vm2289_vm7, %v2253_v43, %v10257_v31  ;;  %v2174_v13 = vsel %vm2127_vm6, %v2093_v27, %v10197_v23  ;;  %v2254_v31 = vsel %vm2208_vm5, %v2173_v29, %v10235_v45  ;;  %v3239_v23 = vsel %vm3214_vm3, %v10492_v26, %v10958_v17  ;;  %v415_v45 = vld [vmem:[#allocation2 + $0x240] sm:$0xff]  ;;  %v685_v34 = vld [vmem:[#allocation2 + $0x3ab] sm:$0xff]  ;;  %v15547_v63 = vld [vmem:[#allocation62_spill] sm:$0xff] }
 0x3f6   :  { %v11003_v7 = vpop.permute.xlu0 %1307  ;;  %v2681_v55 = vpop.permute.xlu1 %2680  ;;  %v2255_v46 = vsel %vm2208_vm5, %v2174_v13, %v10246_v51  ;;  %v11043_v58 = vsel %vm2289_vm7, %v2254_v31, %v10275_v56  ;;  %v3304_v51 = vsel %vm3279_vm8, %v3239_v23, %v2679_v57  ;;  %v606_v56 = vld [vmem:[#allocation2 + $0x3b2] sm:$0xff]  ;;  %v2094_v26 = vsel %vm210_vm0, %v414_v53, %v15547_v63  ;;  %v416_v23 = vld [vmem:[#allocation2 + $0x248] sm:$0xff] }
 0x3f7   :  { %v15548_v17 = vld [vmem:[#allocation65_spill] sm:$0xff]  ;;  %v15550_v38 = vld [vmem:[#allocation146_spill] sm:$0xff]  ;;  %v3240_v53 = vsel %vm3214_vm3, %v10518_v21, %v10986_v24  ;;  %v15554_v24 = vld [vmem:[#allocation147_spill] sm:$0xff] }
 0x3f8   :  { %1961 = vrot.lane.b32.xlu0 %v764_v12, %s8720_s25  ;;  %2500 = vrot.lane.b32.xlu1 %v11007_v9, %s8721_s14  ;;  %v11047_v12 = vsel %vm2289_vm7, %v2255_v46, %v15546_v3  ;;  %v15549_v57 = vld [vmem:[#allocation145_spill] sm:$0xff] }
 0x3f9   :  { %v2175_v43 = vsel %vm2127_vm6, %v2094_v26, %v15549_v57  ;;  %v15552_v27 = vld [vmem:[#allocation149_spill] sm:$0xff] }
 0x3fa   :  { %v2875_v18 = vpop.permute.xlu0 %2874  ;;  %v11018_v49 = vpop.permute.xlu1 %1309  ;;  %v2256_v11 = vsel %vm2208_vm5, %v2175_v43, %v15551_v19  ;;  %v15555_v19 = vld [vmem:[#allocation67_spill] sm:$0xff] }
 0x3fb   :  { %v3369_v33 = vsel %vm3344_vm9, %v3304_v51, %v2875_v18  ;;  %v11080_v46 = vsel %vm2289_vm7, %v2256_v11, %v10304_v8  ;;  %v686_v51 = vld [vmem:[#allocation2 + $0x3b3] sm:$0xff] }
 0x3fc   :  { %2694 = vrot.lane.b32.xlu0 %v11022_v6, %s8722_s17  ;;  %1323 = vrot.lane.b32.xlu1 %v605_v40, %s8718_s0  ;;  %v2095_v40 = vsel %vm210_vm0, %v415_v45, %v15548_v17  ;;  %v3305_v45 = vsel %vm3279_vm8, %v3240_v53, %v2681_v55  ;;  %v765_v8 = vld [vmem:[#allocation2 + $0x3ac] sm:$0xff]  ;;  %v766_v17 = vld [vmem:[#allocation2 + $0x3b4] sm:$0xff]  ;;  %v15556_v53 = vld [vmem:[#allocation35_spill] sm:$0xff] }
 0x3fd   :  { %v2176_v18 = vsel %vm2127_vm6, %v2095_v40, %v15550_v38 }
 0x3fe   :  { %v11039_v14 = vpop.permute.xlu0 %1627  ;;  %v2877_v36 = vpop.permute.xlu1 %2876  ;;  %v2257_v29 = vsel %vm2208_vm5, %v2176_v18, %v15552_v27 }
 0x3ff   :  { %v11084_v3 = vsel %vm2289_vm7, %v2257_v29, %v10315_v61  ;;  %v418_v29 = vld [vmem:[#allocation2 + $0x260] sm:$0xff] }
 0x400   :  { %2696 = vrot.lane.b32.xlu0 %v11043_v58, %s8722_s17  ;;  %2890 = vrot.lane.b32.xlu1 %v11047_v12, %s8723_s11 }
 0x402   :  { %v3071_v22 = vpop.permute.xlu0 %3070  ;;  %v11058_v10 = vpop.permute.xlu1 %1629 }
 0x403   :  { %v3434_v62 = vsel %vm3409_vm10, %v3369_v33, %v3071_v22  ;;  %v15553_v22 = vld [vmem:[#allocation64_spill] sm:$0xff] }
 0x404   :  { %1325 = vrot.lane.b32.xlu0 %v606_v56, %s8718_s0  ;;  %1643 = vrot.lane.b32.xlu1 %v685_v34, %s8719_s22  ;;  %v3370_v56 = vsel %vm3344_vm9, %v3305_v45, %v2877_v36  ;;  %v2096_v21 = vsel %vm210_vm0, %v416_v23, %v15553_v22  ;;  %v15558_v22 = vld [vmem:[#allocation66_spill] sm:$0xff] }
 0x405   :  { %8256 = vmatprep.mubr.msk.f32.mxu0 %vm3487_vm11, %v3434_v62  ;;  %v2177_v62 = vsel %vm2127_vm6, %v2096_v21, %v15554_v24  ;;  %v2098_v21 = vsel %vm210_vm0, %v418_v29, %v15558_v22  ;;  %v15559_v24 = vld [vmem:[#allocation97_spill] sm:$0xff] }
 0x406   :  { %v11076_v13 = vpop.permute.xlu0 %1947  ;;  %v2487_v31 = vpop.permute.xlu1 %2486  ;;  %v2258_v55 = vsel %vm2208_vm5, %v2177_v62, %v10302_v52  ;;  %v2179_v62 = vsel %vm2127_vm6, %v2098_v21, %v15559_v24  ;;  %v15560_v29 = vld [vmem:[#allocation69_spill] sm:$0xff]  ;;  %v15566_v24 = vld [vmem:[#allocation99_spill] sm:$0xff] }
 0x407   :  { %v11109_v26 = vsel %vm2289_vm7, %v2258_v55, %v10329_v4  ;;  %v417_v4 = vld [vmem:[#allocation2 + $0x258] sm:$0xff]  ;;  %v3241_v27 = vsel %vm3214_vm3, %v10558_v42, %v2487_v31 }
 0x408   :  { %2892 = vrot.lane.b32.xlu0 %v11080_v46, %s8723_s11  ;;  %3086 = vrot.lane.b32.xlu1 %v11084_v3, %s8724_s26  ;;  %v2097_v11 = vsel %vm210_vm0, %v417_v4, %v15555_v19 }
 0x409   :  { %v2178_v23 = vsel %vm2127_vm6, %v2097_v11, %v15556_v53 }
 0x40a   :  { %v3073_v34 = vpop.permute.xlu0 %3072  ;;  %v11095_v61 = vpop.permute.xlu1 %1949 }
 0x40b   :  { %v3435_v33 = vsel %vm3409_vm10, %v3370_v56, %v3073_v34 }
 0x40c   :  { %1645 = vrot.lane.b32.xlu0 %v686_v51, %s8719_s22  ;;  %1963 = vrot.lane.b32.xlu1 %v765_v8, %s8720_s25  ;;  %v15557_v51 = vld [vmem:[#allocation34_spill] sm:$0xff]  ;;  %s8735_s22 = smov [#allocation6 + $0x640]  }
 0x40d   :  { %8257 = vmatmul.mubr.msk.f32.gmra.mxu0 %vm3487_vm11, %v3435_v33  ;;  %v2259_v8 = vsel %vm2208_vm5, %v2178_v23, %v15557_v51  ;;  %v15561_v23 = vld [vmem:[#allocation37_spill] sm:$0xff]  ;;  %s142_s2 = sshll.u32 %s8735_s22, 4  ;;  %s143_s2 = int_to_ptr.vmem [resolvable:$true] %s142_s2 }
 0x40e   :  { %v2489_v36 = vpop.permute.xlu0 %2488  ;;  %v2683_v63 = vpop.permute.xlu1 %2682  ;;  %v11146_v42 = vsel %vm2289_vm7, %v2259_v8, %v10382_v0  ;;  %v2260_v0 = vsel %vm2208_vm5, %v2179_v62, %v10369_v50 }
 0x40f   :  { %v3306_v45 = vsel %vm3279_vm8, %v3241_v27, %v2683_v63 }
 0x410   :  { %2502 = vrot.lane.b32.xlu0 %v11022_v6, %s8721_s14  ;;  %3088 = vrot.lane.b32.xlu1 %v11109_v26, %s8724_s26 }
 0x412   :  { %v11115_v40 = vpop.permute.xlu0 %1311  ;;  %v2685_v57 = vpop.permute.xlu1 %2684 }
 0x414   :  { %1965 = vrot.lane.b32.xlu0 %v766_v17, %s8720_s25  ;;  %2504 = vrot.lane.b32.xlu1 %v11043_v58, %s8721_s14  ;;  %v11164_v17 = vsel %vm2289_vm7, %v2260_v0, %v10395_v25  ;;  %v419_v25 = vld [vmem:[#allocation2 + $0x270] sm:$0xff] }
 0x416   :  { %v2879_v52 = vpop.permute.xlu0 %2878  ;;  %v11120_v43 = vpop.permute.xlu1 %1313 }
 0x417   :  { %v3371_v56 = vsel %vm3344_vm9, %v3306_v45, %v2879_v52  ;;  %v3242_v52 = vsel %vm3214_vm3, %v10584_v41, %v2489_v36 }
 0x418   :  { %2698 = vrot.lane.b32.xlu0 %v11047_v12, %s8722_s17  ;;  %2700 = vrot.lane.b32.xlu1 %v11080_v46, %s8722_s17  ;;  %v3307_v4 = vsel %vm3279_vm8, %v3242_v52, %v2685_v57  ;;  %v2099_v57 = vsel %vm210_vm0, %v419_v25, %v15560_v29  ;;  %v421_v29 = vld [vmem:[#allocation2 + $0x288] sm:$0xff] }
 0x419   :  { %v2180_v53 = vsel %vm2127_vm6, %v2099_v57, %v10406_v32  ;;  %v15565_v32 = vld [vmem:[#allocation96_spill] sm:$0xff] }
 0x41a   :  { %v11126_v38 = vpop.permute.xlu0 %1631  ;;  %v2881_v18 = vpop.permute.xlu1 %2880  ;;  %v2261_v45 = vsel %vm2208_vm5, %v2180_v53, %v15561_v23 }
 0x41b   :  { %v3372_v50 = vsel %vm3344_vm9, %v3307_v4, %v2881_v18  ;;  %v420_v18 = vld [vmem:[#allocation2 + $0x278] sm:$0xff] }
 0x41c   :  { %2894 = vrot.lane.b32.xlu0 %v11084_v3, %s8723_s11  ;;  %2896 = vrot.lane.b32.xlu1 %v11109_v26, %s8723_s11  ;;  %v15568_v4 = vld [vmem:[#allocation98_spill] sm:$0xff] }
 0x41e   :  { %v3075_v34 = vpop.permute.xlu0 %3074  ;;  %v11142_v33 = vpop.permute.xlu1 %1633 }
 0x41f   :  { %v3436_v31 = vsel %vm3409_vm10, %v3371_v56, %v3075_v34  ;;  %v15562_v56 = vld [vmem:[#allocation36_spill] sm:$0xff] }
 0x420   :  { %3090 = vrot.lane.b32.xlu0 %v11146_v42, %s8724_s26  ;;  %2506 = vrot.lane.b32.xlu1 %v11047_v12, %s8721_s14  ;;  %v11196_v34 = vsel %vm2289_vm7, %v2261_v45, %v15562_v56  ;;  %v15571_v56 = vld [vmem:[#allocation71_spill] sm:$0xff] }
 0x421   :  { %8259 = vmatprep.mubr.msk.f32.mxu0 %vm3487_vm11, %v3436_v31  ;;  %15563 = vst [vmem:[#allocation132_spill] sm:$0xff] %v11196_v34  ;;  %v15564_v31 = vld [vmem:[#allocation68_spill] sm:$0xff] }
 0x422   :  { %v11160_v55 = vpop.permute.xlu0 %1951  ;;  %v2491_v63 = vpop.permute.xlu1 %2490  ;;  %v2100_v22 = vsel %vm210_vm0, %v420_v18, %v15564_v31  ;;  %v2101_v31 = vsel %vm210_vm0, %v421_v29, %v15571_v56 }
 0x423   :  { %v2181_v21 = vsel %vm2127_vm6, %v2100_v22, %v15565_v32  ;;  %v3243_v25 = vsel %vm3214_vm3, %v10624_v35, %v2491_v63  ;;  %v422_v35 = vld [vmem:[#allocation2 + $0x290] sm:$0xff]  ;;  %v15572_v63 = vld [vmem:[#allocation39_spill] sm:$0xff] }
 0x424   :  { %3092 = vrot.lane.b32.xlu0 %v11164_v17, %s8724_s26  ;;  %2508 = vrot.lane.b32.xlu1 %v11080_v46, %s8721_s14  ;;  %v2262_v62 = vsel %vm2208_vm5, %v2181_v21, %v15566_v24  ;;  %v15573_v22 = vld [vmem:[#allocation38_spill] sm:$0xff] }
 0x426   :  { %v3077_v19 = vpop.permute.xlu0 %3076  ;;  %v11174_v11 = vpop.permute.xlu1 %1953 }
 0x427   :  { %v3437_v27 = vsel %vm3409_vm10, %v3372_v50, %v3077_v19  ;;  %v11212_v50 = vsel %vm2289_vm7, %v2262_v62, %v15568_v4  ;;  %v15575_v62 = vld [vmem:[#allocation119_spill] sm:$0xff]  ;;  %v15576_v4 = vld [vmem:[#allocation70_spill] sm:$0xff] }
 0x428   :  { %2702 = vrot.lane.b32.xlu0 %v11084_v3, %s8722_s17  ;;  %2704 = vrot.lane.b32.xlu1 %v11109_v26, %s8722_s17  ;;  %15569 = vst [vmem:[#allocation48_spill] sm:$0xff] %v11212_v50 }
 0x429   :  { %8260 = vmatmul.mubr.msk.f32.gmra.mxu0 %vm3487_vm11, %v3437_v27 }
 0x42a   :  { %v2493_v41 = vpop.permute.xlu0 %2492  ;;  %v2687_v36 = vpop.permute.xlu1 %2686 }
 0x42b   :  { %v3308_v57 = vsel %vm3279_vm8, %v3243_v25, %v2687_v36  ;;  %v2182_v36 = vsel %vm2127_vm6, %v2101_v31, %v15572_v63  ;;  %v2102_v25 = vsel %vm210_vm0, %v422_v35, %v15576_v4  ;;  %v3244_v29 = vsel %vm3214_vm3, %v10650_v47, %v2493_v41  ;;  %v15580_v47 = vld [vmem:[#allocation121_spill] sm:$0xff] }
 0x42c   :  { %2898 = vrot.lane.b32.xlu0 %v11146_v42, %s8723_s11  ;;  %2900 = vrot.lane.b32.xlu1 %v11164_v17, %s8723_s11  ;;  %v2263_v32 = vsel %vm2208_vm5, %v2182_v36, %v15573_v22  ;;  %v15582_v4 = vld [vmem:[#allocation73_spill] sm:$0xff] }
 0x42e   :  { %v11192_v51 = vpop.permute.xlu0 %1315  ;;  %v2689_v8 = vpop.permute.xlu1 %2688 }
 0x430   :  { %3094 = vrot.lane.b32.xlu0 %v11196_v34, %s8724_s26  ;;  %2510 = vrot.lane.b32.xlu1 %v11084_v3, %s8721_s14 }
 0x432   :  { %v2883_v0 = vpop.permute.xlu0 %2882  ;;  %v11208_v52 = vpop.permute.xlu1 %1317 }
 0x433   :  { %15567 = vst [vmem:[#allocation134_spill] sm:$0xff] %v11208_v52  ;;  %v3373_v18 = vsel %vm3344_vm9, %v3308_v57, %v2883_v0  ;;  %v11246_v0 = vsel %vm2289_vm7, %v2263_v32, %v15575_v62  ;;  %v15577_v57 = vld [vmem:[#allocation101_spill] sm:$0xff] }
 0x434   :  { %3096 = vrot.lane.b32.xlu0 %v11212_v50, %s8724_s26  ;;  %2512 = vrot.lane.b32.xlu1 %v11109_v26, %s8721_s14 }
 0x436   :  { %v11218_v19 = vpop.permute.xlu0 %1635  ;;  %v2885_v27 = vpop.permute.xlu1 %2884 }
 0x438   :  { %2706 = vrot.lane.b32.xlu0 %v11146_v42, %s8722_s17  ;;  %2708 = vrot.lane.b32.xlu1 %v11164_v17, %s8722_s17 }
 0x43a   :  { %v3079_v53 = vpop.permute.xlu0 %3078  ;;  %v11228_v23 = vpop.permute.xlu1 %1637 }
 0x43b   :  { %15570 = vst [vmem:[#allocation110_spill] sm:$0xff] %v11228_v23  ;;  %v3438_v45 = vsel %vm3409_vm10, %v3373_v18, %v3079_v53  ;;  %v2183_v18 = vsel %vm2127_vm6, %v2102_v25, %v15577_v57  ;;  %v3309_v53 = vsel %vm3279_vm8, %v3244_v29, %v2689_v8  ;;  %v424_v29 = vld [vmem:[#allocation2 + $0x2a8] sm:$0xff] }
 0x43c   :  { %2902 = vrot.lane.b32.xlu0 %v11196_v34, %s8723_s11  ;;  %2904 = vrot.lane.b32.xlu1 %v11212_v50, %s8723_s11  ;;  %v3374_v31 = vsel %vm3344_vm9, %v3309_v53, %v2885_v27  ;;  %v423_v27 = vld [vmem:[#allocation2 + $0x2a0] sm:$0xff]  ;;  %v15583_v57 = vld [vmem:[#allocation41_spill] sm:$0xff] }
 0x43d   :  { %8262 = vmatprep.mubr.msk.f32.mxu0 %vm3487_vm11, %v3438_v45  ;;  %v15578_v45 = vld [vmem:[#allocation100_spill] sm:$0xff]  ;;  %v2103_v25 = vsel %vm210_vm0, %v423_v27, %v15582_v4  ;;  %v15587_v27 = vld [vmem:[#allocation103_spill] sm:$0xff] }
 0x43e   :  { %v11242_v21 = vpop.permute.xlu0 %1955  ;;  %v2495_v24 = vpop.permute.xlu1 %2494  ;;  %v2264_v56 = vsel %vm2208_vm5, %v2183_v18, %v15578_v45  ;;  %v2184_v18 = vsel %vm2127_vm6, %v2103_v25, %v15583_v57  ;;  %v15584_v53 = vld [vmem:[#allocation120_spill] sm:$0xff]  ;;  %v15588_v25 = vld [vmem:[#allocation122_spill] sm:$0xff] }
 0x43f   :  { %15574 = vst [vmem:[#allocation135_spill] sm:$0xff] %v11242_v21  ;;  %v11266_v41 = vsel %vm2289_vm7, %v2264_v56, %v15580_v47  ;;  %v2265_v45 = vsel %vm2208_vm5, %v2184_v18, %v15584_v53  ;;  %v15586_v47 = vld [vmem:[#allocation72_spill] sm:$0xff] }
 0x440   :  { %3098 = vrot.lane.b32.xlu0 %v11246_v0, %s8724_s26  ;;  %2514 = vrot.lane.b32.xlu1 %v11146_v42, %s8721_s14 }
 0x442   :  { %v3081_v35 = vpop.permute.xlu0 %3080  ;;  %v11262_v63 = vpop.permute.xlu1 %1957 }
 0x443   :  { %15579 = vst [vmem:[#allocation137_spill] sm:$0xff] %v11262_v63  ;;  %v3439_v36 = vsel %vm3409_vm10, %v3374_v31, %v3081_v35  ;;  %v11296_v35 = vsel %vm2289_vm7, %v2265_v45, %v10580_v1  ;;  %v15590_v1 = vld [vmem:[#allocation40_spill] sm:$0xff]  ;;  %v15595_v63 = vld [vmem:[#allocation125_spill] sm:$0xff] }
 0x444   :  { %3100 = vrot.lane.b32.xlu0 %v11266_v41, %s8724_s26  ;;  %2516 = vrot.lane.b32.xlu1 %v11164_v17, %s8721_s14  ;;  %15585 = vst [vmem:[#allocation113_spill] sm:$0xff] %v11296_v35 }
 0x445   :  { %8263 = vmatmul.mubr.msk.f32.gmra.mxu0 %vm3487_vm11, %v3439_v36  ;;  %v2104_v36 = vsel %vm210_vm0, %v424_v29, %v15586_v47 }
 0x446   :  { %v2497_v8 = vpop.permute.xlu0 %2496  ;;  %v2691_v22 = vpop.permute.xlu1 %2690  ;;  %v2185_v4 = vsel %vm2127_vm6, %v2104_v36, %v15587_v27  ;;  %v425_v36 = vld [vmem:[#allocation2 + $0x2b8] sm:$0xff] }
 0x447   :  { %v2266_v57 = vsel %vm2208_vm5, %v2185_v4, %v15588_v25  ;;  %v15593_v25 = vld [vmem:[#allocation75_spill] sm:$0xff] }
 0x448   :  { %2710 = vrot.lane.b32.xlu0 %v11196_v34, %s8722_s17  ;;  %2712 = vrot.lane.b32.xlu1 %v11212_v50, %s8722_s17  ;;  %v11312_v45 = vsel %vm2289_vm7, %v2266_v57, %v15590_v1  ;;  %v2105_v57 = vsel %vm210_vm0, %v425_v36, %v15593_v25  ;;  %v3245_v1 = vsel %vm3214_vm3, %v10690_v48, %v2495_v24 }
 0x449   :  { %15591 = vst [vmem:[#allocation138_spill] sm:$0xff] %v11312_v45 }
 0x44a   :  { %v11278_v32 = vpop.permute.xlu0 %1249  ;;  %v11280_v62 = vpop.permute.xlu1 %1319 }
 0x44b   :  { %15581 = vst [vmem:[#allocation51_spill] sm:$0xff] %v11280_v62 }
 0x44c   :  { %2906 = vrot.lane.b32.xlu0 %v11246_v0, %s8723_s11  ;;  %2908 = vrot.lane.b32.xlu1 %v11266_v41, %s8723_s11 }
 0x44e   :  { %v11292_v56 = vpop.permute.xlu0 %1567  ;;  %v2693_v31 = vpop.permute.xlu1 %2692 }
 0x450   :  { %3102 = vrot.lane.b32.xlu0 %v11296_v35, %s8724_s26  ;;  %2518 = vrot.lane.b32.xlu1 %v11196_v34, %s8721_s14  ;;  %v15597_v34 = vld [vmem:[#allocation74_spill] sm:$0xff] }
 0x452   :  { %v2887_v18 = vpop.permute.xlu0 %2886  ;;  %v11308_v53 = vpop.permute.xlu1 %1321 }
 0x453   :  { %15589 = vst [vmem:[#allocation136_spill] sm:$0xff] %v11308_v53  ;;  %v426_v53 = vld [vmem:[#allocation2 + $0x2c0] sm:$0xff] }
 0x454   :  { %3104 = vrot.lane.b32.xlu0 %v11312_v45, %s8724_s26  ;;  %2520 = vrot.lane.b32.xlu1 %v11212_v50, %s8721_s14  ;;  %v3310_v50 = vsel %vm3279_vm8, %v3245_v1, %v2691_v22  ;;  %v2106_v21 = vsel %vm210_vm0, %v426_v53, %v15597_v34 }
 0x455   :  { %v3375_v36 = vsel %vm3344_vm9, %v3310_v50, %v2887_v18 }
 0x456   :  { %v11318_v29 = vpop.permute.xlu0 %1569  ;;  %v11320_v47 = vpop.permute.xlu1 %1639 }
 0x457   :  { %15592 = vst [vmem:[#allocation50_spill] sm:$0xff] %v11320_v47  ;;  %v15594_v47 = vld [vmem:[#allocation102_spill] sm:$0xff] }
 0x458   :  { %2714 = vrot.lane.b32.xlu0 %v11246_v0, %s8722_s17  ;;  %2716 = vrot.lane.b32.xlu1 %v11266_v41, %s8722_s17  ;;  %v2186_v62 = vsel %vm2127_vm6, %v2105_v57, %v15594_v47 }
 0x459   :  { %v2267_v23 = vsel %vm2208_vm5, %v2186_v62, %v15595_v63  ;;  %v15598_v63 = vld [vmem:[#allocation123_spill] sm:$0xff]  ;;  %v15600_v62 = vld [vmem:[#allocation104_spill] sm:$0xff] }
 0x45a   :  { %v11326_v27 = vpop.permute.xlu0 %1887  ;;  %v2889_v4 = vpop.permute.xlu1 %2888  ;;  %v11346_v48 = vsel %vm2289_vm7, %v2267_v23, %v10646_v20  ;;  %v2187_v50 = vsel %vm2127_vm6, %v2106_v21, %v15598_v63  ;;  %v3246_v18 = vsel %vm3214_vm3, %v15600_v62, %v2497_v8  ;;  %v15603_v63 = vld [vmem:[#allocation124_spill] sm:$0xff] }
 0x45b   :  { %15596 = vst [vmem:[#allocation112_spill] sm:$0xff] %v11346_v48  ;;  %v2268_v20 = vsel %vm2208_vm5, %v2187_v50, %v10633_v44  ;;  %v3311_v21 = vsel %vm3279_vm8, %v3246_v18, %v2693_v31  ;;  %v15604_v18 = vld [vmem:[#allocation42_spill] sm:$0xff] }
 0x45c   :  { %2910 = vrot.lane.b32.xlu0 %v11296_v35, %s8723_s11  ;;  %2912 = vrot.lane.b32.xlu1 %v11312_v45, %s8723_s11  ;;  %v11366_v34 = vsel %vm2289_vm7, %v2268_v20, %v10659_v15  ;;  %v3376_v44 = vsel %vm3344_vm9, %v3311_v21, %v2889_v4  ;;  %v427_v15 = vld [vmem:[#allocation2 + $0x2d0] sm:$0xff]  ;;  %v428_v4 = vld [vmem:[#allocation2 + $0x2d8] sm:$0xff] }
 0x45d   :  { %15599 = vst [vmem:[#allocation139_spill] sm:$0xff] %v11366_v34 }
 0x45e   :  { %v3083_v25 = vpop.permute.xlu0 %3082  ;;  %v11342_v52 = vpop.permute.xlu1 %1641 }
 0x45f   :  { %v3440_v24 = vsel %vm3409_vm10, %v3375_v36, %v3083_v25  ;;  %v15601_v36 = vld [vmem:[#allocation77_spill] sm:$0xff]  ;;  %v15602_v25 = vld [vmem:[#allocation43_spill] sm:$0xff] }
 0x460   :  { %3106 = vrot.lane.b32.xlu0 %v11346_v48, %s8724_s26  ;;  %2522 = vrot.lane.b32.xlu1 %v11246_v0, %s8721_s14  ;;  %v2107_v31 = vsel %vm210_vm0, %v427_v15, %v15601_v36  ;;  %v15607_v15 = vld [vmem:[#allocation105_spill] sm:$0xff] }
 0x461   :  { %8265 = vmatprep.mubr.msk.f32.mxu0 %vm3487_vm11, %v3440_v24  ;;  %v2188_v24 = vsel %vm2127_vm6, %v2107_v31, %v15602_v25  ;;  %v15608_v31 = vld [vmem:[#allocation126_spill] sm:$0xff] }
 0x462   :  { %v11360_v23 = vpop.permute.xlu0 %1889  ;;  %v11362_v22 = vpop.permute.xlu1 %1959  ;;  %v2269_v50 = vsel %vm2208_vm5, %v2188_v24, %v15603_v63 }
 0x463   :  { %v11398_v21 = vsel %vm2289_vm7, %v2269_v50, %v15604_v18  ;;  %v15609_v50 = vld [vmem:[#allocation127_spill] sm:$0xff] }
 0x464   :  { %3108 = vrot.lane.b32.xlu0 %v11366_v34, %s8724_s26  ;;  %2524 = vrot.lane.b32.xlu1 %v11266_v41, %s8721_s14  ;;  %15605 = vst [vmem:[#allocation140_spill] sm:$0xff] %v11398_v21 }
 0x466   :  { %v2499_v53 = vpop.permute.xlu0 %2498  ;;  %v3085_v47 = vpop.permute.xlu1 %3084 }
 0x467   :  { %v3441_v57 = vsel %vm3409_vm10, %v3376_v44, %v3085_v47  ;;  %v15606_v44 = vld [vmem:[#allocation76_spill] sm:$0xff] }
 0x468   :  { %2718 = vrot.lane.b32.xlu0 %v11296_v35, %s8722_s17  ;;  %2720 = vrot.lane.b32.xlu1 %v11312_v45, %s8722_s17  ;;  %v2108_v47 = vsel %vm210_vm0, %v428_v4, %v15606_v44  ;;  %v15610_v4 = vld [vmem:[#allocation57_spill] sm:$0xff] }
 0x469   :  { %8266 = vmatmul.mubr.msk.f32.gmra.mxu0 %vm3487_vm11, %v3441_v57  ;;  %v407_v57 = vld [vmem:[#allocation2 + $0x1e0] sm:$0xff]  ;;  %v2189_v36 = vsel %vm2127_vm6, %v2108_v47, %v15607_v15 }
 0x46a   :  { %v11382_v8 = vpop.permute.xlu0 %1961  ;;  %v2501_v1 = vpop.permute.xlu1 %2500  ;;  %v2270_v25 = vsel %vm2208_vm5, %v2189_v36, %v15608_v31  ;;  %v2087_v44 = vsel %vm210_vm0, %v407_v57, %v15610_v4 }
 0x46b   :  { %v11412_v18 = vsel %vm2289_vm7, %v2270_v25, %v15609_v50  ;;  %v408_v50 = vld [vmem:[#allocation2 + $0x1e8] sm:$0xff] }
 0x46c   :  { %2914 = vrot.lane.b32.xlu0 %v11346_v48, %s8723_s11  ;;  %2916 = vrot.lane.b32.xlu1 %v11366_v34, %s8723_s11 }
 0x46e   :  { %v2695_v20 = vpop.permute.xlu0 %2694  ;;  %v11394_v62 = vpop.permute.xlu1 %1323 }
 0x470   :  { %3110 = vrot.lane.b32.xlu0 %v11398_v21, %s8724_s26  ;;  %2526 = vrot.lane.b32.xlu1 %v11296_v35, %s8721_s14  ;;  %v15611_v35 = vld [vmem:[#allocation118_spill] sm:$0xff] }
 0x471   :  { %v2168_v47 = vsel %vm2127_vm6, %v2087_v44, %v15611_v35  ;;  %v429_v35 = vld [vmem:[#allocation2 + $0x2e8] sm:$0xff] }
 0x472   :  { %v2697_v24 = vpop.permute.xlu0 %2696  ;;  %v2891_v63 = vpop.permute.xlu1 %2890  ;;  %v2249_v15 = vsel %vm2208_vm5, %v2168_v47, %v11292_v56 }
 0x473   :  { %v2330_v25 = vsel %vm2289_vm7, %v2249_v15, %v11326_v27 }
 0x474   :  { %3112 = vrot.lane.b32.xlu0 %v11412_v18, %s8724_s26  ;;  %2528 = vrot.lane.b32.xlu1 %v11312_v45, %s8721_s14  ;;  %v3247_v57 = vsel %vm3214_vm3, %v2330_v25, %v2499_v53  ;;  %v15614_v53 = vld [vmem:[#allocation79_spill] sm:$0xff]  ;;  %v430_v25 = vld [vmem:[#allocation2 + $0x2f0] sm:$0xff] }
 0x475   :  { %v3312_v4 = vsel %vm3279_vm8, %v3247_v57, %v2695_v20  ;;  %v2109_v15 = vsel %vm210_vm0, %v429_v35, %v15614_v53  ;;  %v15615_v20 = vld [vmem:[#allocation129_spill] sm:$0xff] }
 0x476   :  { %v11424_v36 = vpop.permute.xlu0 %1325  ;;  %v11426_v31 = vpop.permute.xlu1 %1643  ;;  %v3377_v56 = vsel %vm3344_vm9, %v3312_v4, %v2891_v63  ;;  %v2190_v63 = vsel %vm2127_vm6, %v2109_v15, %v15615_v20  ;;  %v15616_v4 = vld [vmem:[#allocation107_spill] sm:$0xff] }
 0x477   :  { %15612 = vst [vmem:[#allocation53_spill] sm:$0xff] %v11426_v31  ;;  %v15613_v31 = vld [vmem:[#allocation56_spill] sm:$0xff] }
 0x478   :  { %2722 = vrot.lane.b32.xlu0 %v11346_v48, %s8722_s17  ;;  %2724 = vrot.lane.b32.xlu1 %v11366_v34, %s8722_s17  ;;  %v2088_v27 = vsel %vm210_vm0, %v408_v50, %v15613_v31  ;;  %v2271_v31 = vsel %vm2208_vm5, %v2190_v63, %v15616_v4 }
 0x479   :  { %v2169_v57 = vsel %vm2127_vm6, %v2088_v27, %v11278_v32  ;;  %v15618_v32 = vld [vmem:[#allocation78_spill] sm:$0xff] }
 0x47a   :  { %v2893_v44 = vpop.permute.xlu0 %2892  ;;  %v3087_v47 = vpop.permute.xlu1 %3086  ;;  %v2250_v50 = vsel %vm2208_vm5, %v2169_v57, %v11318_v29  ;;  %v15619_v29 = vld [vmem:[#allocation45_spill] sm:$0xff]  ;;  %v15620_v57 = vld [vmem:[#allocation128_spill] sm:$0xff] }
 0x47b   :  { %v3442_v45 = vsel %vm3409_vm10, %v3377_v56, %v3087_v47  ;;  %v15617_v47 = vld [vmem:[#allocation44_spill] sm:$0xff]  ;;  %v2331_v15 = vsel %vm2289_vm7, %v2250_v50, %v11360_v23  ;;  %v15621_v50 = vld [vmem:[#allocation106_spill] sm:$0xff] }
 0x47c   :  { %2918 = vrot.lane.b32.xlu0 %v11398_v21, %s8723_s11  ;;  %2920 = vrot.lane.b32.xlu1 %v11412_v18, %s8723_s11  ;;  %v11461_v53 = vsel %vm2289_vm7, %v2271_v31, %v15617_v47  ;;  %v3248_v27 = vsel %vm3214_vm3, %v2331_v15, %v2501_v1 }
 0x47d   :  { %8268 = vmatprep.mubr.msk.f32.mxu0 %vm3487_vm11, %v3442_v45  ;;  %v2110_v45 = vsel %vm210_vm0, %v430_v25, %v15618_v32  ;;  %v3313_v63 = vsel %vm3279_vm8, %v3248_v27, %v2697_v24  ;;  %v15623_v27 = vld [vmem:[#allocation81_spill] sm:$0xff] }
 0x47e   :  { %v11455_v35 = vpop.permute.xlu0 %1645  ;;  %v11457_v56 = vpop.permute.xlu1 %1963  ;;  %v2191_v20 = vsel %vm2127_vm6, %v2110_v45, %v15619_v29  ;;  %v3378_v23 = vsel %vm3344_vm9, %v3313_v63, %v2893_v44  ;;  %v431_v44 = vld [vmem:[#allocation2 + $0x300] sm:$0xff]  ;;  %v15624_v63 = vld [vmem:[#allocation130_spill] sm:$0xff] }
 0x47f   :  { %v2272_v4 = vsel %vm2208_vm5, %v2191_v20, %v15620_v57  ;;  %v2111_v29 = vsel %vm210_vm0, %v431_v44, %v15623_v27  ;;  %v432_v20 = vld [vmem:[#allocation2 + $0x308] sm:$0xff] }
 0x480   :  { %3114 = vrot.lane.b32.xlu0 %v11461_v53, %s8724_s26  ;;  %2530 = vrot.lane.b32.xlu1 %v11346_v48, %s8721_s14  ;;  %v11480_v1 = vsel %vm2289_vm7, %v2272_v4, %v15621_v50  ;;  %v2192_v57 = vsel %vm2127_vm6, %v2111_v29, %v15624_v63  ;;  %v15625_v4 = vld [vmem:[#allocation109_spill] sm:$0xff]  ;;  %v15627_v44 = vld [vmem:[#allocation80_spill] sm:$0xff]  ;;  %v15628_v29 = vld [vmem:[#allocation47_spill] sm:$0xff] }
 0x481   :  { %v2112_v27 = vsel %vm210_vm0, %v432_v20, %v15627_v44 }
 0x482   :  { %v2503_v31 = vpop.permute.xlu0 %2502  ;;  %v3089_v25 = vpop.permute.xlu1 %3088  ;;  %v2193_v63 = vsel %vm2127_vm6, %v2112_v27, %v15628_v29 }
 0x483   :  { %v3443_v47 = vsel %vm3409_vm10, %v3378_v23, %v3089_v25  ;;  %v2273_v23 = vsel %vm2208_vm5, %v2192_v57, %v15625_v4  ;;  %v3249_v48 = vsel %vm3214_vm3, %v10992_v16, %v2503_v31  ;;  %v15629_v4 = vld [vmem:[#allocation46_spill] sm:$0xff] }
 0x484   :  { %3116 = vrot.lane.b32.xlu0 %v11480_v1, %s8724_s26  ;;  %2532 = vrot.lane.b32.xlu1 %v11366_v34, %s8721_s14 }
 0x485   :  { %8269 = vmatmul.mubr.msk.f32.gmra.mxu0 %vm3487_vm11, %v3443_v47  ;;  %v15626_v47 = vld [vmem:[#allocation108_spill] sm:$0xff] }
 0x486   :  { %v11488_v24 = vpop.permute.xlu0 %1965  ;;  %v2505_v15 = vpop.permute.xlu1 %2504  ;;  %v11506_v34 = vsel %vm2289_vm7, %v2273_v23, %v15626_v47  ;;  %v2274_v23 = vsel %vm2208_vm5, %v2193_v63, %v15629_v4  ;;  %v15632_v63 = vld [vmem:[#allocation133_spill] sm:$0xff]  ;;  %v15633_v4 = vld [vmem:[#allocation111_spill] sm:$0xff] }
 0x487   :  { %15622 = vst [vmem:[#allocation115_spill] sm:$0xff] %v11488_v24  ;;  %v15630_v24 = vld [vmem:[#allocation131_spill] sm:$0xff] }
 0x488   :  { %2726 = vrot.lane.b32.xlu0 %v11398_v21, %s8722_s17  ;;  %2728 = vrot.lane.b32.xlu1 %v11412_v18, %s8722_s17  ;;  %v11524_v16 = vsel %vm2289_vm7, %v2274_v23, %v15630_v24 }
 0x48a   :  { %v2699_v32 = vpop.permute.xlu0 %2698  ;;  %v2701_v45 = vpop.permute.xlu1 %2700 }
 0x48b   :  { %v3314_v57 = vsel %vm3279_vm8, %v3249_v48, %v2699_v32 }
 0x48c   :  { %2922 = vrot.lane.b32.xlu0 %v11461_v53, %s8723_s11  ;;  %2924 = vrot.lane.b32.xlu1 %v11480_v1, %s8723_s11 }
 0x48e   :  { %v2895_v25 = vpop.permute.xlu0 %2894  ;;  %v2897_v50 = vpop.permute.xlu1 %2896 }
 0x48f   :  { %v3379_v47 = vsel %vm3344_vm9, %v3314_v57, %v2895_v25 }
 0x490   :  { %3118 = vrot.lane.b32.xlu0 %v11506_v34, %s8724_s26  ;;  %2534 = vrot.lane.b32.xlu1 %v11398_v21, %s8721_s14  ;;  %v3250_v21 = vsel %vm3214_vm3, %v11007_v9, %v2505_v15  ;;  %v433_v9 = vld [vmem:[#allocation2 + $0x318] sm:$0xff] }
 0x491   :  { %v3315_v48 = vsel %vm3279_vm8, %v3250_v21, %v2701_v45  ;;  %v15631_v21 = vld [vmem:[#allocation83_spill] sm:$0xff] }
 0x492   :  { %v3091_v20 = vpop.permute.xlu0 %3090  ;;  %v2507_v44 = vpop.permute.xlu1 %2506  ;;  %v3380_v32 = vsel %vm3344_vm9, %v3315_v48, %v2897_v50  ;;  %v2113_v45 = vsel %vm210_vm0, %v433_v9, %v15631_v21  ;;  %v434_v50 = vld [vmem:[#allocation2 + $0x320] sm:$0xff]  ;;  %v15634_v48 = vld [vmem:[#allocation82_spill] sm:$0xff] }
 0x493   :  { %v3444_v31 = vsel %vm3409_vm10, %v3379_v47, %v3091_v20  ;;  %v2194_v57 = vsel %vm2127_vm6, %v2113_v45, %v15632_v63 }
 0x494   :  { %3120 = vrot.lane.b32.xlu0 %v11524_v16, %s8724_s26  ;;  %2536 = vrot.lane.b32.xlu1 %v11412_v18, %s8721_s14  ;;  %v2275_v23 = vsel %vm2208_vm5, %v2194_v57, %v15633_v4 }
 0x495   :  { %8271 = vmatprep.mubr.msk.f32.mxu0 %vm3487_vm11, %v3444_v31  ;;  %v11554_v31 = vsel %vm2289_vm7, %v2275_v23, %v10907_v28 }
 0x496   :  { %v3093_v25 = vpop.permute.xlu0 %3092  ;;  %v2509_v24 = vpop.permute.xlu1 %2508 }
 0x497   :  { %v3445_v27 = vsel %vm3409_vm10, %v3380_v32, %v3093_v25  ;;  %v2114_v32 = vsel %vm210_vm0, %v434_v50, %v15634_v48  ;;  %v3251_v25 = vsel %vm3214_vm3, %v11022_v6, %v2507_v44  ;;  %v3252_v57 = vsel %vm3214_vm3, %v11043_v58, %v2509_v24  ;;  %v435_v58 = vld [vmem:[#allocation2 + $0x330] sm:$0xff] }
 0x498   :  { %2730 = vrot.lane.b32.xlu0 %v11461_v53, %s8722_s17  ;;  %2732 = vrot.lane.b32.xlu1 %v11480_v1, %s8722_s17 }
 0x499   :  { %8272 = vmatmul.mubr.msk.f32.gmra.mxu0 %vm3487_vm11, %v3445_v27  ;;  %v15635_v27 = vld [vmem:[#allocation49_spill] sm:$0xff] }
 0x49a   :  { %v2703_v15 = vpop.permute.xlu0 %2702  ;;  %v2705_v29 = vpop.permute.xlu1 %2704  ;;  %v2195_v9 = vsel %vm2127_vm6, %v2114_v32, %v15635_v27 }
 0x49b   :  { %v3316_v21 = vsel %vm3279_vm8, %v3251_v25, %v2703_v15  ;;  %v2276_v28 = vsel %vm2208_vm5, %v2195_v9, %v10894_v39  ;;  %v3317_v39 = vsel %vm3279_vm8, %v3252_v57, %v2705_v29  ;;  %v15636_v29 = vld [vmem:[#allocation85_spill] sm:$0xff] }
 0x49c   :  { %2926 = vrot.lane.b32.xlu0 %v11506_v34, %s8723_s11  ;;  %2928 = vrot.lane.b32.xlu1 %v11524_v16, %s8723_s11  ;;  %v11572_v6 = vsel %vm2289_vm7, %v2276_v28, %v10917_v30  ;;  %v2115_v48 = vsel %vm210_vm0, %v435_v58, %v15636_v29  ;;  %v15637_v28 = vld [vmem:[#allocation84_spill] sm:$0xff]  ;;  %v438_v29 = vld [vmem:[#allocation2 + $0x350] sm:$0xff] }
 0x49d   :  { %v2196_v32 = vsel %vm2127_vm6, %v2115_v48, %v10927_v37 }
 0x49e   :  { %v2899_v47 = vpop.permute.xlu0 %2898  ;;  %v2901_v20 = vpop.permute.xlu1 %2900  ;;  %v2277_v25 = vsel %vm2208_vm5, %v2196_v32, %v10936_v5 }
 0x49f   :  { %v3381_v45 = vsel %vm3344_vm9, %v3316_v21, %v2899_v47  ;;  %v3382_v15 = vsel %vm3344_vm9, %v3317_v39, %v2901_v20  ;;  %v436_v20 = vld [vmem:[#allocation2 + $0x338] sm:$0xff]  ;;  %v11602_v21 = vsel %vm2289_vm7, %v2277_v25, %v10956_v2 }
 0x4a0   :  { %3122 = vrot.lane.b32.xlu0 %v11554_v31, %s8724_s26  ;;  %2538 = vrot.lane.b32.xlu1 %v11461_v53, %s8721_s14 }
 0x4a2   :  { %v3095_v50 = vpop.permute.xlu0 %3094  ;;  %v2511_v63 = vpop.permute.xlu1 %2510 }
 0x4a3   :  { %v3446_v44 = vsel %vm3409_vm10, %v3381_v45, %v3095_v50  ;;  %v2116_v45 = vsel %vm210_vm0, %v436_v20, %v15637_v28  ;;  %v3253_v50 = vsel %vm3214_vm3, %v11047_v12, %v2511_v63 }
 0x4a4   :  { %3124 = vrot.lane.b32.xlu0 %v11572_v6, %s8724_s26  ;;  %2540 = vrot.lane.b32.xlu1 %v11480_v1, %s8721_s14  ;;  %v2197_v37 = vsel %vm2127_vm6, %v2116_v45, %v10932_v59 }
 0x4a5   :  { %8274 = vmatprep.mubr.msk.f32.mxu0 %vm3487_vm11, %v3446_v44  ;;  %v2278_v2 = vsel %vm2208_vm5, %v2197_v37, %v10944_v60 }
 0x4a6   :  { %v3097_v4 = vpop.permute.xlu0 %3096  ;;  %v2513_v30 = vpop.permute.xlu1 %2512  ;;  %v11620_v12 = vsel %vm2289_vm7, %v2278_v2, %v10968_v54 }
 0x4a7   :  { %v3447_v23 = vsel %vm3409_vm10, %v3382_v15, %v3097_v4  ;;  %v3254_v15 = vsel %vm3214_vm3, %v11080_v46, %v2513_v30  ;;  %v437_v46 = vld [vmem:[#allocation2 + $0x348] sm:$0xff] }
 0x4a8   :  { %2734 = vrot.lane.b32.xlu0 %v11506_v34, %s8722_s17  ;;  %2736 = vrot.lane.b32.xlu1 %v11524_v16, %s8722_s17 }
 0x4a9   :  { %8275 = vmatmul.mubr.msk.f32.gmra.mxu0 %vm3487_vm11, %v3447_v23 }
 0x4aa   :  { %v2707_v24 = vpop.permute.xlu0 %2706  ;;  %v2709_v47 = vpop.permute.xlu1 %2708 }
 0x4ab   :  { %v3318_v5 = vsel %vm3279_vm8, %v3253_v50, %v2707_v24  ;;  %v3319_v59 = vsel %vm3279_vm8, %v3254_v15, %v2709_v47  ;;  %v15638_v24 = vld [vmem:[#allocation87_spill] sm:$0xff] }
 0x4ac   :  { %2930 = vrot.lane.b32.xlu0 %v11554_v31, %s8723_s11  ;;  %2932 = vrot.lane.b32.xlu1 %v11572_v6, %s8723_s11  ;;  %v2117_v47 = vsel %vm210_vm0, %v437_v46, %v15638_v24  ;;  %v15641_v24 = vld [vmem:[#allocation88_spill] sm:$0xff] }
 0x4ad   :  { %v2198_v48 = vsel %vm2127_vm6, %v2117_v47, %v11003_v7 }
 0x4ae   :  { %v2903_v27 = vpop.permute.xlu0 %2902  ;;  %v2905_v9 = vpop.permute.xlu1 %2904  ;;  %v2279_v20 = vsel %vm2208_vm5, %v2198_v48, %v11039_v14 }
 0x4af   :  { %v3383_v44 = vsel %vm3344_vm9, %v3318_v5, %v2903_v27  ;;  %v3384_v60 = vsel %vm3344_vm9, %v3319_v59, %v2905_v9  ;;  %v11650_v27 = vsel %vm2289_vm7, %v2279_v20, %v11076_v13  ;;  %v15639_v9 = vld [vmem:[#allocation86_spill] sm:$0xff]  ;;  %v15640_v59 = vld [vmem:[#allocation89_spill] sm:$0xff] }
 0x4b0   :  { %3126 = vrot.lane.b32.xlu0 %v11602_v21, %s8724_s26  ;;  %2542 = vrot.lane.b32.xlu1 %v11506_v34, %s8721_s14  ;;  %v2118_v28 = vsel %vm210_vm0, %v438_v29, %v15639_v9 }
 0x4b1   :  { %v2199_v7 = vsel %vm2127_vm6, %v2118_v28, %v11018_v49 }
 0x4b2   :  { %v3099_v57 = vpop.permute.xlu0 %3098  ;;  %v2515_v39 = vpop.permute.xlu1 %2514  ;;  %v2280_v13 = vsel %vm2208_vm5, %v2199_v7, %v11058_v10 }
 0x4b3   :  { %v3448_v63 = vsel %vm3409_vm10, %v3383_v44, %v3099_v57  ;;  %v3255_v45 = vsel %vm3214_vm3, %v11084_v3, %v2515_v39  ;;  %v11668_v3 = vsel %vm2289_vm7, %v2280_v13, %v11095_v61  ;;  %v15642_v13 = vld [vmem:[#allocation91_spill] sm:$0xff] }
 0x4b4   :  { %3128 = vrot.lane.b32.xlu0 %v11620_v12, %s8724_s26  ;;  %2544 = vrot.lane.b32.xlu1 %v11524_v16, %s8721_s14 }
 0x4b5   :  { %8277 = vmatprep.mubr.msk.f32.mxu0 %vm3487_vm11, %v3448_v63 }
 0x4b6   :  { %v3101_v4 = vpop.permute.xlu0 %3100  ;;  %v2517_v54 = vpop.permute.xlu1 %2516 }
 0x4b7   :  { %v3449_v23 = vsel %vm3409_vm10, %v3384_v60, %v3101_v4  ;;  %v3256_v44 = vsel %vm3214_vm3, %v11109_v26, %v2517_v54  ;;  %v439_v26 = vld [vmem:[#allocation2 + $0x360] sm:$0xff]  ;;  %v440_v4 = vld [vmem:[#allocation2 + $0x368] sm:$0xff] }
 0x4b8   :  { %2738 = vrot.lane.b32.xlu0 %v11554_v31, %s8722_s17  ;;  %2740 = vrot.lane.b32.xlu1 %v11572_v6, %s8722_s17  ;;  %v2119_v60 = vsel %vm210_vm0, %v439_v26, %v15640_v59  ;;  %v2120_v47 = vsel %vm210_vm0, %v440_v4, %v15641_v24  ;;  %v15645_v26 = vld [vmem:[#allocation132_spill] sm:$0xff]  ;;  %v15647_v59 = vld [vmem:[#allocation110_spill] sm:$0xff] }
 0x4b9   :  { %8278 = vmatmul.mubr.msk.f32.gmra.mxu0 %vm3487_vm11, %v3449_v23  ;;  %v2200_v54 = vsel %vm2127_vm6, %v2119_v60, %v11115_v40  ;;  %v2201_v40 = vsel %vm2127_vm6, %v2120_v47, %v11120_v43  ;;  %v15649_v47 = vld [vmem:[#allocation48_spill] sm:$0xff] }
 0x4ba   :  { %v2711_v30 = vpop.permute.xlu0 %2710  ;;  %v2713_v58 = vpop.permute.xlu1 %2712  ;;  %v2281_v23 = vsel %vm2208_vm5, %v2200_v54, %v11126_v38 }
 0x4bb   :  { %v3320_v14 = vsel %vm3279_vm8, %v3255_v45, %v2711_v30  ;;  %v3321_v49 = vsel %vm3279_vm8, %v3256_v44, %v2713_v58  ;;  %v11698_v58 = vsel %vm2289_vm7, %v2281_v23, %v11160_v55  ;;  %v2282_v55 = vsel %vm2208_vm5, %v2201_v40, %v11142_v33 }
 0x4bc   :  { %2934 = vrot.lane.b32.xlu0 %v11602_v21, %s8723_s11  ;;  %2936 = vrot.lane.b32.xlu1 %v11620_v12, %s8723_s11 }
 0x4be   :  { %v2907_v32 = vpop.permute.xlu0 %2906  ;;  %v2909_v25 = vpop.permute.xlu1 %2908 }
 0x4bf   :  { %v3385_v50 = vsel %vm3344_vm9, %v3320_v14, %v2907_v32  ;;  %v3386_v10 = vsel %vm3344_vm9, %v3321_v49, %v2909_v25 }
 0x4c0   :  { %3130 = vrot.lane.b32.xlu0 %v11650_v27, %s8724_s26  ;;  %2546 = vrot.lane.b32.xlu1 %v11554_v31, %s8721_s14 }
 0x4c2   :  { %v3103_v37 = vpop.permute.xlu0 %3102  ;;  %v2519_v5 = vpop.permute.xlu1 %2518 }
 0x4c3   :  { %v3450_v2 = vsel %vm3409_vm10, %v3385_v50, %v3103_v37  ;;  %v3257_v29 = vsel %vm3214_vm3, %v11146_v42, %v2519_v5  ;;  %v11716_v42 = vsel %vm2289_vm7, %v2282_v55, %v11174_v11  ;;  %v442_v37 = vld [vmem:[#allocation2 + $0x380] sm:$0xff] }
 0x4c4   :  { %3132 = vrot.lane.b32.xlu0 %v11668_v3, %s8724_s26  ;;  %2548 = vrot.lane.b32.xlu1 %v11572_v6, %s8721_s14 }
 0x4c5   :  { %8280 = vmatprep.mubr.msk.f32.mxu0 %vm3487_vm11, %v3450_v2 }
 0x4c6   :  { %v3105_v57 = vpop.permute.xlu0 %3104  ;;  %v2521_v61 = vpop.permute.xlu1 %2520 }
 0x4c7   :  { %v3451_v39 = vsel %vm3409_vm10, %v3386_v10, %v3105_v57  ;;  %v3258_v9 = vsel %vm3214_vm3, %v11164_v17, %v2521_v61  ;;  %v441_v17 = vld [vmem:[#allocation2 + $0x378] sm:$0xff] }
 0x4c8   :  { %2742 = vrot.lane.b32.xlu0 %v11602_v21, %s8722_s17  ;;  %2744 = vrot.lane.b32.xlu1 %v11620_v12, %s8722_s17  ;;  %v2121_v50 = vsel %vm210_vm0, %v441_v17, %v15642_v13  ;;  %v15643_v10 = vld [vmem:[#allocation135_spill] sm:$0xff]  ;;  %v15644_v61 = vld [vmem:[#allocation90_spill] sm:$0xff] }
 0x4c9   :  { %8281 = vmatmul.mubr.msk.f32.gmra.mxu0 %vm3487_vm11, %v3451_v39  ;;  %v2202_v5 = vsel %vm2127_vm6, %v2121_v50, %v11192_v51  ;;  %v2122_v39 = vsel %vm210_vm0, %v442_v37, %v15644_v61  ;;  %v15646_v51 = vld [vmem:[#allocation134_spill] sm:$0xff]  ;;  %v15653_v37 = vld [vmem:[#allocation92_spill] sm:$0xff] }
 0x4ca   :  { %v2715_v63 = vpop.permute.xlu0 %2714  ;;  %v2717_v15 = vpop.permute.xlu1 %2716  ;;  %v2283_v2 = vsel %vm2208_vm5, %v2202_v5, %v11218_v19  ;;  %v15652_v17 = vld [vmem:[#allocation50_spill] sm:$0xff] }
 0x4cb   :  { %v3322_v38 = vsel %vm3279_vm8, %v3257_v29, %v2715_v63  ;;  %v3323_v43 = vsel %vm3279_vm8, %v3258_v9, %v2717_v15  ;;  %v2364_v57 = vsel %vm2289_vm7, %v2283_v2, %v15643_v10  ;;  %v2203_v15 = vsel %vm2127_vm6, %v2122_v39, %v15646_v51 }
 0x4cc   :  { %2938 = vrot.lane.b32.xlu0 %v11650_v27, %s8723_s11  ;;  %2940 = vrot.lane.b32.xlu1 %v11668_v3, %s8723_s11  ;;  %v2284_v60 = vsel %vm2208_vm5, %v2203_v15, %v15647_v59  ;;  %v445_v59 = vld [vmem:[#allocation2 + $0x3a8] sm:$0xff] }
 0x4ce   :  { %v2911_v46 = vpop.permute.xlu0 %2910  ;;  %v2913_v30 = vpop.permute.xlu1 %2912 }
 0x4cf   :  { %v3387_v48 = vsel %vm3344_vm9, %v3322_v38, %v2911_v46  ;;  %v3388_v33 = vsel %vm3344_vm9, %v3323_v43, %v2913_v30  ;;  %v15648_v46 = vld [vmem:[#allocation137_spill] sm:$0xff] }
 0x4d0   :  { %3134 = vrot.lane.b32.xlu0 %v11698_v58, %s8724_s26  ;;  %2550 = vrot.lane.b32.xlu1 %v11602_v21, %s8721_s14  ;;  %v2365_v30 = vsel %vm2289_vm7, %v2284_v60, %v15648_v46  ;;  %v15650_v43 = vld [vmem:[#allocation93_spill] sm:$0xff] }
 0x4d2   :  { %v3107_v20 = vpop.permute.xlu0 %3106  ;;  %v2523_v32 = vpop.permute.xlu1 %2522 }
 0x4d3   :  { %v3452_v25 = vsel %vm3409_vm10, %v3387_v48, %v3107_v20  ;;  %v3259_v63 = vsel %vm3214_vm3, %v15645_v26, %v2523_v32  ;;  %v443_v32 = vld [vmem:[#allocation2 + $0x390] sm:$0xff] }
 0x4d4   :  { %3136 = vrot.lane.b32.xlu0 %v11716_v42, %s8724_s26  ;;  %2552 = vrot.lane.b32.xlu1 %v11620_v12, %s8721_s14 }
 0x4d5   :  { %8283 = vmatprep.mubr.msk.f32.mxu0 %vm3487_vm11, %v3452_v25 }
 0x4d6   :  { %v3109_v28 = vpop.permute.xlu0 %3108  ;;  %v2525_v11 = vpop.permute.xlu1 %2524 }
 0x4d7   :  { %v3453_v45 = vsel %vm3409_vm10, %v3388_v33, %v3109_v28  ;;  %v3260_v29 = vsel %vm3214_vm3, %v15649_v47, %v2525_v11  ;;  %v2123_v33 = vsel %vm210_vm0, %v443_v32, %v15650_v43  ;;  %v444_v28 = vld [vmem:[#allocation2 + $0x398] sm:$0xff]  ;;  %v15659_v32 = vld [vmem:[#allocation113_spill] sm:$0xff] }
 0x4d8   :  { %2746 = vrot.lane.b32.xlu0 %v11650_v27, %s8722_s17  ;;  %2748 = vrot.lane.b32.xlu1 %v11668_v3, %s8722_s17  ;;  %v15651_v11 = vld [vmem:[#allocation51_spill] sm:$0xff]  ;;  %v2124_v5 = vsel %vm210_vm0, %v444_v28, %v15653_v37 }
 0x4d9   :  { %8284 = vmatmul.mubr.msk.f32.gmra.mxu0 %vm3487_vm11, %v3453_v45  ;;  %v2204_v45 = vsel %vm2127_vm6, %v2123_v33, %v15651_v11  ;;  %v15660_v33 = vld [vmem:[#allocation138_spill] sm:$0xff] }
 0x4da   :  { %v2719_v7 = vpop.permute.xlu0 %2718  ;;  %v2721_v14 = vpop.permute.xlu1 %2720 }
 0x4db   :  { %v3324_v19 = vsel %vm3279_vm8, %v3259_v63, %v2719_v7  ;;  %v3325_v40 = vsel %vm3279_vm8, %v3260_v29, %v2721_v14  ;;  %v2285_v7 = vsel %vm2208_vm5, %v2204_v45, %v15652_v17 }
 0x4dc   :  { %2942 = vrot.lane.b32.xlu0 %v11698_v58, %s8723_s11  ;;  %2944 = vrot.lane.b32.xlu1 %v11716_v42, %s8723_s11  ;;  %v2366_v50 = vsel %vm2289_vm7, %v2285_v7, %v11362_v22 }
 0x4de   :  { %v2915_v44 = vpop.permute.xlu0 %2914  ;;  %v2917_v49 = vpop.permute.xlu1 %2916 }
 0x4df   :  { %v3389_v4 = vsel %vm3344_vm9, %v3324_v19, %v2915_v44  ;;  %v3390_v38 = vsel %vm3344_vm9, %v3325_v40, %v2917_v49  ;;  %v15654_v44 = vld [vmem:[#allocation136_spill] sm:$0xff] }
 0x4e0   :  { %3138 = vrot.lane.b32.xlu0 %v2364_v57, %s8724_s26  ;;  %2554 = vrot.lane.b32.xlu1 %v11650_v27, %s8721_s14  ;;  %v2205_v49 = vsel %vm2127_vm6, %v2124_v5, %v15654_v44  ;;  %v15661_v5 = vld [vmem:[#allocation112_spill] sm:$0xff] }
 0x4e1   :  { %v2286_v61 = vsel %vm2208_vm5, %v2205_v49, %v11342_v52 }
 0x4e2   :  { %v3111_v54 = vpop.permute.xlu0 %3110  ;;  %v2527_v23 = vpop.permute.xlu1 %2526 }
 0x4e3   :  { %v3454_v24 = vsel %vm3409_vm10, %v3389_v4, %v3111_v54  ;;  %v3261_v2 = vsel %vm3214_vm3, %v11246_v0, %v2527_v23  ;;  %v2367_v0 = vsel %vm2289_vm7, %v2286_v61, %v11382_v8  ;;  %v15655_v4 = vld [vmem:[#allocation94_spill] sm:$0xff]  ;;  %v15656_v23 = vld [vmem:[#allocation95_spill] sm:$0xff] }
 0x4e4   :  { %3140 = vrot.lane.b32.xlu0 %v2365_v30, %s8724_s26  ;;  %2556 = vrot.lane.b32.xlu1 %v11668_v3, %s8721_s14  ;;  %v2125_v46 = vsel %vm210_vm0, %v445_v59, %v15656_v23  ;;  %v15663_v59 = vld [vmem:[#allocation140_spill] sm:$0xff] }
 0x4e5   :  { %8286 = vmatprep.mubr.msk.f32.mxu0 %vm3487_vm11, %v3454_v24  ;;  %v15657_v24 = vld [vmem:[#allocation53_spill] sm:$0xff] }
 0x4e6   :  { %v3113_v55 = vpop.permute.xlu0 %3112  ;;  %v2529_v48 = vpop.permute.xlu1 %2528 }
 0x4e7   :  { %v3455_v20 = vsel %vm3409_vm10, %v3390_v38, %v3113_v55 }
 0x4e8   :  { %2750 = vrot.lane.b32.xlu0 %v11698_v58, %s8722_s17  ;;  %2752 = vrot.lane.b32.xlu1 %v11716_v42, %s8722_s17 }
 0x4e9   :  { %8287 = vmatmul.mubr.msk.f32.gmra.mxu0 %vm3487_vm11, %v3455_v20 }
 0x4ea   :  { %v2723_v25 = vpop.permute.xlu0 %2722  ;;  %v2725_v9 = vpop.permute.xlu1 %2724 }
 0x4eb   :  { %v3326_v10 = vsel %vm3279_vm8, %v3261_v2, %v2723_v25 }
 0x4ec   :  { %2946 = vrot.lane.b32.xlu0 %v2364_v57, %s8723_s11  ;;  %2948 = vrot.lane.b32.xlu1 %v2365_v30, %s8723_s11 }
 0x4ee   :  { %v2919_v14 = vpop.permute.xlu0 %2918  ;;  %v2921_v13 = vpop.permute.xlu1 %2920 }
 0x4ef   :  { %v3391_v22 = vsel %vm3344_vm9, %v3326_v10, %v2919_v14 }
 0x4f0   :  { %3142 = vrot.lane.b32.xlu0 %v2366_v50, %s8724_s26  ;;  %2558 = vrot.lane.b32.xlu1 %v11698_v58, %s8721_s14  ;;  %v3262_v58 = vsel %vm3214_vm3, %v11266_v41, %v2529_v48  ;;  %v446_v41 = vld [vmem:[#allocation2 + $0x3b0] sm:$0xff]  ;;  %v15658_v48 = vld [vmem:[#allocation115_spill] sm:$0xff] }
 0x4f1   :  { %v3327_v51 = vsel %vm3279_vm8, %v3262_v58, %v2725_v9  ;;  %v2126_v54 = vsel %vm210_vm0, %v446_v41, %v15655_v4  ;;  %vm5733_vm0 = vcmask 359424  }
 0x4f2   :  { %v3115_v39 = vpop.permute.xlu0 %3114  ;;  %v2531_v26 = vpop.permute.xlu1 %2530  ;;  %v3392_v52 = vsel %vm3344_vm9, %v3327_v51, %v2921_v13 }
 0x4f3   :  { %v3456_v63 = vsel %vm3409_vm10, %v3391_v22, %v3115_v39  ;;  %v15662_v39 = vld [vmem:[#allocation139_spill] sm:$0xff] }
 0x4f4   :  { %3144 = vrot.lane.b32.xlu0 %v2367_v0, %s8724_s26  ;;  %2560 = vrot.lane.b32.xlu1 %v11716_v42, %s8721_s14 }
 0x4f5   :  { %8289 = vmatprep.mubr.msk.f32.mxu0 %vm3487_vm11, %v3456_v63 }
 0x4f6   :  { %v3117_v15 = vpop.permute.xlu0 %3116  ;;  %v2533_v19 = vpop.permute.xlu1 %2532 }
 0x4f7   :  { %v3457_v8 = vsel %vm3409_vm10, %v3392_v52, %v3117_v15 }
 0x4f8   :  { %2754 = vrot.lane.b32.xlu0 %v2364_v57, %s8722_s17  ;;  %2756 = vrot.lane.b32.xlu1 %v2365_v30, %s8722_s17  ;;  %v2206_v57 = vsel %vm2127_vm6, %v2125_v46, %v11394_v62  ;;  %v2207_v30 = vsel %vm2127_vm6, %v2126_v54, %v11424_v36  ;;  %v3263_v62 = vsel %vm3214_vm3, %v15659_v32, %v2531_v26 }
 0x4f9   :  { %8290 = vmatmul.mubr.msk.f32.gmra.mxu0 %vm3487_vm11, %v3457_v8  ;;  %v2287_v47 = vsel %vm2208_vm5, %v2206_v57, %v15657_v24  ;;  %v2288_v29 = vsel %vm2208_vm5, %v2207_v30, %v11455_v35 }
 0x4fa   :  { %v2727_v60 = vpop.permute.xlu0 %2726  ;;  %v2729_v42 = vpop.permute.xlu1 %2728  ;;  %v2368_v55 = vsel %vm2289_vm7, %v2287_v47, %v11457_v56  ;;  %v2369_v20 = vsel %vm2289_vm7, %v2288_v29, %v15658_v48  ;;  %v3264_v56 = vsel %vm3214_vm3, %v15660_v33, %v2533_v19 }
 0x4fb   :  { %v3328_v36 = vsel %vm3279_vm8, %v3263_v62, %v2727_v60  ;;  %v3329_v28 = vsel %vm3279_vm8, %v3264_v56, %v2729_v42 }
 0x4fc   :  { %2950 = vrot.lane.b32.xlu0 %v2366_v50, %s8723_s11  ;;  %2952 = vrot.lane.b32.xlu1 %v2367_v0, %s8723_s11 }
 0x4fe   :  { %v2923_v40 = vpop.permute.xlu0 %2922  ;;  %v2925_v38 = vpop.permute.xlu1 %2924 }
 0x4ff   :  { %v3393_v25 = vsel %vm3344_vm9, %v3328_v36, %v2923_v40  ;;  %v3394_v11 = vsel %vm3344_vm9, %v3329_v28, %v2925_v38 }
 0x500   :  { %3146 = vrot.lane.b32.xlu0 %v2368_v55, %s8724_s26  ;;  %3148 = vrot.lane.b32.xlu1 %v2369_v20, %s8724_s26 }
 0x502   :  { %v3119_v35 = vpop.permute.xlu0 %3118  ;;  %v2535_v9 = vpop.permute.xlu1 %2534 }
 0x503   :  { %v3458_v43 = vsel %vm3409_vm10, %v3393_v25, %v3119_v35  ;;  %v3265_v2 = vsel %vm3214_vm3, %v15661_v5, %v2535_v9 }
 0x504   :  { %8292 = vmatprep.mubr.msk.f32.mxu0 %vm3487_vm11, %v3458_v43 }
 0x506   :  { %v3121_v45 = vpop.permute.xlu0 %3120  ;;  %v2537_v17 = vpop.permute.xlu1 %2536 }
 0x507   :  { %v3459_v7 = vsel %vm3409_vm10, %v3394_v11, %v3121_v45  ;;  %v3266_v26 = vsel %vm3214_vm3, %v15662_v39, %v2537_v17 }
 0x508   :  { %8293 = vmatmul.mubr.msk.f32.gmra.mxu0 %vm3487_vm11, %v3459_v7 }
 0x50a   :  { %v2731_v14 = vpop.permute.xlu0 %2730  ;;  %v2733_v13 = vpop.permute.xlu1 %2732 }
 0x50b   :  { %v3330_v44 = vsel %vm3279_vm8, %v3265_v2, %v2731_v14  ;;  %v3331_v0 = vsel %vm3279_vm8, %v3266_v26, %v2733_v13 }
 0x50e   :  { %v2927_v50 = vpop.permute.xlu0 %2926  ;;  %v2929_v37 = vpop.permute.xlu1 %2928 }
 0x50f   :  { %v3395_v49 = vsel %vm3344_vm9, %v3330_v44, %v2927_v50  ;;  %v3396_v63 = vsel %vm3344_vm9, %v3331_v0, %v2929_v37 }
 0x512   :  { %v3123_v10 = vpop.permute.xlu0 %3122  ;;  %v2539_v61 = vpop.permute.xlu1 %2538 }
 0x513   :  { %v3460_v22 = vsel %vm3409_vm10, %v3395_v49, %v3123_v10  ;;  %v3267_v60 = vsel %vm3214_vm3, %v15663_v59, %v2539_v61 }
 0x514   :  { %8295 = vmatprep.mubr.msk.f32.mxu0 %vm3487_vm11, %v3460_v22 }
 0x516   :  { %v3125_v58 = vpop.permute.xlu0 %3124  ;;  %v2541_v51 = vpop.permute.xlu1 %2540 }
 0x517   :  { %v3461_v52 = vsel %vm3409_vm10, %v3396_v63, %v3125_v58  ;;  %v3268_v57 = vsel %vm3214_vm3, %v11412_v18, %v2541_v51 }
 0x518   :  { %8296 = vmatmul.mubr.msk.f32.gmra.mxu0 %vm3487_vm11, %v3461_v52 }
 0x51a   :  { %v2735_v15 = vpop.permute.xlu0 %2734  ;;  %v2737_v19 = vpop.permute.xlu1 %2736 }
 0x51b   :  { %v3332_v42 = vsel %vm3279_vm8, %v3267_v60, %v2735_v15  ;;  %v3333_v30 = vsel %vm3279_vm8, %v3268_v57, %v2737_v19 }
 0x51e   :  { %v2931_v8 = vpop.permute.xlu0 %2930  ;;  %v2933_v41 = vpop.permute.xlu1 %2932 }
 0x51f   :  { %v3397_v4 = vsel %vm3344_vm9, %v3332_v42, %v2931_v8  ;;  %v3398_v24 = vsel %vm3344_vm9, %v3333_v30, %v2933_v41 }
 0x522   :  { %v3127_v54 = vpop.permute.xlu0 %3126  ;;  %v2543_v23 = vpop.permute.xlu1 %2542 }
 0x523   :  { %v3462_v46 = vsel %vm3409_vm10, %v3397_v4, %v3127_v54  ;;  %v3269_v32 = vsel %vm3214_vm3, %v11461_v53, %v2543_v23 }
 0x524   :  { %8298 = vmatprep.mubr.msk.f32.mxu0 %vm3487_vm11, %v3462_v46 }
 0x526   :  { %v3129_v47 = vpop.permute.xlu0 %3128  ;;  %v2545_v29 = vpop.permute.xlu1 %2544 }
 0x527   :  { %v3463_v40 = vsel %vm3409_vm10, %v3398_v24, %v3129_v47  ;;  %v3270_v9 = vsel %vm3214_vm3, %v11480_v1, %v2545_v29 }
 0x528   :  { %8299 = vmatmul.mubr.msk.f32.gmra.mxu0 %vm3487_vm11, %v3463_v40 }
 0x52a   :  { %v2739_v38 = vpop.permute.xlu0 %2738  ;;  %v2741_v55 = vpop.permute.xlu1 %2740 }
 0x52b   :  { %v3334_v18 = vsel %vm3279_vm8, %v3269_v32, %v2739_v38  ;;  %v3335_v43 = vsel %vm3279_vm8, %v3270_v9, %v2741_v55 }
 0x52e   :  { %v2935_v48 = vpop.permute.xlu0 %2934  ;;  %v2937_v20 = vpop.permute.xlu1 %2936 }
 0x52f   :  { %v3399_v62 = vsel %vm3344_vm9, %v3334_v18, %v2935_v48  ;;  %v3400_v33 = vsel %vm3344_vm9, %v3335_v43, %v2937_v20 }
 0x532   :  { %v3131_v36 = vpop.permute.xlu0 %3130  ;;  %v2547_v25 = vpop.permute.xlu1 %2546 }
 0x533   :  { %v3464_v35 = vsel %vm3409_vm10, %v3399_v62, %v3131_v36  ;;  %v3271_v14 = vsel %vm3214_vm3, %v11506_v34, %v2547_v25 }
 0x534   :  { %8301 = vmatprep.mubr.msk.f32.mxu0 %vm3487_vm11, %v3464_v35 }
 0x536   :  { %v3133_v56 = vpop.permute.xlu0 %3132  ;;  %v2549_v28 = vpop.permute.xlu1 %2548 }
 0x537   :  { %v3465_v53 = vsel %vm3409_vm10, %v3400_v33, %v3133_v56  ;;  %v3272_v2 = vsel %vm3214_vm3, %v11524_v16, %v2549_v28 }
 0x538   :  { %8302 = vmatmul.mubr.msk.f32.gmra.mxu0 %vm3487_vm11, %v3465_v53 }
 0x53a   :  { %v2743_v11 = vpop.permute.xlu0 %2742  ;;  %v2745_v45 = vpop.permute.xlu1 %2744 }
 0x53b   :  { %v3336_v1 = vsel %vm3279_vm8, %v3271_v14, %v2743_v11  ;;  %v3337_v44 = vsel %vm3279_vm8, %v3272_v2, %v2745_v45 }
 0x53e   :  { %v2939_v17 = vpop.permute.xlu0 %2938  ;;  %v2941_v7 = vpop.permute.xlu1 %2940 }
 0x53f   :  { %v3401_v13 = vsel %vm3344_vm9, %v3336_v1, %v2939_v17  ;;  %v3402_v49 = vsel %vm3344_vm9, %v3337_v44, %v2941_v7 }
 0x542   :  { %v3135_v50 = vpop.permute.xlu0 %3134  ;;  %v2551_v37 = vpop.permute.xlu1 %2550 }
 0x543   :  { %v3466_v5 = vsel %vm3409_vm10, %v3401_v13, %v3135_v50  ;;  %v3273_v63 = vsel %vm3214_vm3, %v11554_v31, %v2551_v37 }
 0x544   :  { %8304 = vmatprep.mubr.msk.f32.mxu0 %vm3487_vm11, %v3466_v5 }
 0x546   :  { %v3137_v10 = vpop.permute.xlu0 %3136  ;;  %v2553_v61 = vpop.permute.xlu1 %2552 }
 0x547   :  { %v3467_v34 = vsel %vm3409_vm10, %v3402_v49, %v3137_v10  ;;  %v3274_v19 = vsel %vm3214_vm3, %v11572_v6, %v2553_v61 }
 0x548   :  { %8305 = vmatmul.mubr.msk.f32.gmra.mxu0 %vm3487_vm11, %v3467_v34 }
 0x54a   :  { %v2747_v22 = vpop.permute.xlu0 %2746  ;;  %v2749_v39 = vpop.permute.xlu1 %2748 }
 0x54b   :  { %v3338_v16 = vsel %vm3279_vm8, %v3273_v63, %v2747_v22  ;;  %v3339_v8 = vsel %vm3279_vm8, %v3274_v19, %v2749_v39 }
 0x54e   :  { %v2943_v26 = vpop.permute.xlu0 %2942  ;;  %v2945_v0 = vpop.permute.xlu1 %2944 }
 0x54f   :  { %v3403_v58 = vsel %vm3344_vm9, %v3338_v16, %v2943_v26  ;;  %v3404_v41 = vsel %vm3344_vm9, %v3339_v8, %v2945_v0 }
 0x552   :  { %v3139_v51 = vpop.permute.xlu0 %3138  ;;  %v2555_v52 = vpop.permute.xlu1 %2554 }
 0x553   :  { %v3468_v15 = vsel %vm3409_vm10, %v3403_v58, %v3139_v51  ;;  %v3275_v46 = vsel %vm3214_vm3, %v11602_v21, %v2555_v52 }
 0x554   :  { %8307 = vmatprep.mubr.msk.f32.mxu0 %vm3487_vm11, %v3468_v15 }
 0x556   :  { %v3141_v59 = vpop.permute.xlu0 %3140  ;;  %v2557_v60 = vpop.permute.xlu1 %2556 }
 0x557   :  { %v3469_v31 = vsel %vm3409_vm10, %v3404_v41, %v3141_v59  ;;  %v3276_v29 = vsel %vm3214_vm3, %v11620_v12, %v2557_v60 }
 0x558   :  { %8308 = vmatmul.mubr.msk.f32.gmra.mxu0 %vm3487_vm11, %v3469_v31 }
 0x55a   :  { %v2751_v42 = vpop.permute.xlu0 %2750  ;;  %v2753_v4 = vpop.permute.xlu1 %2752 }
 0x55b   :  { %v3340_v6 = vsel %vm3279_vm8, %v3275_v46, %v2751_v42  ;;  %v3341_v40 = vsel %vm3279_vm8, %v3276_v29, %v2753_v4 }
 0x55e   :  { %v2947_v54 = vpop.permute.xlu0 %2946  ;;  %v2949_v23 = vpop.permute.xlu1 %2948 }
 0x55f   :  { %v3405_v57 = vsel %vm3344_vm9, %v3340_v6, %v2947_v54  ;;  %v3406_v38 = vsel %vm3344_vm9, %v3341_v40, %v2949_v23 }
 0x562   :  { %v3143_v30 = vpop.permute.xlu0 %3142  ;;  %v2559_v24 = vpop.permute.xlu1 %2558 }
 0x563   :  { %v3470_v47 = vsel %vm3409_vm10, %v3405_v57, %v3143_v30  ;;  %v3277_v36 = vsel %vm3214_vm3, %v11650_v27, %v2559_v24  ;;  %v11929_v27 = vpop.f32.mrf.mxu0 }
 0x564   :  { %8310 = vmatprep.mubr.msk.f32.mxu0 %vm3487_vm11, %v3470_v47  ;;  %v4072_v14 = vsel %vm3214_vm3, %v11929_v27, 0.0 }
 0x566   :  { %v3145_v55 = vpop.permute.xlu0 %3144  ;;  %v2561_v48 = vpop.permute.xlu1 %2560 }
 0x567   :  { %v3471_v21 = vsel %vm3409_vm10, %v3406_v38, %v3145_v55  ;;  %v3278_v12 = vsel %vm3214_vm3, %v11668_v3, %v2561_v48  ;;  %v11932_v3 = vpop.f32.mrf.mxu0 }
 0x568   :  { %8311 = vmatmul.mubr.msk.f32.gmra.mxu0 %vm3487_vm11, %v3471_v21  ;;  %v4071_v17 = vsel %vm3214_vm3, %v11932_v3, 0.0 }
 0x569   :  { %v11934_v11 = vpop.f32.mrf.mxu0  ;;  %v4073_v13 = vadd.f32 %v4072_v14, %v4071_v17 }
 0x56a   :  { %v2755_v20 = vpop.permute.xlu0 %2754  ;;  %v2757_v32 = vpop.permute.xlu1 %2756  ;;  %v4076_v2 = vsel %vm3214_vm3, %v11934_v11, 0.0 }
 0x56b   :  { %v3342_v25 = vsel %vm3279_vm8, %v3277_v36, %v2755_v20  ;;  %v3343_v35 = vsel %vm3279_vm8, %v3278_v12, %v2757_v32  ;;  %v11936_v45 = vpop.f32.mrf.mxu0 }
 0x56c   :  { %v4074_v1 = vsel %vm3214_vm3, %v11936_v45, 0.0 }
 0x56d   :  { %v11940_v7 = vpop.f32.mrf.mxu0  ;;  %v4075_v50 = vadd.f32 %v4074_v1, %v4073_v13 }
 0x56e   :  { %v2951_v18 = vpop.permute.xlu0 %2950  ;;  %v2953_v62 = vpop.permute.xlu1 %2952  ;;  %v4080_v22 = vsel %vm3214_vm3, %v11940_v7, 0.0 }
 0x56f   :  { %v3407_v9 = vsel %vm3344_vm9, %v3342_v25, %v2951_v18  ;;  %v3408_v43 = vsel %vm3344_vm9, %v3343_v35, %v2953_v62  ;;  %v11946_v37 = vpop.f32.mrf.mxu0  ;;  %v4077_v49 = vadd.f32 %v4076_v2, %v4075_v50 }
 0x570   :  { %v4078_v44 = vsel %vm3214_vm3, %v11946_v37, 0.0 }
 0x571   :  { %v11948_v5 = vpop.f32.mrf.mxu0  ;;  %v4079_v10 = vadd.f32 %v4078_v44, %v4077_v49 }
 0x572   :  { %v3147_v33 = vpop.permute.xlu0 %3146  ;;  %v3149_v56 = vpop.permute.xlu1 %3148  ;;  %v4084_v58 = vsel %vm3214_vm3, %v11948_v5, 0.0 }
 0x573   :  { %v3472_v28 = vsel %vm3409_vm10, %v3407_v9, %v3147_v33  ;;  %v3473_v53 = vsel %vm3409_vm10, %v3408_v43, %v3149_v56  ;;  %v11954_v61 = vpop.f32.mrf.mxu0  ;;  %v4081_v26 = vadd.f32 %v4080_v22, %v4079_v10 }
 0x574   :  { %8313 = vmatprep.mubr.msk.f32.mxu0 %vm3487_vm11, %v3472_v28  ;;  %v4082_v39 = vsel %vm3214_vm3, %v11954_v61, 0.0 }
 0x575   :  { %8314 = vmatmul.mubr.msk.f32.gmra.mxu0 %vm3487_vm11, %v3473_v53  ;;  %v11956_v34 = vpop.f32.mrf.mxu0  ;;  %v4083_v0 = vadd.f32 %v4082_v39, %v4081_v26 }
 0x576   :  { %v4088_v41 = vsel %vm3214_vm3, %v11956_v34, 0.0 }
 0x577   :  { %v11962_v63 = vpop.f32.mrf.mxu0  ;;  %v4085_v52 = vadd.f32 %v4084_v58, %v4083_v0 }
 0x578   :  { %v4086_v51 = vsel %vm3214_vm3, %v11962_v63, 0.0 }
 0x579   :  { %v11964_v16 = vpop.f32.mrf.mxu0  ;;  %v4087_v15 = vadd.f32 %v4086_v51, %v4085_v52 }
 0x57a   :  { %v4092_v54 = vsel %vm3214_vm3, %v11964_v16, 0.0 }
 0x57b   :  { %v11970_v19 = vpop.f32.mrf.mxu0  ;;  %v4089_v60 = vadd.f32 %v4088_v41, %v4087_v15 }
 0x57c   :  { %v4090_v59 = vsel %vm3214_vm3, %v11970_v19, 0.0 }
 0x57d   :  { %v11972_v8 = vpop.f32.mrf.mxu0  ;;  %v4091_v31 = vadd.f32 %v4090_v59, %v4089_v60 }
 0x57e   :  { %v4096_v24 = vsel %vm3214_vm3, %v11972_v8, 0.0 }
 0x57f   :  { %v11978_v42 = vpop.f32.mrf.mxu0  ;;  %v4093_v46 = vadd.f32 %v4092_v54, %v4091_v31 }
 0x580   :  { %v4094_v23 = vsel %vm3214_vm3, %v11978_v42, 0.0 }
 0x581   :  { %v11980_v4 = vpop.f32.mrf.mxu0  ;;  %v4095_v6 = vadd.f32 %v4094_v23, %v4093_v46 }
 0x582   :  { %v4100_v48 = vsel %vm3214_vm3, %v11980_v4, 0.0 }
 0x583   :  { %v11986_v57 = vpop.f32.mrf.mxu0  ;;  %v4097_v29 = vadd.f32 %v4096_v24, %v4095_v6 }
 0x584   :  { %v4098_v47 = vsel %vm3214_vm3, %v11986_v57, 0.0 }
 0x585   :  { %v11988_v30 = vpop.f32.mrf.mxu0  ;;  %v4099_v40 = vadd.f32 %v4098_v47, %v4097_v29 }
 0x586   :  { %v4104_v36 = vsel %vm3214_vm3, %v11988_v30, 0.0 }
 0x587   :  { %v11994_v38 = vpop.f32.mrf.mxu0  ;;  %v4101_v20 = vadd.f32 %v4100_v48, %v4099_v40 }
 0x588   :  { %v4102_v21 = vsel %vm3214_vm3, %v11994_v38, 0.0 }
 0x589   :  { %v11996_v55 = vpop.f32.mrf.mxu0  ;;  %v4103_v32 = vadd.f32 %v4102_v21, %v4101_v20 }
 0x58a   :  { %v4108_v33 = vsel %vm3214_vm3, %v11996_v55, 0.0 }
 0x58b   :  { %v12002_v18 = vpop.f32.mrf.mxu0  ;;  %v4105_v25 = vadd.f32 %v4104_v36, %v4103_v32 }
 0x58c   :  { %v4106_v12 = vsel %vm3214_vm3, %v12002_v18, 0.0 }
 0x58d   :  { %v12004_v62 = vpop.f32.mrf.mxu0  ;;  %v4107_v35 = vadd.f32 %v4106_v12, %v4105_v25 }
 0x58e   :  { %v4112_v1 = vsel %vm3214_vm3, %v12004_v62, 0.0 }
 0x58f   :  { %v12010_v9 = vpop.f32.mrf.mxu0  ;;  %v4109_v28 = vadd.f32 %v4108_v33, %v4107_v35 }
 0x590   :  { %v4110_v56 = vsel %vm3214_vm3, %v12010_v9, 0.0 }
 0x591   :  { %v12012_v43 = vpop.f32.mrf.mxu0  ;;  %v4111_v53 = vadd.f32 %v4110_v56, %v4109_v28 }
 0x592   :  { %v4116_v10 = vsel %vm3214_vm3, %v12012_v43, 0.0 }
 0x593   :  { %v12018_v17 = vpop.f32.mrf.mxu0  ;;  %v4113_v50 = vadd.f32 %v4112_v1, %v4111_v53 }
 0x594   :  { %v4114_v13 = vsel %vm3214_vm3, %v12018_v17, 0.0 }
 0x595   :  { %v12020_v14 = vpop.f32.mrf.mxu0  ;;  %v4115_v2 = vadd.f32 %v4114_v13, %v4113_v50 }
 0x596   :  { %v4120_v51 = vsel %vm3214_vm3, %v12020_v14, 0.0 }
 0x597   :  { %v12026_v44 = vpop.f32.mrf.mxu0  ;;  %v4117_v39 = vadd.f32 %v4116_v10, %v4115_v2 }
 0x598   :  { %v4118_v22 = vsel %vm3214_vm3, %v12026_v44, 0.0 }
 0x599   :  { %v12028_v49 = vpop.f32.mrf.mxu0  ;;  %v4119_v26 = vadd.f32 %v4118_v22, %v4117_v39 }
 0x59a   :  { %v4124_v31 = vsel %vm3214_vm3, %v12028_v49, 0.0 }
 0x59b   :  { %v12034_v0 = vpop.f32.mrf.mxu0  ;;  %v4121_v15 = vadd.f32 %v4120_v51, %v4119_v26 }
 0x59c   :  { %v4122_v52 = vsel %vm3214_vm3, %v12034_v0, 0.0 }
 0x59d   :  { %v12036_v58 = vpop.f32.mrf.mxu0  ;;  %v4123_v41 = vadd.f32 %v4122_v52, %v4121_v15 }
 0x59e   :  { %v4128_v47 = vsel %vm3214_vm3, %v12036_v58, 0.0 }
 0x59f   :  { %v12042_v59 = vpop.f32.mrf.mxu0  ;;  %v4125_v23 = vadd.f32 %v4124_v31, %v4123_v41 }
 0x5a0   :  { %v4126_v54 = vsel %vm3214_vm3, %v12042_v59, 0.0 }
 0x5a1   :  { %v12044_v60 = vpop.f32.mrf.mxu0  ;;  %v4127_v46 = vadd.f32 %v4126_v54, %v4125_v23 }
 0x5a2   :  { %v4132_v32 = vsel %vm3214_vm3, %v12044_v60, 0.0 }
 0x5a3   :  { %v12050_v6 = vpop.f32.mrf.mxu0  ;;  %v4129_v40 = vadd.f32 %v4128_v47, %v4127_v46 }
 0x5a4   :  { %v4130_v29 = vsel %vm3214_vm3, %v12050_v6, 0.0 }
 0x5a5   :  { %v12052_v24 = vpop.f32.mrf.mxu0  ;;  %v4131_v48 = vadd.f32 %v4130_v29, %v4129_v40 }
 0x5a6   :  { %v4136_v56 = vsel %vm3214_vm3, %v12052_v24, 0.0 }
 0x5a7   :  { %v12058_v21 = vpop.f32.mrf.mxu0  ;;  %v4133_v12 = vadd.f32 %v4132_v32, %v4131_v48 }
 0x5a8   :  { %v4134_v36 = vsel %vm3214_vm3, %v12058_v21, 0.0 }
 0x5a9   :  { %v12060_v20 = vpop.f32.mrf.mxu0  ;;  %v4135_v25 = vadd.f32 %v4134_v36, %v4133_v12 }
 0x5aa   :  { %v4140_v2 = vsel %vm3214_vm3, %v12060_v20, 0.0 }
 0x5ab   :  { %v12066_v35 = vpop.f32.mrf.mxu0  ;;  %v4137_v53 = vadd.f32 %v4136_v56, %v4135_v25 }
 0x5ac   :  { %v4138_v28 = vsel %vm3214_vm3, %v12066_v35, 0.0 }
 0x5ad   :  { %v12068_v33 = vpop.f32.mrf.mxu0  ;;  %v4139_v1 = vadd.f32 %v4138_v28, %v4137_v53 }
 0x5ae   :  { %v4144_v52 = vsel %vm3214_vm3, %v12068_v33, 0.0 }
 0x5af   :  { %v12074_v13 = vpop.f32.mrf.mxu0  ;;  %v4141_v22 = vadd.f32 %v4140_v2, %v4139_v1 }
 0x5b0   :  { %v4142_v10 = vsel %vm3214_vm3, %v12074_v13, 0.0 }
 0x5b1   :  { %v12076_v50 = vpop.f32.mrf.mxu0  ;;  %v4143_v39 = vadd.f32 %v4142_v10, %v4141_v22 }
 0x5b2   :  { %v4148_v46 = vsel %vm3214_vm3, %v12076_v50, 0.0 }
 0x5b3   :  { %v12082_v26 = vpop.f32.mrf.mxu0  ;;  %v4145_v41 = vadd.f32 %v4144_v52, %v4143_v39 }
 0x5b4   :  { %v4146_v15 = vsel %vm3214_vm3, %v12082_v26, 0.0 }
 0x5b5   :  { %v12084_v51 = vpop.f32.mrf.mxu0  ;;  %v4147_v31 = vadd.f32 %v4146_v15, %v4145_v41 }
 0x5b6   :  { %15664 = vst [vmem:[#allocation141_spill] sm:$0xff] %v12084_v51  ;;  %v4152_v36 = vsel %vm3214_vm3, %v12084_v51, 0.0 }
 0x5b7   :  { %v12090_v54 = vpop.f32.mrf.mxu0  ;;  %v4149_v29 = vadd.f32 %v4148_v46, %v4147_v31 }
 0x5b8   :  { %15665 = vst [vmem:[#allocation143_spill] sm:$0xff] %v12090_v54  ;;  %v4150_v47 = vsel %vm3214_vm3, %v12090_v54, 0.0 }
 0x5b9   :  { %v12092_v23 = vpop.f32.mrf.mxu0  ;;  %v4151_v40 = vadd.f32 %v4150_v47, %v4149_v29 }
 0x5ba   :  { %15666 = vst [vmem:[#allocation52_spill] sm:$0xff] %v12092_v23  ;;  %v4156_v1 = vsel %vm3214_vm3, %v12092_v23, 0.0 }
 0x5bb   :  { %v12098_v48 = vpop.f32.mrf.mxu0  ;;  %v4153_v25 = vadd.f32 %v4152_v36, %v4151_v40 }
 0x5bc   :  { %15667 = vst [vmem:[#allocation114_spill] sm:$0xff] %v12098_v48  ;;  %v4154_v12 = vsel %vm3214_vm3, %v12098_v48, 0.0 }
 0x5bd   :  { %v12100_v32 = vpop.f32.mrf.mxu0  ;;  %v4155_v56 = vadd.f32 %v4154_v12, %v4153_v25 }
 0x5be   :  { %15668 = vst [vmem:[#allocation142_spill] sm:$0xff] %v12100_v32  ;;  %v4160_v15 = vsel %vm3214_vm3, %v12100_v32, 0.0 }
 0x5bf   :  { %v12106_v28 = vpop.f32.mrf.mxu0  ;;  %v4157_v10 = vadd.f32 %v4156_v1, %v4155_v56 }
 0x5c0   :  { %15669 = vst [vmem:[#allocation144_spill] sm:$0xff] %v12106_v28  ;;  %v4158_v2 = vsel %vm3214_vm3, %v12106_v28, 0.0 }
 0x5c1   :  { %v12108_v53 = vpop.f32.mrf.mxu0  ;;  %v4159_v22 = vadd.f32 %v4158_v2, %v4157_v10 }
 0x5c2   :  { %15670 = vst [vmem:[#allocation55_spill] sm:$0xff] %v12108_v53  ;;  %v4164_v40 = vsel %vm3214_vm3, %v12108_v53, 0.0 }
 0x5c3   :  { %v12114_v39 = vpop.f32.mrf.mxu0  ;;  %v4161_v31 = vadd.f32 %v4160_v15, %v4159_v22 }
 0x5c4   :  { %15671 = vst [vmem:[#allocation117_spill] sm:$0xff] %v12114_v39  ;;  %v4162_v41 = vsel %vm3214_vm3, %v12114_v39, 0.0 }
 0x5c5   :  { %v4163_v46 = vadd.f32 %v4162_v41, %v4161_v31 }
 0x5c7   :  { %v4165_v12 = vadd.f32 %v4164_v40, %v4163_v46 }
 0x5c8   :  { %v12116_v52 = vpop.f32.mrf.mxu0 }
 0x5c9   :  { %15672 = vst [vmem:[#allocation54_spill] sm:$0xff] %v12116_v52  ;;  %v4168_v2 = vsel %vm3214_vm3, %v12116_v52, 0.0 }
 0x5ca   :  { %v12122_v47 = vpop.f32.mrf.mxu0 }
 0x5cb   :  { %15673 = vst [vmem:[#allocation59_spill] sm:$0xff] %v12122_v47  ;;  %v4166_v36 = vsel %vm3214_vm3, %v12122_v47, 0.0 }
 0x5cc   :  { %v4167_v25 = vadd.f32 %v4166_v36, %v4165_v12 }
 0x5ce   :  { %v4169_v22 = vadd.f32 %v4168_v2, %v4167_v25 }
 0x5d8   :  { %v12124_v29 = vpop.f32.mrf.mxu0 }
 0x5d9   :  { %15674 = vst [vmem:[#allocation116_spill] sm:$0xff] %v12124_v29  ;;  %v4172_v46 = vsel %vm3214_vm3, %v12124_v29, 0.0 }
 0x5da   :  { %v12130_v56 = vpop.f32.mrf.mxu0 }
 0x5db   :  { %15675 = vst [vmem:[#allocation58_spill] sm:$0xff] %v12130_v56  ;;  %v4170_v10 = vsel %vm3214_vm3, %v12130_v56, 0.0 }
 0x5dc   :  { %v4171_v15 = vadd.f32 %v4170_v10, %v4169_v22 }
 0x5de   :  { %v4173_v36 = vadd.f32 %v4172_v46, %v4171_v15 }
 0x5e8   :  { %v12132_v1 = vpop.f32.mrf.mxu0 }
 0x5e9   :  { %15676 = vst [vmem:[#allocation61_spill] sm:$0xff] %v12132_v1  ;;  %v4176_v25 = vsel %vm3214_vm3, %v12132_v1, 0.0 }
 0x5ea   :  { %v12138_v41 = vpop.f32.mrf.mxu0 }
 0x5eb   :  { %15677 = vst [vmem:[#allocation60_spill] sm:$0xff] %v12138_v41  ;;  %v4174_v40 = vsel %vm3214_vm3, %v12138_v41, 0.0 }
 0x5ec   :  { %v4175_v12 = vadd.f32 %v4174_v40, %v4173_v36 }
 0x5ee   :  { %v4177_v10 = vadd.f32 %v4176_v25, %v4175_v12 }
 0x5f8   :  { %v12140_v31 = vpop.f32.mrf.mxu0 }
 0x5f9   :  { %15678 = vst [vmem:[#allocation63_spill] sm:$0xff] %v12140_v31  ;;  %v4180_v41 = vsel %vm3214_vm3, %v12140_v31, 0.0 }
 0x5fa   :  { %v12146_v47 = vpop.f32.mrf.mxu0 }
 0x5fb   :  { %15679 = vst [vmem:[#allocation150_spill] sm:$0xff] %v12146_v47  ;;  %v4178_v2 = vsel %vm3214_vm3, %v12146_v47, 0.0 }
 0x5fc   :  { %v4179_v22 = vadd.f32 %v4178_v2, %v4177_v10 }
 0x5fe   :  { %v4181_v46 = vadd.f32 %v4180_v41, %v4179_v22 }
 0x608   :  { %v12148_v52 = vpop.f32.mrf.mxu0 }
 0x609   :  { %15680 = vst [vmem:[#allocation62_spill] sm:$0xff] %v12148_v52  ;;  %v4184_v1 = vsel %vm3214_vm3, %v12148_v52, 0.0 }
 0x60a   :  { %v12154_v56 = vpop.f32.mrf.mxu0 }
 0x60b   :  { %15681 = vst [vmem:[#allocation65_spill] sm:$0xff] %v12154_v56  ;;  %v4182_v15 = vsel %vm3214_vm3, %v12154_v56, 0.0 }
 0x60c   :  { %v4183_v40 = vadd.f32 %v4182_v15, %v4181_v46 }
 0x60e   :  { %v4185_v12 = vadd.f32 %v4184_v1, %v4183_v40 }
 0x618   :  { %v8309_v29 = vpop.f32.mrf.mxu0 }
 0x619   :  { %v4188_v10 = vsel %vm3214_vm3, %v8309_v29, 0.0 }
 0x61a   :  { %v4040_v36 = vpop.f32.mrf.mxu0 }
 0x61b   :  { %v4186_v47 = vsel %vm3214_vm3, %v4040_v36, 0.0 }
 0x61c   :  { %v4187_v25 = vadd.f32 %v4186_v47, %v4185_v12 }
 0x61e   :  { %v4189_v31 = vadd.f32 %v4188_v10, %v4187_v25 }
 0x628   :  { %v8312_v53 = vpop.f32.mrf.mxu0 }
 0x629   :  { %v4192_v41 = vsel %vm3214_vm3, %v8312_v53, 0.0 }
 0x62a   :  { %v4050_v2 = vpop.f32.mrf.mxu0 }
 0x62b   :  { %v4190_v39 = vsel %vm3214_vm3, %v4050_v2, 0.0 }
 0x62c   :  { %v4191_v32 = vadd.f32 %v4190_v39, %v4189_v31 }
 0x62e   :  { %v4193_v15 = vadd.f32 %v4192_v41, %v4191_v32 }
 0x635   :  { %v8315_v28 = vpop.f32.mrf.mxu0 }
 0x636   :  { %v4196_v52 = vsel %vm3214_vm3, %v8315_v28, 0.0 }
 0x637   :  { %v4060_v22 = vpop.f32.mrf.mxu0 }
 0x638   :  { %v4194_v46 = vsel %vm3214_vm3, %v4060_v22, 0.0 }
 0x639   :  { %v4195_v56 = vadd.f32 %v4194_v46, %v4193_v15 }
 0x63b   :  { %v4197_v23 = vadd.f32 %v4196_v52, %v4195_v56 }
 0x63d   :  { %v4198_v1 = vrot.slane %v4197_v23, 4 }
 0x63f   :  { %v4199_v47 = vadd.f32 %v4198_v1, %v4197_v23 }
 0x641   :  { %v4200_v40 = vrot.slane %v4199_v47, 2 }
 0x643   :  { %v4201_v12 = vadd.f32 %v4200_v40, %v4199_v47 }
 0x645   :  { %v4202_v48 = vrot.slane %v4201_v12, 1 }
 0x647   :  { %v4203_v51 = vadd.f32 %v4202_v48, %v4201_v12 }
 0x649   :  { %v12168_v54 = vmul.f32 0.001953125, %v4203_v51 }
 0x64b   :  { %v12171_v39 = vsub.f32 %v4040_v36, %v12168_v54  ;;  %v12174_v31 = vsub.f32 %v8309_v29, %v12168_v54  ;;  %v12177_v32 = vsub.f32 %v4050_v2, %v12168_v54  ;;  %v12180_v25 = vsub.f32 %v8312_v53, %v12168_v54 }
 0x64c   :  { %v12183_v23 = vsub.f32 %v4060_v22, %v12168_v54  ;;  %v12186_v52 = vsub.f32 %v8315_v28, %v12168_v54  ;;  %v12190_v51 = vsub.f32 %v11932_v3, %v12168_v54  ;;  %v12194_v48 = vsub.f32 %v11929_v27, %v12168_v54 }
 0x64d   :  { %15682 = vst [vmem:[#allocation145_spill] sm:$0xff] %v12171_v39  ;;  %15683 = vst [vmem:[#allocation146_spill] sm:$0xff] %v12174_v31  ;;  %v12198_v29 = vsub.f32 %v11936_v45, %v12168_v54  ;;  %v12202_v53 = vsub.f32 %v11934_v11, %v12168_v54  ;;  %v12210_v3 = vsub.f32 %v11946_v37, %v12168_v54 }
 0x64e   :  { %15684 = vst [vmem:[#allocation148_spill] sm:$0xff] %v12180_v25  ;;  %15685 = vst [vmem:[#allocation149_spill] sm:$0xff] %v12186_v52  ;;  %v4270_v28 = vmul.f32 %v12190_v51, %v12190_v51  ;;  %v4271_v56 = vmul.f32 %v12194_v48, %v12194_v48  ;;  %v12216_v45 = vsub.f32 %v11940_v7, %v12168_v54 }
 0x64f   :  { %v4272_v27 = vmul.f32 %v12198_v29, %v12198_v29  ;;  %v4273_v11 = vmul.f32 %v12202_v53, %v12202_v53  ;;  %v12224_v41 = vsub.f32 %v11954_v61, %v12168_v54  ;;  %v4274_v37 = vmul.f32 %v12210_v3, %v12210_v3 }
 0x650   :  { %v4334_v36 = vsel %vm3214_vm3, %v4270_v28, 0.0  ;;  %v4335_v2 = vsel %vm3214_vm3, %v4271_v56, 0.0  ;;  %v12231_v7 = vsub.f32 %v11948_v5, %v12168_v54  ;;  %v4275_v46 = vmul.f32 %v12216_v45, %v12216_v45 }
 0x651   :  { %v4336_v10 = vadd.f32 %v4335_v2, %v4334_v36  ;;  %v4337_v22 = vsel %vm3214_vm3, %v4272_v27, 0.0  ;;  %v4339_v1 = vsel %vm3214_vm3, %v4273_v11, 0.0  ;;  %v12238_v61 = vsub.f32 %v11962_v63, %v12168_v54 }
 0x652   :  { %v4276_v40 = vmul.f32 %v12224_v41, %v12224_v41  ;;  %v4341_v12 = vsel %vm3214_vm3, %v4274_v37, 0.0  ;;  %v12245_v5 = vsub.f32 %v11956_v34, %v12168_v54  ;;  %v4277_v56 = vmul.f32 %v12231_v7, %v12231_v7 }
 0x653   :  { %v4338_v15 = vadd.f32 %v4337_v22, %v4336_v10  ;;  %v4343_v27 = vsel %vm3214_vm3, %v4275_v46, 0.0  ;;  %v12252_v63 = vsub.f32 %v11970_v19, %v12168_v54  ;;  %v4278_v36 = vmul.f32 %v12238_v61, %v12238_v61 }
 0x654   :  { %v4345_v2 = vsel %vm3214_vm3, %v4276_v40, 0.0  ;;  %v12259_v34 = vsub.f32 %v11964_v16, %v12168_v54  ;;  %v4279_v37 = vmul.f32 %v12245_v5, %v12245_v5  ;;  %v4347_v22 = vsel %vm3214_vm3, %v4277_v56, 0.0 }
 0x655   :  { %v4340_v47 = vadd.f32 %v4339_v1, %v4338_v15  ;;  %v12266_v19 = vsub.f32 %v11978_v42, %v12168_v54  ;;  %v4280_v46 = vmul.f32 %v12252_v63, %v12252_v63  ;;  %v4349_v1 = vsel %vm3214_vm3, %v4278_v36, 0.0 }
 0x656   :  { %v12273_v16 = vsub.f32 %v11972_v8, %v12168_v54  ;;  %v4281_v40 = vmul.f32 %v12259_v34, %v12259_v34  ;;  %v12280_v42 = vsub.f32 %v11986_v57, %v12168_v54  ;;  %v12287_v8 = vsub.f32 %v11980_v4, %v12168_v54 }
 0x657   :  { %v4342_v28 = vadd.f32 %v4341_v12, %v4340_v47  ;;  %v4351_v12 = vsel %vm3214_vm3, %v4279_v37, 0.0  ;;  %v4282_v56 = vmul.f32 %v12266_v19, %v12266_v19  ;;  %v12294_v57 = vsub.f32 %v11994_v38, %v12168_v54 }
 0x658   :  { %v4283_v36 = vmul.f32 %v12273_v16, %v12273_v16  ;;  %v4284_v37 = vmul.f32 %v12280_v42, %v12280_v42  ;;  %v12301_v4 = vsub.f32 %v11988_v30, %v12168_v54  ;;  %v12308_v38 = vsub.f32 %v12002_v18, %v12168_v54 }
 0x659   :  { %v4344_v11 = vadd.f32 %v4343_v27, %v4342_v28  ;;  %v4353_v27 = vsel %vm3214_vm3, %v4280_v46, 0.0  ;;  %v4285_v46 = vmul.f32 %v12287_v8, %v12287_v8  ;;  %v12315_v30 = vsub.f32 %v11996_v55, %v12168_v54 }
 0x65a   :  { %v12322_v18 = vsub.f32 %v12010_v9, %v12168_v54  ;;  %v12329_v55 = vsub.f32 %v12004_v62, %v12168_v54  ;;  %v12336_v9 = vsub.f32 %v12018_v17, %v12168_v54  ;;  %v12343_v62 = vsub.f32 %v12012_v43, %v12168_v54 }
 0x65b   :  { %v4346_v10 = vadd.f32 %v4345_v2, %v4344_v11  ;;  %v4355_v2 = vsel %vm3214_vm3, %v4281_v40, 0.0  ;;  %v4286_v40 = vmul.f32 %v12294_v57, %v12294_v57  ;;  %v12350_v17 = vsub.f32 %v12026_v44, %v12168_v54 }
 0x65c   :  { %v12357_v43 = vsub.f32 %v12020_v14, %v12168_v54  ;;  %v12364_v44 = vsub.f32 %v12034_v0, %v12168_v54  ;;  %v12371_v14 = vsub.f32 %v12028_v49, %v12168_v54  ;;  %v12378_v0 = vsub.f32 %v12042_v59, %v12168_v54 }
 0x65d   :  { %v4348_v15 = vadd.f32 %v4347_v22, %v4346_v10  ;;  %v4357_v22 = vsel %vm3214_vm3, %v4282_v56, 0.0  ;;  %v4287_v56 = vmul.f32 %v12301_v4, %v12301_v4  ;;  %v12385_v49 = vsub.f32 %v12036_v58, %v12168_v54 }
 0x65e   :  { %v12392_v59 = vsub.f32 %v12050_v6, %v12168_v54  ;;  %v12399_v58 = vsub.f32 %v12044_v60, %v12168_v54  ;;  %v12406_v6 = vsub.f32 %v12058_v21, %v12168_v54  ;;  %v12413_v60 = vsub.f32 %v12052_v24, %v12168_v54 }
 0x65f   :  { %v4350_v47 = vadd.f32 %v4349_v1, %v4348_v15  ;;  %v4359_v1 = vsel %vm3214_vm3, %v4283_v36, 0.0  ;;  %v4288_v36 = vmul.f32 %v12308_v38, %v12308_v38  ;;  %v12420_v21 = vsub.f32 %v12066_v35, %v12168_v54 }
 0x660   :  { %v12427_v24 = vsub.f32 %v12060_v20, %v12168_v54  ;;  %v12434_v35 = vsub.f32 %v12074_v13, %v12168_v54  ;;  %v12441_v20 = vsub.f32 %v12068_v33, %v12168_v54  ;;  %v12448_v13 = vsub.f32 %v12082_v26, %v12168_v54 }
 0x661   :  { %v4352_v28 = vadd.f32 %v4351_v12, %v4350_v47  ;;  %v4361_v12 = vsel %vm3214_vm3, %v4284_v37, 0.0  ;;  %v4289_v37 = vmul.f32 %v12315_v30, %v12315_v30  ;;  %v12463_v26 = vsub.f32 %v12076_v50, %v12168_v54 }
 0x663   :  { %v4354_v11 = vadd.f32 %v4353_v27, %v4352_v28  ;;  %v4363_v27 = vsel %vm3214_vm3, %v4285_v46, 0.0  ;;  %v4290_v46 = vmul.f32 %v12322_v18, %v12322_v18 }
 0x665   :  { %v4356_v10 = vadd.f32 %v4355_v2, %v4354_v11  ;;  %v4365_v2 = vsel %vm3214_vm3, %v4286_v40, 0.0  ;;  %v4291_v40 = vmul.f32 %v12329_v55, %v12329_v55 }
 0x667   :  { %v4358_v15 = vadd.f32 %v4357_v22, %v4356_v10  ;;  %v4367_v22 = vsel %vm3214_vm3, %v4287_v56, 0.0  ;;  %v4292_v56 = vmul.f32 %v12336_v9, %v12336_v9 }
 0x669   :  { %v4360_v47 = vadd.f32 %v4359_v1, %v4358_v15  ;;  %v4369_v1 = vsel %vm3214_vm3, %v4288_v36, 0.0  ;;  %v4293_v36 = vmul.f32 %v12343_v62, %v12343_v62 }
 0x66b   :  { %v4362_v28 = vadd.f32 %v4361_v12, %v4360_v47  ;;  %v4371_v12 = vsel %vm3214_vm3, %v4289_v37, 0.0  ;;  %v4294_v37 = vmul.f32 %v12350_v17, %v12350_v17 }
 0x66d   :  { %v4364_v11 = vadd.f32 %v4363_v27, %v4362_v28  ;;  %v4373_v27 = vsel %vm3214_vm3, %v4290_v46, 0.0  ;;  %v4295_v46 = vmul.f32 %v12357_v43, %v12357_v43 }
 0x66f   :  { %v4366_v10 = vadd.f32 %v4365_v2, %v4364_v11  ;;  %v4375_v2 = vsel %vm3214_vm3, %v4291_v40, 0.0  ;;  %v4296_v40 = vmul.f32 %v12364_v44, %v12364_v44 }
 0x671   :  { %v4368_v15 = vadd.f32 %v4367_v22, %v4366_v10  ;;  %v4377_v22 = vsel %vm3214_vm3, %v4292_v56, 0.0  ;;  %v4297_v56 = vmul.f32 %v12371_v14, %v12371_v14 }
 0x673   :  { %v4370_v47 = vadd.f32 %v4369_v1, %v4368_v15  ;;  %v4379_v1 = vsel %vm3214_vm3, %v4293_v36, 0.0  ;;  %v4298_v36 = vmul.f32 %v12378_v0, %v12378_v0 }
 0x675   :  { %v4372_v28 = vadd.f32 %v4371_v12, %v4370_v47  ;;  %v4381_v12 = vsel %vm3214_vm3, %v4294_v37, 0.0  ;;  %v4299_v37 = vmul.f32 %v12385_v49, %v12385_v49 }
 0x677   :  { %v4374_v11 = vadd.f32 %v4373_v27, %v4372_v28  ;;  %v4383_v27 = vsel %vm3214_vm3, %v4295_v46, 0.0  ;;  %v4300_v46 = vmul.f32 %v12392_v59, %v12392_v59 }
 0x679   :  { %v4376_v10 = vadd.f32 %v4375_v2, %v4374_v11  ;;  %v4385_v2 = vsel %vm3214_vm3, %v4296_v40, 0.0  ;;  %v4301_v40 = vmul.f32 %v12399_v58, %v12399_v58 }
 0x67b   :  { %v4378_v15 = vadd.f32 %v4377_v22, %v4376_v10  ;;  %v4387_v22 = vsel %vm3214_vm3, %v4297_v56, 0.0  ;;  %v4302_v56 = vmul.f32 %v12406_v6, %v12406_v6 }
 0x67d   :  { %v4380_v47 = vadd.f32 %v4379_v1, %v4378_v15  ;;  %v4389_v1 = vsel %vm3214_vm3, %v4298_v36, 0.0  ;;  %v4303_v36 = vmul.f32 %v12413_v60, %v12413_v60 }
 0x67f   :  { %v4382_v28 = vadd.f32 %v4381_v12, %v4380_v47  ;;  %v4391_v12 = vsel %vm3214_vm3, %v4299_v37, 0.0  ;;  %v4304_v37 = vmul.f32 %v12420_v21, %v12420_v21 }
 0x681   :  { %v4384_v11 = vadd.f32 %v4383_v27, %v4382_v28  ;;  %v4393_v27 = vsel %vm3214_vm3, %v4300_v46, 0.0  ;;  %v4305_v46 = vmul.f32 %v12427_v24, %v12427_v24 }
 0x683   :  { %v4386_v10 = vadd.f32 %v4385_v2, %v4384_v11  ;;  %v4395_v2 = vsel %vm3214_vm3, %v4301_v40, 0.0  ;;  %v4306_v40 = vmul.f32 %v12434_v35, %v12434_v35 }
 0x685   :  { %v4388_v15 = vadd.f32 %v4387_v22, %v4386_v10  ;;  %v4397_v22 = vsel %vm3214_vm3, %v4302_v56, 0.0  ;;  %v4307_v56 = vmul.f32 %v12441_v20, %v12441_v20 }
 0x687   :  { %v4390_v47 = vadd.f32 %v4389_v1, %v4388_v15  ;;  %v4399_v1 = vsel %vm3214_vm3, %v4303_v36, 0.0  ;;  %v15687_v36 = vld [vmem:[#allocation143_spill] sm:$0xff] }
 0x689   :  { %v4392_v28 = vadd.f32 %v4391_v12, %v4390_v47  ;;  %v4401_v12 = vsel %vm3214_vm3, %v4304_v37, 0.0  ;;  %v4405_v37 = vsel %vm3214_vm3, %v4306_v40, 0.0 }
 0x68b   :  { %v4394_v11 = vadd.f32 %v4393_v27, %v4392_v28  ;;  %v15686_v28 = vmov 0.0   ;;  %v4403_v27 = vsel %vm3214_vm3, %v4305_v46, 0.0  ;;  %v4407_v46 = vsel %vm3214_vm3, %v4307_v56, 0.0 }
 0x68c   :  { %4822 = vst.msk [vmem:[#allocation3 + $0x18] sm:$0xf] %vm4819_vm12, %v15686_v28  ;;  %4820 = vst.msk [vmem:[#allocation3 + $0x8] sm:$0xf] %vm4819_vm12, %v15686_v28 }
 0x68d   :  { %v4396_v10 = vadd.f32 %v4395_v2, %v4394_v11  ;;  %4824 = vst.msk [vmem:[#allocation3 + $0xc8] sm:$0xf] %vm4819_vm12, %v15686_v28  ;;  %4826 = vst.msk [vmem:[#allocation3 + $0xd8] sm:$0xf] %vm4819_vm12, %v15686_v28  ;;  %v12470_v2 = vsub.f32 %v15687_v36, %v12168_v54  ;;  %v15693_v36 = vld [vmem:[#allocation52_spill] sm:$0xff] }
 0x68e   :  { %4829 = vst.msk [vmem:[#allocation3 + $0xa8] sm:$0xf] %vm4819_vm12, %v15686_v28  ;;  %4831 = vst.msk [vmem:[#allocation3 + $0xb8] sm:$0xf] %vm4819_vm12, %v15686_v28 }
 0x68f   :  { %v4398_v15 = vadd.f32 %v4397_v22, %v4396_v10  ;;  %4833 = vst.msk [vmem:[#allocation3 + $0x168] sm:$0xf] %vm4819_vm12, %v15686_v28  ;;  %4835 = vst.msk [vmem:[#allocation3 + $0x178] sm:$0xf] %vm4819_vm12, %v15686_v28  ;;  %v4308_v10 = vmul.f32 %v12448_v13, %v12448_v13 }
 0x690   :  { %15688 = vst [vmem:[#allocation64_spill] sm:$0xff] %v12470_v2  ;;  %4838 = vst.msk [vmem:[#allocation3 + $0x20] sm:$0x3] %vm4837_vm13, %v15686_v28 }
 0x691   :  { %v4400_v47 = vadd.f32 %v4399_v1, %v4398_v15  ;;  %v15689_v15 = vld [vmem:[#allocation141_spill] sm:$0xff]  ;;  %v4309_v1 = vmul.f32 %v12463_v26, %v12463_v26  ;;  %v4409_v40 = vsel %vm3214_vm3, %v4308_v10, 0.0  ;;  %4839 = vst.msk [vmem:[#allocation3 + $0x30] sm:$0x3] %vm4837_vm13, %v15686_v28  ;;  %4840 = vst.msk [vmem:[#allocation3 + $0x40] sm:$0x3] %vm4837_vm13, %v15686_v28 }
 0x692   :  { %v12477_v50 = vsub.f32 %v15689_v15, %v12168_v54  ;;  %4841 = vst.msk [vmem:[#allocation3 + $0x50] sm:$0x3] %vm4837_vm13, %v15686_v28  ;;  %4842 = vst.msk [vmem:[#allocation3 + $0x60] sm:$0x3] %vm4837_vm13, %v15686_v28 }
 0x693   :  { %v4402_v33 = vadd.f32 %v4401_v12, %v4400_v47  ;;  %v15691_v12 = vld [vmem:[#allocation114_spill] sm:$0xff]  ;;  %v4411_v56 = vsel %vm3214_vm3, %v4309_v1, 0.0  ;;  %4843 = vst.msk [vmem:[#allocation3 + $0x70] sm:$0x3] %vm4837_vm13, %v15686_v28  ;;  %4844 = vst.msk [vmem:[#allocation3 + $0x80] sm:$0x3] %vm4837_vm13, %v15686_v28 }
 0x694   :  { %15690 = vst [vmem:[#allocation147_spill] sm:$0xff] %v12477_v50  ;;  %v4311_v15 = vmul.f32 %v12477_v50, %v12477_v50  ;;  %4845 = vst.msk [vmem:[#allocation3 + $0x90] sm:$0x3] %vm4837_vm13, %v15686_v28 }
 0x695   :  { %v4404_v11 = vadd.f32 %v4403_v27, %v4402_v33  ;;  %v12484_v33 = vsub.f32 %v15691_v12, %v12168_v54  ;;  %v4310_v27 = vmul.f32 %v12470_v2, %v12470_v2  ;;  %4846 = vst.msk [vmem:[#allocation3 + $0xe0] sm:$0x3] %vm4837_vm13, %v15686_v28  ;;  %4847 = vst.msk [vmem:[#allocation3 + $0xf0] sm:$0x3] %vm4837_vm13, %v15686_v28 }
 0x696   :  { %4848 = vst.msk [vmem:[#allocation3 + $0x100] sm:$0x3] %vm4837_vm13, %v15686_v28  ;;  %4849 = vst.msk [vmem:[#allocation3 + $0x110] sm:$0x3] %vm4837_vm13, %v15686_v28 }
 0x697   :  { %v4406_v22 = vadd.f32 %v4405_v37, %v4404_v11  ;;  %15692 = vst [vmem:[#allocation67_spill] sm:$0xff] %v12484_v33  ;;  %v12491_v37 = vsub.f32 %v15693_v36, %v12168_v54  ;;  %v4312_v2 = vmul.f32 %v12484_v33, %v12484_v33  ;;  %v4413_v10 = vsel %vm3214_vm3, %v4310_v27, 0.0  ;;  %4850 = vst.msk [vmem:[#allocation3 + $0x120] sm:$0x3] %vm4837_vm13, %v15686_v28 }
 0x698   :  { %4851 = vst.msk [vmem:[#allocation3 + $0x130] sm:$0x3] %vm4837_vm13, %v15686_v28  ;;  %4852 = vst.msk [vmem:[#allocation3 + $0x140] sm:$0x3] %vm4837_vm13, %v15686_v28 }
 0x699   :  { %v4408_v47 = vadd.f32 %v4407_v46, %v4406_v22  ;;  %15694 = vst [vmem:[#allocation35_spill] sm:$0xff] %v12491_v37  ;;  %v15695_v46 = vld [vmem:[#allocation144_spill] sm:$0xff]  ;;  %4853 = vst.msk [vmem:[#allocation3 + $0x150] sm:$0x3] %vm4837_vm13, %v15686_v28 }
 0x69a   :  { %v12498_v12 = vsub.f32 %v15695_v46, %v12168_v54  ;;  %4854 = vst.msk [vmem:[#allocation3 + $0x2a] sm:$0x3] %vm4837_vm13, %v15686_v28  ;;  %4855 = vst.msk [vmem:[#allocation3 + $0x3a] sm:$0x3] %vm4837_vm13, %v15686_v28 }
 0x69b   :  { %v4410_v11 = vadd.f32 %v4409_v40, %v4408_v47  ;;  %4856 = vst.msk [vmem:[#allocation3 + $0x4a] sm:$0x3] %vm4837_vm13, %v15686_v28  ;;  %4857 = vst.msk [vmem:[#allocation3 + $0x5a] sm:$0x3] %vm4837_vm13, %v15686_v28  ;;  %v15697_v47 = vld [vmem:[#allocation142_spill] sm:$0xff]  ;;  %v4313_v40 = vmul.f32 %v12491_v37, %v12491_v37 }
 0x69c   :  { %15696 = vst [vmem:[#allocation34_spill] sm:$0xff] %v12498_v12  ;;  %4858 = vst.msk [vmem:[#allocation3 + $0x6a] sm:$0x3] %vm4837_vm13, %v15686_v28  ;;  %v12569_v27 = vsub.f32 %v15697_v47, %v12168_v54  ;;  %v4314_v33 = vmul.f32 %v12498_v12, %v12498_v12 }
 0x69d   :  { %v4412_v22 = vadd.f32 %v4411_v56, %v4410_v11  ;;  %4859 = vst.msk [vmem:[#allocation3 + $0x7a] sm:$0x3] %vm4837_vm13, %v15686_v28  ;;  %4860 = vst.msk [vmem:[#allocation3 + $0x8a] sm:$0x3] %vm4837_vm13, %v15686_v28  ;;  %v4415_v11 = vsel %vm3214_vm3, %v4311_v15, 0.0  ;;  %v15699_v56 = vld [vmem:[#allocation117_spill] sm:$0xff] }
 0x69e   :  { %4861 = vst.msk [vmem:[#allocation3 + $0x9a] sm:$0x3] %vm4837_vm13, %v15686_v28  ;;  %4862 = vst.msk [vmem:[#allocation3 + $0xea] sm:$0x3] %vm4837_vm13, %v15686_v28  ;;  %v12576_v46 = vsub.f32 %v15699_v56, %v12168_v54  ;;  %v4315_v37 = vmul.f32 %v12569_v27, %v12569_v27  ;;  %v4419_v15 = vsel %vm3214_vm3, %v4313_v40, 0.0 }
 0x69f   :  { %4863 = vst.msk [vmem:[#allocation3 + $0xfa] sm:$0x3] %vm4837_vm13, %v15686_v28  ;;  %4864 = vst.msk [vmem:[#allocation3 + $0x10a] sm:$0x3] %vm4837_vm13, %v15686_v28  ;;  %v4414_v1 = vadd.f32 %v4413_v10, %v4412_v22  ;;  %v15701_v10 = vld [vmem:[#allocation55_spill] sm:$0xff] }
 0x6a0   :  { %4865 = vst.msk [vmem:[#allocation3 + $0x11a] sm:$0x3] %vm4837_vm13, %v15686_v28  ;;  %4866 = vst.msk [vmem:[#allocation3 + $0x12a] sm:$0x3] %vm4837_vm13, %v15686_v28  ;;  %v12583_v47 = vsub.f32 %v15701_v10, %v12168_v54  ;;  %v4316_v12 = vmul.f32 %v12576_v46, %v12576_v46  ;;  %v4423_v40 = vsel %vm3214_vm3, %v4315_v37, 0.0 }
 0x6a1   :  { %4867 = vst.msk [vmem:[#allocation3 + $0x13a] sm:$0x3] %vm4837_vm13, %v15686_v28  ;;  %4868 = vst.msk [vmem:[#allocation3 + $0x14a] sm:$0x3] %vm4837_vm13, %v15686_v28  ;;  %v4416_v36 = vadd.f32 %v4415_v11, %v4414_v1  ;;  %v15703_v11 = vld [vmem:[#allocation59_spill] sm:$0xff] }
 0x6a2   :  { %4869 = vst.msk [vmem:[#allocation3 + $0x15a] sm:$0x3] %vm4837_vm13, %v15686_v28  ;;  %15698 = vst [vmem:[#allocation66_spill] sm:$0xff] %v12569_v27  ;;  %v4417_v28 = vsel %vm3214_vm3, %v4312_v2, 0.0  ;;  %v12590_v56 = vsub.f32 %v15703_v11, %v12168_v54  ;;  %v4421_v2 = vsel %vm3214_vm3, %v4314_v33, 0.0  ;;  %v4317_v27 = vmul.f32 %v12583_v47, %v12583_v47 }
 0x6a3   :  { %15700 = vst [vmem:[#allocation97_spill] sm:$0xff] %v12576_v46  ;;  %v4418_v22 = vadd.f32 %v4417_v28, %v4416_v36  ;;  %15702 = vst [vmem:[#allocation69_spill] sm:$0xff] %v12583_v47  ;;  %v15705_v36 = vld [vmem:[#allocation54_spill] sm:$0xff]  ;;  %v4425_v33 = vsel %vm3214_vm3, %v4316_v12, 0.0 }
 0x6a4   :  { %15704 = vst [vmem:[#allocation37_spill] sm:$0xff] %v12590_v56  ;;  %v12597_v10 = vsub.f32 %v15705_v36, %v12168_v54  ;;  %v4318_v46 = vmul.f32 %v12590_v56, %v12590_v56  ;;  %v4427_v37 = vsel %vm3214_vm3, %v4317_v27, 0.0 }
 0x6a5   :  { %v4420_v1 = vadd.f32 %v4419_v15, %v4418_v22  ;;  %v15707_v15 = vld [vmem:[#allocation58_spill] sm:$0xff] }
 0x6a6   :  { %15706 = vst [vmem:[#allocation36_spill] sm:$0xff] %v12597_v10  ;;  %v12604_v11 = vsub.f32 %v15707_v15, %v12168_v54  ;;  %v4319_v47 = vmul.f32 %v12597_v10, %v12597_v10  ;;  %v4429_v12 = vsel %vm3214_vm3, %v4318_v46, 0.0 }
 0x6a7   :  { %v4422_v28 = vadd.f32 %v4421_v2, %v4420_v1  ;;  %v15709_v2 = vld [vmem:[#allocation116_spill] sm:$0xff] }
 0x6a8   :  { %15708 = vst [vmem:[#allocation68_spill] sm:$0xff] %v12604_v11  ;;  %v12611_v36 = vsub.f32 %v15709_v2, %v12168_v54  ;;  %v4320_v56 = vmul.f32 %v12604_v11, %v12604_v11  ;;  %v4431_v27 = vsel %vm3214_vm3, %v4319_v47, 0.0 }
 0x6a9   :  { %v4424_v22 = vadd.f32 %v4423_v40, %v4422_v28  ;;  %v15711_v40 = vld [vmem:[#allocation60_spill] sm:$0xff] }
 0x6aa   :  { %15710 = vst [vmem:[#allocation96_spill] sm:$0xff] %v12611_v36  ;;  %v12618_v15 = vsub.f32 %v15711_v40, %v12168_v54  ;;  %v4321_v10 = vmul.f32 %v12611_v36, %v12611_v36  ;;  %v4433_v46 = vsel %vm3214_vm3, %v4320_v56, 0.0 }
 0x6ab   :  { %v4426_v1 = vadd.f32 %v4425_v33, %v4424_v22  ;;  %v15713_v33 = vld [vmem:[#allocation61_spill] sm:$0xff] }
 0x6ac   :  { %15712 = vst [vmem:[#allocation99_spill] sm:$0xff] %v12618_v15  ;;  %v12625_v2 = vsub.f32 %v15713_v33, %v12168_v54  ;;  %v4322_v11 = vmul.f32 %v12618_v15, %v12618_v15  ;;  %v4435_v47 = vsel %vm3214_vm3, %v4321_v10, 0.0 }
 0x6ad   :  { %v4428_v28 = vadd.f32 %v4427_v37, %v4426_v1  ;;  %v15715_v37 = vld [vmem:[#allocation150_spill] sm:$0xff] }
 0x6ae   :  { %15714 = vst [vmem:[#allocation98_spill] sm:$0xff] %v12625_v2  ;;  %v12632_v40 = vsub.f32 %v15715_v37, %v12168_v54  ;;  %v4323_v36 = vmul.f32 %v12625_v2, %v12625_v2  ;;  %v4437_v56 = vsel %vm3214_vm3, %v4322_v11, 0.0 }
 0x6af   :  { %v4430_v22 = vadd.f32 %v4429_v12, %v4428_v28  ;;  %v15716_v12 = vld [vmem:[#allocation63_spill] sm:$0xff] }
 0x6b0   :  { %v12639_v33 = vsub.f32 %v15716_v12, %v12168_v54  ;;  %v4324_v15 = vmul.f32 %v12632_v40, %v12632_v40  ;;  %v4439_v10 = vsel %vm3214_vm3, %v4323_v36, 0.0  ;;  %v4329_v36 = vmul.f32 %v12174_v31, %v12174_v31 }
 0x6b1   :  { %v4432_v1 = vadd.f32 %v4431_v27, %v4430_v22  ;;  %v15718_v27 = vld [vmem:[#allocation65_spill] sm:$0xff] }
 0x6b2   :  { %15717 = vst [vmem:[#allocation71_spill] sm:$0xff] %v12639_v33  ;;  %v12646_v37 = vsub.f32 %v15718_v27, %v12168_v54  ;;  %v4325_v2 = vmul.f32 %v12639_v33, %v12639_v33  ;;  %v4441_v27 = vsel %vm3214_vm3, %v4324_v15, 0.0  ;;  %v4330_v15 = vmul.f32 %v12177_v32, %v12177_v32 }
 0x6b3   :  { %v4434_v28 = vadd.f32 %v4433_v46, %v4432_v1  ;;  %v15719_v46 = vld [vmem:[#allocation62_spill] sm:$0xff] }
 0x6b4   :  { %v12653_v12 = vsub.f32 %v15719_v46, %v12168_v54  ;;  %v4328_v54 = vmul.f32 %v12171_v39, %v12171_v39 }
 0x6b5   :  { %v4436_v22 = vadd.f32 %v4435_v47, %v4434_v28  ;;  %v4326_v47 = vmul.f32 %v12646_v37, %v12646_v37 }
 0x6b6   :  { %15720 = vst [vmem:[#allocation39_spill] sm:$0xff] %v12653_v12  ;;  %v4327_v11 = vmul.f32 %v12653_v12, %v12653_v12 }
 0x6b7   :  { %v4438_v1 = vadd.f32 %v4437_v56, %v4436_v22  ;;  %v4443_v22 = vsel %vm3214_vm3, %v4325_v2, 0.0  ;;  %v4445_v46 = vsel %vm3214_vm3, %v4326_v47, 0.0  ;;  %v4451_v2 = vsel %vm3214_vm3, %v4329_v36, 0.0 }
 0x6b8   :  { %v4332_v47 = vmul.f32 %v12183_v23, %v12183_v23 }
 0x6b9   :  { %v4440_v28 = vadd.f32 %v4439_v10, %v4438_v1  ;;  %v4447_v1 = vsel %vm3214_vm3, %v4327_v11, 0.0 }
 0x6bb   :  { %v4442_v50 = vadd.f32 %v4441_v27, %v4440_v28  ;;  %v4449_v28 = vsel %vm3214_vm3, %v4328_v54, 0.0  ;;  %v4457_v54 = vsel %vm3214_vm3, %v4332_v47, 0.0 }
 0x6bd   :  { %v4444_v56 = vadd.f32 %v4443_v22, %v4442_v50  ;;  %v4331_v50 = vmul.f32 %v12180_v25, %v12180_v25 }
 0x6bf   :  { %v4446_v33 = vadd.f32 %v4445_v46, %v4444_v56  ;;  %v4453_v56 = vsel %vm3214_vm3, %v4330_v15, 0.0  ;;  %v4455_v11 = vsel %vm3214_vm3, %v4331_v50, 0.0  ;;  %v4069_v50 = vld [vmem:[#allocation8] sm:$0x1] }
 0x6c1   :  { %v4448_v10 = vadd.f32 %v4447_v1, %v4446_v33  ;;  %v4333_v33 = vmul.f32 %v12186_v52, %v12186_v52 }
 0x6c3   :  { %v4450_v27 = vadd.f32 %v4449_v28, %v4448_v10  ;;  %v4459_v28 = vsel %vm3214_vm3, %v4333_v33, 0.0 }
 0x6c5   :  { %v4452_v22 = vadd.f32 %v4451_v2, %v4450_v27 }
 0x6c7   :  { %v4454_v46 = vadd.f32 %v4453_v56, %v4452_v22  ;;  %v4472_v56 = vlaneseq }
 0x6c9   :  { %v4456_v1 = vadd.f32 %v4455_v11, %v4454_v46  ;;  %v12684_v52 = vshrl.u32 %v4472_v56, 7  ;;  %v15725_v56 = vld [vmem:[#allocation67_spill] sm:$0xff] }
 0x6cb   :  { %v4458_v10 = vadd.f32 %v4457_v54, %v4456_v1  ;;  %15721 = vst [vmem:[#allocation38_spill] sm:$0xff] %v12684_v52  ;;  %v12687_v46 = vsub.s32 0, %v12684_v52  ;;  %v15738_v52 = vld [vmem:[#allocation98_spill] sm:$0xff] }
 0x6cd   :  { %v4460_v25 = vadd.f32 %v4459_v28, %v4458_v10  ;;  %15722 = vst [vmem:[#allocation119_spill] sm:$0xff] %v12687_v46 }
 0x6cf   :  { %v4461_v36 = vrot.slane %v4460_v25, 4 }
 0x6d1   :  { %v4462_v27 = vadd.f32 %v4461_v36, %v4460_v25  ;;  %v12692_v25 = vld [vmem:[#allocation11] ss:$0 sm:$0xff] }
 0x6d3   :  { %v4463_v2 = vrot.slane %v4462_v27, 2 }
 0x6d5   :  { %v4464_v31 = vadd.f32 %v4463_v2, %v4462_v27 }
 0x6d7   :  { %v4465_v39 = vrot.slane %v4464_v31, 1 }
 0x6d9   :  { %v4466_v12 = vadd.f32 %v4465_v39, %v4464_v31 }
 0x6db   :  { %v4467_v15 = vmul.f32 0.001953125, %v4466_v12 }
 0x6dd   :  { %v4468_v22 = vadd.f32 1e-05, %v4467_v15  ;;  %v15723_v15 = vld [vmem:[#allocation64_spill] sm:$0xff] }
 0x6df   :  { %8475 = vrsqrt.f32 %v4468_v22  ;;  %v15724_v22 = vld [vmem:[#allocation147_spill] sm:$0xff] }
 0x6ec   :  { %v8476_v47 = vpop.eup %8475 }
 0x6ed   :  { %v4470_v11 = vmul.f32 %v8476_v47, %v4069_v50  ;;  %v15726_v50 = vld [vmem:[#allocation35_spill] sm:$0xff]  ;;  %v15727_v47 = vld [vmem:[#allocation34_spill] sm:$0xff] }
 0x6ef   :  { %v12690_v33 = vrot.slane %v4470_v11, %v12687_v46  ;;  %v15728_v11 = vld [vmem:[#allocation66_spill] sm:$0xff]  ;;  %v15741_v46 = vld [vmem:[#allocation71_spill] sm:$0xff] }
 0x6f1   :  { %v4537_v39 = vmul.f32 %v12690_v33, %v12177_v32  ;;  %v4539_v31 = vmul.f32 %v12690_v33, %v12183_v23  ;;  %v12700_v12 = vmul.f32 %v12690_v33, %v12190_v51  ;;  %v12704_v1 = vmul.f32 %v12690_v33, %v12194_v48 }
 0x6f2   :  { %v12708_v54 = vmul.f32 %v12690_v33, %v12198_v29  ;;  %v12712_v10 = vmul.f32 %v12690_v33, %v12202_v53  ;;  %v12716_v32 = vmul.f32 %v12690_v33, %v12210_v3  ;;  %v12720_v23 = vmul.f32 %v12690_v33, %v12216_v45 }
 0x6f3   :  { %v4607_v51 = vadd.f32 %v12692_v25, %v4537_v39  ;;  %v4609_v48 = vadd.f32 %v12692_v25, %v4539_v31  ;;  %v12726_v29 = vmul.f32 %v12690_v33, %v12224_v41  ;;  %v12730_v53 = vmul.f32 %v12690_v33, %v12231_v7  ;;  %v15729_v31 = vld [vmem:[#allocation97_spill] sm:$0xff] }
 0x6f4   :  { %v12734_v3 = vmul.f32 %v12690_v33, %v12238_v61  ;;  %v12738_v45 = vmul.f32 %v12690_v33, %v12245_v5  ;;  %v12742_v28 = vmul.f32 %v12690_v33, %v12252_v63  ;;  %v12746_v41 = vmul.f32 %v12690_v33, %v12259_v34 }
 0x6f5   :  { %v4671_v36 = vmax.f32 %v4607_v51, 0.0  ;;  %v4673_v27 = vmax.f32 %v4609_v48, 0.0  ;;  %v12750_v7 = vmul.f32 %v12690_v33, %v12266_v19  ;;  %v12754_v61 = vmul.f32 %v12690_v33, %v12273_v16  ;;  %v15730_v48 = vld [vmem:[#allocation69_spill] sm:$0xff] }
 0x6f6   :  { %v12758_v5 = vmul.f32 %v12690_v33, %v12280_v42  ;;  %v12762_v63 = vmul.f32 %v12690_v33, %v12287_v8  ;;  %v12766_v34 = vmul.f32 %v12690_v33, %v12294_v57  ;;  %v12770_v19 = vmul.f32 %v12690_v33, %v12301_v4 }
 0x6f7   :  { %v4705_v2 = vmax.f32 %v4671_v36, %v4673_v27  ;;  %v12774_v16 = vmul.f32 %v12690_v33, %v12308_v38  ;;  %v12778_v42 = vmul.f32 %v12690_v33, %v12315_v30  ;;  %v12782_v8 = vmul.f32 %v12690_v33, %v12322_v18  ;;  %v15731_v27 = vld [vmem:[#allocation37_spill] sm:$0xff] }
 0x6f8   :  { %v12786_v57 = vmul.f32 %v12690_v33, %v12329_v55  ;;  %v12790_v4 = vmul.f32 %v12690_v33, %v12336_v9  ;;  %v12794_v38 = vmul.f32 %v12690_v33, %v12343_v62  ;;  %v12798_v30 = vmul.f32 %v12690_v33, %v12350_v17 }
 0x6f9   :  { %4737 = vst.msk [vmem:[#allocation4 + $0xf0] sm:$0xff] %vm3214_vm3, %v4705_v2  ;;  %v12803_v18 = vmul.f32 %v12690_v33, %v12357_v43  ;;  %v12807_v55 = vmul.f32 %v12690_v33, %v12364_v44  ;;  %v12811_v9 = vmul.f32 %v12690_v33, %v12371_v14  ;;  %v12815_v62 = vmul.f32 %v12690_v33, %v12378_v0 }
 0x6fa   :  { %v12819_v17 = vmul.f32 %v12690_v33, %v12385_v49  ;;  %v12823_v43 = vmul.f32 %v12690_v33, %v12392_v59  ;;  %v12827_v44 = vmul.f32 %v12690_v33, %v12399_v58  ;;  %v12831_v14 = vmul.f32 %v12690_v33, %v12406_v6 }
 0x6fb   :  { %v12835_v0 = vmul.f32 %v12690_v33, %v12413_v60  ;;  %v12839_v49 = vmul.f32 %v12690_v33, %v12420_v21  ;;  %v12843_v59 = vmul.f32 %v12690_v33, %v12427_v24  ;;  %v12847_v58 = vmul.f32 %v12690_v33, %v12434_v35 }
 0x6fc   :  { %v12851_v6 = vmul.f32 %v12690_v33, %v12441_v20  ;;  %v12855_v60 = vmul.f32 %v12690_v33, %v12448_v13  ;;  %v12859_v21 = vmul.f32 %v12690_v33, %v12463_v26  ;;  %v12863_v24 = vmul.f32 %v12690_v33, %v15723_v15  ;;  %v15732_v15 = vld [vmem:[#allocation36_spill] sm:$0xff] }
 0x6fd   :  { %v12867_v35 = vmul.f32 %v12690_v33, %v15724_v22  ;;  %v12871_v20 = vmul.f32 %v12690_v33, %v15725_v56  ;;  %v12875_v13 = vmul.f32 %v12690_v33, %v15726_v50  ;;  %v12879_v26 = vmul.f32 %v12690_v33, %v15727_v47  ;;  %v15733_v56 = vld [vmem:[#allocation68_spill] sm:$0xff] }
 0x6fe   :  { %v12883_v39 = vmul.f32 %v12690_v33, %v15728_v11  ;;  %v12887_v51 = vmul.f32 %v12690_v33, %v15729_v31  ;;  %v12891_v36 = vmul.f32 %v12690_v33, %v15730_v48  ;;  %v12895_v2 = vmul.f32 %v12690_v33, %v15731_v27  ;;  %v15734_v47 = vld [vmem:[#allocation96_spill] sm:$0xff]  ;;  %v15736_v31 = vld [vmem:[#allocation99_spill] sm:$0xff] }
 0x6ff   :  { %v12899_v22 = vmul.f32 %v12690_v33, %v15732_v15  ;;  %v12903_v50 = vmul.f32 %v12690_v33, %v15733_v56  ;;  %v12907_v11 = vmul.f32 %v12690_v33, %v15734_v47  ;;  %v12911_v48 = vmul.f32 %v12690_v33, %v15736_v31 }
 0x700   :  { %v12915_v27 = vmul.f32 %v12690_v33, %v15738_v52  ;;  %v12919_v15 = vmul.f32 %v12690_v33, %v12632_v40  ;;  %v12923_v56 = vmul.f32 %v12690_v33, %v15741_v46  ;;  %v12927_v47 = vmul.f32 %v12690_v33, %v12646_v37 }
 0x701   :  { %15735 = vst [vmem:[#allocation70_spill] sm:$0xff] %v12907_v11  ;;  %15737 = vst [vmem:[#allocation101_spill] sm:$0xff] %v12911_v48  ;;  %v15743_v11 = vld [vmem:[#allocation39_spill] sm:$0xff]  ;;  %v15745_v48 = vld [vmem:[#allocation145_spill] sm:$0xff] }
 0x702   :  { %15739 = vst [vmem:[#allocation100_spill] sm:$0xff] %v12915_v27  ;;  %15740 = vst [vmem:[#allocation121_spill] sm:$0xff] %v12919_v15  ;;  %v12931_v31 = vmul.f32 %v12690_v33, %v15743_v11  ;;  %v12935_v52 = vmul.f32 %v12690_v33, %v15745_v48  ;;  %v15746_v27 = vld [vmem:[#allocation146_spill] sm:$0xff]  ;;  %v15747_v15 = vld [vmem:[#allocation148_spill] sm:$0xff]  ;;  %v4547_v11 = vadd.f32 %v12692_v25, %v12700_v12 }
 0x703   :  { %15742 = vst [vmem:[#allocation73_spill] sm:$0xff] %v12923_v56  ;;  %v12939_v40 = vmul.f32 %v12690_v33, %v15746_v27  ;;  %v12943_v46 = vmul.f32 %v12690_v33, %v15747_v15  ;;  %v15748_v56 = vld [vmem:[#allocation149_spill] sm:$0xff]  ;;  %v4549_v48 = vadd.f32 %v12692_v25, %v12708_v54  ;;  %v4550_v27 = vadd.f32 %v12692_v25, %v12712_v10 }
 0x704   :  { %15744 = vst [vmem:[#allocation41_spill] sm:$0xff] %v12931_v31  ;;  %v12947_v37 = vmul.f32 %v12690_v33, %v15748_v56  ;;  %v4548_v31 = vadd.f32 %v12692_v25, %v12704_v1  ;;  %v12959_v15 = vadd.f32 %v12692_v25, %v12716_v32  ;;  %v12963_v33 = vadd.f32 %v12692_v25, %v12720_v23 }
 0x705   :  { %v12967_v12 = vadd.f32 %v12692_v25, %v12726_v29  ;;  %v4611_v56 = vmax.f32 %v4547_v11, 0.0  ;;  %v12971_v54 = vadd.f32 %v12692_v25, %v12730_v53  ;;  %v4614_v10 = vmax.f32 %v4550_v27, 0.0 }
 0x706   :  { %15749 = vst [vmem:[#allocation120_spill] sm:$0xff] %v12947_v37  ;;  %v4612_v1 = vmax.f32 %v4548_v31, 0.0  ;;  %v4613_v37 = vmax.f32 %v4549_v48, 0.0  ;;  %v12975_v32 = vadd.f32 %v12692_v25, %v12734_v3  ;;  %v12979_v23 = vadd.f32 %v12692_v25, %v12738_v45 }
 0x707   :  { %v12983_v29 = vadd.f32 %v12692_v25, %v12742_v28  ;;  %v12987_v31 = vadd.f32 %v12692_v25, %v12746_v41  ;;  %v12991_v53 = vadd.f32 %v12692_v25, %v12750_v7  ;;  %v12995_v3 = vadd.f32 %v12692_v25, %v12754_v61 }
 0x708   :  { %15750 = vst [vmem:[#allocation72_spill] sm:$0xff] %v12979_v23  ;;  %v4675_v11 = vmax.f32 %v4611_v56, %v4613_v37  ;;  %v4676_v48 = vmax.f32 %v4612_v1, %v4614_v10  ;;  %v12999_v45 = vadd.f32 %v12692_v25, %v12758_v5  ;;  %v13003_v28 = vadd.f32 %v12692_v25, %v12762_v63 }
 0x709   :  { %15751 = vst [vmem:[#allocation103_spill] sm:$0xff] %v12991_v53  ;;  %15752 = vst [vmem:[#allocation122_spill] sm:$0xff] %v12995_v3  ;;  %v13007_v41 = vadd.f32 %v12692_v25, %v12766_v34  ;;  %v13012_v7 = vadd.f32 %v12692_v25, %v12770_v19  ;;  %v13016_v61 = vadd.f32 %v12692_v25, %v12774_v16  ;;  %v15762_v10 = vld [vmem:[#allocation100_spill] sm:$0xff] }
 0x70a   :  { %15753 = vst [vmem:[#allocation40_spill] sm:$0xff] %v12999_v45  ;;  %15754 = vst [vmem:[#allocation75_spill] sm:$0xff] %v13003_v28  ;;  %v13020_v5 = vadd.f32 %v12692_v25, %v12778_v42  ;;  %v13024_v63 = vadd.f32 %v12692_v25, %v12782_v8  ;;  %v13029_v34 = vadd.f32 %v12692_v25, %v12786_v57 }
 0x70b   :  { %15755 = vst [vmem:[#allocation102_spill] sm:$0xff] %v13007_v41  ;;  %4707 = vst.msk [vmem:[#allocation4] sm:$0xff] %vm3214_vm3, %v4675_v11  ;;  %v13033_v19 = vadd.f32 %v12692_v25, %v12790_v4  ;;  %v13037_v16 = vadd.f32 %v12692_v25, %v12794_v38  ;;  %v13041_v42 = vadd.f32 %v12692_v25, %v12798_v30 }
 0x70c   :  { %15756 = vst [vmem:[#allocation125_spill] sm:$0xff] %v13012_v7  ;;  %4708 = vst.msk [vmem:[#allocation4 + $0x8] sm:$0xff] %vm3214_vm3, %v4676_v48  ;;  %v13045_v8 = vadd.f32 %v12692_v25, %v12803_v18  ;;  %v13049_v57 = vadd.f32 %v12692_v25, %v12807_v55  ;;  %v13053_v4 = vadd.f32 %v12692_v25, %v12811_v9  ;;  %v15763_v48 = vld [vmem:[#allocation121_spill] sm:$0xff] }
 0x70d   :  { %15757 = vst [vmem:[#allocation74_spill] sm:$0xff] %v13029_v34  ;;  %v13057_v38 = vadd.f32 %v12692_v25, %v12815_v62  ;;  %v13061_v30 = vadd.f32 %v12692_v25, %v12819_v17  ;;  %v13065_v18 = vadd.f32 %v12692_v25, %v12823_v43  ;;  %v13069_v55 = vadd.f32 %v12692_v25, %v12827_v44 }
 0x70e   :  { %v13073_v9 = vadd.f32 %v12692_v25, %v12831_v14  ;;  %v13077_v62 = vadd.f32 %v12692_v25, %v12835_v0  ;;  %v13081_v17 = vadd.f32 %v12692_v25, %v12839_v49  ;;  %v13085_v43 = vadd.f32 %v12692_v25, %v12843_v59 }
 0x70f   :  { %v13089_v44 = vadd.f32 %v12692_v25, %v12847_v58  ;;  %v13093_v14 = vadd.f32 %v12692_v25, %v12851_v6  ;;  %v13097_v0 = vadd.f32 %v12692_v25, %v12855_v60  ;;  %v13101_v49 = vadd.f32 %v12692_v25, %v12859_v21 }
 0x710   :  { %v13105_v59 = vadd.f32 %v12692_v25, %v12863_v24  ;;  %v13109_v58 = vadd.f32 %v12692_v25, %v12867_v35  ;;  %v13113_v6 = vadd.f32 %v12692_v25, %v12871_v20  ;;  %v13117_v60 = vadd.f32 %v12692_v25, %v12875_v13 }
 0x711   :  { %v13121_v21 = vadd.f32 %v12692_v25, %v12879_v26  ;;  %v13125_v24 = vadd.f32 %v12692_v25, %v12883_v39  ;;  %v13129_v35 = vadd.f32 %v12692_v25, %v12887_v51  ;;  %v13133_v20 = vadd.f32 %v12692_v25, %v12891_v36  ;;  %v15759_v51 = vld [vmem:[#allocation70_spill] sm:$0xff]  ;;  %v15761_v36 = vld [vmem:[#allocation101_spill] sm:$0xff] }
 0x712   :  { %v13137_v13 = vadd.f32 %v12692_v25, %v12895_v2  ;;  %v13141_v26 = vadd.f32 %v12692_v25, %v12899_v22  ;;  %v13145_v39 = vadd.f32 %v12692_v25, %v12903_v50  ;;  %v13149_v56 = vadd.f32 %v12692_v25, %v15759_v51 }
 0x713   :  { %v4739_v37 = vld [vmem:[#allocation4] ss:$2 sm:$0xff]  ;;  %v4771_v27 = vld [vmem:[#allocation4 + $0x1] ss:$2 sm:$0xff]  ;;  %v13153_v1 = vadd.f32 %v12692_v25, %v15761_v36  ;;  %v13157_v11 = vadd.f32 %v12692_v25, %v15762_v10  ;;  %v13161_v22 = vadd.f32 %v12692_v25, %v15763_v48  ;;  %v13169_v51 = vadd.f32 %v12692_v25, %v12927_v47 }
 0x714   :  { %15758 = vst [vmem:[#allocation123_spill] sm:$0xff] %v13141_v26  ;;  %15760 = vst [vmem:[#allocation104_spill] sm:$0xff] %v13149_v56  ;;  %v4802_v2 = vmax.f32 %v4739_v37, %v4771_v27  ;;  %v15764_v26 = vld [vmem:[#allocation73_spill] sm:$0xff]  ;;  %v13177_v37 = vadd.f32 %v12692_v25, %v12935_v52  ;;  %v13181_v27 = vadd.f32 %v12692_v25, %v12939_v40  ;;  %v15769_v47 = vld [vmem:[#allocation120_spill] sm:$0xff]  ;;  %v4629_v40 = vmax.f32 %v13016_v61, 0.0 }
 0x715   :  { %v13165_v50 = vadd.f32 %v12692_v25, %v15764_v26  ;;  %v15765_v56 = vld [vmem:[#allocation41_spill] sm:$0xff]  ;;  %v13186_v26 = vadd.f32 %v12692_v25, %v12943_v46  ;;  %v13190_v10 = vadd.f32 %v12692_v25, %v15769_v47  ;;  %v4634_v47 = vmax.f32 %v13037_v16, 0.0 }
 0x716   :  { %v13173_v36 = vadd.f32 %v12692_v25, %v15765_v56  ;;  %15766 = vst [vmem:[#allocation77_spill] sm:$0xff] %v13177_v37  ;;  %15767 = vst [vmem:[#allocation43_spill] sm:$0xff] %v13181_v27  ;;  %v4631_v27 = vmax.f32 %v13024_v63, 0.0  ;;  %v4935_v52 = vld [vmem:[#allocation3 + $0x12] sm:$0xff]  ;;  %v4633_v25 = vmax.f32 %v13033_v19, 0.0  ;;  %v4635_v48 = vmax.f32 %v13041_v42, 0.0 }
 0x717   :  { %4870 = vst.msk [vmem:[#allocation3 + $0x22] sm:$0xff] %vm3214_vm3, %v4802_v2  ;;  %15768 = vst [vmem:[#allocation124_spill] sm:$0xff] %v13186_v26  ;;  %v4630_v2 = vmax.f32 %v13020_v5, 0.0  ;;  %v4911_v26 = vld [vmem:[#allocation3 + $0x11] sm:$0xff]  ;;  %v4636_v56 = vmax.f32 %v13045_v8, 0.0  ;;  %v4637_v37 = vmax.f32 %v13049_v57, 0.0 }
 0x718   :  { %v4638_v61 = vmax.f32 %v13053_v4, 0.0  ;;  %v4639_v5 = vmax.f32 %v13057_v38, 0.0  ;;  %v4640_v63 = vmax.f32 %v13061_v30, 0.0  ;;  %v4641_v34 = vmax.f32 %v13065_v18, 0.0 }
 0x719   :  { %v4642_v19 = vmax.f32 %v13069_v55, 0.0  ;;  %v4643_v16 = vmax.f32 %v13073_v9, 0.0  ;;  %v4644_v42 = vmax.f32 %v13077_v62, 0.0  ;;  %v4645_v57 = vmax.f32 %v13081_v17, 0.0 }
 0x71a   :  { %v4646_v4 = vmax.f32 %v13085_v43, 0.0  ;;  %v4647_v38 = vmax.f32 %v13089_v44, 0.0  ;;  %v4648_v30 = vmax.f32 %v13093_v14, 0.0  ;;  %v4649_v3 = vmax.f32 %v13097_v0, 0.0 }
 0x71b   :  { %v4650_v18 = vmax.f32 %v13101_v49, 0.0  ;;  %v4651_v55 = vmax.f32 %v13105_v59, 0.0  ;;  %v4653_v9 = vmax.f32 %v13113_v6, 0.0  ;;  %v4654_v62 = vmax.f32 %v13117_v60, 0.0  ;;  %v15770_v0 = vld [vmem:[#allocation123_spill] sm:$0xff] }
 0x71c   :  { %v4655_v17 = vmax.f32 %v13121_v21, 0.0  ;;  %v4656_v43 = vmax.f32 %v13125_v24, 0.0  ;;  %v4657_v44 = vmax.f32 %v13129_v35, 0.0  ;;  %v4658_v14 = vmax.f32 %v13133_v20, 0.0 }
 0x71d   :  { %v4660_v49 = vmax.f32 %v15770_v0, 0.0  ;;  %v4661_v59 = vmax.f32 %v13145_v39, 0.0  ;;  %v4663_v60 = vmax.f32 %v13153_v1, 0.0  ;;  %v4664_v21 = vmax.f32 %v13157_v11, 0.0  ;;  %v15773_v0 = vld [vmem:[#allocation43_spill] sm:$0xff] }
 0x71e   :  { %v4936_v7 = vld [vmem:[#allocation3 + $0x22] sm:$0xff]  ;;  %v4665_v24 = vmax.f32 %v13161_v22, 0.0  ;;  %v4666_v35 = vmax.f32 %v13165_v50, 0.0  ;;  %v4667_v20 = vmax.f32 %v13169_v51, 0.0  ;;  %v4670_v39 = vmax.f32 %v15773_v0, 0.0 }
 0x71f   :  { %v4912_v46 = vld [vmem:[#allocation3 + $0x21] sm:$0xff]  ;;  %v8355_v41 = vpack.i.bf16 %v4936_v7, %v4935_v52  ;;  %v4652_v7 = vmax.f32 %v13109_v58, 0.0  ;;  %v4983_v52 = vld [vmem:[#allocation3 + $0x14] sm:$0xff]  ;;  %v4674_v53 = vmax.f32 %v13190_v10, 0.0  ;;  %v15775_v1 = vmax.f32 %v12967_v12, 0.0 }
 0x720   :  { %v8350_v8 = vpack.i.bf16 %v4912_v46, %v4911_v26  ;;  %v15771_v26 = vld [vmem:[#allocation104_spill] sm:$0xff]  ;;  %v15772_v46 = vld [vmem:[#allocation77_spill] sm:$0xff]  ;;  %v15776_v11 = vmax.f32 %v12959_v15, 0.0  ;;  %v15777_v50 = vmax.f32 %v12971_v54, 0.0  ;;  %v15778_v51 = vmax.f32 %v12963_v33, 0.0  ;;  %v15788_v33 = vld [vmem:[#allocation75_spill] sm:$0xff] }
 0x721   :  { %8356 = vrot.lane.b32.xlu1 %v8355_v41, %s8722_s17  ;;  %v4659_v41 = vmax.f32 %v13137_v13, 0.0  ;;  %v4662_v58 = vmax.f32 %v15771_v26, 0.0  ;;  %v4984_v6 = vld [vmem:[#allocation3 + $0x24] sm:$0xff]  ;;  %v4668_v13 = vmax.f32 %v13173_v36, 0.0  ;;  %v15779_v36 = vmax.f32 %v12983_v29, 0.0 }
 0x722   :  { %8351 = vrot.lane.b32.xlu0 %v8350_v8, %s8721_s14  ;;  %v4669_v8 = vmax.f32 %v15772_v46, 0.0  ;;  %v15774_v28 = vld [vmem:[#allocation124_spill] sm:$0xff]  ;;  %v8365_v45 = vpack.i.bf16 %v4984_v6, %v4983_v52  ;;  %v4677_v22 = vmax.f32 %v15776_v11, %v15775_v1  ;;  %v4678_v23 = vmax.f32 %v15778_v51, %v15777_v50  ;;  %v15786_v1 = vld [vmem:[#allocation103_spill] sm:$0xff]  ;;  %v15790_v51 = vld [vmem:[#allocation122_spill] sm:$0xff] }
 0x723   :  { %v4672_v26 = vmax.f32 %v15774_v28, 0.0  ;;  %v15780_v46 = vmax.f32 %v12975_v32, 0.0  ;;  %v15781_v28 = vmax.f32 %v12987_v31, 0.0  ;;  %v15782_v10 = vld [vmem:[#allocation72_spill] sm:$0xff]  ;;  %v15787_v11 = vmax.f32 %v15786_v1, 0.0  ;;  %v15796_v1 = vld [vmem:[#allocation74_spill] sm:$0xff] }
 0x724   :  { %v15783_v6 = vmax.f32 %v15782_v10, 0.0  ;;  %v15784_v12 = vld [vmem:[#allocation40_spill] sm:$0xff]  ;;  %v15789_v50 = vmax.f32 %v15788_v33, 0.0  ;;  %v15791_v29 = vmax.f32 %v15790_v51, 0.0  ;;  %v15794_v10 = vld [vmem:[#allocation125_spill] sm:$0xff]  ;;  %4709 = vst.msk [vmem:[#allocation4 + $0x10] sm:$0xff] %vm3214_vm3, %v4677_v22  ;;  %v4688_v33 = vmax.f32 %v4636_v56, %v4638_v61 }
 0x725   :  { %v4679_v0 = vmax.f32 %v15780_v46, %v15779_v36  ;;  %v15785_v15 = vmax.f32 %v15784_v12, 0.0  ;;  %8366 = vrot.lane.b32.xlu1 %v8365_v45, %s8724_s26  ;;  %v15792_v36 = vld [vmem:[#allocation102_spill] sm:$0xff]  ;;  %v4685_v12 = vmax.f32 %v4631_v27, %v4633_v25  ;;  %v4687_v45 = vmax.f32 %v4635_v48, %v4637_v37  ;;  %4710 = vst.msk [vmem:[#allocation4 + $0x18] sm:$0xff] %vm3214_vm3, %v4678_v23  ;;  %v4960_v25 = vld [vmem:[#allocation3 + $0x23] sm:$0xff] }
 0x726   :  { %v4680_v52 = vmax.f32 %v15783_v6, %v15781_v28  ;;  %v4682_v32 = vmax.f32 %v15791_v29, %v15789_v50  ;;  %v15793_v46 = vmax.f32 %v15792_v36, 0.0  ;;  %v15795_v6 = vmax.f32 %v15794_v10, 0.0  ;;  %v4959_v48 = vld [vmem:[#allocation3 + $0x13] sm:$0xff]  ;;  %4720 = vst.msk [vmem:[#allocation4 + $0x68] sm:$0xff] %vm3214_vm3, %v4688_v33 }
 0x727   :  { %v4681_v54 = vmax.f32 %v15787_v11, %v15785_v15  ;;  %v15797_v11 = vmax.f32 %v15796_v1, 0.0  ;;  %v4689_v51 = vmax.f32 %v4639_v5, %v4641_v34  ;;  %4711 = vst.msk [vmem:[#allocation4 + $0x20] sm:$0xff] %vm3214_vm3, %v4679_v0  ;;  %v4691_v50 = vmax.f32 %v4643_v16, %v4645_v57  ;;  %4717 = vst.msk [vmem:[#allocation4 + $0x50] sm:$0xff] %vm3214_vm3, %v4685_v12 }
 0x728   :  { %v4683_v31 = vmax.f32 %v15793_v46, %v4629_v40  ;;  %v4684_v28 = vmax.f32 %v15795_v6, %v4630_v2  ;;  %4712 = vst.msk [vmem:[#allocation4 + $0x28] sm:$0xff] %vm3214_vm3, %v4680_v52  ;;  %v4690_v40 = vmax.f32 %v4640_v63, %v4642_v19  ;;  %v4692_v2 = vmax.f32 %v4644_v42, %v4646_v4 }
 0x729   :  { %v4686_v15 = vmax.f32 %v15797_v11, %v4634_v47  ;;  %4713 = vst.msk [vmem:[#allocation4 + $0x30] sm:$0xff] %vm3214_vm3, %v4681_v54  ;;  %v4693_v27 = vmax.f32 %v4647_v38, %v4649_v3  ;;  %4714 = vst.msk [vmem:[#allocation4 + $0x38] sm:$0xff] %vm3214_vm3, %v4682_v32  ;;  %v4694_v34 = vmax.f32 %v4648_v30, %v4650_v18 }
 0x72a   :  { %4715 = vst.msk [vmem:[#allocation4 + $0x40] sm:$0xff] %vm3214_vm3, %v4683_v31  ;;  %4716 = vst.msk [vmem:[#allocation4 + $0x48] sm:$0xff] %vm3214_vm3, %v4684_v28  ;;  %v4695_v23 = vmax.f32 %v4651_v55, %v4653_v9  ;;  %v4696_v37 = vmax.f32 %v4652_v7, %v4654_v62  ;;  %v4697_v56 = vmax.f32 %v4655_v17, %v4657_v44 }
 0x72b   :  { %4718 = vst.msk [vmem:[#allocation4 + $0x58] sm:$0xff] %vm3214_vm3, %v4686_v15  ;;  %4719 = vst.msk [vmem:[#allocation4 + $0x60] sm:$0xff] %vm3214_vm3, %v4687_v45  ;;  %v4698_v3 = vmax.f32 %v4656_v43, %v4658_v14  ;;  %v4699_v47 = vmax.f32 %v4659_v41, %v4661_v59  ;;  %v4700_v61 = vmax.f32 %v4660_v49, %v4662_v58 }
 0x72c   :  { %4721 = vst.msk [vmem:[#allocation4 + $0x70] sm:$0xff] %vm3214_vm3, %v4689_v51  ;;  %v4701_v5 = vmax.f32 %v4663_v60, %v4665_v24  ;;  %4722 = vst.msk [vmem:[#allocation4 + $0x78] sm:$0xff] %vm3214_vm3, %v4690_v40  ;;  %v4702_v63 = vmax.f32 %v4664_v21, %v4666_v35  ;;  %v4703_v19 = vmax.f32 %v4667_v20, %v4669_v8  ;;  %v4773_v4 = vld [vmem:[#allocation4 + $0x11] ss:$2 sm:$0xff] }
 0x72d   :  { %4723 = vst.msk [vmem:[#allocation4 + $0x80] sm:$0xff] %vm3214_vm3, %v4691_v50  ;;  %4724 = vst.msk [vmem:[#allocation4 + $0x88] sm:$0xff] %vm3214_vm3, %v4692_v2  ;;  %v4704_v16 = vmax.f32 %v4668_v13, %v4670_v39  ;;  %v4706_v42 = vmax.f32 %v4672_v26, %v4674_v53  ;;  %v8360_v57 = vpack.i.bf16 %v4960_v25, %v4959_v48  ;;  %v4741_v53 = vld [vmem:[#allocation4 + $0x10] ss:$2 sm:$0xff] }
 0x72e   :  { %4725 = vst.msk [vmem:[#allocation4 + $0x90] sm:$0xff] %vm3214_vm3, %v4693_v27  ;;  %4726 = vst.msk [vmem:[#allocation4 + $0x98] sm:$0xff] %vm3214_vm3, %v4694_v34  ;;  %v4803_v30 = vmax.f32 %v4741_v53, %v4773_v4 }
 0x72f   :  { %4727 = vst.msk [vmem:[#allocation4 + $0xa0] sm:$0xff] %vm3214_vm3, %v4695_v23  ;;  %4728 = vst.msk [vmem:[#allocation4 + $0xa8] sm:$0xff] %vm3214_vm3, %v4696_v37  ;;  %8361 = vrot.lane.b32.xlu0 %v8360_v57, %s8723_s11  ;;  %v4743_v38 = vld [vmem:[#allocation4 + $0x20] ss:$2 sm:$0xff]  ;;  %v4775_v18 = vld [vmem:[#allocation4 + $0x21] ss:$2 sm:$0xff] }
 0x730   :  { %4729 = vst.msk [vmem:[#allocation4 + $0xb0] sm:$0xff] %vm3214_vm3, %v4697_v56  ;;  %4730 = vst.msk [vmem:[#allocation4 + $0xb8] sm:$0xff] %vm3214_vm3, %v4698_v3  ;;  %v4745_v55 = vld [vmem:[#allocation4 + $0x30] ss:$2 sm:$0xff]  ;;  %v4777_v7 = vld [vmem:[#allocation4 + $0x31] ss:$2 sm:$0xff]  ;;  %v4804_v9 = vmax.f32 %v4743_v38, %v4775_v18 }
 0x731   :  { %4731 = vst.msk [vmem:[#allocation4 + $0xc0] sm:$0xff] %vm3214_vm3, %v4699_v47  ;;  %4732 = vst.msk [vmem:[#allocation4 + $0xc8] sm:$0xff] %vm3214_vm3, %v4700_v61  ;;  %v4805_v62 = vmax.f32 %v4745_v55, %v4777_v7  ;;  %v4747_v17 = vld [vmem:[#allocation4 + $0x40] ss:$2 sm:$0xff]  ;;  %v4779_v43 = vld [vmem:[#allocation4 + $0x41] ss:$2 sm:$0xff] }
 0x732   :  { %4733 = vst.msk [vmem:[#allocation4 + $0xd0] sm:$0xff] %vm3214_vm3, %v4701_v5  ;;  %4734 = vst.msk [vmem:[#allocation4 + $0xd8] sm:$0xff] %vm3214_vm3, %v4702_v63  ;;  %v4749_v44 = vld [vmem:[#allocation4 + $0x50] ss:$2 sm:$0xff]  ;;  %v4806_v49 = vmax.f32 %v4747_v17, %v4779_v43  ;;  %v4781_v59 = vld [vmem:[#allocation4 + $0x51] ss:$2 sm:$0xff] }
 0x733   :  { %4735 = vst.msk [vmem:[#allocation4 + $0xe0] sm:$0xff] %vm3214_vm3, %v4703_v19  ;;  %4736 = vst.msk [vmem:[#allocation4 + $0xe8] sm:$0xff] %vm3214_vm3, %v4704_v16  ;;  %v4807_v58 = vmax.f32 %v4749_v44, %v4781_v59  ;;  %v4751_v60 = vld [vmem:[#allocation4 + $0x60] ss:$2 sm:$0xff]  ;;  %v4783_v21 = vld [vmem:[#allocation4 + $0x61] ss:$2 sm:$0xff] }
 0x734   :  { %4738 = vst.msk [vmem:[#allocation4 + $0xf8] sm:$0xff] %vm3214_vm3, %v4706_v42  ;;  %4871 = vst.msk [vmem:[#allocation3 + $0x32] sm:$0xff] %vm3214_vm3, %v4803_v30  ;;  %v4755_v14 = vld [vmem:[#allocation4 + $0x80] ss:$2 sm:$0xff]  ;;  %v4787_v41 = vld [vmem:[#allocation4 + $0x81] ss:$2 sm:$0xff]  ;;  %v4808_v20 = vmax.f32 %v4751_v60, %v4783_v21 }
 0x735   :  { %4872 = vst.msk [vmem:[#allocation3 + $0x42] sm:$0xff] %vm3214_vm3, %v4804_v9  ;;  %4873 = vst.msk [vmem:[#allocation3 + $0x52] sm:$0xff] %vm3214_vm3, %v4805_v62  ;;  %v4753_v24 = vld [vmem:[#allocation4 + $0x70] ss:$2 sm:$0xff]  ;;  %v4810_v35 = vmax.f32 %v4755_v14, %v4787_v41  ;;  %v4785_v13 = vld [vmem:[#allocation4 + $0x71] ss:$2 sm:$0xff] }
 0x736   :  { %4874 = vst.msk [vmem:[#allocation3 + $0x62] sm:$0xff] %vm3214_vm3, %v4806_v49  ;;  %v4757_v8 = vld [vmem:[#allocation4 + $0x90] ss:$2 sm:$0xff]  ;;  %v4789_v39 = vld [vmem:[#allocation4 + $0x91] ss:$2 sm:$0xff]  ;;  %4875 = vst.msk [vmem:[#allocation3 + $0x72] sm:$0xff] %vm3214_vm3, %v4807_v58  ;;  %v4809_v26 = vmax.f32 %v4753_v24, %v4785_v13 }
 0x737   :  { %4878 = vst.msk [vmem:[#allocation3 + $0xe2] sm:$0xff] %vm3214_vm3, %v4810_v35  ;;  %v4811_v22 = vmax.f32 %v4757_v8, %v4789_v39  ;;  %v4759_v0 = vld [vmem:[#allocation4 + $0xa0] ss:$2 sm:$0xff]  ;;  %v4791_v52 = vld [vmem:[#allocation4 + $0xa1] ss:$2 sm:$0xff]  ;;  %4876 = vst.msk [vmem:[#allocation3 + $0x82] sm:$0xff] %vm3214_vm3, %v4808_v20 }
 0x738   :  { %v4761_v54 = vld [vmem:[#allocation4 + $0xb0] ss:$2 sm:$0xff]  ;;  %v4812_v29 = vmax.f32 %v4759_v0, %v4791_v52  ;;  %v4793_v32 = vld [vmem:[#allocation4 + $0xb1] ss:$2 sm:$0xff]  ;;  %v4763_v36 = vld [vmem:[#allocation4 + $0xc0] ss:$2 sm:$0xff] }
 0x739   :  { %v4795_v46 = vld [vmem:[#allocation4 + $0xc1] ss:$2 sm:$0xff]  ;;  %4877 = vst.msk [vmem:[#allocation3 + $0x92] sm:$0xff] %vm3214_vm3, %v4809_v26  ;;  %4879 = vst.msk [vmem:[#allocation3 + $0xf2] sm:$0xff] %vm3214_vm3, %v4811_v22  ;;  %v4813_v31 = vmax.f32 %v4761_v54, %v4793_v32  ;;  %v4765_v6 = vld [vmem:[#allocation4 + $0xd0] ss:$2 sm:$0xff] }
 0x73a   :  { %v4814_v10 = vmax.f32 %v4763_v36, %v4795_v46  ;;  %v4797_v28 = vld [vmem:[#allocation4 + $0xd1] ss:$2 sm:$0xff]  ;;  %v4767_v12 = vld [vmem:[#allocation4 + $0xe0] ss:$2 sm:$0xff]  ;;  %4880 = vst.msk [vmem:[#allocation3 + $0x102] sm:$0xff] %vm3214_vm3, %v4812_v29 }
 0x73b   :  { %v4815_v1 = vmax.f32 %v4765_v6, %v4797_v28  ;;  %v4799_v11 = vld [vmem:[#allocation4 + $0xe1] ss:$2 sm:$0xff]  ;;  %v4769_v15 = vld [vmem:[#allocation4 + $0xf0] ss:$2 sm:$0xff]  ;;  %v4801_v45 = vld [vmem:[#allocation4 + $0xf1] ss:$2 sm:$0xff] }
 0x73c   :  { %v4937_v33 = vld [vmem:[#allocation3 + $0x32] sm:$0xff]  ;;  %4881 = vst.msk [vmem:[#allocation3 + $0x112] sm:$0xff] %vm3214_vm3, %v4813_v31  ;;  %4882 = vst.msk [vmem:[#allocation3 + $0x122] sm:$0xff] %vm3214_vm3, %v4814_v10  ;;  %v4816_v40 = vmax.f32 %v4767_v12, %v4799_v11  ;;  %v4817_v50 = vmax.f32 %v4769_v15, %v4801_v45  ;;  %v4938_v34 = vld [vmem:[#allocation3 + $0x42] sm:$0xff] }
 0x73d   :  { %v4913_v51 = vld [vmem:[#allocation3 + $0x31] sm:$0xff]  ;;  %5132 = vrot.lane.b32.xlu1 %v4937_v33, %s8722_s17  ;;  %4883 = vst.msk [vmem:[#allocation3 + $0x132] sm:$0xff] %vm3214_vm3, %v4815_v1  ;;  %v4914_v23 = vld [vmem:[#allocation3 + $0x41] sm:$0xff] }
 0x73e   :  { %5036 = vrot.lane.b32.xlu0 %v4913_v51, %s8721_s14  ;;  %4884 = vst.msk [vmem:[#allocation3 + $0x142] sm:$0xff] %vm3214_vm3, %v4816_v40  ;;  %4885 = vst.msk [vmem:[#allocation3 + $0x152] sm:$0xff] %vm3214_vm3, %v4817_v50  ;;  %v4985_v2 = vld [vmem:[#allocation3 + $0x34] sm:$0xff]  ;;  %v4986_v37 = vld [vmem:[#allocation3 + $0x44] sm:$0xff] }
 0x73f   :  { %v4961_v27 = vld [vmem:[#allocation3 + $0x33] sm:$0xff]  ;;  %v4962_v56 = vld [vmem:[#allocation3 + $0x43] sm:$0xff] }
 0x740   :  { %v4939_v48 = vld [vmem:[#allocation3 + $0x52] sm:$0xff]  ;;  %v4940_v61 = vld [vmem:[#allocation3 + $0x62] sm:$0xff] }
 0x741   :  { %5324 = vrot.lane.b32.xlu1 %v4985_v2, %s8724_s26  ;;  %v4915_v25 = vld [vmem:[#allocation3 + $0x51] sm:$0xff]  ;;  %v4916_v5 = vld [vmem:[#allocation3 + $0x61] sm:$0xff] }
 0x742   :  { %5228 = vrot.lane.b32.xlu0 %v4961_v27, %s8723_s11  ;;  %v4987_v3 = vld [vmem:[#allocation3 + $0x54] sm:$0xff]  ;;  %v4988_v63 = vld [vmem:[#allocation3 + $0x64] sm:$0xff] }
 0x743   :  { %v4963_v47 = vld [vmem:[#allocation3 + $0x53] sm:$0xff]  ;;  %v4964_v19 = vld [vmem:[#allocation3 + $0x63] sm:$0xff] }
 0x744   :  { %v4941_v16 = vld [vmem:[#allocation3 + $0x72] sm:$0xff]  ;;  %v4942_v4 = vld [vmem:[#allocation3 + $0x82] sm:$0xff] }
 0x745   :  { %5134 = vrot.lane.b32.xlu1 %v4938_v34, %s8722_s17  ;;  %v4917_v42 = vld [vmem:[#allocation3 + $0x71] sm:$0xff]  ;;  %v4918_v38 = vld [vmem:[#allocation3 + $0x81] sm:$0xff] }
 0x746   :  { %5038 = vrot.lane.b32.xlu0 %v4914_v23, %s8721_s14  ;;  %v4989_v57 = vld [vmem:[#allocation3 + $0x74] sm:$0xff]  ;;  %v4990_v30 = vld [vmem:[#allocation3 + $0x84] sm:$0xff] }
 0x747   :  { %v4965_v53 = vld [vmem:[#allocation3 + $0x73] sm:$0xff]  ;;  %v4966_v18 = vld [vmem:[#allocation3 + $0x83] sm:$0xff] }
 0x748   :  { %v4943_v55 = vld [vmem:[#allocation3 + $0x92] sm:$0xff]  ;;  %v4948_v44 = vld [vmem:[#allocation3 + $0xe2] sm:$0xff] }
 0x749   :  { %5326 = vrot.lane.b32.xlu1 %v4986_v37, %s8724_s26  ;;  %v4919_v7 = vld [vmem:[#allocation3 + $0x91] sm:$0xff]  ;;  %v4924_v14 = vld [vmem:[#allocation3 + $0xe1] sm:$0xff] }
 0x74a   :  { %5230 = vrot.lane.b32.xlu0 %v4962_v56, %s8723_s11  ;;  %v4991_v9 = vld [vmem:[#allocation3 + $0x94] sm:$0xff]  ;;  %v4996_v58 = vld [vmem:[#allocation3 + $0xe4] sm:$0xff] }
 0x74b   :  { %v4947_v62 = vld [vmem:[#allocation3 + $0xd2] sm:$0xff]  ;;  %v4972_v21 = vld [vmem:[#allocation3 + $0xe3] sm:$0xff] }
 0x74c   :  { %v4923_v17 = vld [vmem:[#allocation3 + $0xd1] sm:$0xff]  ;;  %v8375_v41 = vpack.i.bf16 %v4948_v44, %v4947_v62  ;;  %v4950_v26 = vld [vmem:[#allocation3 + $0x102] sm:$0xff] }
 0x74d   :  { %5136 = vrot.lane.b32.xlu1 %v4939_v48, %s8722_s17  ;;  %v4967_v43 = vld [vmem:[#allocation3 + $0x93] sm:$0xff]  ;;  %v8370_v49 = vpack.i.bf16 %v4924_v14, %v4923_v17  ;;  %v4926_v22 = vld [vmem:[#allocation3 + $0x101] sm:$0xff] }
 0x74e   :  { %5040 = vrot.lane.b32.xlu0 %v4915_v25, %s8721_s14  ;;  %v4995_v59 = vld [vmem:[#allocation3 + $0xd4] sm:$0xff]  ;;  %v4998_v0 = vld [vmem:[#allocation3 + $0x104] sm:$0xff] }
 0x74f   :  { %v4971_v60 = vld [vmem:[#allocation3 + $0xd3] sm:$0xff]  ;;  %v8385_v24 = vpack.i.bf16 %v4996_v58, %v4995_v59  ;;  %v4974_v52 = vld [vmem:[#allocation3 + $0x103] sm:$0xff] }
 0x750   :  { %v8380_v35 = vpack.i.bf16 %v4972_v21, %v4971_v60  ;;  %v4949_v20 = vld [vmem:[#allocation3 + $0xf2] sm:$0xff]  ;;  %v4952_v46 = vld [vmem:[#allocation3 + $0x122] sm:$0xff] }
 0x751   :  { %5328 = vrot.lane.b32.xlu1 %v4987_v3, %s8724_s26  ;;  %v4925_v13 = vld [vmem:[#allocation3 + $0xf1] sm:$0xff]  ;;  %v4928_v31 = vld [vmem:[#allocation3 + $0x121] sm:$0xff] }
 0x752   :  { %5232 = vrot.lane.b32.xlu0 %v4963_v47, %s8723_s11  ;;  %v4997_v8 = vld [vmem:[#allocation3 + $0xf4] sm:$0xff]  ;;  %v5000_v1 = vld [vmem:[#allocation3 + $0x124] sm:$0xff] }
 0x753   :  { %v4973_v39 = vld [vmem:[#allocation3 + $0xf3] sm:$0xff]  ;;  %v4976_v11 = vld [vmem:[#allocation3 + $0x123] sm:$0xff] }
 0x754   :  { %v4951_v54 = vld [vmem:[#allocation3 + $0x112] sm:$0xff]  ;;  %v5795_v15 = vld [vmem:[%s15235_s4 + $0xe8] sm:$0xff]  ;;  %v5794_v33 = vld [vmem:[%s15235_s4 + $0xe0] sm:$0xff] }
 0x755   :  { %5138 = vrot.lane.b32.xlu1 %v4940_v61, %s8722_s17  ;;  %v4927_v29 = vld [vmem:[#allocation3 + $0x111] sm:$0xff]  ;;  %v5779_v45 = vld [vmem:[%s15235_s4 + $0x68] sm:$0xff]  ;;  %v5778_v50 = vld [vmem:[%s15235_s4 + $0x60] sm:$0xff] }
 0x756   :  { %5042 = vrot.lane.b32.xlu0 %v4916_v5, %s8721_s14  ;;  %v4999_v32 = vld [vmem:[#allocation3 + $0x114] sm:$0xff]  ;;  %v4910_v48 = vld [vmem:[#allocation3 + $0x1] sm:$0xff] }
 0x757   :  { %v4975_v36 = vld [vmem:[#allocation3 + $0x113] sm:$0xff]  ;;  %v4922_v25 = vld [vmem:[#allocation3 + $0xc1] sm:$0xff] }
 0x758   :  { %v5797_v10 = vld [vmem:[%s15235_s4 + $0xf8] sm:$0xff]  ;;  %v5796_v28 = vld [vmem:[%s15235_s4 + $0xf0] sm:$0xff]  ;;  %v5791_v61 = vld [vmem:[%s15235_s4 + $0xc8] sm:$0xff] }
 0x759   :  { %5330 = vrot.lane.b32.xlu1 %v4988_v63, %s8724_s26  ;;  %v5781_v6 = vld [vmem:[%s15235_s4 + $0x78] sm:$0xff]  ;;  %8079 = vmatprep.subr.mxu1 %v5797_v10  ;;  %v5780_v12 = vld [vmem:[%s15235_s4 + $0x70] sm:$0xff]  ;;  %v4954_v5 = vld [vmem:[#allocation3 + $0x142] sm:$0xff] }
 0x75a   :  { %5234 = vrot.lane.b32.xlu0 %v4964_v19, %s8723_s11  ;;  %8080 = vmatpush3.msra.mxu1 %v5781_v6  ;;  %v4953_v51 = vld [vmem:[#allocation3 + $0x132] sm:$0xff]  ;;  %v4930_v63 = vld [vmem:[#allocation3 + $0x141] sm:$0xff] }
 0x75b   :  { %8081 = vmatprep.subr.mxu1 %v5796_v28  ;;  %v4929_v40 = vld [vmem:[#allocation3 + $0x131] sm:$0xff]  ;;  %v5775_v19 = vld [vmem:[%s15235_s4 + $0x48] sm:$0xff]  ;;  %v4888_v62 = vld [vmem:[#allocation3 + $0x20] sm:$0xff] }
 0x75c   :  { %8082 = vmatpush3.msra.mxu1 %v5780_v12  ;;  %v5793_v2 = vld [vmem:[%s15235_s4 + $0xd8] sm:$0xff]  ;;  %v5792_v37 = vld [vmem:[%s15235_s4 + $0xd0] sm:$0xff]  ;;  %v4958_v10 = vld [vmem:[#allocation3 + $0x3] sm:$0xff] }
 0x75d   :  { %5140 = vrot.lane.b32.xlu1 %v4941_v16, %s8722_s17  ;;  %8083 = vmatprep.subr.mxu1 %v5795_v15  ;;  %v5777_v27 = vld [vmem:[%s15235_s4 + $0x58] sm:$0xff]  ;;  %v5776_v56 = vld [vmem:[%s15235_s4 + $0x50] sm:$0xff]  ;;  %v8390_v16 = vpack.i.bf16 %v4922_v25, %v4910_v48  ;;  %v5783_v25 = vld [vmem:[%s15235_s4 + $0x88] sm:$0xff] }
 0x75e   :  { %5044 = vrot.lane.b32.xlu0 %v4917_v42, %s8721_s14  ;;  %8084 = vmatpush3.msra.mxu1 %v5779_v45  ;;  %v5001_v34 = vld [vmem:[#allocation3 + $0x134] sm:$0xff]  ;;  %v5790_v42 = vld [vmem:[%s15235_s4 + $0xc0] sm:$0xff] }
 0x75f   :  { %8085 = vmatprep.subr.mxu1 %v5794_v33  ;;  %v4977_v23 = vld [vmem:[#allocation3 + $0x133] sm:$0xff] }
 0x760   :  { %8086 = vmatpush3.msra.mxu1 %v5778_v50  ;;  %v5788_v17 = vld [vmem:[%s15235_s4 + $0xb0] sm:$0xff]  ;;  %v5785_v12 = vld [vmem:[%s15235_s4 + $0x98] sm:$0xff]  ;;  %v4982_v50 = vld [vmem:[#allocation3 + $0x4] sm:$0xff] }
 0x761   :  { %5332 = vrot.lane.b32.xlu1 %v4989_v57, %s8724_s26  ;;  %8087 = vmatprep.subr.mxu1 %v5793_v2  ;;  %v5774_v57 = vld [vmem:[%s15235_s4 + $0x40] sm:$0xff]  ;;  %v4931_v14 = vld [vmem:[#allocation3 + $0x151] sm:$0xff] }
 0x762   :  { %5236 = vrot.lane.b32.xlu0 %v4965_v53, %s8723_s11  ;;  %8088 = vmatpush3.msra.mxu1 %v5777_v27  ;;  %v4978_v53 = vld [vmem:[#allocation3 + $0x143] sm:$0xff]  ;;  %v5769_v33 = vld [vmem:[%s15235_s4 + $0x18] sm:$0xff] }
 0x763   :  { %8089 = vmatprep.subr.mxu1 %v5792_v37  ;;  %v4890_v27 = vld [vmem:[#allocation3 + $0x40] sm:$0xff]  ;;  %v5768_v37 = vld [vmem:[%s15235_s4 + $0x10] sm:$0xff] }
 0x764   :  { %8090 = vmatpush3.msra.mxu1 %v5776_v56 }
 0x765   :  { %5142 = vrot.lane.b32.xlu1 %v4942_v4, %s8722_s17  ;;  %8091 = vmatprep.subr.mxu1 %v5791_v61  ;;  %v5789_v4 = vld [vmem:[%s15235_s4 + $0xb8] sm:$0xff] }
 0x766   :  { %5046 = vrot.lane.b32.xlu0 %v4918_v38, %s8721_s14  ;;  %8092 = vmatpush3.msra.mxu1 %v5775_v19  ;;  %v5782_v19 = vld [vmem:[%s15235_s4 + $0x80] sm:$0xff] }
 0x767   :  { %8093 = vmatprep.subr.mxu1 %v5790_v42  ;;  %v5003_v42 = vld [vmem:[#allocation3 + $0x154] sm:$0xff] }
 0x768   :  { %8094 = vmatpush3.msra.mxu1 %v5774_v57  ;;  %v5766_v57 = vld [vmem:[%s15235_s4] sm:$0xff] }
 0x769   :  { %5334 = vrot.lane.b32.xlu1 %v4990_v30, %s8724_s26  ;;  %8095 = vmatprep.subr.mxu1 %v5789_v4 }
 0x76a   :  { %5238 = vrot.lane.b32.xlu0 %v4966_v18, %s8723_s11 }
 0x76d   :  { %5144 = vrot.lane.b32.xlu1 %v4943_v55, %s8722_s17 }
 0x76e   :  { %5048 = vrot.lane.b32.xlu0 %v4919_v7, %s8721_s14  ;;  %v5773_v7 = vld [vmem:[%s15235_s4 + $0x38] sm:$0xff] }
 0x76f   :  { %8096 = vmatpush3.msra.mxu1 %v5773_v7  ;;  %v15798_v7 = vmov 0.0  }
 0x770   :  { %8097 = vmatprep.subr.mxu1 %v5788_v17 }
 0x771   :  { %5336 = vrot.lane.b32.xlu1 %v4991_v9, %s8724_s26  ;;  %v4887_v9 = vld [vmem:[#allocation3 + $0x10] sm:$0xff] }
 0x772   :  { %5240 = vrot.lane.b32.xlu0 %v4967_v43, %s8723_s11 }
 0x775   :  { %8376 = vrot.lane.b32.xlu1 %v8375_v41, %s8722_s17  ;;  %v5002_v41 = vld [vmem:[#allocation3 + $0x144] sm:$0xff] }
 0x776   :  { %8371 = vrot.lane.b32.xlu0 %v8370_v49, %s8721_s14  ;;  %v5772_v49 = vld [vmem:[%s15235_s4 + $0x30] sm:$0xff] }
 0x777   :  { %8098 = vmatpush3.msra.mxu1 %v5772_v49  ;;  %v4892_v49 = vld [vmem:[#allocation3 + $0x60] sm:$0xff] }
 0x779   :  { %8386 = vrot.lane.b32.xlu1 %v8385_v24, %s8724_s26  ;;  %v5787_v24 = vld [vmem:[%s15235_s4 + $0xa8] sm:$0xff] }
 0x77a   :  { %8381 = vrot.lane.b32.xlu0 %v8380_v35, %s8723_s11  ;;  %v4934_v35 = vld [vmem:[#allocation3 + $0x2] sm:$0xff]  ;;  %8099 = vmatprep.subr.mxu1 %v5787_v24 }
 0x77d   :  { %5156 = vrot.lane.b32.xlu1 %v4949_v20, %s8722_s17 }
 0x77e   :  { %5060 = vrot.lane.b32.xlu0 %v4925_v13, %s8721_s14 }
 0x781   :  { %5348 = vrot.lane.b32.xlu1 %v4997_v8, %s8724_s26  ;;  %v5771_v8 = vld [vmem:[%s15235_s4 + $0x28] sm:$0xff] }
 0x782   :  { %5252 = vrot.lane.b32.xlu0 %v4973_v39, %s8723_s11  ;;  %8100 = vmatpush3.msra.mxu1 %v5771_v8 }
 0x785   :  { %5158 = vrot.lane.b32.xlu1 %v4950_v26, %s8722_s17 }
 0x786   :  { %5062 = vrot.lane.b32.xlu0 %v4926_v22, %s8721_s14 }
 0x789   :  { %5350 = vrot.lane.b32.xlu1 %v4998_v0, %s8724_s26 }
 0x78a   :  { %5254 = vrot.lane.b32.xlu0 %v4974_v52, %s8723_s11  ;;  %v4889_v52 = vld [vmem:[#allocation3 + $0x30] sm:$0xff] }
 0x78d   :  { %5160 = vrot.lane.b32.xlu1 %v4951_v54, %s8722_s17  ;;  %v4955_v54 = vld [vmem:[#allocation3 + $0x152] sm:$0xff] }
 0x78e   :  { %5064 = vrot.lane.b32.xlu0 %v4927_v29, %s8721_s14  ;;  %v5786_v29 = vld [vmem:[%s15235_s4 + $0xa0] sm:$0xff] }
 0x78f   :  { %8101 = vmatprep.subr.mxu1 %v5786_v29 }
 0x791   :  { %5352 = vrot.lane.b32.xlu1 %v4999_v32, %s8724_s26 }
 0x792   :  { %5256 = vrot.lane.b32.xlu0 %v4975_v36, %s8723_s11 }
 0x793   :  { %v8357_v3 = vpop.permute.xlu1 %8356 }
 0x794   :  { %v8352_v47 = vpop.permute.xlu0 %8351  ;;  %v8359_v43 = vunpack.i.h.bf16 %v8357_v3  ;;  %v8358_v44 = vunpack.i.l.bf16 %v8357_v3  ;;  %v5767_v3 = vld [vmem:[%s15235_s4 + $0x8] sm:$0xff] }
 0x795   :  { %5162 = vrot.lane.b32.xlu1 %v4952_v46, %s8722_s17  ;;  %v8354_v38 = vunpack.i.h.bf16 %v8352_v47  ;;  %v8353_v30 = vunpack.i.l.bf16 %v8352_v47 }
 0x796   :  { %5066 = vrot.lane.b32.xlu0 %v4928_v31, %s8721_s14  ;;  %v5770_v31 = vld [vmem:[%s15235_s4 + $0x20] sm:$0xff] }
 0x797   :  { %v8367_v18 = vpop.permute.xlu1 %8366  ;;  %v5391_v59 = vsel %vm3214_vm3, %v4887_v9, %v8353_v30  ;;  %v5392_v58 = vsel %vm3214_vm3, %v4888_v62, %v8354_v38  ;;  %8102 = vmatpush3.msra.mxu1 %v5770_v31  ;;  %v4891_v30 = vld [vmem:[#allocation3 + $0x50] sm:$0xff]  ;;  %v4894_v31 = vld [vmem:[#allocation3 + $0x80] sm:$0xff] }
 0x798   :  { %v8369_v39 = vunpack.i.h.bf16 %v8367_v18  ;;  %v8368_v26 = vunpack.i.l.bf16 %v8367_v18  ;;  %v5415_v22 = vsel %vm3279_vm8, %v5391_v59, %v8358_v44  ;;  %v5416_v0 = vsel %vm3279_vm8, %v5392_v58, %v8359_v43  ;;  %8103 = vmatprep.subr.mxu1 %v5785_v12 }
 0x799   :  { %5354 = vrot.lane.b32.xlu1 %v5000_v1, %s8724_s26  ;;  %8104 = vmatpush3.msra.mxu1 %v5769_v33 }
 0x79a   :  { %5258 = vrot.lane.b32.xlu0 %v4976_v11, %s8723_s11  ;;  %v4979_v11 = vld [vmem:[#allocation3 + $0x153] sm:$0xff] }
 0x79d   :  { %5164 = vrot.lane.b32.xlu1 %v4953_v51, %s8722_s17 }
 0x79e   :  { %5068 = vrot.lane.b32.xlu0 %v4929_v40, %s8721_s14  ;;  %v5784_v40 = vld [vmem:[%s15235_s4 + $0x90] sm:$0xff] }
 0x79f   :  { %8105 = vmatprep.subr.mxu1 %v5784_v40 }
 0x7a0   :  { %8106 = vmatpush3.msra.mxu1 %v5768_v37 }
 0x7a1   :  { %5356 = vrot.lane.b32.xlu1 %v5001_v34, %s8724_s26  ;;  %v8362_v55 = vpop.permute.xlu0 %8361  ;;  %8107 = vmatprep.subr.mxu1 %v5783_v25 }
 0x7a2   :  { %5260 = vrot.lane.b32.xlu0 %v4977_v23, %s8723_s11  ;;  %v8364_v60 = vunpack.i.h.bf16 %v8362_v55  ;;  %v8363_v21 = vunpack.i.l.bf16 %v8362_v55  ;;  %8108 = vmatpush3.msra.mxu1 %v5767_v3 }
 0x7a3   :  { %8109 = vmatprep.subr.mxu1 %v5782_v19 }
 0x7a4   :  { %v5439_v32 = vsel %vm3344_vm9, %v5415_v22, %v8363_v21  ;;  %v5440_v36 = vsel %vm3344_vm9, %v5416_v0, %v8364_v60  ;;  %8110 = vmatpush3.msra.mxu1 %v5766_v57  ;;  %v4921_v57 = vld [vmem:[#allocation3 + $0xb1] sm:$0xff] }
 0x7a5   :  { %5166 = vrot.lane.b32.xlu1 %v4954_v5, %s8722_s17  ;;  %v13472_v15 = vsel %vm3409_vm10, %v5439_v32, %v8368_v26  ;;  %v13475_v45 = vsel %vm3409_vm10, %v5440_v36, %v8369_v39  ;;  %6026 = vmatprep.subr.mxu1 %v15798_v7  ;;  %v4893_v39 = vld [vmem:[#allocation3 + $0x70] sm:$0xff] }
 0x7a6   :  { %5070 = vrot.lane.b32.xlu0 %v4930_v63, %s8721_s14  ;;  %v8395_v23 = vpack.i.bf16 %v13475_v45, %v13472_v15 }
 0x7a9   :  { %8391 = vrot.lane.b32.xlu1 %v8390_v16, %s8721_s14 }
 0x7aa   :  { %5262 = vrot.lane.b32.xlu0 %v4978_v53, %s8723_s11 }
 0x7ad   :  { %5072 = vrot.lane.b32.xlu1 %v4931_v14, %s8721_s14 }
 0x7ae   :  { %5358 = vrot.lane.b32.xlu0 %v5002_v41, %s8724_s26 }
 0x7af   :  { %v5133_v20 = vpop.permute.xlu1 %5132 }
 0x7b0   :  { %v5037_v13 = vpop.permute.xlu0 %5036 }
 0x7b1   :  { %v5393_v46 = vsel %vm3214_vm3, %v4889_v52, %v5037_v13  ;;  %5168 = vrot.lane.b32.xlu1 %v4955_v54, %s8722_s17 }
 0x7b2   :  { %5126 = vrot.lane.b32.xlu0 %v4934_v35, %s8722_s17  ;;  %v5417_v1 = vsel %vm3279_vm8, %v5393_v46, %v5133_v20 }
 0x7b3   :  { %v5325_v6 = vpop.permute.xlu1 %5324 }
 0x7b4   :  { %v5229_v28 = vpop.permute.xlu0 %5228 }
 0x7b5   :  { %v5441_v51 = vsel %vm3344_vm9, %v5417_v1, %v5229_v28  ;;  %5264 = vrot.lane.b32.xlu1 %v4979_v11, %s8723_s11 }
 0x7b6   :  { %5222 = vrot.lane.b32.xlu0 %v4958_v10, %s8723_s11  ;;  %v13492_v56 = vsel %vm3409_vm10, %v5441_v51, %v5325_v6 }
 0x7b7   :  { %v5135_v2 = vpop.permute.xlu1 %5134  ;;  %v8400_v63 = vpack.i.bf16 %v13492_v56, %v13475_v45 }
 0x7b8   :  { %v5039_v34 = vpop.permute.xlu0 %5038 }
 0x7b9   :  { %v5394_v48 = vsel %vm3214_vm3, %v4890_v27, %v5039_v34  ;;  %8396 = vrot.lane.b32.xlu1 %v8395_v23, %s8725_s23  ;;  %v4920_v34 = vld [vmem:[#allocation3 + $0xa1] sm:$0xff] }
 0x7ba   :  { %5318 = vrot.lane.b32.xlu0 %v4982_v50, %s8724_s26  ;;  %v5418_v61 = vsel %vm3279_vm8, %v5394_v48, %v5135_v2  ;;  %v4895_v50 = vld [vmem:[#allocation3 + $0x90] sm:$0xff] }
 0x7bb   :  { %v5327_v47 = vpop.permute.xlu1 %5326 }
 0x7bc   :  { %v5231_v5 = vpop.permute.xlu0 %5230 }
 0x7bd   :  { %v5442_v16 = vsel %vm3344_vm9, %v5418_v61, %v5231_v5  ;;  %5360 = vrot.lane.b32.xlu1 %v5003_v42, %s8724_s26  ;;  %v4899_v42 = vld [vmem:[#allocation3 + $0xd0] sm:$0xff] }
 0x7be   :  { %v13514_v53 = vsel %vm3409_vm10, %v5442_v16, %v5327_v47  ;;  %8401 = vrot.lane.b32.xlu0 %v8400_v63, %s8726_s13  ;;  %v4968_v47 = vld [vmem:[#allocation3 + $0xa3] sm:$0xff] }
 0x7bf   :  { %v8405_v4 = vpack.i.bf16 %v13514_v53, %v13492_v56  ;;  %v5137_v38 = vpop.permute.xlu1 %5136 }
 0x7c0   :  { %v5041_v18 = vpop.permute.xlu0 %5040 }
 0x7c1   :  { %v5395_v55 = vsel %vm3214_vm3, %v4891_v30, %v5041_v18  ;;  %v4900_v18 = vld [vmem:[#allocation3 + $0xe0] sm:$0xff] }
 0x7c2   :  { %8406 = vrot.lane.b32.xlu0 %v8405_v4, %s8725_s23  ;;  %v5419_v62 = vsel %vm3279_vm8, %v5395_v55, %v5137_v38  ;;  %v4944_v4 = vld [vmem:[#allocation3 + $0xa2] sm:$0xff] }
 0x7c3   :  { %v5329_v9 = vpop.permute.xlu1 %5328 }
 0x7c4   :  { %v5233_v17 = vpop.permute.xlu0 %5232 }
 0x7c5   :  { %v5443_v43 = vsel %vm3344_vm9, %v5419_v62, %v5233_v17 }
 0x7c6   :  { %v13526_v44 = vsel %vm3409_vm10, %v5443_v43, %v5329_v9 }
 0x7c7   :  { %v8410_v14 = vpack.i.bf16 %v13526_v44, %v13514_v53  ;;  %v5139_v41 = vpop.permute.xlu1 %5138 }
 0x7c8   :  { %v5043_v59 = vpop.permute.xlu0 %5042 }
 0x7c9   :  { %v5396_v58 = vsel %vm3214_vm3, %v4892_v49, %v5043_v59  ;;  %8411 = vrot.lane.b32.xlu1 %v8410_v14, %s8726_s13  ;;  %v4992_v49 = vld [vmem:[#allocation3 + $0xa4] sm:$0xff] }
 0x7ca   :  { %v5420_v21 = vsel %vm3279_vm8, %v5396_v58, %v5139_v41  ;;  %v4945_v41 = vld [vmem:[#allocation3 + $0xb2] sm:$0xff] }
 0x7cb   :  { %v5331_v60 = vpop.permute.xlu1 %5330 }
 0x7cc   :  { %v5235_v24 = vpop.permute.xlu0 %5234 }
 0x7cd   :  { %v5444_v35 = vsel %vm3344_vm9, %v5420_v21, %v5235_v24 }
 0x7ce   :  { %v13535_v20 = vsel %vm3409_vm10, %v5444_v35, %v5331_v60 }
 0x7cf   :  { %v8415_v13 = vpack.i.bf16 %v13535_v20, %v13526_v44  ;;  %v5141_v8 = vpop.permute.xlu1 %5140 }
 0x7d0   :  { %v5045_v26 = vpop.permute.xlu0 %5044 }
 0x7d1   :  { %v5397_v22 = vsel %vm3214_vm3, %v4893_v39, %v5045_v26  ;;  %8416 = vrot.lane.b32.xlu0 %v8415_v13, %s8725_s23  ;;  %v4969_v39 = vld [vmem:[#allocation3 + $0xb3] sm:$0xff]  ;;  %v4946_v26 = vld [vmem:[#allocation3 + $0xc2] sm:$0xff] }
 0x7d2   :  { %v5421_v52 = vsel %vm3279_vm8, %v5397_v22, %v5141_v8  ;;  %v4901_v22 = vld [vmem:[#allocation3 + $0xf0] sm:$0xff] }
 0x7d3   :  { %v5333_v0 = vpop.permute.xlu1 %5332 }
 0x7d4   :  { %v5237_v54 = vpop.permute.xlu0 %5236 }
 0x7d5   :  { %v5445_v29 = vsel %vm3344_vm9, %v5421_v52, %v5237_v54 }
 0x7d6   :  { %v13544_v32 = vsel %vm3409_vm10, %v5445_v29, %v5333_v0 }
 0x7d7   :  { %v8420_v36 = vpack.i.bf16 %v13544_v32, %v13535_v20  ;;  %v5143_v46 = vpop.permute.xlu1 %5142 }
 0x7d8   :  { %v5047_v10 = vpop.permute.xlu0 %5046 }
 0x7d9   :  { %v5398_v6 = vsel %vm3214_vm3, %v4894_v31, %v5047_v10  ;;  %8421 = vrot.lane.b32.xlu1 %v8420_v36, %s8726_s13 }
 0x7da   :  { %v5422_v12 = vsel %vm3279_vm8, %v5398_v6, %v5143_v46  ;;  %v4970_v46 = vld [vmem:[#allocation3 + $0xc3] sm:$0xff] }
 0x7db   :  { %v5335_v28 = vpop.permute.xlu1 %5334 }
 0x7dc   :  { %v5239_v1 = vpop.permute.xlu0 %5238 }
 0x7dd   :  { %v5446_v11 = vsel %vm3344_vm9, %v5422_v12, %v5239_v1 }
 0x7de   :  { %v13553_v33 = vsel %vm3409_vm10, %v5446_v11, %v5335_v28  ;;  %v4902_v28 = vld [vmem:[#allocation3 + $0x100] sm:$0xff] }
 0x7df   :  { %v8425_v51 = vpack.i.bf16 %v13553_v33, %v13544_v32  ;;  %v5145_v40 = vpop.permute.xlu1 %5144 }
 0x7e0   :  { %v5049_v2 = vpop.permute.xlu0 %5048 }
 0x7e1   :  { %v5399_v27 = vsel %vm3214_vm3, %v4895_v50, %v5049_v2  ;;  %8426 = vrot.lane.b32.xlu0 %v8425_v51, %s8725_s23  ;;  %v4993_v51 = vld [vmem:[#allocation3 + $0xb4] sm:$0xff] }
 0x7e2   :  { %v5423_v37 = vsel %vm3279_vm8, %v5399_v27, %v5145_v40  ;;  %v4994_v40 = vld [vmem:[#allocation3 + $0xc4] sm:$0xff] }
 0x7e3   :  { %v5337_v23 = vpop.permute.xlu1 %5336 }
 0x7e4   :  { %v5241_v48 = vpop.permute.xlu0 %5240 }
 0x7e5   :  { %v5447_v25 = vsel %vm3344_vm9, %v5423_v37, %v5241_v48  ;;  %5050 = vrot.lane.b32.xlu0 %v4920_v34, %s8721_s14 }
 0x7e6   :  { %v13563_v3 = vsel %vm3409_vm10, %v5447_v25, %v5337_v23 }
 0x7e7   :  { %v8430_v61 = vpack.i.bf16 %v13563_v3, %v13553_v33  ;;  %v8377_v5 = vpop.permute.xlu1 %8376 }
 0x7e8   :  { %v8372_v63 = vpop.permute.xlu0 %8371  ;;  %v8379_v38 = vunpack.i.h.bf16 %v8377_v5  ;;  %v8378_v30 = vunpack.i.l.bf16 %v8377_v5 }
 0x7e9   :  { %v8374_v19 = vunpack.i.h.bf16 %v8372_v63  ;;  %v8373_v16 = vunpack.i.l.bf16 %v8372_v63  ;;  %5242 = vrot.lane.b32.xlu0 %v4968_v47, %s8723_s11  ;;  %8431 = vrot.lane.b32.xlu1 %v8430_v61, %s8726_s13  ;;  %v4903_v47 = vld [vmem:[#allocation3 + $0x110] sm:$0xff] }
 0x7eb   :  { %v8387_v55 = vpop.permute.xlu1 %8386  ;;  %v5404_v62 = vsel %vm3214_vm3, %v4900_v18, %v8374_v19  ;;  %v5403_v17 = vsel %vm3214_vm3, %v4899_v42, %v8373_v16  ;;  %v4904_v18 = vld [vmem:[#allocation3 + $0x120] sm:$0xff] }
 0x7ec   :  { %v8382_v9 = vpop.permute.xlu0 %8381  ;;  %v8389_v59 = vunpack.i.h.bf16 %v8387_v55  ;;  %v8388_v58 = vunpack.i.l.bf16 %v8387_v55  ;;  %v5427_v60 = vsel %vm3279_vm8, %v5403_v17, %v8378_v30  ;;  %v5428_v21 = vsel %vm3279_vm8, %v5404_v62, %v8379_v38 }
 0x7ed   :  { %v8384_v43 = vunpack.i.h.bf16 %v8382_v9  ;;  %v8383_v14 = vunpack.i.l.bf16 %v8382_v9  ;;  %5052 = vrot.lane.b32.xlu0 %v4921_v57, %s8721_s14  ;;  %5146 = vrot.lane.b32.xlu1 %v4944_v4, %s8722_s17 }
 0x7ef   :  { %v5157_v24 = vpop.permute.xlu1 %5156  ;;  %v5451_v13 = vsel %vm3344_vm9, %v5427_v60, %v8383_v14  ;;  %v5452_v8 = vsel %vm3344_vm9, %v5428_v21, %v8384_v43 }
 0x7f0   :  { %v5061_v35 = vpop.permute.xlu0 %5060  ;;  %v13580_v54 = vsel %vm3409_vm10, %v5451_v13, %v8388_v58  ;;  %v13583_v29 = vsel %vm3409_vm10, %v5452_v8, %v8389_v59  ;;  %v4905_v58 = vld [vmem:[#allocation3 + $0x130] sm:$0xff] }
 0x7f1   :  { %5148 = vrot.lane.b32.xlu0 %v4945_v41, %s8722_s17  ;;  %5338 = vrot.lane.b32.xlu1 %v4992_v49, %s8724_s26  ;;  %v5405_v36 = vsel %vm3214_vm3, %v4901_v22, %v5061_v35  ;;  %v8435_v31 = vpack.i.bf16 %v13583_v29, %v13580_v54 }
 0x7f2   :  { %v5429_v10 = vsel %vm3279_vm8, %v5405_v36, %v5157_v24 }
 0x7f3   :  { %v5349_v0 = vpop.permute.xlu1 %5348 }
 0x7f4   :  { %v5253_v52 = vpop.permute.xlu0 %5252 }
 0x7f5   :  { %5244 = vrot.lane.b32.xlu0 %v4969_v39, %s8723_s11  ;;  %5150 = vrot.lane.b32.xlu1 %v4946_v26, %s8722_s17  ;;  %v5453_v1 = vsel %vm3344_vm9, %v5429_v10, %v5253_v52  ;;  %v4906_v52 = vld [vmem:[#allocation3 + $0x140] sm:$0xff] }
 0x7f6   :  { %v13596_v50 = vsel %vm3409_vm10, %v5453_v1, %v5349_v0 }
 0x7f7   :  { %v5159_v6 = vpop.permute.xlu1 %5158  ;;  %v8440_v37 = vpack.i.bf16 %v13596_v50, %v13583_v29 }
 0x7f8   :  { %v5063_v12 = vpop.permute.xlu0 %5062 }
 0x7f9   :  { %v5406_v11 = vsel %vm3214_vm3, %v4902_v28, %v5063_v12  ;;  %8436 = vrot.lane.b32.xlu0 %v8435_v31, %s8725_s23  ;;  %5246 = vrot.lane.b32.xlu1 %v4970_v46, %s8723_s11 }
 0x7fa   :  { %v5430_v27 = vsel %vm3279_vm8, %v5406_v11, %v5159_v6 }
 0x7fb   :  { %v5351_v2 = vpop.permute.xlu1 %5350 }
 0x7fc   :  { %v5255_v34 = vpop.permute.xlu0 %5254 }
 0x7fd   :  { %v5454_v23 = vsel %vm3344_vm9, %v5430_v27, %v5255_v34  ;;  %5340 = vrot.lane.b32.xlu0 %v4993_v51, %s8724_s26  ;;  %5342 = vrot.lane.b32.xlu1 %v4994_v40, %s8724_s26 }
 0x7fe   :  { %v13605_v48 = vsel %vm3409_vm10, %v5454_v23, %v5351_v2  ;;  %v4932_v2 = vld [vmem:[#allocation3 + $0x161] sm:$0xff] }
 0x7ff   :  { %v5161_v25 = vpop.permute.xlu1 %5160  ;;  %v8445_v63 = vpack.i.bf16 %v13605_v48, %v13596_v50  ;;  %v4980_v23 = vld [vmem:[#allocation3 + $0x163] sm:$0xff] }
 0x800   :  { %v5065_v61 = vpop.permute.xlu0 %5064 }
 0x801   :  { %v5407_v5 = vsel %vm3214_vm3, %v4903_v47, %v5065_v61  ;;  %8441 = vrot.lane.b32.xlu1 %v8440_v37, %s8726_s13 }
 0x802   :  { %v5431_v16 = vsel %vm3279_vm8, %v5407_v5, %v5161_v25  ;;  %v4886_v25 = vld [vmem:[#allocation3] sm:$0xff]  ;;  %v4907_v5 = vld [vmem:[#allocation3 + $0x150] sm:$0xff] }
 0x803   :  { %v5353_v19 = vpop.permute.xlu1 %5352 }
 0x804   :  { %v5257_v42 = vpop.permute.xlu0 %5256 }
 0x805   :  { %v5455_v57 = vsel %vm3344_vm9, %v5431_v16, %v5257_v42  ;;  %8446 = vrot.lane.b32.xlu1 %v8445_v63, %s8725_s23  ;;  %v4933_v63 = vld [vmem:[#allocation3 + $0x171] sm:$0xff] }
 0x806   :  { %v13615_v4 = vsel %vm3409_vm10, %v5455_v57, %v5353_v19 }
 0x807   :  { %v8450_v38 = vpack.i.bf16 %v13615_v4, %v13605_v48  ;;  %v5163_v30 = vpop.permute.xlu1 %5162 }
 0x808   :  { %v5067_v55 = vpop.permute.xlu0 %5066 }
 0x809   :  { %v5408_v9 = vsel %vm3214_vm3, %v4904_v18, %v5067_v55  ;;  %8451 = vrot.lane.b32.xlu0 %v8450_v38, %s8726_s13 }
 0x80a   :  { %v5432_v17 = vsel %vm3279_vm8, %v5408_v9, %v5163_v30 }
 0x80b   :  { %v5355_v62 = vpop.permute.xlu1 %5354 }
 0x80c   :  { %v5259_v43 = vpop.permute.xlu0 %5258 }
 0x80d   :  { %v5456_v14 = vsel %vm3344_vm9, %v5432_v17, %v5259_v43  ;;  %v4981_v43 = vld [vmem:[#allocation3 + $0x173] sm:$0xff] }
 0x80e   :  { %v13624_v41 = vsel %vm3409_vm10, %v5456_v14, %v5355_v62 }
 0x80f   :  { %v8455_v49 = vpack.i.bf16 %v13624_v41, %v13615_v4  ;;  %v5165_v59 = vpop.permute.xlu1 %5164 }
 0x810   :  { %v5069_v60 = vpop.permute.xlu0 %5068 }
 0x811   :  { %v5409_v21 = vsel %vm3214_vm3, %v4905_v58, %v5069_v60  ;;  %8456 = vrot.lane.b32.xlu1 %v8455_v49, %s8725_s23 }
 0x812   :  { %v5433_v35 = vsel %vm3279_vm8, %v5409_v21, %v5165_v59  ;;  %v5813_v21 = vld [vmem:[%s15235_s4 + $0x178] sm:$0xff] }
 0x813   :  { %v5357_v24 = vpop.permute.xlu1 %5356 }
 0x814   :  { %v5261_v13 = vpop.permute.xlu0 %5260 }
 0x815   :  { %v5457_v8 = vsel %vm3344_vm9, %v5433_v35, %v5261_v13  ;;  %v4956_v35 = vld [vmem:[#allocation3 + $0x162] sm:$0xff] }
 0x816   :  { %v13633_v39 = vsel %vm3409_vm10, %v5457_v8, %v5357_v24  ;;  %v5812_v8 = vld [vmem:[%s15235_s4 + $0x170] sm:$0xff] }
 0x817   :  { %v8460_v26 = vpack.i.bf16 %v13633_v39, %v13624_v41  ;;  %v5167_v22 = vpop.permute.xlu1 %5166 }
 0x818   :  { %v5071_v0 = vpop.permute.xlu0 %5070 }
 0x819   :  { %8461 = vrot.lane.b32.xlu0 %v8460_v26, %s8726_s13  ;;  %v5410_v36 = vsel %vm3214_vm3, %v4906_v52, %v5071_v0  ;;  %v5004_v0 = vld [vmem:[#allocation3 + $0x164] sm:$0xff] }
 0x81a   :  { %v5434_v10 = vsel %vm3279_vm8, %v5410_v36, %v5167_v22  ;;  %v5811_v36 = vld [vmem:[%s15235_s4 + $0x168] sm:$0xff] }
 0x81b   :  { %v13639_v46 = vpop.permute.xlu1 %8391 }
 0x81c   :  { %v5263_v31 = vpop.permute.xlu0 %5262  ;;  %v8393_v37 = vunpack.i.l.bf16 %v13639_v46 }
 0x81d   :  { %v5458_v6 = vsel %vm3344_vm9, %v5434_v10, %v5263_v31 }
 0x81e   :  { %v5390_v42 = vsel %vm3214_vm3, %v4886_v25, %v8393_v37  ;;  %v5806_v25 = vld [vmem:[%s15235_s4 + $0x140] sm:$0xff] }
 0x81f   :  { %v5073_v28 = vpop.permute.xlu1 %5072 }
 0x820   :  { %v5359_v12 = vpop.permute.xlu0 %5358  ;;  %v5411_v19 = vsel %vm3214_vm3, %v4907_v5, %v5073_v28 }
 0x821   :  { %v13644_v1 = vsel %vm3409_vm10, %v5458_v6, %v5359_v12  ;;  %v4957_v6 = vld [vmem:[#allocation3 + $0x172] sm:$0xff] }
 0x822   :  { %v8465_v11 = vpack.i.bf16 %v13644_v1, %v13633_v39 }
 0x823   :  { %v5169_v51 = vpop.permute.xlu1 %5168 }
 0x824   :  { %v5127_v40 = vpop.permute.xlu0 %5126  ;;  %8466 = vrot.lane.b32.xlu1 %v8465_v11, %s8725_s23  ;;  %v5435_v16 = vsel %vm3279_vm8, %v5411_v19, %v5169_v51  ;;  %v5810_v11 = vld [vmem:[%s15235_s4 + $0x160] sm:$0xff] }
 0x825   :  { %v5414_v57 = vsel %vm3279_vm8, %v5390_v42, %v5127_v40 }
 0x827   :  { %v5265_v27 = vpop.permute.xlu1 %5264 }
 0x828   :  { %v5223_v34 = vpop.permute.xlu0 %5222  ;;  %5074 = vrot.lane.b32.xlu1 %v4932_v2, %s8721_s14  ;;  %v5459_v38 = vsel %vm3344_vm9, %v5435_v16, %v5265_v27  ;;  %v5809_v2 = vld [vmem:[%s15235_s4 + $0x158] sm:$0xff] }
 0x829   :  { %v5438_v55 = vsel %vm3344_vm9, %v5414_v57, %v5223_v34  ;;  %v5005_v27 = vld [vmem:[#allocation3 + $0x174] sm:$0xff] }
 0x82a   :  { %v5808_v34 = vld [vmem:[%s15235_s4 + $0x150] sm:$0xff]  ;;  %v5805_v16 = vld [vmem:[%s15235_s4 + $0x138] sm:$0xff] }
 0x82b   :  { %v8397_v61 = vpop.permute.xlu1 %8396 }
 0x82c   :  { %v5319_v47 = vpop.permute.xlu0 %5318  ;;  %5266 = vrot.lane.b32.xlu1 %v4980_v23, %s8723_s11  ;;  %v8398_v9 = vunpack.i.l.bf16 %v8397_v61  ;;  %v8399_v60 = vunpack.i.h.bf16 %v8397_v61  ;;  %v5807_v23 = vld [vmem:[%s15235_s4 + $0x148] sm:$0xff] }
 0x82d   :  { %v5462_v14 = vsel %vm3409_vm10, %v5438_v55, %v5319_v47  ;;  %v5803_v55 = vld [vmem:[%s15235_s4 + $0x128] sm:$0xff] }
 0x82e   :  { %v5700_v24 = vsel %vm3487_vm11, %v5462_v14, %v8398_v9  ;;  %v5701_v22 = vsel %vm3487_vm11, %v13472_v15, %v8399_v60  ;;  %v5801_v14 = vld [vmem:[%s15235_s4 + $0x118] sm:$0xff] }
 0x82f   :  { %v5361_v18 = vpop.permute.xlu1 %5360 }
 0x830   :  { %v13657_v30 = vpop.permute.xlu0 %8401  ;;  %5076 = vrot.lane.b32.xlu1 %v4933_v63, %s8721_s14  ;;  %v13663_v17 = vsel %vm3409_vm10, %v5459_v38, %v5361_v18  ;;  %v5804_v38 = vld [vmem:[%s15235_s4 + $0x130] sm:$0xff]  ;;  %s132_s14 = scalar_lea.hbm %s15238_s7, 25600 }
 0x831   :  { %v8403_v62 = vunpack.i.l.bf16 %v13657_v30  ;;  %v8404_v49 = vunpack.i.h.bf16 %v13657_v30  ;;  %v8470_v59 = vpack.i.bf16 %v13663_v17, %v13644_v1 }
 0x833   :  { %v5717_v58 = vsel %vm5716_vm14, %v8398_v9, %v8403_v62  ;;  %8471 = vrot.lane.b32.xlu0 %v8470_v59, %s8726_s13  ;;  %v5718_v13 = vsel %vm5716_vm14, %v8399_v60, %v8404_v49  ;;  %v5802_v9 = vld [vmem:[%s15235_s4 + $0x120] sm:$0xff] }
 0x834   :  { %5268 = vrot.lane.b32.xlu1 %v4981_v43, %s8723_s11  ;;  %5945 = vmatprep.mubr.f32.mxu1 %v5717_v58  ;;  %v8407_v26 = vpop.permute.xlu0 %8406  ;;  %v4896_v59 = vld [vmem:[#allocation3 + $0xa0] sm:$0xff] }
 0x835   :  { %5946 = vmatmul.mubr.f32.vlgmr.msra.gmra.mxu1 %v5700_v24  ;;  %v8408_v31 = vunpack.i.l.bf16 %v8407_v26  ;;  %v8409_v12 = vunpack.i.h.bf16 %v8407_v26  ;;  %v5799_v24 = vld [vmem:[%s15235_s4 + $0x108] sm:$0xff] }
 0x836   :  { %5950 = vmatprep.mubr.f32.mxu1 %v5718_v13  ;;  %6027 = vmatpush1.msra.mxu1 %v5813_v21 }
 0x837   :  { %5170 = vrot.lane.b32.xlu0 %v4956_v35, %s8722_s17  ;;  %6028 = vmatprep.subr.mxu1 %v15798_v7  ;;  %v5702_v51 = vsel %vm3487_vm11, %v13475_v45, %v8408_v31  ;;  %v5703_v45 = vsel %vm3487_vm11, %v13492_v56, %v8409_v12 }
 0x838   :  { %5652 = vrot.lane.b32.xlu1 %v13514_v53, %s8720_s25  ;;  %6029 = vmatpush1.msra.mxu1 %v5812_v8 }
 0x839   :  { %5951 = vmatmul.mubr.f32.gmra.mxu1 %v5701_v22  ;;  %6030 = vmatprep.subr.mxu1 %v15798_v7  ;;  %v5798_v22 = vld [vmem:[%s15235_s4 + $0x100] sm:$0xff] }
 0x83a   :  { %6031 = vmatpush1.msra.mxu1 %v5811_v36 }
 0x83b   :  { %v13690_v52 = vpop.permute.xlu1 %8411  ;;  %5362 = vrot.lane.b32.xlu0 %v5004_v0, %s8724_s26  ;;  %6032 = vmatprep.subr.mxu1 %v15798_v7 }
 0x83c   :  { %v8413_v10 = vunpack.i.l.bf16 %v13690_v52  ;;  %5604 = vrot.lane.b32.xlu1 %v13514_v53, %s8727_s16  ;;  %v8414_v15 = vunpack.i.h.bf16 %v13690_v52  ;;  %6033 = vmatpush1.msra.mxu1 %v5810_v11 }
 0x83d   :  { %6034 = vmatprep.subr.mxu1 %v15798_v7 }
 0x83e   :  { %v5719_v28 = vsel %vm5716_vm14, %v8408_v31, %v8413_v10  ;;  %v5720_v40 = vsel %vm5716_vm14, %v8409_v12, %v8414_v15  ;;  %6035 = vmatpush1.msra.mxu1 %v5809_v2  ;;  %v4897_v2 = vld [vmem:[#allocation3 + $0xb0] sm:$0xff] }
 0x83f   :  { %5955 = vmatprep.mubr.f32.mxu1 %v5719_v28  ;;  %5172 = vrot.lane.b32.xlu0 %v4957_v6, %s8722_s17  ;;  %v5828_v28 = vld [vmem:[%s15235_s4 + $0x1f0] sm:$0xf] }
 0x840   :  { %5606 = vrot.lane.b32.xlu1 %v13526_v44, %s8727_s16  ;;  %5956 = vmatmul.mubr.f32.gmra.mxu1 %v5702_v51 }
 0x841   :  { %5960 = vmatprep.mubr.f32.mxu1 %v5720_v40  ;;  %6036 = vmatprep.subr.mxu1 %v15798_v7  ;;  %v5827_v40 = vld [vmem:[%s15235_s4 + $0x1e8] sm:$0xff] }
 0x842   :  { %6037 = vmatpush1.msra.mxu1 %v5808_v34 }
 0x843   :  { %5602 = vrot.lane.b32.xlu0 %v13492_v56, %s8727_s16  ;;  %v8417_v37 = vpop.permute.xlu0 %8416  ;;  %6038 = vmatprep.subr.mxu1 %v15798_v7 }
 0x844   :  { %5608 = vrot.lane.b32.xlu1 %v13535_v20, %s8727_s16  ;;  %5961 = vmatmul.mubr.f32.gmra.mxu1 %v5703_v45  ;;  %v8418_v47 = vunpack.i.l.bf16 %v8417_v37  ;;  %v8419_v19 = vunpack.i.h.bf16 %v8417_v37  ;;  %v5825_v37 = vld [vmem:[%s15235_s4 + $0x1d8] sm:$0xff] }
 0x845   :  { %6039 = vmatpush1.msra.mxu1 %v5807_v23 }
 0x846   :  { %6040 = vmatprep.subr.mxu1 %v15798_v7  ;;  %v5704_v42 = vsel %vm3487_vm11, %v13514_v53, %v8418_v47  ;;  %v5705_v53 = vsel %vm3487_vm11, %v13526_v44, %v8419_v19 }
 0x847   :  { %5364 = vrot.lane.b32.xlu0 %v5005_v27, %s8724_s26  ;;  %6041 = vmatpush1.msra.mxu1 %v5806_v25  ;;  %v5824_v25 = vld [vmem:[%s15235_s4 + $0x1d0] sm:$0xff] }
 0x848   :  { %5610 = vrot.lane.b32.xlu1 %v13544_v32, %s8727_s16  ;;  %6042 = vmatprep.subr.mxu1 %v15798_v7 }
 0x849   :  { %6043 = vmatpush1.msra.mxu1 %v5805_v16  ;;  %v5823_v16 = vld [vmem:[%s15235_s4 + $0x1c8] sm:$0xff] }
 0x84a   :  { %6044 = vmatprep.subr.mxu1 %v15798_v7 }
 0x84b   :  { %v13737_v56 = vpop.permute.xlu1 %8421  ;;  %5654 = vrot.lane.b32.xlu0 %v13526_v44, %s8720_s25  ;;  %6045 = vmatpush1.msra.mxu1 %v5804_v38  ;;  %v5800_v44 = vld [vmem:[%s15235_s4 + $0x110] sm:$0xff]  ;;  %v5822_v38 = vld [vmem:[%s15235_s4 + $0x1c0] sm:$0xff] }
 0x84c   :  { %v8423_v61 = vunpack.i.l.bf16 %v13737_v56  ;;  %5612 = vrot.lane.b32.xlu1 %v13553_v33, %s8727_s16  ;;  %v8424_v5 = vunpack.i.h.bf16 %v13737_v56  ;;  %6046 = vmatprep.subr.mxu1 %v15798_v7 }
 0x84d   :  { %6047 = vmatpush1.msra.mxu1 %v5803_v55 }
 0x84e   :  { %v5721_v63 = vsel %vm5716_vm14, %v8418_v47, %v8423_v61  ;;  %v5722_v57 = vsel %vm5716_vm14, %v8419_v19, %v8424_v5  ;;  %6048 = vmatprep.subr.mxu1 %v15798_v7 }
 0x84f   :  { %5965 = vmatprep.mubr.f32.mxu1 %v5721_v63  ;;  %5656 = vrot.lane.b32.xlu0 %v13535_v20, %s8720_s25 }
 0x850   :  { %5614 = vrot.lane.b32.xlu1 %v13563_v3, %s8727_s16  ;;  %5966 = vmatmul.mubr.f32.gmra.mxu1 %v5704_v42  ;;  %v8394_v42 = vunpack.i.h.bf16 %v13639_v46  ;;  %v5821_v46 = vld [vmem:[%s15235_s4 + $0x1b8] sm:$0xff] }
 0x851   :  { %5970 = vmatprep.mubr.f32.mxu1 %v5722_v57  ;;  %6049 = vmatpush1.msra.mxu1 %v5802_v9 }
 0x852   :  { %6050 = vmatprep.subr.mxu1 %v15798_v7 }
 0x853   :  { %v8427_v18 = vpop.permute.xlu0 %8426  ;;  %5658 = vrot.lane.b32.xlu0 %v13544_v32, %s8720_s25  ;;  %6051 = vmatpush1.msra.mxu1 %v5801_v14 }
 0x854   :  { %5971 = vmatmul.mubr.f32.gmra.mxu1 %v5705_v53  ;;  %v8428_v58 = vunpack.i.l.bf16 %v8427_v18  ;;  %6052 = vmatprep.subr.mxu1 %v15798_v7  ;;  %v8429_v8 = vunpack.i.h.bf16 %v8427_v18  ;;  %v4898_v18 = vld [vmem:[#allocation3 + $0xc0] sm:$0xff] }
 0x855   :  { %6053 = vmatpush1.msra.mxu1 %v5800_v44 }
 0x856   :  { %6054 = vmatprep.subr.mxu1 %v15798_v7  ;;  %v5707_v51 = vsel %vm3487_vm11, %v13544_v32, %v8429_v8  ;;  %v5826_v32 = vld [vmem:[%s15235_s4 + $0x1e0] sm:$0xff] }
 0x857   :  { %v5051_v43 = vpop.permute.xlu0 %5050  ;;  %5660 = vrot.lane.b32.xlu0 %v13553_v33, %s8720_s25  ;;  %6055 = vmatpush1.msra.mxu1 %v5799_v24 }
 0x858   :  { %v5400_v13 = vsel %vm3214_vm3, %v4896_v59, %v5051_v43  ;;  %6056 = vmatprep.subr.mxu1 %v15798_v7  ;;  %v5402_v43 = vsel %vm3214_vm3, %v4898_v18, %v8394_v42 }
 0x859   :  { %6057 = vmatpush1.msra.mxu1 %v5798_v22 }
 0x85a   :  { %6060 = vmatprep.subr.mxu1 %v15798_v7 }
 0x85b   :  { %v5243_v60 = vpop.permute.xlu0 %5242  ;;  %v13790_v21 = vpop.permute.xlu1 %8431  ;;  %5662 = vrot.lane.b32.xlu0 %v13563_v3, %s8720_s25  ;;  %v5706_v3 = vsel %vm3487_vm11, %v13535_v20, %v8428_v58  ;;  %7975 = vmatpush2.msk.msra.mxu1 %vm3680_vm4, %v5828_v28 }
 0x85c   :  { %v8434_v33 = vunpack.i.h.bf16 %v13790_v21  ;;  %v8433_v35 = vunpack.i.l.bf16 %v13790_v21  ;;  %6062 = vmatprep.subr.mxu1 %v15798_v7 }
 0x85d   :  { %6063 = vmatpush2.msra.mxu1 %v5827_v40 }
 0x85e   :  { %v5723_v26 = vsel %vm5716_vm14, %v8428_v58, %v8433_v35  ;;  %v5724_v6 = vsel %vm5716_vm14, %v8429_v8, %v8434_v33  ;;  %6064 = vmatprep.subr.mxu1 %v15798_v7  ;;  %v5820_v58 = vld [vmem:[%s15235_s4 + $0x1b0] sm:$0xff] }
 0x85f   :  { %v5053_v0 = vpop.permute.xlu0 %5052  ;;  %v5147_v36 = vpop.permute.xlu1 %5146  ;;  %5975 = vmatprep.mubr.f32.mxu1 %v5723_v26  ;;  %6065 = vmatpush2.msra.mxu1 %v5826_v32 }
 0x860   :  { %v5424_v31 = vsel %vm3279_vm8, %v5400_v13, %v5147_v36  ;;  %5976 = vmatmul.mubr.f32.gmra.mxu1 %v5706_v3  ;;  %v5401_v27 = vsel %vm3214_vm3, %v4897_v2, %v5053_v0  ;;  %6066 = vmatprep.subr.mxu1 %v15798_v7  ;;  %v5819_v36 = vld [vmem:[%s15235_s4 + $0x1a8] sm:$0xff] }
 0x861   :  { %5980 = vmatprep.mubr.f32.mxu1 %v5724_v6  ;;  %v5448_v12 = vsel %vm3344_vm9, %v5424_v31, %v5243_v60  ;;  %6067 = vmatpush2.msra.mxu1 %v5825_v37 }
 0x862   :  { %6068 = vmatprep.subr.mxu1 %v15798_v7 }
 0x863   :  { %v5149_v20 = vpop.permute.xlu0 %5148  ;;  %v5339_v11 = vpop.permute.xlu1 %5338  ;;  %6069 = vmatpush2.msra.mxu1 %v5824_v25 }
 0x864   :  { %v5472_v45 = vsel %vm3409_vm10, %v5448_v12, %v5339_v11  ;;  %5981 = vmatmul.mubr.f32.gmra.mxu1 %v5707_v51  ;;  %v5425_v47 = vsel %vm3279_vm8, %v5401_v27, %v5149_v20  ;;  %6070 = vmatprep.subr.mxu1 %v15798_v7  ;;  %v5818_v20 = vld [vmem:[%s15235_s4 + $0x1a0] sm:$0xff] }
 0x865   :  { %5616 = vrot.lane.b32.xlu1 %v5472_v45, %s8727_s16  ;;  %5664 = vrot.lane.b32.xlu0 %v5472_v45, %s8720_s25  ;;  %v5817_v45 = vld [vmem:[%s15235_s4 + $0x198] sm:$0xff] }
 0x866   :  { %6071 = vmatpush2.msra.mxu1 %v5823_v16 }
 0x867   :  { %v5245_v34 = vpop.permute.xlu0 %5244  ;;  %v5151_v23 = vpop.permute.xlu1 %5150  ;;  %6072 = vmatprep.subr.mxu1 %v15798_v7 }
 0x868   :  { %v5449_v57 = vsel %vm3344_vm9, %v5425_v47, %v5245_v34  ;;  %6073 = vmatpush2.msra.mxu1 %v5822_v38  ;;  %v5426_v14 = vsel %vm3279_vm8, %v5402_v43, %v5151_v23  ;;  %v5815_v34 = vld [vmem:[%s15235_s4 + $0x188] sm:$0xff]  ;;  %v5814_v23 = vld [vmem:[%s15235_s4 + $0x180] sm:$0xff] }
 0x869   :  { %5618 = vrot.lane.b32.xlu1 %v13596_v50, %s8727_s16  ;;  %6074 = vmatprep.subr.mxu1 %v15798_v7 }
 0x86a   :  { %6075 = vmatpush2.msra.mxu1 %v5821_v46 }
 0x86b   :  { %v8437_v63 = vpop.permute.xlu0 %8436  ;;  %v5247_v19 = vpop.permute.xlu1 %5246  ;;  %6076 = vmatprep.subr.mxu1 %v15798_v7 }
 0x86c   :  { %v5450_v44 = vsel %vm3344_vm9, %v5426_v14, %v5247_v19  ;;  %v8438_v60 = vunpack.i.l.bf16 %v8437_v63  ;;  %6077 = vmatpush2.msra.mxu1 %v5820_v58  ;;  %v8439_v22 = vunpack.i.h.bf16 %v8437_v63 }
 0x86d   :  { %5620 = vrot.lane.b32.xlu1 %v13605_v48, %s8727_s16  ;;  %6078 = vmatprep.subr.mxu1 %v15798_v7 }
 0x86e   :  { %6079 = vmatpush2.msra.mxu1 %v5819_v36  ;;  %v5709_v12 = vsel %vm3487_vm11, %v13580_v54, %v8439_v22 }
 0x86f   :  { %v5341_v55 = vpop.permute.xlu0 %5340  ;;  %v5343_v53 = vpop.permute.xlu1 %5342  ;;  %6080 = vmatprep.subr.mxu1 %v15798_v7 }
 0x870   :  { %v5473_v9 = vsel %vm3409_vm10, %v5449_v57, %v5341_v55  ;;  %v5474_v24 = vsel %vm3409_vm10, %v5450_v44, %v5343_v53  ;;  %6081 = vmatpush2.msra.mxu1 %v5818_v20  ;;  %v4908_v53 = vld [vmem:[#allocation3 + $0x160] sm:$0xff] }
 0x871   :  { %5622 = vrot.lane.b32.xlu1 %v13615_v4, %s8727_s16  ;;  %5666 = vrot.lane.b32.xlu0 %v5473_v9, %s8720_s25  ;;  %v5708_v0 = vsel %vm3487_vm11, %v5474_v24, %v8438_v60 }
 0x872   :  { %6082 = vmatprep.subr.mxu1 %v15798_v7 }
 0x873   :  { %v13869_v59 = vpop.permute.xlu1 %8441  ;;  %6083 = vmatpush2.msra.mxu1 %v5817_v45 }
 0x874   :  { %v8443_v13 = vunpack.i.l.bf16 %v13869_v59  ;;  %v8444_v8 = vunpack.i.h.bf16 %v13869_v59  ;;  %6084 = vmatprep.subr.mxu1 %v15798_v7 }
 0x875   :  { %5624 = vrot.lane.b32.xlu1 %v13624_v41, %s8727_s16  ;;  %5668 = vrot.lane.b32.xlu0 %v13605_v48, %s8720_s25 }
 0x876   :  { %v5725_v26 = vsel %vm5716_vm14, %v8438_v60, %v8443_v13  ;;  %v5726_v31 = vsel %vm5716_vm14, %v8439_v22, %v8444_v8 }
 0x877   :  { %5985 = vmatprep.mubr.f32.mxu1 %v5725_v26  ;;  %v8447_v3 = vpop.permute.xlu1 %8446 }
 0x878   :  { %5986 = vmatmul.mubr.f32.gmra.mxu1 %v5708_v0  ;;  %v8448_v6 = vunpack.i.l.bf16 %v8447_v3  ;;  %v8449_v40 = vunpack.i.h.bf16 %v8447_v3 }
 0x879   :  { %5626 = vrot.lane.b32.xlu1 %v13633_v39, %s8727_s16  ;;  %5670 = vrot.lane.b32.xlu0 %v13615_v4, %s8720_s25 }
 0x87a   :  { %5990 = vmatprep.mubr.f32.mxu1 %v5726_v31  ;;  %v5710_v2 = vsel %vm3487_vm11, %v13583_v29, %v8448_v6  ;;  %v5816_v29 = vld [vmem:[%s15235_s4 + $0x190] sm:$0xff]  ;;  %v5711_v27 = vsel %vm3487_vm11, %v13596_v50, %v8449_v40  ;;  %s8728_s4 = smov 22  }
 0x87b   :  { %v13897_v28 = vpop.permute.xlu0 %8451  ;;  %6085 = vmatpush2.msra.mxu1 %v5816_v29 }
 0x87c   :  { %v8453_v11 = vunpack.i.l.bf16 %v13897_v28  ;;  %5991 = vmatmul.mubr.f32.gmra.mxu1 %v5709_v12  ;;  %v8454_v51 = vunpack.i.h.bf16 %v13897_v28  ;;  %6086 = vmatprep.subr.mxu1 %v15798_v7 }
 0x87d   :  { %5628 = vrot.lane.b32.xlu1 %v13644_v1, %s8727_s16  ;;  %5672 = vrot.lane.b32.xlu0 %v13624_v41, %s8720_s25 }
 0x87e   :  { %v5727_v54 = vsel %vm5716_vm14, %v8448_v6, %v8453_v11  ;;  %v5728_v32 = vsel %vm5716_vm14, %v8449_v40, %v8454_v51  ;;  %6087 = vmatpush2.msra.mxu1 %v5815_v34 }
 0x87f   :  { %5995 = vmatprep.mubr.f32.mxu1 %v5727_v54  ;;  %6088 = vmatprep.subr.mxu1 %v15798_v7 }
 0x880   :  { %5996 = vmatmul.mubr.f32.gmra.mxu1 %v5710_v2 }
 0x881   :  { %5630 = vrot.lane.b32.xlu1 %v13663_v17, %s8727_s16  ;;  %5674 = vrot.lane.b32.xlu0 %v13633_v39, %s8720_s25 }
 0x882   :  { %6000 = vmatprep.mubr.f32.mxu1 %v5728_v32  ;;  %6089 = vmatpush2.msra.mxu1 %v5814_v23 }
 0x883   :  { %v8457_v37 = vpop.permute.xlu1 %8456 }
 0x884   :  { %6001 = vmatmul.mubr.f32.gmra.mxu1 %v5711_v27  ;;  %v8458_v50 = vunpack.i.l.bf16 %v8457_v37  ;;  %v8459_v63 = vunpack.i.h.bf16 %v8457_v37 }
 0x885   :  { %5676 = vrot.lane.b32.xlu0 %v13644_v1, %s8720_s25 }
 0x886   :  { %v5712_v16 = vsel %vm3487_vm11, %v13605_v48, %v8458_v50  ;;  %v5713_v42 = vsel %vm3487_vm11, %v13615_v4, %v8459_v63 }
 0x889   :  { %5678 = vrot.lane.b32.xlu0 %v13663_v17, %s8720_s25 }
 0x88b   :  { %v13945_v25 = vpop.permute.xlu0 %8461 }
 0x88c   :  { %v8464_v1 = vunpack.i.h.bf16 %v13945_v25  ;;  %v8463_v47 = vunpack.i.l.bf16 %v13945_v25 }
 0x88e   :  { %v5729_v19 = vsel %vm5716_vm14, %v8458_v50, %v8463_v47  ;;  %v5730_v17 = vsel %vm5716_vm14, %v8459_v63, %v8464_v1 }
 0x88f   :  { %6005 = vmatprep.mubr.f32.mxu1 %v5729_v19 }
 0x890   :  { %6006 = vmatmul.mubr.f32.gmra.mxu1 %v5712_v16 }
 0x891   :  { %6010 = vmatprep.mubr.f32.mxu1 %v5730_v17 }
 0x894   :  { %6011 = vmatmul.mubr.f32.gmra.mxu1 %v5713_v42 }
 0x896   :  { %v8467_v57 = vpop.permute.xlu1 %8466 }
 0x897   :  { %v8468_v9 = vunpack.i.l.bf16 %v8467_v57  ;;  %v8469_v44 = vunpack.i.h.bf16 %v8467_v57 }
 0x899   :  { %v5714_v24 = vsel %vm3487_vm11, %v13624_v41, %v8468_v9  ;;  %v5715_v3 = vsel %vm3487_vm11, %v13633_v39, %v8469_v44  ;;  %v4909_v41 = vld [vmem:[#allocation3 + $0x170] sm:$0xff] }
 0x89a   :  { %v5075_v38 = vpop.permute.xlu1 %5074 }
 0x89b   :  { %v5412_v14 = vsel %vm3214_vm3, %v4908_v53, %v5075_v38 }
 0x89e   :  { %v5267_v18 = vpop.permute.xlu1 %5266 }
 0x8a2   :  { %v5077_v55 = vpop.permute.xlu1 %5076 }
 0x8a3   :  { %v5413_v20 = vsel %vm3214_vm3, %v4909_v41, %v5077_v55 }
 0x8a5   :  { %v13959_v46 = vpop.permute.xlu0 %8471 }
 0x8a6   :  { %v8474_v48 = vunpack.i.h.bf16 %v13959_v46  ;;  %v8473_v43 = vunpack.i.l.bf16 %v13959_v46  ;;  %v5269_v58 = vpop.permute.xlu1 %5268 }
 0x8a8   :  { %v5731_v4 = vsel %vm5716_vm14, %v8468_v9, %v8473_v43  ;;  %v5732_v22 = vsel %vm5716_vm14, %v8469_v44, %v8474_v48 }
 0x8a9   :  { %v5171_v60 = vpop.permute.xlu0 %5170  ;;  %6015 = vmatprep.mubr.f32.mxu1 %v5731_v4 }
 0x8aa   :  { %v5436_v26 = vsel %vm3279_vm8, %v5412_v14, %v5171_v60  ;;  %6016 = vmatmul.mubr.f32.gmra.mxu1 %v5714_v24  ;;  %v5653_v31 = vpop.permute.xlu1 %5652 }
 0x8ab   :  { %6020 = vmatprep.mubr.f32.mxu1 %v5732_v22  ;;  %v5460_v36 = vsel %vm3344_vm9, %v5436_v26, %v5267_v18 }
 0x8ad   :  { %v5363_v0 = vpop.permute.xlu0 %5362 }
 0x8ae   :  { %v5484_v6 = vsel %vm3409_vm10, %v5460_v36, %v5363_v0  ;;  %6021 = vmatmul.mubr.f32.gmra.mxu1 %v5715_v3  ;;  %v5605_v54 = vpop.permute.xlu1 %5604 }
 0x8af   :  { %5632 = vrot.lane.b32.xlu1 %v5484_v6, %s8727_s16  ;;  %5680 = vrot.lane.b32.xlu0 %v5484_v6, %s8720_s25 }
 0x8b1   :  { %v5173_v12 = vpop.permute.xlu0 %5172 }
 0x8b2   :  { %v5437_v2 = vsel %vm3279_vm8, %v5413_v20, %v5173_v12  ;;  %v5607_v27 = vpop.permute.xlu1 %5606 }
 0x8b3   :  { %v5461_v29 = vsel %vm3344_vm9, %v5437_v2, %v5269_v58  ;;  %v5736_v16 = vsel %vm5733_vm0, %v8413_v10, %v5607_v27 }
 0x8b5   :  { %v5603_v40 = vpop.permute.xlu0 %5602 }
 0x8b6   :  { %v5734_v39 = vsel %vm5733_vm0, %v8403_v62, %v5603_v40  ;;  %v5750_v45 = vsel %vm2289_vm7, %v5603_v40, %v5653_v31  ;;  %v5735_v62 = vsel %vm5733_vm0, %v8404_v49, %v5605_v54  ;;  %v5609_v50 = vpop.permute.xlu1 %5608 }
 0x8b7   :  { %7976 = vmatprep.mubr.msk.f32.mxu1 %vm5829_vm15, %v5750_v45  ;;  %v5737_v30 = vsel %vm5733_vm0, %v8414_v15, %v5609_v50 }
 0x8b8   :  { %6091 = vmatmul.mubr.f32.vlgmr.msra.gmra.mxu1 %v5734_v39 }
 0x8b9   :  { %v5365_v32 = vpop.permute.xlu0 %5364 }
 0x8ba   :  { %v5485_v34 = vsel %vm3409_vm10, %v5461_v29, %v5365_v32  ;;  %v5611_v42 = vpop.permute.xlu1 %5610 }
 0x8bb   :  { %5682 = vrot.lane.b32.xlu0 %v5485_v34, %s8720_s25  ;;  %v5738_v10 = vsel %vm5733_vm0, %v8423_v61, %v5611_v42 }
 0x8bd   :  { %v5655_v23 = vpop.permute.xlu0 %5654 }
 0x8be   :  { %v5751_v37 = vsel %vm2289_vm7, %v5605_v54, %v5655_v23  ;;  %v5613_v18 = vpop.permute.xlu1 %5612 }
 0x8bf   :  { %7977 = vmatprep.mubr.msk.f32.mxu1 %vm5829_vm15, %v5751_v37  ;;  %v5739_v52 = vsel %vm5733_vm0, %v8424_v5, %v5613_v18 }
 0x8c0   :  { %6096 = vmatmul.mubr.f32.gmra.mxu1 %v5735_v62 }
 0x8c1   :  { %v5657_v63 = vpop.permute.xlu0 %5656 }
 0x8c2   :  { %v5752_v19 = vsel %vm2289_vm7, %v5607_v27, %v5657_v63  ;;  %v5615_v15 = vpop.permute.xlu1 %5614 }
 0x8c3   :  { %7978 = vmatprep.mubr.msk.f32.mxu1 %vm5829_vm15, %v5752_v19  ;;  %v5740_v61 = vsel %vm5733_vm0, %v8433_v35, %v5615_v15 }
 0x8c4   :  { %6101 = vmatmul.mubr.f32.gmra.mxu1 %v5736_v16 }
 0x8c5   :  { %v5659_v17 = vpop.permute.xlu0 %5658 }
 0x8c6   :  { %v5753_v57 = vsel %vm2289_vm7, %v5609_v50, %v5659_v17 }
 0x8c7   :  { %7979 = vmatprep.mubr.msk.f32.mxu1 %vm5829_vm15, %v5753_v57 }
 0x8c8   :  { %6106 = vmatmul.mubr.f32.gmra.mxu1 %v5737_v30 }
 0x8c9   :  { %v5661_v49 = vpop.permute.xlu0 %5660 }
 0x8ca   :  { %v5754_v38 = vsel %vm2289_vm7, %v5611_v42, %v5661_v49 }
 0x8cb   :  { %7980 = vmatprep.mubr.msk.f32.mxu1 %vm5829_vm15, %v5754_v38 }
 0x8cc   :  { %6111 = vmatmul.mubr.f32.gmra.mxu1 %v5738_v10 }
 0x8cd   :  { %v5663_v55 = vpop.permute.xlu0 %5662 }
 0x8ce   :  { %v5755_v53 = vsel %vm2289_vm7, %v5613_v18, %v5663_v55 }
 0x8cf   :  { %7981 = vmatprep.mubr.msk.f32.mxu1 %vm5829_vm15, %v5755_v53 }
 0x8d0   :  { %6116 = vmatmul.mubr.f32.gmra.mxu1 %v5739_v52 }
 0x8d7   :  { %v5665_v9 = vpop.permute.xlu0 %5664  ;;  %v5617_v14 = vpop.permute.xlu1 %5616 }
 0x8d8   :  { %v5756_v44 = vsel %vm2289_vm7, %v5615_v15, %v5665_v9  ;;  %v5741_v5 = vsel %vm5733_vm0, %v8434_v33, %v5617_v14 }
 0x8d9   :  { %7982 = vmatprep.mubr.msk.f32.mxu1 %vm5829_vm15, %v5756_v44 }
 0x8da   :  { %6121 = vmatmul.mubr.f32.gmra.mxu1 %v5740_v61 }
 0x8db   :  { %v5619_v58 = vpop.permute.xlu1 %5618 }
 0x8dc   :  { %v5742_v35 = vsel %vm5733_vm0, %v8443_v13, %v5619_v58 }
 0x8df   :  { %v5621_v4 = vpop.permute.xlu1 %5620 }
 0x8e0   :  { %v5743_v21 = vsel %vm5733_vm0, %v8444_v8, %v5621_v4 }
 0x8e3   :  { %v5667_v60 = vpop.permute.xlu0 %5666  ;;  %v5623_v26 = vpop.permute.xlu1 %5622 }
 0x8e4   :  { %v5757_v56 = vsel %vm2289_vm7, %v5617_v14, %v5667_v60  ;;  %v5744_v13 = vsel %vm5733_vm0, %v8453_v11, %v5623_v26 }
 0x8e5   :  { %7983 = vmatprep.mubr.msk.f32.mxu1 %vm5829_vm15, %v5757_v56 }
 0x8e6   :  { %6126 = vmatmul.mubr.f32.gmra.mxu1 %v5741_v5 }
 0x8e7   :  { %v5669_v24 = vpop.permute.xlu0 %5668  ;;  %v5625_v33 = vpop.permute.xlu1 %5624 }
 0x8e8   :  { %v5758_v22 = vsel %vm2289_vm7, %v5619_v58, %v5669_v24  ;;  %v5745_v59 = vsel %vm5733_vm0, %v8454_v51, %v5625_v33 }
 0x8e9   :  { %7984 = vmatprep.mubr.msk.f32.mxu1 %vm5829_vm15, %v5758_v22 }
 0x8ea   :  { %6131 = vmatmul.mubr.f32.gmra.mxu1 %v5742_v35 }
 0x8eb   :  { %v5671_v0 = vpop.permute.xlu0 %5670  ;;  %v5627_v41 = vpop.permute.xlu1 %5626 }
 0x8ec   :  { %v5759_v36 = vsel %vm2289_vm7, %v5621_v4, %v5671_v0  ;;  %v5746_v11 = vsel %vm5733_vm0, %v8463_v47, %v5627_v41 }
 0x8ed   :  { %7985 = vmatprep.mubr.msk.f32.mxu1 %vm5829_vm15, %v5759_v36 }
 0x8ee   :  { %6136 = vmatmul.mubr.f32.gmra.mxu1 %v5743_v21 }
 0x8ef   :  { %v5673_v3 = vpop.permute.xlu0 %5672  ;;  %v5629_v39 = vpop.permute.xlu1 %5628 }
 0x8f0   :  { %v5760_v31 = vsel %vm2289_vm7, %v5623_v26, %v5673_v3  ;;  %v5747_v27 = vsel %vm5733_vm0, %v8464_v1, %v5629_v39 }
 0x8f1   :  { %7986 = vmatprep.mubr.msk.f32.mxu1 %vm5829_vm15, %v5760_v31 }
 0x8f2   :  { %6141 = vmatmul.mubr.f32.gmra.mxu1 %v5744_v13 }
 0x8f3   :  { %v5675_v6 = vpop.permute.xlu0 %5674  ;;  %v5631_v30 = vpop.permute.xlu1 %5630 }
 0x8f4   :  { %v5761_v12 = vsel %vm2289_vm7, %v5625_v33, %v5675_v6  ;;  %v5748_v18 = vsel %vm5733_vm0, %v8473_v43, %v5631_v30 }
 0x8f5   :  { %7987 = vmatprep.mubr.msk.f32.mxu1 %vm5829_vm15, %v5761_v12  ;;  %v8111_v8 = vpop.f32.mrf.mxu1 }
 0x8f6   :  { %6146 = vmatmul.mubr.f32.gmra.mxu1 %v5745_v59 }
 0x8f7   :  { %v5677_v20 = vpop.permute.xlu0 %5676  ;;  %v8112_v40 = vpop.f32.mrf.mxu1 }
 0x8f8   :  { %v5762_v54 = vsel %vm2289_vm7, %v5627_v41, %v5677_v20  ;;  %v14045_v2 = vadd.f32 %v8112_v40, %v8111_v8 }
 0x8f9   :  { %7988 = vmatprep.mubr.msk.f32.mxu1 %vm5829_vm15, %v5762_v54  ;;  %v8114_v45 = vpop.f32.mrf.mxu1 }
 0x8fa   :  { %6151 = vmatmul.mubr.f32.gmra.mxu1 %v5746_v11 }
 0x8fb   :  { %v5679_v28 = vpop.permute.xlu0 %5678  ;;  %v8115_v32 = vpop.f32.mrf.mxu1 }
 0x8fc   :  { %v5763_v51 = vsel %vm2289_vm7, %v5629_v39, %v5679_v28  ;;  %v14052_v29 = vadd.f32 %v8115_v32, %v8114_v45 }
 0x8fd   :  { %7989 = vmatprep.mubr.msk.f32.mxu1 %vm5829_vm15, %v5763_v51 }
 0x8fe   :  { %6156 = vmatmul.mubr.f32.gmra.mxu1 %v5747_v27 }
 0x900   :  { %v8117_v34 = vpop.f32.mrf.mxu1 }
 0x902   :  { %v8118_v23 = vpop.f32.mrf.mxu1 }
 0x903   :  { %v14058_v37 = vadd.f32 %v8118_v23, %v8117_v34 }
 0x904   :  { %v8120_v47 = vpop.f32.mrf.mxu1 }
 0x906   :  { %v8121_v62 = vpop.f32.mrf.mxu1 }
 0x907   :  { %v14060_v50 = vadd.f32 %v8121_v62, %v8120_v47 }
 0x910   :  { %v8123_v63 = vpop.f32.mrf.mxu1 }
 0x912   :  { %v8124_v19 = vpop.f32.mrf.mxu1 }
 0x913   :  { %v14062_v16 = vadd.f32 %v8124_v19, %v8123_v63 }
 0x914   :  { %v8126_v17 = vpop.f32.mrf.mxu1 }
 0x916   :  { %v8127_v42 = vpop.f32.mrf.mxu1 }
 0x917   :  { %v14064_v57 = vadd.f32 %v8127_v42, %v8126_v17 }
 0x920   :  { %v8129_v25 = vpop.f32.mrf.mxu1 }
 0x921   :  { %v5681_v1 = vpop.permute.xlu0 %5680  ;;  %v5633_v15 = vpop.permute.xlu1 %5632 }
 0x922   :  { %v5764_v49 = vsel %vm2289_vm7, %v5631_v30, %v5681_v1  ;;  %v8130_v38 = vpop.f32.mrf.mxu1  ;;  %v5749_v44 = vsel %vm5733_vm0, %v8474_v48, %v5633_v15 }
 0x923   :  { %v14067_v10 = vadd.f32 %v8130_v38, %v8129_v25  ;;  %7990 = vmatprep.mubr.msk.f32.mxu1 %vm5829_vm15, %v5764_v49 }
 0x924   :  { %v8132_v55 = vpop.f32.mrf.mxu1  ;;  %6161 = vmatmul.mubr.f32.gmra.mxu1 %v5748_v18 }
 0x926   :  { %v8133_v53 = vpop.f32.mrf.mxu1 }
 0x927   :  { %v14073_v52 = vadd.f32 %v8133_v53, %v8132_v55 }
 0x92d   :  { %v5683_v9 = vpop.permute.xlu0 %5682 }
 0x92e   :  { %v5765_v14 = vsel %vm2289_vm7, %v5633_v15, %v5683_v9 }
 0x92f   :  { %7991 = vmatprep.mubr.msk.f32.mxu1 %vm5829_vm15, %v5765_v14 }
 0x930   :  { %6166 = vmatmul.mubr.f32.gmra.mxu1 %v5749_v44 }
 0x938   :  { %v8135_v61 = vpop.f32.mrf.mxu1 }
 0x93a   :  { %v8136_v58 = vpop.f32.mrf.mxu1 }
 0x93b   :  { %v14080_v4 = vadd.f32 %v8136_v58, %v8135_v61 }
 0x93c   :  { %v8138_v43 = vpop.f32.mrf.mxu1 }
 0x93e   :  { %v8139_v60 = vpop.f32.mrf.mxu1 }
 0x93f   :  { %v14082_v56 = vadd.f32 %v8139_v60, %v8138_v43 }
 0x940   :  { %v8141_v5 = vpop.f32.mrf.mxu1 }
 0x942   :  { %v8142_v24 = vpop.f32.mrf.mxu1 }
 0x943   :  { %v14084_v26 = vadd.f32 %v8142_v24, %v8141_v5 }
 0x944   :  { %v8144_v22 = vpop.f32.mrf.mxu1 }
 0x946   :  { %v8145_v35 = vpop.f32.mrf.mxu1 }
 0x947   :  { %v14086_v0 = vadd.f32 %v8145_v35, %v8144_v22 }
 0x950   :  { %v8147_v46 = vpop.f32.mrf.mxu1 }
 0x952   :  { %v8148_v36 = vpop.f32.mrf.mxu1 }
 0x953   :  { %v14088_v48 = vadd.f32 %v8148_v36, %v8147_v46 }
 0x954   :  { %v8150_v21 = vpop.f32.mrf.mxu1 }
 0x956   :  { %v8151_v33 = vpop.f32.mrf.mxu1 }
 0x957   :  { %v14090_v3 = vadd.f32 %v8151_v33, %v8150_v21 }
 0x96a   :  { %v8153_v31 = vpop.f32.mrf.mxu1 }
 0x96c   :  { %v8154_v13 = vpop.f32.mrf.mxu1 }
 0x96d   :  { %v14092_v6 = vadd.f32 %v8154_v13, %v8153_v31 }
 0x96e   :  { %v8156_v41 = vpop.f32.mrf.mxu1 }
 0x970   :  { %v8157_v12 = vpop.f32.mrf.mxu1 }
 0x971   :  { %v14094_v59 = vadd.f32 %v8157_v12, %v8156_v41 }
 0x978   :  { %v6092_v8 = vpop.f32.mrf.mxu1 }
 0x979   :  { %v14097_v20 = vadd.f32 %v14045_v2, %v6092_v8 }
 0x97a   :  { %v6094_v54 = vpop.f32.mrf.mxu1 }
 0x97b   :  { %v6174_v45 = vsel %vm6173_vm1, %v14097_v20, 0.0 }
 0x980   :  { %v6097_v40 = vpop.f32.mrf.mxu1 }
 0x981   :  { %v14100_v11 = vadd.f32 %v14052_v29, %v6097_v40 }
 0x982   :  { %v6099_v39 = vpop.f32.mrf.mxu1 }
 0x983   :  { %v6175_v28 = vsel %vm6173_vm1, %v14100_v11, 0.0 }
 0x984   :  { %v6176_v51 = vadd.f32 %v6175_v28, %v6174_v45  ;;  %v6102_v32 = vpop.f32.mrf.mxu1 }
 0x985   :  { %v14107_v27 = vadd.f32 %v14058_v37, %v6102_v32 }
 0x986   :  { %v6104_v2 = vpop.f32.mrf.mxu1 }
 0x987   :  { %v6177_v34 = vsel %vm6173_vm1, %v14107_v27, 0.0 }
 0x988   :  { %v6178_v23 = vadd.f32 %v6177_v34, %v6176_v51  ;;  %v6107_v47 = vpop.f32.mrf.mxu1 }
 0x989   :  { %v14112_v29 = vadd.f32 %v14060_v50, %v6107_v47 }
 0x98a   :  { %v6109_v62 = vpop.f32.mrf.mxu1 }
 0x98b   :  { %v6179_v63 = vsel %vm6173_vm1, %v14112_v29, 0.0 }
 0x98c   :  { %v6180_v19 = vadd.f32 %v6179_v63, %v6178_v23  ;;  %v6112_v17 = vpop.f32.mrf.mxu1 }
 0x98d   :  { %v14117_v42 = vadd.f32 %v14062_v16, %v6112_v17 }
 0x98e   :  { %v6114_v37 = vpop.f32.mrf.mxu1 }
 0x98f   :  { %v6181_v25 = vsel %vm6173_vm1, %v14117_v42, 0.0 }
 0x990   :  { %v6182_v30 = vadd.f32 %v6181_v25, %v6180_v19  ;;  %v6117_v1 = vpop.f32.mrf.mxu1 }
 0x991   :  { %v14122_v49 = vadd.f32 %v14064_v57, %v6117_v1 }
 0x992   :  { %v6119_v50 = vpop.f32.mrf.mxu1 }
 0x993   :  { %v6183_v38 = vsel %vm6173_vm1, %v14122_v49, 0.0 }
 0x994   :  { %v6184_v18 = vadd.f32 %v6183_v38, %v6182_v30 }
 0x99a   :  { %v6122_v55 = vpop.f32.mrf.mxu1 }
 0x99b   :  { %v6123_v53 = vadd.f32 %v14067_v10, %v6122_v55 }
 0x99c   :  { %v6124_v15 = vpop.f32.mrf.mxu1 }
 0x99d   :  { %v6185_v16 = vsel %vm6173_vm1, %v6123_v53, 0.0 }
 0x99e   :  { %v6186_v9 = vadd.f32 %v6185_v16, %v6184_v18 }
 0x9a6   :  { %v6127_v14 = vpop.f32.mrf.mxu1 }
 0x9a7   :  { %v6128_v44 = vadd.f32 %v14073_v52, %v6127_v14 }
 0x9a8   :  { %v6129_v61 = vpop.f32.mrf.mxu1 }
 0x9a9   :  { %v6187_v58 = vsel %vm6173_vm1, %v6128_v44, 0.0 }
 0x9aa   :  { %v6188_v57 = vadd.f32 %v6187_v58, %v6186_v9  ;;  %v6132_v43 = vpop.f32.mrf.mxu1 }
 0x9ab   :  { %v6133_v60 = vadd.f32 %v14080_v4, %v6132_v43 }
 0x9ac   :  { %v6134_v5 = vpop.f32.mrf.mxu1 }
 0x9ad   :  { %v6189_v24 = vsel %vm6173_vm1, %v6133_v60, 0.0 }
 0x9ae   :  { %v6190_v22 = vadd.f32 %v6189_v24, %v6188_v57  ;;  %v6137_v35 = vpop.f32.mrf.mxu1 }
 0x9af   :  { %v6138_v10 = vadd.f32 %v14082_v56, %v6137_v35 }
 0x9b0   :  { %v6139_v46 = vpop.f32.mrf.mxu1 }
 0x9b1   :  { %v6191_v36 = vsel %vm6173_vm1, %v6138_v10, 0.0 }
 0x9b2   :  { %v6192_v21 = vadd.f32 %v6191_v36, %v6190_v22  ;;  %v6142_v33 = vpop.f32.mrf.mxu1 }
 0x9b3   :  { %v6143_v52 = vadd.f32 %v14084_v26, %v6142_v33 }
 0x9b4   :  { %v6144_v31 = vpop.f32.mrf.mxu1 }
 0x9b5   :  { %v6193_v13 = vsel %vm6173_vm1, %v6143_v52, 0.0 }
 0x9b6   :  { %v6194_v41 = vadd.f32 %v6193_v13, %v6192_v21  ;;  %v6147_v12 = vpop.f32.mrf.mxu1 }
 0x9b7   :  { %v6148_v4 = vadd.f32 %v14086_v0, %v6147_v12 }
 0x9b8   :  { %v6149_v8 = vpop.f32.mrf.mxu1 }
 0x9b9   :  { %v6195_v54 = vsel %vm6173_vm1, %v6148_v4, 0.0 }
 0x9ba   :  { %v6196_v40 = vadd.f32 %v6195_v54, %v6194_v41  ;;  %v6152_v39 = vpop.f32.mrf.mxu1 }
 0x9bb   :  { %v6153_v56 = vadd.f32 %v14088_v48, %v6152_v39 }
 0x9bc   :  { %v6154_v45 = vpop.f32.mrf.mxu1 }
 0x9bd   :  { %v6197_v28 = vsel %vm6173_vm1, %v6153_v56, 0.0 }
 0x9be   :  { %v6198_v51 = vadd.f32 %v6197_v28, %v6196_v40  ;;  %v6157_v32 = vpop.f32.mrf.mxu1 }
 0x9bf   :  { %v6158_v26 = vadd.f32 %v14090_v3, %v6157_v32 }
 0x9c0   :  { %v6159_v2 = vpop.f32.mrf.mxu1 }
 0x9c1   :  { %v6199_v34 = vsel %vm6173_vm1, %v6158_v26, 0.0 }
 0x9c2   :  { %v6200_v23 = vadd.f32 %v6199_v34, %v6198_v51 }
 0x9e4   :  { %v6162_v47 = vpop.f32.mrf.mxu1 }
 0x9e5   :  { %v6163_v0 = vadd.f32 %v14092_v6, %v6162_v47 }
 0x9e6   :  { %v6164_v62 = vpop.f32.mrf.mxu1 }
 0x9e7   :  { %v6201_v63 = vsel %vm6173_vm1, %v6163_v0, 0.0 }
 0x9e8   :  { %v6202_v19 = vadd.f32 %v6201_v63, %v6200_v23 }
 0x9f0   :  { %v6167_v17 = vpop.f32.mrf.mxu1 }
 0x9f1   :  { %v6168_v48 = vadd.f32 %v14094_v59, %v6167_v17 }
 0x9f2   :  { %v6169_v37 = vpop.f32.mrf.mxu1 }
 0x9f3   :  { %v6203_v25 = vsel %vm6173_vm1, %v6168_v48, 0.0 }
 0x9f4   :  { %v6204_v30 = vadd.f32 %v6203_v25, %v6202_v19 }
 0x9f6   :  { %v6205_v1 = vrot.slane %v6204_v30, 4 }
 0x9f8   :  { %v6206_v3 = vadd.f32 %v6205_v1, %v6204_v30 }
 0x9fa   :  { %v6207_v50 = vrot.slane %v6206_v3, 2 }
 0x9fc   :  { %v6208_v38 = vadd.f32 %v6207_v50, %v6206_v3 }
 0x9fe   :  { %v6209_v18 = vrot.slane %v6208_v38, 1 }
 0xa00   :  { %v6210_v55 = vadd.f32 %v6209_v18, %v6208_v38 }
 0xa02   :  { %v6212_v15 = vmul.f32 0.0078125, %v6210_v55 }
 0xa04   :  { %v14147_v6 = vsub.f32 %v14097_v20, %v6212_v15  ;;  %v14150_v16 = vsub.f32 %v14100_v11, %v6212_v15  ;;  %v14153_v9 = vsub.f32 %v14107_v27, %v6212_v15  ;;  %v14156_v59 = vsub.f32 %v14112_v29, %v6212_v15 }
 0xa05   :  { %v14159_v14 = vsub.f32 %v14117_v42, %v6212_v15  ;;  %v14162_v61 = vsub.f32 %v14122_v49, %v6212_v15  ;;  %v14164_v58 = vsub.f32 %v6123_v53, %v6212_v15  ;;  %v14166_v57 = vsub.f32 %v6128_v44, %v6212_v15 }
 0xa06   :  { %v14168_v20 = vsub.f32 %v6133_v60, %v6212_v15  ;;  %v14170_v11 = vsub.f32 %v6138_v10, %v6212_v15  ;;  %v14172_v43 = vsub.f32 %v6143_v52, %v6212_v15  ;;  %v14174_v27 = vsub.f32 %v6148_v4, %v6212_v15 }
 0xa07   :  { %v14176_v29 = vsub.f32 %v6153_v56, %v6212_v15  ;;  %v14178_v5 = vsub.f32 %v6158_v26, %v6212_v15  ;;  %v14180_v42 = vsub.f32 %v6163_v0, %v6212_v15  ;;  %v14182_v49 = vsub.f32 %v6168_v48, %v6212_v15 }
 0xa08   :  { %v6229_v53 = vmul.f32 %v14147_v6, %v14147_v6  ;;  %v6230_v44 = vmul.f32 %v14150_v16, %v14150_v16  ;;  %v6231_v60 = vmul.f32 %v14153_v9, %v14153_v9  ;;  %v6232_v24 = vmul.f32 %v14156_v59, %v14156_v59 }
 0xa09   :  { %v6233_v46 = vmul.f32 %v14159_v14, %v14159_v14  ;;  %v6234_v33 = vmul.f32 %v14162_v61, %v14162_v61  ;;  %v6235_v13 = vmul.f32 %v14164_v58, %v14164_v58  ;;  %v6236_v4 = vmul.f32 %v14166_v57, %v14166_v57 }
 0xa0a   :  { %v6245_v22 = vsel %vm6173_vm1, %v6229_v53, 0.0  ;;  %v6246_v35 = vsel %vm6173_vm1, %v6230_v44, 0.0  ;;  %v6248_v36 = vsel %vm6173_vm1, %v6231_v60, 0.0  ;;  %v6250_v52 = vsel %vm6173_vm1, %v6232_v24, 0.0 }
 0xa0b   :  { %v6247_v10 = vadd.f32 %v6246_v35, %v6245_v22  ;;  %v6252_v41 = vsel %vm6173_vm1, %v6233_v46, 0.0  ;;  %v6254_v8 = vsel %vm6173_vm1, %v6234_v33, 0.0  ;;  %v6237_v40 = vmul.f32 %v14168_v20, %v14168_v20 }
 0xa0c   :  { %v6256_v39 = vsel %vm6173_vm1, %v6235_v13, 0.0  ;;  %v6238_v45 = vmul.f32 %v14170_v11, %v14170_v11  ;;  %v6258_v28 = vsel %vm6173_vm1, %v6236_v4, 0.0  ;;  %v6239_v32 = vmul.f32 %v14172_v43, %v14172_v43 }
 0xa0d   :  { %v6249_v21 = vadd.f32 %v6248_v36, %v6247_v10  ;;  %v6260_v26 = vsel %vm6173_vm1, %v6237_v40, 0.0  ;;  %v6240_v34 = vmul.f32 %v14174_v27, %v14174_v27  ;;  %v6241_v0 = vmul.f32 %v14176_v29, %v14176_v29  ;;  %v6171_v36 = vld [vmem:[#allocation13] sm:$0x1] }
 0xa0e   :  { %v6262_v23 = vsel %vm6173_vm1, %v6238_v45, 0.0  ;;  %v6264_v62 = vsel %vm6173_vm1, %v6239_v32, 0.0  ;;  %v6242_v19 = vmul.f32 %v14178_v5, %v14178_v5  ;;  %v6243_v37 = vmul.f32 %v14180_v42, %v14180_v42 }
 0xa0f   :  { %v6251_v31 = vadd.f32 %v6250_v52, %v6249_v21  ;;  %v6266_v17 = vsel %vm6173_vm1, %v6240_v34, 0.0  ;;  %v6268_v25 = vsel %vm6173_vm1, %v6241_v0, 0.0  ;;  %v6244_v1 = vmul.f32 %v14182_v49, %v14182_v49  ;;  %v15799_v52 = vld [vmem:[#allocation119_spill] sm:$0xff] }
 0xa10   :  { %v6270_v3 = vsel %vm6173_vm1, %v6242_v19, 0.0  ;;  %v6272_v38 = vsel %vm6173_vm1, %v6243_v37, 0.0 }
 0xa11   :  { %v6253_v12 = vadd.f32 %v6252_v41, %v6251_v31  ;;  %v6274_v55 = vsel %vm6173_vm1, %v6244_v1, 0.0 }
 0xa13   :  { %v6255_v54 = vadd.f32 %v6254_v8, %v6253_v12  ;;  %v7992_v8 = vld [vmem:[#allocation14] ss:$0 sm:$0xff] }
 0xa15   :  { %v6257_v56 = vadd.f32 %v6256_v39, %v6255_v54 }
 0xa17   :  { %v6259_v51 = vadd.f32 %v6258_v28, %v6257_v56 }
 0xa19   :  { %v6261_v2 = vadd.f32 %v6260_v26, %v6259_v51 }
 0xa1b   :  { %v6263_v47 = vadd.f32 %v6262_v23, %v6261_v2 }
 0xa1d   :  { %v6265_v63 = vadd.f32 %v6264_v62, %v6263_v47 }
 0xa1f   :  { %v6267_v48 = vadd.f32 %v6266_v17, %v6265_v63 }
 0xa21   :  { %v6269_v30 = vadd.f32 %v6268_v25, %v6267_v48 }
 0xa23   :  { %v6271_v50 = vadd.f32 %v6270_v3, %v6269_v30 }
 0xa25   :  { %v6273_v18 = vadd.f32 %v6272_v38, %v6271_v50 }
 0xa27   :  { %v6275_v15 = vadd.f32 %v6274_v55, %v6273_v18 }
 0xa29   :  { %v6276_v53 = vrot.slane %v6275_v15, 4 }
 0xa2b   :  { %v6277_v44 = vadd.f32 %v6276_v53, %v6275_v15 }
 0xa2d   :  { %v6278_v60 = vrot.slane %v6277_v44, 2 }
 0xa2f   :  { %v6279_v24 = vadd.f32 %v6278_v60, %v6277_v44 }
 0xa31   :  { %v6280_v22 = vrot.slane %v6279_v24, 1 }
 0xa33   :  { %v6281_v35 = vadd.f32 %v6280_v22, %v6279_v24 }
 0xa35   :  { %v6282_v10 = vmul.f32 0.0078125, %v6281_v35 }
 0xa37   :  { %v6283_v46 = vadd.f32 1e-05, %v6282_v10 }
 0xa39   :  { %8477 = vrsqrt.f32 %v6283_v46 }
 0xa46   :  { %v8478_v21 = vpop.eup %8477 }
 0xa47   :  { %v6285_v33 = vmul.f32 %v8478_v21, %v6171_v36 }
 0xa49   :  { %v6290_v31 = vrot.slane %v6285_v33, %v15799_v52 }
 0xa4b   :  { %v6292_v13 = vmul.f32 %v6290_v31, %v14147_v6  ;;  %v6293_v41 = vmul.f32 %v6290_v31, %v14150_v16  ;;  %v6294_v12 = vmul.f32 %v6290_v31, %v14153_v9  ;;  %v6295_v4 = vmul.f32 %v6290_v31, %v14156_v59 }
 0xa4c   :  { %v6296_v54 = vmul.f32 %v6290_v31, %v14159_v14  ;;  %v6297_v40 = vmul.f32 %v6290_v31, %v14162_v61  ;;  %v6298_v39 = vmul.f32 %v6290_v31, %v14164_v58  ;;  %v6299_v56 = vmul.f32 %v6290_v31, %v14166_v57 }
 0xa4d   :  { %v6300_v45 = vmul.f32 %v6290_v31, %v14168_v20  ;;  %v6301_v28 = vmul.f32 %v6290_v31, %v14170_v11  ;;  %v6302_v6 = vmul.f32 %v6290_v31, %v14172_v43  ;;  %v6303_v16 = vmul.f32 %v6290_v31, %v14174_v27 }
 0xa4e   :  { %v6304_v9 = vmul.f32 %v6290_v31, %v14176_v29  ;;  %v6305_v59 = vmul.f32 %v6290_v31, %v14178_v5  ;;  %v6306_v14 = vmul.f32 %v6290_v31, %v14180_v42  ;;  %v6307_v61 = vmul.f32 %v6290_v31, %v14182_v49 }
 0xa4f   :  { %v6314_v51 = vadd.f32 %v7992_v8, %v6292_v13  ;;  %v6315_v58 = vadd.f32 %v7992_v8, %v6293_v41  ;;  %v6316_v32 = vadd.f32 %v7992_v8, %v6294_v12  ;;  %v6317_v57 = vadd.f32 %v7992_v8, %v6295_v4 }
 0xa50   :  { %v6318_v26 = vadd.f32 %v7992_v8, %v6296_v54  ;;  %v6319_v20 = vadd.f32 %v7992_v8, %v6297_v40  ;;  %v6320_v2 = vadd.f32 %v7992_v8, %v6298_v39  ;;  %v6321_v11 = vadd.f32 %v7992_v8, %v6299_v56 }
 0xa51   :  { %v6322_v34 = vadd.f32 %v7992_v8, %v6300_v45  ;;  %v6323_v43 = vadd.f32 %v7992_v8, %v6301_v28  ;;  %v6324_v23 = vadd.f32 %v7992_v8, %v6302_v6  ;;  %v6325_v27 = vadd.f32 %v7992_v8, %v6303_v16 }
 0xa52   :  { %v6326_v47 = vadd.f32 %v7992_v8, %v6304_v9  ;;  %v6327_v29 = vadd.f32 %v7992_v8, %v6305_v59  ;;  %v6328_v0 = vadd.f32 %v7992_v8, %v6306_v14  ;;  %v6329_v5 = vadd.f32 %v7992_v8, %v6307_v61 }
 0xa53   :  { %v6330_v62 = vmax.f32 %v6314_v51, 0.0  ;;  %v6331_v42 = vmax.f32 %v6315_v58, 0.0  ;;  %v6332_v63 = vmax.f32 %v6316_v32, 0.0  ;;  %v6333_v49 = vmax.f32 %v6317_v57, 0.0 }
 0xa54   :  { %v6334_v19 = vmax.f32 %v6318_v26, 0.0  ;;  %v6335_v17 = vmax.f32 %v6319_v20, 0.0  ;;  %v6336_v48 = vmax.f32 %v6320_v2, 0.0  ;;  %v6337_v37 = vmax.f32 %v6321_v11, 0.0 }
 0xa55   :  { %v6338_v25 = vmax.f32 %v6322_v34, 0.0  ;;  %v6339_v30 = vmax.f32 %v6323_v43, 0.0  ;;  %v6340_v1 = vmax.f32 %v6324_v23, 0.0  ;;  %v6341_v3 = vmax.f32 %v6325_v27, 0.0 }
 0xa56   :  { %v6342_v50 = vmax.f32 %v6326_v47, 0.0  ;;  %v6343_v38 = vmax.f32 %v6327_v29, 0.0  ;;  %v6344_v18 = vmax.f32 %v6328_v0, 0.0  ;;  %v6345_v55 = vmax.f32 %v6329_v5, 0.0 }
 0xa57   :  { %v6346_v15 = vmax.f32 %v6330_v62, %v6331_v42  ;;  %v6347_v53 = vmax.f32 %v6332_v63, %v6333_v49  ;;  %v6348_v44 = vmax.f32 %v6334_v19, %v6335_v17  ;;  %v6349_v60 = vmax.f32 %v6336_v48, %v6337_v37 }
 0xa58   :  { %v6350_v24 = vmax.f32 %v6338_v25, %v6339_v30  ;;  %v6351_v22 = vmax.f32 %v6340_v1, %v6341_v3  ;;  %v6352_v35 = vmax.f32 %v6342_v50, %v6343_v38  ;;  %v6353_v10 = vmax.f32 %v6344_v18, %v6345_v55 }
 0xa59   :  { %6354 = vst.msk [vmem:[#allocation5] sm:$0xff] %vm6173_vm1, %v6346_v15  ;;  %6355 = vst.msk [vmem:[#allocation5 + $0x8] sm:$0xff] %vm6173_vm1, %v6347_v53 }
 0xa5a   :  { %6356 = vst.msk [vmem:[#allocation5 + $0x10] sm:$0xff] %vm6173_vm1, %v6348_v44  ;;  %6357 = vst.msk [vmem:[#allocation5 + $0x18] sm:$0xff] %vm6173_vm1, %v6349_v60 }
 0xa5b   :  { %6358 = vst.msk [vmem:[#allocation5 + $0x20] sm:$0xff] %vm6173_vm1, %v6350_v24  ;;  %6359 = vst.msk [vmem:[#allocation5 + $0x28] sm:$0xff] %vm6173_vm1, %v6351_v22 }
 0xa5c   :  { %6360 = vst.msk [vmem:[#allocation5 + $0x30] sm:$0xff] %vm6173_vm1, %v6352_v35  ;;  %6361 = vst.msk [vmem:[#allocation5 + $0x38] sm:$0xff] %vm6173_vm1, %v6353_v10 }
 0xa60   :  { %v6362_v46 = vld [vmem:[#allocation5] ss:$2 sm:$0xff]  ;;  %v6370_v36 = vld [vmem:[#allocation5 + $0x1] ss:$2 sm:$0xff] }
 0xa61   :  { %v6377_v31 = vmax.f32 %v6362_v46, %v6370_v36  ;;  %v6364_v12 = vld [vmem:[#allocation5 + $0x10] ss:$2 sm:$0xff]  ;;  %v6372_v4 = vld [vmem:[#allocation5 + $0x11] ss:$2 sm:$0xff] }
 0xa62   :  { %v6366_v21 = vld [vmem:[#allocation5 + $0x20] ss:$2 sm:$0xff]  ;;  %v6374_v33 = vld [vmem:[#allocation5 + $0x21] ss:$2 sm:$0xff]  ;;  %v14259_v28 = vmax.f32 %v6364_v12, %v6372_v4 }
 0xa63   :  { %v6368_v13 = vld [vmem:[#allocation5 + $0x30] ss:$2 sm:$0xff]  ;;  %v6379_v41 = vmax.f32 %v6366_v21, %v6374_v33  ;;  %v6376_v8 = vld [vmem:[#allocation5 + $0x31] ss:$2 sm:$0xff]  ;;  %v6398_v54 = vrot.slane %v6377_v31, 3  ;;  %v6392_v40 = vrot.slane %v6377_v31, 2 }
 0xa64   :  { %v14257_v39 = vmax.f32 %v6368_v13, %v6376_v8  ;;  %v6422_v6 = vrot.slane %v6377_v31, 7  ;;  %v6458_v61 = vrot.slane %v14259_v28, 5  ;;  %v6452_v57 = vrot.slane %v14259_v28, 4 }
 0xa65   :  { %v6399_v56 = vrot.slane %v6379_v41, 2  ;;  %v6393_v45 = vrot.slane %v6379_v41, 1  ;;  %v6423_v14 = vrot.slane %v6379_v41, 6  ;;  %v6383_v2 = vrot.slane %v6379_v41, 7 }
 0xa66   :  { %v6430_v59 = vrot.slane %v14257_v39, 7  ;;  %v6459_v51 = vrot.slane %v14257_v39, 4  ;;  %v6453_v26 = vrot.slane %v14257_v39, 3  ;;  %v6404_v34 = vrot.slane %v6377_v31, 4 }
 0xa67   :  { %v6400_v16 = vsel %vm6384_vm2, %v6399_v56, %v6398_v54  ;;  %v6394_v9 = vsel %vm6384_vm2, %v6393_v45, %v6392_v40  ;;  %v6424_v32 = vsel %vm6384_vm2, %v6423_v14, %v6422_v6  ;;  %v6405_v43 = vrot.slane %v6379_v41, 3 }
 0xa68   :  { %6401 = vrot.lane.b32.xlu0 %v6400_v16, %s8728_s4  ;;  %6395 = vrot.lane.b32.xlu1 %v6394_v9, %s8725_s23  ;;  %v6431_v58 = vsel %vm6384_vm2, %v6430_v59, %v14259_v28  ;;  %v6460_v20 = vsel %vm6384_vm2, %v6459_v51, %v6458_v61  ;;  %v6454_v11 = vsel %vm6384_vm2, %v6453_v26, %v6452_v57  ;;  %v6387_v23 = vrot.slane %v6377_v31, 1  ;;  %s8730_s23 = smov 10  }
 0xa69   :  { %v14276_v27 = vsel %vm6384_vm2, %v6383_v2, %v6377_v31  ;;  %v6416_v47 = vrot.slane %v6377_v31, 6  ;;  %v6417_v29 = vrot.slane %v6379_v41, 5  ;;  %v6406_v0 = vsel %vm6384_vm2, %v6405_v43, %v6404_v34 }
 0xa6a   :  { %v6388_v5 = vsel %vm6384_vm2, %v6379_v41, %v6387_v23  ;;  %v6410_v62 = vrot.slane %v6377_v31, 5  ;;  %v6411_v42 = vrot.slane %v6379_v41, 4  ;;  %v6440_v63 = vrot.slane %v14259_v28, 2 }
 0xa6b   :  { %v6418_v49 = vsel %vm6384_vm2, %v6417_v29, %v6416_v47  ;;  %v6441_v17 = vrot.slane %v14257_v39, 1  ;;  %v6435_v48 = vrot.slane %v14259_v28, 1  ;;  %v6464_v37 = vrot.slane %v14259_v28, 6 }
 0xa6c   :  { %6432 = vrot.lane.b32.xlu0 %v6431_v58, %s8720_s25  ;;  %6425 = vrot.lane.b32.xlu1 %v6424_v32, %s8729_s28  ;;  %s8732_s25 = smov 50   ;;  %v6412_v19 = vsel %vm6384_vm2, %v6411_v42, %v6410_v62  ;;  %v6465_v25 = vrot.slane %v14257_v39, 5 }
 0xa70   :  { %6461 = vrot.lane.b32.xlu0 %v6460_v20, %s8730_s23  ;;  %6455 = vrot.lane.b32.xlu1 %v6454_v11, %s8731_s9 }
 0xa74   :  { %6407 = vrot.lane.b32.xlu0 %v6406_v0, %s8726_s13  ;;  %6389 = vrot.lane.b32.xlu1 %v6388_v5, %s8732_s25  ;;  %s8734_s13 = smov [#allocation6]  }
 0xa75   :  { %s128_s0 = sshll.u32 %s8734_s13, 4  ;;  %s129_s0 = int_to_ptr.vmem [resolvable:$true] %s128_s0 }
 0xa76   :  { %s8640_s15 = scalar_lea.vmem %s129_s0, 25600  ;;  %s8644_s18 = scalar_lea.vmem %s129_s0, 51200 }
 0xa77   :  { %p8641_p7 = scmp.ne.s32.totalorder %s129_s0, %s8640_s15  ;;  %p8645_p8 = scmp.lt.s32.totalorder %s129_s0, %s129_s0 }
 0xa78   :  { %6419 = vrot.lane.b32.xlu0 %v6418_v49, %s8727_s16  ;;  %6413 = vrot.lane.b32.xlu1 %v6412_v19, %s8733_s1  ;;  %p8646_p9 = scmp.lt.s32.totalorder %s8644_s18, %s8640_s15 }
 0xa7a   :  { %p8647_p10 = por %p8646_p9, %p8645_p8 }
 0xa7c   :  { %p8648_p11 = pnand %p8647_p10, %p8641_p7 }
 0xa7e   :  { %8651 = shalt.err (!%p8648_p11)  }
 0xa7f   :  { %131 = dma.hbm_to_vmem [thread:$0]  %s15238_s7, 25600, %s129_s0, [#allocation7]  ;;  %v6442_v30 = vsel %vm6384_vm2, %v6441_v17, %v6440_v63  ;;  %v6436_v1 = vsel %vm6384_vm2, %v14257_v39, %v6435_v48  ;;  %v6446_v3 = vrot.slane %v14259_v28, 3  ;;  %v6447_v50 = vrot.slane %v14257_v39, 2 }
 0xa80   :  { %s8736_s19 = smov 116   ;;  %s8737_s8 = smov 66  }
 0xa81   :  { %6443 = vrot.lane.b32.xlu0 %v6442_v30, %s8736_s19  ;;  %6437 = vrot.lane.b32.xlu1 %v6436_v1, %s8737_s8  ;;  %s8662_s17 = scalar_lea.vmem %s143_s2, 25600  ;;  %p8667_p13 = scmp.lt.s32.totalorder %s143_s2, %s129_s0 }
 0xa82   :  { %p8663_p12 = scmp.ne.s32.totalorder %s143_s2, %s8662_s17  ;;  %p8668_p0 = scmp.lt.s32.totalorder %s8644_s18, %s8662_s17 }
 0xa84   :  { %p8669_p1 = por %p8668_p0, %p8667_p13 }
 0xa86   :  { %p8670_p2 = pnand %p8669_p1, %p8663_p12 }
 0xa88   :  { %8673 = shalt.err (!%p8670_p2)  }
 0xa89   :  { %145 = dma.hbm_to_vmem [thread:$0]  %s132_s14, 25600, %s143_s2, [#allocation7 + $0x1]  ;;  %v6466_v38 = vsel %vm6384_vm2, %v6465_v25, %v6464_v37  ;;  %v6448_v18 = vsel %vm6384_vm2, %v6447_v50, %v6446_v3  ;;  %v6470_v55 = vrot.slane %v14259_v28, 7  ;;  %v6471_v15 = vrot.slane %v14257_v39, 6 }
 0xa8a   :  { %6467 = vrot.lane.b32.xlu0 %v6466_v38, %s8723_s11  ;;  %s8738_s21 = smov 38   ;;  %s8739_s6 = smov 110   ;;  %vm6478_vm3 = vcmask 179200   ;;  %vm6481_vm5 = vcmask 998400   ;;  %vm6484_vm6 = vcmask 769024   ;;  %vm6487_vm8 = vcmask 539648  }
 0xa8b   :  { %6449 = vrot.lane.b32.xlu1 %v6448_v18, %s8738_s21  ;;  %v6472_v53 = vsel %vm6384_vm2, %v6471_v15, %v6470_v55  ;;  %vm6490_vm10 = vcmask 310272   ;;  %vm6494_vm12 = vcmask 80896   ;;  %vm6497_vm13 = vcmask 900096  }
 0xa8f   :  { %6473 = vrot.lane.b32.xlu1 %v6472_v53, %s8739_s6 }
 0xada   :  { %v6402_v44 = vpop.permute.xlu0 %6401  ;;  %v6396_v60 = vpop.permute.xlu1 %6395 }
 0xadb   :  { %v6479_v31 = vsel %vm6478_vm3, %v6396_v60, %v6402_v44 }
 0xade   :  { %v6433_v24 = vpop.permute.xlu0 %6432  ;;  %v6426_v22 = vpop.permute.xlu1 %6425 }
 0xadf   :  { %v6486_v40 = vsel %vm2289_vm7, %v6426_v22, %v6433_v24 }
 0xae2   :  { %v6462_v35 = vpop.permute.xlu0 %6461  ;;  %v6456_v10 = vpop.permute.xlu1 %6455 }
 0xae3   :  { %v6495_v14 = vsel %vm6494_vm12, %v6456_v10, %v6462_v35 }
 0xae6   :  { %v6408_v46 = vpop.permute.xlu0 %6407  ;;  %v6390_v36 = vpop.permute.xlu1 %6389 }
 0xae7   :  { %v6476_v21 = vsel %vm6173_vm1, %v14276_v27, %v6390_v36  ;;  %v6480_v13 = vsel %vm5716_vm14, %v6479_v31, %v6408_v46 }
 0xae8   :  { %v14313_v33 = vsel %vm3487_vm11, %v6476_v21, %v6396_v60  ;;  %vm6492_vm11 = vcmask 719872  }
 0xae9   :  { %15800 = vst [vmem:[#allocation42_spill] sm:$0xff] %v14313_v33 }
 0xaea   :  { %v6420_v41 = vpop.permute.xlu0 %6419  ;;  %v6414_v12 = vpop.permute.xlu1 %6413 }
 0xaeb   :  { %v14316_v4 = vsel %vm6481_vm5, %v6480_v13, %v6414_v12  ;;  %v6483_v8 = vsel %vm5733_vm0, %v6414_v12, %v6420_v41 }
 0xaec   :  { %15801 = vst [vmem:[#allocation76_spill] sm:$0xff] %v14316_v4  ;;  %v14319_v54 = vsel %vm6484_vm6, %v6483_v8, %v6426_v22 }
 0xaf3   :  { %v6444_v39 = vpop.permute.xlu0 %6443  ;;  %v6438_v56 = vpop.permute.xlu1 %6437 }
 0xaf4   :  { %v6488_v45 = vsel %vm6487_vm8, %v6486_v40, %v6438_v56 }
 0xaf5   :  { %v14323_v28 = vsel %vm5829_vm15, %v6488_v45, %v6444_v39 }
 0xafc   :  { %v6468_v16 = vpop.permute.xlu0 %6467 }
 0xafd   :  { %v6450_v6 = vpop.permute.xlu1 %6449  ;;  %v6496_v61 = vsel %vm3344_vm9, %v6495_v14, %v6468_v16 }
 0xafe   :  { %v6491_v9 = vsel %vm6490_vm10, %v6444_v39, %v6450_v6 }
 0xaff   :  { %v14325_v59 = vsel %vm6492_vm11, %v6491_v9, %v6456_v10 }
 0xb01   :  { %v14328_v51 = vpop.permute.xlu1 %6473 }
 0xb02   :  { %v14331_v58 = vsel %vm6497_vm13, %v6496_v61, %v14328_v51 }
 0xb03   :  { %8703 = dma.done.wait [#allocation7], 25600 }
 0xb04   :  { %8704 = vsyncadd [#allocation7], 4294941696  ;;  %v14333_v32 = vld [vmem:[#allocation6] sm:$0xff]  ;;  %v14335_v57 = vld [vmem:[#allocation6 + $0x8] sm:$0xff] }
 0xb05   :  { %15802 = vst [vmem:[#allocation105_spill] sm:$0xff] %v14333_v32  ;;  %15803 = vst [vmem:[#allocation126_spill] sm:$0xff] %v14335_v57  ;;  %v14337_v26 = vld [vmem:[#allocation6 + $0x10] sm:$0xff]  ;;  %v14339_v20 = vld [vmem:[#allocation6 + $0x18] sm:$0xff] }
 0xb06   :  { %15804 = vst [vmem:[#allocation127_spill] sm:$0xff] %v14337_v26  ;;  %15805 = vst [vmem:[#allocation57_spill] sm:$0xff] %v14339_v20  ;;  %v14341_v2 = vld [vmem:[#allocation6 + $0x20] sm:$0xff]  ;;  %v14343_v11 = vld [vmem:[#allocation6 + $0x28] sm:$0xff] }
 0xb07   :  { %15806 = vst [vmem:[#allocation118_spill] sm:$0xff] %v14341_v2  ;;  %15807 = vst [vmem:[#allocation56_spill] sm:$0xff] %v14343_v11  ;;  %v14345_v34 = vld [vmem:[#allocation6 + $0x30] sm:$0xff]  ;;  %v14347_v43 = vld [vmem:[#allocation6 + $0x38] sm:$0xff] }
 0xb08   :  { %15808 = vst [vmem:[#allocation79_spill] sm:$0xff] %v14345_v34  ;;  %15809 = vst [vmem:[#allocation129_spill] sm:$0xff] %v14347_v43  ;;  %v14349_v23 = vld [vmem:[#allocation6 + $0x40] sm:$0xff]  ;;  %v14351_v27 = vld [vmem:[#allocation6 + $0x48] sm:$0xff] }
 0xb09   :  { %15810 = vst [vmem:[#allocation107_spill] sm:$0xff] %v14349_v23  ;;  %15811 = vst [vmem:[#allocation44_spill] sm:$0xff] %v14351_v27  ;;  %v14353_v47 = vld [vmem:[#allocation6 + $0x50] sm:$0xff]  ;;  %v14355_v29 = vld [vmem:[#allocation6 + $0x58] sm:$0xff] }
 0xb0a   :  { %15812 = vst [vmem:[#allocation78_spill] sm:$0xff] %v14353_v47  ;;  %15813 = vst [vmem:[#allocation45_spill] sm:$0xff] %v14355_v29  ;;  %v14357_v0 = vld [vmem:[#allocation6 + $0x60] sm:$0xff]  ;;  %v14359_v5 = vld [vmem:[#allocation6 + $0x68] sm:$0xff] }
 0xb0b   :  { %15814 = vst [vmem:[#allocation128_spill] sm:$0xff] %v14357_v0  ;;  %15815 = vst [vmem:[#allocation106_spill] sm:$0xff] %v14359_v5  ;;  %v14361_v62 = vld [vmem:[#allocation6 + $0x70] sm:$0xff]  ;;  %v14363_v42 = vld [vmem:[#allocation6 + $0x78] sm:$0xff] }
 0xb0c   :  { %15816 = vst [vmem:[#allocation81_spill] sm:$0xff] %v14361_v62  ;;  %15817 = vst [vmem:[#allocation130_spill] sm:$0xff] %v14363_v42  ;;  %v14365_v63 = vld [vmem:[#allocation6 + $0x80] sm:$0xff]  ;;  %v14367_v49 = vld [vmem:[#allocation6 + $0x88] sm:$0xff] }
 0xb0d   :  { %15818 = vst [vmem:[#allocation109_spill] sm:$0xff] %v14365_v63  ;;  %15819 = vst [vmem:[#allocation108_spill] sm:$0xff] %v14367_v49  ;;  %v14369_v19 = vld [vmem:[#allocation6 + $0x90] sm:$0xff]  ;;  %v14371_v17 = vld [vmem:[#allocation6 + $0x98] sm:$0xff] }
 0xb0e   :  { %15820 = vst [vmem:[#allocation80_spill] sm:$0xff] %v14369_v19  ;;  %15821 = vst [vmem:[#allocation47_spill] sm:$0xff] %v14371_v17  ;;  %v14373_v48 = vld [vmem:[#allocation6 + $0xa0] sm:$0xff]  ;;  %v14375_v37 = vld [vmem:[#allocation6 + $0xa8] sm:$0xff] }
 0xb0f   :  { %15822 = vst [vmem:[#allocation46_spill] sm:$0xff] %v14373_v48  ;;  %15823 = vst [vmem:[#allocation131_spill] sm:$0xff] %v14375_v37  ;;  %v14377_v25 = vld [vmem:[#allocation6 + $0xb0] sm:$0xff]  ;;  %v14379_v30 = vld [vmem:[#allocation6 + $0xb8] sm:$0xff] }
 0xb10   :  { %15824 = vst [vmem:[#allocation83_spill] sm:$0xff] %v14377_v25  ;;  %15825 = vst [vmem:[#allocation133_spill] sm:$0xff] %v14379_v30  ;;  %v14381_v1 = vld [vmem:[#allocation6 + $0xc0] sm:$0xff]  ;;  %v14383_v3 = vld [vmem:[#allocation6 + $0xc8] sm:$0xff] }
 0xb11   :  { %15826 = vst [vmem:[#allocation111_spill] sm:$0xff] %v14381_v1  ;;  %15827 = vst [vmem:[#allocation82_spill] sm:$0xff] %v14383_v3  ;;  %v14385_v50 = vld [vmem:[#allocation6 + $0xd0] sm:$0xff]  ;;  %v14387_v38 = vld [vmem:[#allocation6 + $0xd8] sm:$0xff] }
 0xb12   :  { %15828 = vst [vmem:[#allocation49_spill] sm:$0xff] %v14385_v50  ;;  %15829 = vst [vmem:[#allocation85_spill] sm:$0xff] %v14387_v38  ;;  %v14389_v18 = vld [vmem:[#allocation6 + $0xe0] sm:$0xff]  ;;  %v14391_v55 = vld [vmem:[#allocation6 + $0xe8] sm:$0xff] }
 0xb13   :  { %15830 = vst [vmem:[#allocation84_spill] sm:$0xff] %v14389_v18  ;;  %15831 = vst [vmem:[#allocation87_spill] sm:$0xff] %v14391_v55  ;;  %v14393_v15 = vld [vmem:[#allocation6 + $0xf0] sm:$0xff]  ;;  %v14395_v53 = vld [vmem:[#allocation6 + $0xf8] sm:$0xff] }
 0xb14   :  { %15832 = vst [vmem:[#allocation86_spill] sm:$0xff] %v14393_v15  ;;  %15833 = vst [vmem:[#allocation89_spill] sm:$0xff] %v14395_v53  ;;  %v14397_v44 = vld [vmem:[#allocation6 + $0x100] sm:$0xff]  ;;  %v14399_v60 = vld [vmem:[#allocation6 + $0x108] sm:$0xff] }
 0xb15   :  { %15834 = vst [vmem:[#allocation88_spill] sm:$0xff] %v14397_v44  ;;  %15835 = vst [vmem:[#allocation91_spill] sm:$0xff] %v14399_v60  ;;  %v14401_v24 = vld [vmem:[#allocation6 + $0x110] sm:$0xff]  ;;  %v14403_v22 = vld [vmem:[#allocation6 + $0x118] sm:$0xff] }
 0xb16   :  { %15836 = vst [vmem:[#allocation135_spill] sm:$0xff] %v14401_v24  ;;  %15837 = vst [vmem:[#allocation90_spill] sm:$0xff] %v14403_v22  ;;  %v14405_v35 = vld [vmem:[#allocation6 + $0x120] sm:$0xff]  ;;  %v14407_v10 = vld [vmem:[#allocation6 + $0x128] sm:$0xff] }
 0xb17   :  { %15838 = vst [vmem:[#allocation132_spill] sm:$0xff] %v14405_v35  ;;  %15839 = vst [vmem:[#allocation134_spill] sm:$0xff] %v14407_v10  ;;  %v14409_v46 = vld [vmem:[#allocation6 + $0x130] sm:$0xff]  ;;  %v14411_v36 = vld [vmem:[#allocation6 + $0x138] sm:$0xff] }
 0xb18   :  { %15840 = vst [vmem:[#allocation110_spill] sm:$0xff] %v14409_v46  ;;  %15841 = vst [vmem:[#allocation137_spill] sm:$0xff] %v14411_v36  ;;  %v14413_v21 = vld [vmem:[#allocation6 + $0x140] sm:$0xff]  ;;  %v14415_v31 = vld [vmem:[#allocation6 + $0x148] sm:$0xff] }
 0xb19   :  { %15842 = vst [vmem:[#allocation48_spill] sm:$0xff] %v14413_v21  ;;  %15843 = vst [vmem:[#allocation93_spill] sm:$0xff] %v14415_v31  ;;  %v14417_v13 = vld [vmem:[#allocation6 + $0x150] sm:$0xff]  ;;  %v14419_v41 = vld [vmem:[#allocation6 + $0x158] sm:$0xff] }
 0xb1a   :  { %15844 = vst [vmem:[#allocation51_spill] sm:$0xff] %v14417_v13  ;;  %15845 = vst [vmem:[#allocation50_spill] sm:$0xff] %v14419_v41  ;;  %v14421_v12 = vld [vmem:[#allocation6 + $0x160] sm:$0xff]  ;;  %v14423_v8 = vld [vmem:[#allocation6 + $0x168] sm:$0xff] }
 0xb1b   :  { %15846 = vst [vmem:[#allocation92_spill] sm:$0xff] %v14421_v12  ;;  %15847 = vst [vmem:[#allocation136_spill] sm:$0xff] %v14423_v8  ;;  %v14425_v40 = vld [vmem:[#allocation6 + $0x170] sm:$0xff]  ;;  %v14427_v39 = vld [vmem:[#allocation6 + $0x178] sm:$0xff] }
 0xb1c   :  { %v14429_v56 = vld [vmem:[#allocation6 + $0x180] sm:$0xff]  ;;  %v14431_v45 = vld [vmem:[#allocation6 + $0x188] sm:$0xff]  ;;  %v14433_v6 = vld [vmem:[#allocation6 + $0x190] sm:$0xff] }
 0xb1d   :  { %15848 = vst [vmem:[#allocation94_spill] sm:$0xff] %v14429_v56  ;;  %15849 = vst [vmem:[#allocation95_spill] sm:$0xff] %v14431_v45  ;;  %v14435_v16 = vld [vmem:[#allocation6 + $0x198] sm:$0xff]  ;;  %v14437_v9 = vld [vmem:[#allocation6 + $0x1a0] sm:$0xff] }
 0xb1e   :  { %15850 = vst [vmem:[#allocation53_spill] sm:$0xff] %v14437_v9  ;;  %v14439_v14 = vld [vmem:[#allocation6 + $0x1a8] sm:$0xff]  ;;  %v14441_v61 = vld [vmem:[#allocation6 + $0x1b0] sm:$0xff]  ;;  %v14443_v52 = vld [vmem:[#allocation6 + $0x1b8] sm:$0xff] }
 0xb1f   :  { %15851 = vst [vmem:[#allocation115_spill] sm:$0xff] %v14439_v14  ;;  %v14445_v7 = vld [vmem:[#allocation6 + $0x1c0] sm:$0xff]  ;;  %v14447_v32 = vld [vmem:[#allocation6 + $0x1c8] sm:$0xff]  ;;  %v14449_v57 = vld [vmem:[#allocation6 + $0x1d0] sm:$0xff] }
 0xb20   :  { %15852 = vst [vmem:[#allocation113_spill] sm:$0xff] %v14445_v7  ;;  %15853 = vst [vmem:[#allocation138_spill] sm:$0xff] %v14447_v32  ;;  %v14451_v2 = vld [vmem:[#allocation6 + $0x1d8] sm:$0xff]  ;;  %v14453_v33 = vld [vmem:[#allocation6 + $0x1e0] sm:$0xff] }
 0xb21   :  { %15854 = vst [vmem:[#allocation112_spill] sm:$0xff] %v14453_v33  ;;  %v14455_v11 = vld [vmem:[#allocation6 + $0x1e8] sm:$0xff]  ;;  %v14457_v4 = vld [vmem:[#allocation6 + $0x1f0] sm:$0xff]  ;;  %v14459_v23 = vld [vmem:[#allocation6 + $0x1f8] sm:$0xff] }
 0xb22   :  { %15855 = vst [vmem:[#allocation139_spill] sm:$0xff] %v14455_v11  ;;  %v14461_v27 = vld [vmem:[#allocation6 + $0x200] sm:$0xff]  ;;  %v14463_v0 = vld [vmem:[#allocation6 + $0x208] sm:$0xff]  ;;  %v14465_v5 = vld [vmem:[#allocation6 + $0x210] sm:$0xff] }
 0xb23   :  { %15856 = vst [vmem:[#allocation140_spill] sm:$0xff] %v14461_v27  ;;  %15857 = vst [vmem:[#allocation143_spill] sm:$0xff] %v14463_v0  ;;  %v14467_v63 = vld [vmem:[#allocation6 + $0x218] sm:$0xff]  ;;  %v14469_v49 = vld [vmem:[#allocation6 + $0x220] sm:$0xff] }
 0xb24   :  { %15858 = vst [vmem:[#allocation141_spill] sm:$0xff] %v14465_v5  ;;  %15859 = vst [vmem:[#allocation114_spill] sm:$0xff] %v14467_v63  ;;  %v14471_v48 = vld [vmem:[#allocation6 + $0x228] sm:$0xff]  ;;  %v14473_v37 = vld [vmem:[#allocation6 + $0x230] sm:$0xff] }
 0xb25   :  { %15860 = vst [vmem:[#allocation52_spill] sm:$0xff] %v14469_v49  ;;  %15861 = vst [vmem:[#allocation144_spill] sm:$0xff] %v14471_v48  ;;  %v14475_v1 = vld [vmem:[#allocation6 + $0x238] sm:$0xff]  ;;  %v14477_v3 = vld [vmem:[#allocation6 + $0x240] sm:$0xff] }
 0xb26   :  { %15862 = vst [vmem:[#allocation142_spill] sm:$0xff] %v14473_v37  ;;  %15863 = vst [vmem:[#allocation117_spill] sm:$0xff] %v14475_v1  ;;  %v14479_v18 = vld [vmem:[#allocation6 + $0x248] sm:$0xff]  ;;  %v14481_v55 = vld [vmem:[#allocation6 + $0x250] sm:$0xff] }
 0xb27   :  { %15864 = vst [vmem:[#allocation55_spill] sm:$0xff] %v14477_v3  ;;  %15865 = vst [vmem:[#allocation59_spill] sm:$0xff] %v14479_v18  ;;  %v14483_v27 = vld [vmem:[#allocation6 + $0x258] sm:$0xff]  ;;  %v14485_v0 = vld [vmem:[#allocation6 + $0x260] sm:$0xff] }
 0xb28   :  { %15866 = vst [vmem:[#allocation54_spill] sm:$0xff] %v14481_v55  ;;  %15867 = vst [vmem:[#allocation58_spill] sm:$0xff] %v14483_v27  ;;  %v14487_v5 = vld [vmem:[#allocation6 + $0x268] sm:$0xff]  ;;  %v14489_v63 = vld [vmem:[#allocation6 + $0x270] sm:$0xff] }
 0xb29   :  { %15868 = vst [vmem:[#allocation116_spill] sm:$0xff] %v14485_v0  ;;  %15869 = vst [vmem:[#allocation60_spill] sm:$0xff] %v14487_v5  ;;  %v14491_v49 = vld [vmem:[#allocation6 + $0x278] sm:$0xff]  ;;  %v14493_v48 = vld [vmem:[#allocation6 + $0x280] sm:$0xff] }
 0xb2a   :  { %15870 = vst [vmem:[#allocation61_spill] sm:$0xff] %v14489_v63  ;;  %15871 = vst [vmem:[#allocation150_spill] sm:$0xff] %v14491_v49  ;;  %v14495_v37 = vld [vmem:[#allocation6 + $0x288] sm:$0xff]  ;;  %v14497_v1 = vld [vmem:[#allocation6 + $0x290] sm:$0xff] }
 0xb2b   :  { %15872 = vst [vmem:[#allocation63_spill] sm:$0xff] %v14493_v48  ;;  %15873 = vst [vmem:[#allocation65_spill] sm:$0xff] %v14495_v37  ;;  %v14499_v3 = vld [vmem:[#allocation6 + $0x298] sm:$0xff]  ;;  %v14501_v18 = vld [vmem:[#allocation6 + $0x2a0] sm:$0xff] }
 0xb2c   :  { %15874 = vst [vmem:[#allocation62_spill] sm:$0xff] %v14497_v1  ;;  %15875 = vst [vmem:[#allocation64_spill] sm:$0xff] %v14499_v3  ;;  %v14503_v55 = vld [vmem:[#allocation6 + $0x2a8] sm:$0xff]  ;;  %v14505_v27 = vld [vmem:[#allocation6 + $0x2b0] sm:$0xff] }
 0xb2d   :  { %15876 = vst [vmem:[#allocation147_spill] sm:$0xff] %v14501_v18  ;;  %15877 = vst [vmem:[#allocation67_spill] sm:$0xff] %v14503_v55  ;;  %v14507_v0 = vld [vmem:[#allocation6 + $0x2b8] sm:$0xff]  ;;  %v14509_v5 = vld [vmem:[#allocation6 + $0x2c0] sm:$0xff] }
 0xb2e   :  { %15878 = vst [vmem:[#allocation35_spill] sm:$0xff] %v14505_v27  ;;  %15879 = vst [vmem:[#allocation34_spill] sm:$0xff] %v14507_v0  ;;  %v14511_v63 = vld [vmem:[#allocation6 + $0x2c8] sm:$0xff]  ;;  %v14513_v49 = vld [vmem:[#allocation6 + $0x2d0] sm:$0xff] }
 0xb2f   :  { %15880 = vst [vmem:[#allocation66_spill] sm:$0xff] %v14509_v5  ;;  %15881 = vst [vmem:[#allocation97_spill] sm:$0xff] %v14511_v63  ;;  %v14515_v48 = vld [vmem:[#allocation6 + $0x2d8] sm:$0xff]  ;;  %v14517_v37 = vld [vmem:[#allocation6 + $0x2e0] sm:$0xff] }
 0xb30   :  { %15882 = vst [vmem:[#allocation69_spill] sm:$0xff] %v14513_v49  ;;  %15883 = vst [vmem:[#allocation37_spill] sm:$0xff] %v14515_v48  ;;  %v14519_v1 = vld [vmem:[#allocation6 + $0x2e8] sm:$0xff]  ;;  %v14521_v3 = vld [vmem:[#allocation6 + $0x2f0] sm:$0xff] }
 0xb31   :  { %15884 = vst [vmem:[#allocation36_spill] sm:$0xff] %v14517_v37  ;;  %15885 = vst [vmem:[#allocation68_spill] sm:$0xff] %v14519_v1  ;;  %v14523_v18 = vld [vmem:[#allocation6 + $0x2f8] sm:$0xff]  ;;  %v14525_v55 = vld [vmem:[#allocation6 + $0x300] sm:$0xff] }
 0xb32   :  { %15886 = vst [vmem:[#allocation96_spill] sm:$0xff] %v14521_v3  ;;  %15887 = vst [vmem:[#allocation99_spill] sm:$0xff] %v14523_v18  ;;  %v14527_v27 = vld [vmem:[#allocation6 + $0x308] sm:$0xff]  ;;  %v14529_v0 = vld [vmem:[#allocation6 + $0x310] sm:$0xff] }
 0xb33   :  { %15888 = vst [vmem:[#allocation98_spill] sm:$0xff] %v14525_v55  ;;  %15889 = vst [vmem:[#allocation71_spill] sm:$0xff] %v14527_v27  ;;  %v14531_v5 = vld [vmem:[#allocation6 + $0x318] sm:$0xff]  ;;  %v14533_v63 = vld [vmem:[#allocation6 + $0x320] sm:$0xff] }
 0xb34   :  { %15890 = vst [vmem:[#allocation39_spill] sm:$0xff] %v14529_v0  ;;  %15891 = vst [vmem:[#allocation145_spill] sm:$0xff] %v14531_v5  ;;  %v14535_v49 = vld [vmem:[#allocation6 + $0x328] sm:$0xff]  ;;  %v14537_v44 = vld [vmem:[#allocation6 + $0x330] sm:$0xff] }
 0xb35   :  { %15892 = vst [vmem:[#allocation146_spill] sm:$0xff] %v14533_v63  ;;  %15893 = vst [vmem:[#allocation148_spill] sm:$0xff] %v14535_v49  ;;  %v14539_v37 = vld [vmem:[#allocation6 + $0x338] sm:$0xff]  ;;  %v14541_v1 = vld [vmem:[#allocation6 + $0x340] sm:$0xff] }
 0xb36   :  { %15894 = vst [vmem:[#allocation149_spill] sm:$0xff] %v14537_v44  ;;  %15895 = vst [vmem:[#allocation70_spill] sm:$0xff] %v14539_v37  ;;  %v14543_v48 = vld [vmem:[#allocation6 + $0x348] sm:$0xff]  ;;  %v14545_v60 = vld [vmem:[#allocation6 + $0x350] sm:$0xff] }
 0xb37   :  { %15896 = vst [vmem:[#allocation101_spill] sm:$0xff] %v14541_v1  ;;  %15897 = vst [vmem:[#allocation100_spill] sm:$0xff] %v14543_v48  ;;  %v14547_v55 = vld [vmem:[#allocation6 + $0x358] sm:$0xff]  ;;  %v14549_v27 = vld [vmem:[#allocation6 + $0x360] sm:$0xff] }
 0xb38   :  { %15898 = vst [vmem:[#allocation121_spill] sm:$0xff] %v14545_v60  ;;  %15899 = vst [vmem:[#allocation73_spill] sm:$0xff] %v14547_v55  ;;  %v14551_v3 = vld [vmem:[#allocation6 + $0x368] sm:$0xff]  ;;  %v14553_v35 = vld [vmem:[#allocation6 + $0x370] sm:$0xff] }
 0xb39   :  { %15900 = vst [vmem:[#allocation41_spill] sm:$0xff] %v14549_v27  ;;  %15901 = vst [vmem:[#allocation120_spill] sm:$0xff] %v14551_v3  ;;  %v14555_v63 = vld [vmem:[#allocation6 + $0x378] sm:$0xff]  ;;  %v14557_v49 = vld [vmem:[#allocation6 + $0x380] sm:$0xff] }
 0xb3a   :  { %15902 = vst [vmem:[#allocation123_spill] sm:$0xff] %v14553_v35  ;;  %15903 = vst [vmem:[#allocation104_spill] sm:$0xff] %v14555_v63  ;;  %v14559_v18 = vld [vmem:[#allocation6 + $0x388] sm:$0xff]  ;;  %v14561_v10 = vld [vmem:[#allocation6 + $0x390] sm:$0xff] }
 0xb3b   :  { %15904 = vst [vmem:[#allocation77_spill] sm:$0xff] %v14557_v49  ;;  %15905 = vst [vmem:[#allocation43_spill] sm:$0xff] %v14559_v18  ;;  %v14563_v1 = vld [vmem:[#allocation6 + $0x398] sm:$0xff]  ;;  %v14565_v48 = vld [vmem:[#allocation6 + $0x3a0] sm:$0xff] }
 0xb3c   :  { %15906 = vst [vmem:[#allocation124_spill] sm:$0xff] %v14561_v10  ;;  %15907 = vst [vmem:[#allocation72_spill] sm:$0xff] %v14563_v1  ;;  %v14567_v0 = vld [vmem:[#allocation6 + $0x3a8] sm:$0xff]  ;;  %v14569_v21 = vld [vmem:[#allocation6 + $0x3b0] sm:$0xff] }
 0xb3d   :  { %15908 = vst [vmem:[#allocation40_spill] sm:$0xff] %v14565_v48  ;;  %15909 = vst [vmem:[#allocation103_spill] sm:$0xff] %v14567_v0  ;;  %v14571_v27 = vld [vmem:[#allocation6 + $0x3b8] sm:$0xff]  ;;  %v14573_v3 = vld [vmem:[#allocation6 + $0x3c0] sm:$0xff] }
 0xb3e   :  { %15910 = vst [vmem:[#allocation75_spill] sm:$0xff] %v14569_v21  ;;  %15911 = vst [vmem:[#allocation122_spill] sm:$0xff] %v14571_v27  ;;  %v14575_v5 = vld [vmem:[#allocation6 + $0x3c8] sm:$0xff]  ;;  %v14577_v31 = vld [vmem:[#allocation6 + $0x3d0] sm:$0xff] }
 0xb3f   :  { %15912 = vst [vmem:[#allocation102_spill] sm:$0xff] %v14573_v3  ;;  %15913 = vst [vmem:[#allocation125_spill] sm:$0xff] %v14575_v5  ;;  %v14579_v49 = vld [vmem:[#allocation6 + $0x3d8] sm:$0xff]  ;;  %v14581_v18 = vld [vmem:[#allocation6 + $0x3e0] sm:$0xff] }
 0xb40   :  { %15914 = vst [vmem:[#allocation74_spill] sm:$0xff] %v14577_v31  ;;  %15915 = vst [vmem:[#allocation151_spill] sm:$0xff] %v14579_v49  ;;  %v14583_v44 = vld [vmem:[#allocation6 + $0x3e8] sm:$0xff]  ;;  %v14585_v12 = vld [vmem:[#allocation6 + $0x3f0] sm:$0xff] }
 0xb41   :  { %15916 = vst [vmem:[#allocation152_spill] sm:$0xff] %v14581_v18  ;;  %15917 = vst [vmem:[#allocation153_spill] sm:$0xff] %v14583_v44  ;;  %v14587_v48 = vld [vmem:[#allocation6 + $0x3f8] sm:$0xff]  ;;  %v14589_v0 = vld [vmem:[#allocation6 + $0x400] sm:$0xff] }
 0xb42   :  { %15918 = vst [vmem:[#allocation154_spill] sm:$0xff] %v14585_v12  ;;  %15919 = vst [vmem:[#allocation155_spill] sm:$0xff] %v14587_v48  ;;  %v14591_v37 = vld [vmem:[#allocation6 + $0x408] sm:$0xff]  ;;  %v14593_v8 = vld [vmem:[#allocation6 + $0x410] sm:$0xff] }
 0xb43   :  { %15920 = vst [vmem:[#allocation156_spill] sm:$0xff] %v14593_v8  ;;  %v14595_v3 = vld [vmem:[#allocation6 + $0x418] sm:$0xff]  ;;  %v14597_v5 = vld [vmem:[#allocation6 + $0x420] sm:$0xff]  ;;  %v14599_v60 = vld [vmem:[#allocation6 + $0x428] sm:$0xff] }
 0xb44   :  { %15921 = vst [vmem:[#allocation157_spill] sm:$0xff] %v14595_v3  ;;  %v14601_v56 = vld [vmem:[#allocation6 + $0x430] sm:$0xff]  ;;  %v14603_v18 = vld [vmem:[#allocation6 + $0x438] sm:$0xff]  ;;  %v14605_v44 = vld [vmem:[#allocation6 + $0x440] sm:$0xff] }
 0xb45   :  { %15922 = vst [vmem:[#allocation158_spill] sm:$0xff] %v14601_v56  ;;  %15923 = vst [vmem:[#allocation159_spill] sm:$0xff] %v14603_v18  ;;  %v14607_v55 = vld [vmem:[#allocation6 + $0x448] sm:$0xff]  ;;  %v14609_v45 = vld [vmem:[#allocation6 + $0x450] sm:$0xff] }
 0xb46   :  { %15924 = vst [vmem:[#allocation160_spill] sm:$0xff] %v14609_v45  ;;  %v14611_v35 = vld [vmem:[#allocation6 + $0x458] sm:$0xff]  ;;  %v14613_v9 = vld [vmem:[#allocation6 + $0x460] sm:$0xff]  ;;  %v14615_v8 = vld [vmem:[#allocation6 + $0x468] sm:$0xff] }
 0xb47   :  { %15925 = vst [vmem:[#allocation161_spill] sm:$0xff] %v14611_v35  ;;  %v14617_v3 = vld [vmem:[#allocation6 + $0x470] sm:$0xff]  ;;  %v14619_v63 = vld [vmem:[#allocation6 + $0x478] sm:$0xff]  ;;  %v14621_v14 = vld [vmem:[#allocation6 + $0x480] sm:$0xff] }
 0xb48   :  { %15926 = vst [vmem:[#allocation162_spill] sm:$0xff] %v14617_v3  ;;  %15927 = vst [vmem:[#allocation163_spill] sm:$0xff] %v14619_v63  ;;  %v14623_v56 = vld [vmem:[#allocation6 + $0x488] sm:$0xff]  ;;  %v14625_v18 = vld [vmem:[#allocation6 + $0x490] sm:$0xff] }
 0xb49   :  { %15928 = vst [vmem:[#allocation164_spill] sm:$0xff] %v14625_v18  ;;  %v14627_v10 = vld [vmem:[#allocation6 + $0x498] sm:$0xff]  ;;  %v14629_v7 = vld [vmem:[#allocation6 + $0x4a0] sm:$0xff]  ;;  %v14631_v45 = vld [vmem:[#allocation6 + $0x4a8] sm:$0xff] }
 0xb4a   :  { %15929 = vst [vmem:[#allocation165_spill] sm:$0xff] %v14627_v10  ;;  %v14633_v35 = vld [vmem:[#allocation6 + $0x4b0] sm:$0xff]  ;;  %v14635_v1 = vld [vmem:[#allocation6 + $0x4b8] sm:$0xff]  ;;  %v14637_v32 = vld [vmem:[#allocation6 + $0x4c0] sm:$0xff] }
 0xb4b   :  { %15930 = vst [vmem:[#allocation166_spill] sm:$0xff] %v14633_v35  ;;  %15931 = vst [vmem:[#allocation167_spill] sm:$0xff] %v14635_v1  ;;  %v14639_v3 = vld [vmem:[#allocation6 + $0x4c8] sm:$0xff]  ;;  %v14641_v63 = vld [vmem:[#allocation6 + $0x4d0] sm:$0xff] }
 0xb4c   :  { %15932 = vst [vmem:[#allocation168_spill] sm:$0xff] %v14641_v63  ;;  %v14643_v21 = vld [vmem:[#allocation6 + $0x4d8] sm:$0xff]  ;;  %v14645_v33 = vld [vmem:[#allocation6 + $0x4e0] sm:$0xff]  ;;  %v14647_v18 = vld [vmem:[#allocation6 + $0x4e8] sm:$0xff] }
 0xb4d   :  { %15933 = vst [vmem:[#allocation169_spill] sm:$0xff] %v14643_v21  ;;  %v14649_v10 = vld [vmem:[#allocation6 + $0x4f0] sm:$0xff]  ;;  %v14651_v27 = vld [vmem:[#allocation6 + $0x4f8] sm:$0xff]  ;;  %v14653_v11 = vld [vmem:[#allocation6 + $0x500] sm:$0xff] }
 0xb4e   :  { %15934 = vst [vmem:[#allocation170_spill] sm:$0xff] %v14649_v10  ;;  %15935 = vst [vmem:[#allocation171_spill] sm:$0xff] %v14651_v27  ;;  %v14655_v35 = vld [vmem:[#allocation6 + $0x508] sm:$0xff]  ;;  %v14657_v1 = vld [vmem:[#allocation6 + $0x510] sm:$0xff] }
 0xb4f   :  { %15936 = vst [vmem:[#allocation172_spill] sm:$0xff] %v14657_v1  ;;  %v14659_v31 = vld [vmem:[#allocation6 + $0x518] sm:$0xff]  ;;  %v14661_v49 = vld [vmem:[#allocation6 + $0x520] sm:$0xff]  ;;  %v14663_v63 = vld [vmem:[#allocation6 + $0x528] sm:$0xff] }
 0xb50   :  { %15937 = vst [vmem:[#allocation173_spill] sm:$0xff] %v14659_v31  ;;  %v14665_v21 = vld [vmem:[#allocation6 + $0x530] sm:$0xff]  ;;  %v14667_v12 = vld [vmem:[#allocation6 + $0x538] sm:$0xff]  ;;  %v14669_v48 = vld [vmem:[#allocation6 + $0x540] sm:$0xff] }
 0xb51   :  { %15938 = vst [vmem:[#allocation174_spill] sm:$0xff] %v14665_v21  ;;  %15939 = vst [vmem:[#allocation175_spill] sm:$0xff] %v14667_v12  ;;  %v14671_v10 = vld [vmem:[#allocation6 + $0x548] sm:$0xff]  ;;  %v14673_v27 = vld [vmem:[#allocation6 + $0x550] sm:$0xff] }
 0xb52   :  { %15940 = vst [vmem:[#allocation176_spill] sm:$0xff] %v14673_v27  ;;  %v14675_v26 = vld [vmem:[#allocation6 + $0x558] sm:$0xff]  ;;  %v14677_v20 = vld [vmem:[#allocation6 + $0x560] sm:$0xff]  ;;  %v14679_v1 = vld [vmem:[#allocation6 + $0x568] sm:$0xff] }
 0xb53   :  { %15941 = vst [vmem:[#allocation177_spill] sm:$0xff] %v14675_v26  ;;  %v14681_v31 = vld [vmem:[#allocation6 + $0x570] sm:$0xff]  ;;  %v14683_v34 = vld [vmem:[#allocation6 + $0x578] sm:$0xff]  ;;  %v14685_v43 = vld [vmem:[#allocation6 + $0x580] sm:$0xff] }
 0xb54   :  { %15942 = vst [vmem:[#allocation178_spill] sm:$0xff] %v14681_v31  ;;  %15943 = vst [vmem:[#allocation179_spill] sm:$0xff] %v14683_v34  ;;  %v14687_v21 = vld [vmem:[#allocation6 + $0x588] sm:$0xff]  ;;  %v14689_v12 = vld [vmem:[#allocation6 + $0x590] sm:$0xff] }
 0xb55   :  { %15944 = vst [vmem:[#allocation180_spill] sm:$0xff] %v14689_v12  ;;  %v14691_v47 = vld [vmem:[#allocation6 + $0x598] sm:$0xff]  ;;  %v14693_v29 = vld [vmem:[#allocation6 + $0x5a0] sm:$0xff]  ;;  %v14695_v27 = vld [vmem:[#allocation6 + $0x5a8] sm:$0xff] }
 0xb56   :  { %15945 = vst [vmem:[#allocation181_spill] sm:$0xff] %v14691_v47  ;;  %v14697_v26 = vld [vmem:[#allocation6 + $0x5b0] sm:$0xff]  ;;  %v14699_v62 = vld [vmem:[#allocation6 + $0x5b8] sm:$0xff]  ;;  %v14701_v42 = vld [vmem:[#allocation6 + $0x5c0] sm:$0xff] }
 0xb57   :  { %15946 = vst [vmem:[#allocation182_spill] sm:$0xff] %v14697_v26  ;;  %15947 = vst [vmem:[#allocation183_spill] sm:$0xff] %v14699_v62  ;;  %v14703_v31 = vld [vmem:[#allocation6 + $0x5c8] sm:$0xff]  ;;  %v14705_v34 = vld [vmem:[#allocation6 + $0x5d0] sm:$0xff] }
 0xb58   :  { %15948 = vst [vmem:[#allocation184_spill] sm:$0xff] %v14705_v34  ;;  %v14707_v19 = vld [vmem:[#allocation6 + $0x5d8] sm:$0xff]  ;;  %v14709_v17 = vld [vmem:[#allocation6 + $0x5e0] sm:$0xff]  ;;  %v14711_v12 = vld [vmem:[#allocation6 + $0x5e8] sm:$0xff] }
 0xb59   :  { %15949 = vst [vmem:[#allocation185_spill] sm:$0xff] %v14707_v19  ;;  %v14713_v47 = vld [vmem:[#allocation6 + $0x5f0] sm:$0xff]  ;;  %v14715_v25 = vld [vmem:[#allocation6 + $0x5f8] sm:$0xff]  ;;  %v14717_v30 = vld [vmem:[#allocation6 + $0x600] sm:$0xff] }
 0xb5a   :  { %15950 = vst [vmem:[#allocation186_spill] sm:$0xff] %v14713_v47  ;;  %15951 = vst [vmem:[#allocation187_spill] sm:$0xff] %v14715_v25  ;;  %v14719_v26 = vld [vmem:[#allocation6 + $0x608] sm:$0xff]  ;;  %v14721_v62 = vld [vmem:[#allocation6 + $0x610] sm:$0xff]  ;;  %v8479_v47 = vpack.i.bf16 %v14331_v58, %v14325_v59 }
 0xb5b   :  { %15952 = vst [vmem:[#allocation188_spill] sm:$0xff] %v14721_v62  ;;  %v14723_v50 = vld [vmem:[#allocation6 + $0x618] sm:$0xff]  ;;  %v14725_v38 = vld [vmem:[#allocation6 + $0x620] sm:$0xff]  ;;  %v14727_v34 = vld [vmem:[#allocation6 + $0x628] sm:$0xff] }
 0xb5c   :  { %15953 = vst [vmem:[#allocation189_spill] sm:$0xff] %v14723_v50  ;;  %v14729_v19 = vld [vmem:[#allocation6 + $0x630] sm:$0xff]  ;;  %v14731_v15 = vld [vmem:[#allocation6 + $0x638] sm:$0xff] }
 0xb5d   :  { %15954 = vst [vmem:[#allocation190_spill] sm:$0xff] %v14729_v19  ;;  %15955 = vst [vmem:[#allocation191_spill] sm:$0xff] %v14731_v15 }
 0xb5e   :  { %8705 = dma.done.wait [#allocation7 + $0x1], 25600 }
 0xb5f   :  { %8706 = vsyncadd [#allocation7 + $0x1], 4294941696  ;;  %s8740_s7 = smov 112   ;;  %v6766_v62 = vld [vmem:[#allocation6 + $0x828] sm:$0xff]  ;;  %v6768_v50 = vld [vmem:[#allocation6 + $0x838] sm:$0xff]  ;;  %vm6916_vm9 = vcmask 916480  }
 0xb60   :  { %6914 = vrot.lane.b32.xlu1 %v14328_v51, %s8740_s7  ;;  %8480 = vrot.lane.b32.xlu0 %v8479_v47, %s8740_s7  ;;  %v6765_v25 = vld [vmem:[#allocation6 + $0x820] sm:$0xff]  ;;  %v6767_v53 = vld [vmem:[#allocation6 + $0x830] sm:$0xff]  ;;  %v6762_v19 = vld [vmem:[#allocation6 + $0x808] sm:$0xff]  ;;  %vm7519_vm14 = vcmask 943104   ;;  %s8742_s30 = smov [#allocation20]  }
 0xb61   :  { %6925 = vmatprep.subr.mxu1 %v6766_v62  ;;  %7067 = vmatprep.subr.mxu0 %v6768_v50  ;;  %v6764_v24 = vld [vmem:[#allocation6 + $0x818] sm:$0xff]  ;;  %v6761_v15 = vld [vmem:[#allocation6 + $0x800] sm:$0xff]  ;;  %v6763_v59 = vld [vmem:[#allocation6 + $0x810] sm:$0xff]  ;;  %s7884_s14 = sshll.u32 %s8742_s30, 4  ;;  %s7885_s14 = int_to_ptr.vmem [resolvable:$true] %s7884_s14 }
 0xb62   :  { %6926 = vmatpush1.msra.mxu1 %v6765_v25  ;;  %7068 = vmatpush1.msra.mxu0 %v6767_v53  ;;  %v6758_v58 = vld [vmem:[#allocation6 + $0x7e8] sm:$0xff]  ;;  %v6760_v22 = vld [vmem:[#allocation6 + $0x7f8] sm:$0xff]  ;;  %v6757_v51 = vld [vmem:[#allocation6 + $0x7e0] sm:$0xff]  ;;  %p8680_p4 = scmp.lt.s32.totalorder %s7885_s14, %s7885_s14 }
 0xb63   :  { %6927 = vmatprep.subr.mxu1 %v6762_v19  ;;  %7069 = vmatprep.subr.mxu0 %v6764_v24  ;;  %v6759_v47 = vld [vmem:[#allocation6 + $0x7f0] sm:$0xff]  ;;  %v6754_v46 = vld [vmem:[#allocation6 + $0x7c8] sm:$0xff]  ;;  %v6756_v36 = vld [vmem:[#allocation6 + $0x7d8] sm:$0xff] }
 0xb64   :  { %6908 = vrot.lane.b32.xlu0 %v14323_v28, %s8740_s7  ;;  %6928 = vmatpush1.msra.mxu1 %v6761_v15  ;;  %v6753_v62 = vld [vmem:[#allocation6 + $0x7c0] sm:$0xff]  ;;  %v6755_v50 = vld [vmem:[#allocation6 + $0x7d0] sm:$0xff]  ;;  %v6750_v25 = vld [vmem:[#allocation6 + $0x7a8] sm:$0xff] }
 0xb65   :  { %7070 = vmatpush1.msra.mxu0 %v6763_v59  ;;  %6929 = vmatprep.subr.mxu1 %v6758_v58  ;;  %v6752_v53 = vld [vmem:[#allocation6 + $0x7b8] sm:$0xff]  ;;  %v6749_v13 = vld [vmem:[#allocation6 + $0x7a0] sm:$0xff]  ;;  %v6751_v19 = vld [vmem:[#allocation6 + $0x7b0] sm:$0xff] }
 0xb66   :  { %7071 = vmatprep.subr.mxu0 %v6760_v22  ;;  %6930 = vmatpush1.msra.mxu1 %v6757_v51  ;;  %v6746_v24 = vld [vmem:[#allocation6 + $0x788] sm:$0xff]  ;;  %v6748_v41 = vld [vmem:[#allocation6 + $0x798] sm:$0xff]  ;;  %v6745_v15 = vld [vmem:[#allocation6 + $0x780] sm:$0xff] }
 0xb67   :  { %7072 = vmatpush1.msra.mxu0 %v6759_v47  ;;  %6931 = vmatprep.subr.mxu1 %v6754_v46  ;;  %v6747_v59 = vld [vmem:[#allocation6 + $0x790] sm:$0xff]  ;;  %v6742_v22 = vld [vmem:[#allocation6 + $0x768] sm:$0xff]  ;;  %v6744_v58 = vld [vmem:[#allocation6 + $0x778] sm:$0xff] }
 0xb68   :  { %7073 = vmatprep.subr.mxu0 %v6756_v36  ;;  %6932 = vmatpush1.msra.mxu1 %v6753_v62  ;;  %v6741_v51 = vld [vmem:[#allocation6 + $0x760] sm:$0xff]  ;;  %v6743_v47 = vld [vmem:[#allocation6 + $0x770] sm:$0xff]  ;;  %v6738_v46 = vld [vmem:[#allocation6 + $0x748] sm:$0xff] }
 0xb69   :  { %7074 = vmatpush1.msra.mxu0 %v6755_v50  ;;  %6933 = vmatprep.subr.mxu1 %v6750_v25  ;;  %v6740_v36 = vld [vmem:[#allocation6 + $0x758] sm:$0xff]  ;;  %v6737_v62 = vld [vmem:[#allocation6 + $0x740] sm:$0xff]  ;;  %v6739_v50 = vld [vmem:[#allocation6 + $0x750] sm:$0xff] }
 0xb6a   :  { %7075 = vmatprep.subr.mxu0 %v6752_v53  ;;  %6934 = vmatpush1.msra.mxu1 %v6749_v13  ;;  %v6734_v25 = vld [vmem:[#allocation6 + $0x728] sm:$0xff]  ;;  %v6736_v53 = vld [vmem:[#allocation6 + $0x738] sm:$0xff]  ;;  %v6733_v13 = vld [vmem:[#allocation6 + $0x720] sm:$0xff] }
 0xb6b   :  { %7076 = vmatpush1.msra.mxu0 %v6751_v19  ;;  %6935 = vmatprep.subr.mxu1 %v6746_v24  ;;  %v6735_v19 = vld [vmem:[#allocation6 + $0x730] sm:$0xff]  ;;  %v6732_v24 = vld [vmem:[#allocation6 + $0x718] sm:$0xff] }
 0xb6c   :  { %7077 = vmatprep.subr.mxu0 %v6748_v41  ;;  %6936 = vmatpush1.msra.mxu1 %v6745_v15  ;;  %v6730_v41 = vld [vmem:[#allocation6 + $0x708] sm:$0xff]  ;;  %v6729_v15 = vld [vmem:[#allocation6 + $0x700] sm:$0xff] }
 0xb6d   :  { %7078 = vmatpush1.msra.mxu0 %v6747_v59  ;;  %6937 = vmatprep.subr.mxu1 %v6742_v22  ;;  %v6731_v59 = vld [vmem:[#allocation6 + $0x710] sm:$0xff]  ;;  %v6726_v22 = vld [vmem:[#allocation6 + $0x6e8] sm:$0xff] }
 0xb6e   :  { %7079 = vmatprep.subr.mxu0 %v6744_v58  ;;  %6938 = vmatpush1.msra.mxu1 %v6741_v51  ;;  %v6728_v58 = vld [vmem:[#allocation6 + $0x6f8] sm:$0xff]  ;;  %v6725_v51 = vld [vmem:[#allocation6 + $0x6e0] sm:$0xff] }
 0xb6f   :  { %7080 = vmatpush1.msra.mxu0 %v6743_v47  ;;  %6939 = vmatprep.subr.mxu1 %v6738_v46  ;;  %v6727_v47 = vld [vmem:[#allocation6 + $0x6f0] sm:$0xff]  ;;  %v6722_v46 = vld [vmem:[#allocation6 + $0x6c8] sm:$0xff] }
 0xb70   :  { %7081 = vmatprep.subr.mxu0 %v6740_v36  ;;  %6940 = vmatpush1.msra.mxu1 %v6737_v62  ;;  %v6724_v36 = vld [vmem:[#allocation6 + $0x6d8] sm:$0xff]  ;;  %v6721_v62 = vld [vmem:[#allocation6 + $0x6c0] sm:$0xff] }
 0xb71   :  { %7082 = vmatpush1.msra.mxu0 %v6739_v50  ;;  %6941 = vmatprep.subr.mxu1 %v6734_v25  ;;  %v6723_v50 = vld [vmem:[#allocation6 + $0x6d0] sm:$0xff]  ;;  %v6718_v25 = vld [vmem:[#allocation6 + $0x6a8] sm:$0xff] }
 0xb72   :  { %7083 = vmatprep.subr.mxu0 %v6736_v53  ;;  %6942 = vmatpush1.msra.mxu1 %v6733_v13  ;;  %v6720_v53 = vld [vmem:[#allocation6 + $0x6b8] sm:$0xff]  ;;  %v6717_v13 = vld [vmem:[#allocation6 + $0x6a0] sm:$0xff] }
 0xb73   :  { %7084 = vmatpush1.msra.mxu0 %v6735_v19  ;;  %6943 = vmatprep.subr.mxu1 %v6730_v41  ;;  %v6719_v19 = vld [vmem:[#allocation6 + $0x6b0] sm:$0xff]  ;;  %v6714_v41 = vld [vmem:[#allocation6 + $0x688] sm:$0xff] }
 0xb74   :  { %7085 = vmatprep.subr.mxu0 %v6732_v24  ;;  %6944 = vmatpush1.msra.mxu1 %v6729_v15  ;;  %v6716_v24 = vld [vmem:[#allocation6 + $0x698] sm:$0xff]  ;;  %v6713_v15 = vld [vmem:[#allocation6 + $0x680] sm:$0xff] }
 0xb75   :  { %7086 = vmatpush1.msra.mxu0 %v6731_v59  ;;  %6945 = vmatprep.subr.mxu1 %v6726_v22  ;;  %v6715_v59 = vld [vmem:[#allocation6 + $0x690] sm:$0xff]  ;;  %v6710_v22 = vld [vmem:[#allocation6 + $0x668] sm:$0xff] }
 0xb76   :  { %7087 = vmatprep.subr.mxu0 %v6728_v58  ;;  %6946 = vmatpush1.msra.mxu1 %v6725_v51  ;;  %v6712_v58 = vld [vmem:[#allocation6 + $0x678] sm:$0xff]  ;;  %v6709_v51 = vld [vmem:[#allocation6 + $0x660] sm:$0xff] }
 0xb77   :  { %7088 = vmatpush1.msra.mxu0 %v6727_v47  ;;  %6947 = vmatprep.subr.mxu1 %v6722_v46  ;;  %v6711_v47 = vld [vmem:[#allocation6 + $0x670] sm:$0xff]  ;;  %v6706_v46 = vld [vmem:[#allocation6 + $0x648] sm:$0xff] }
 0xb78   :  { %7089 = vmatprep.subr.mxu0 %v6724_v36  ;;  %6948 = vmatpush1.msra.mxu1 %v6721_v62  ;;  %v6708_v36 = vld [vmem:[#allocation6 + $0x658] sm:$0xff]  ;;  %v6705_v62 = vld [vmem:[#allocation6 + $0x640] sm:$0xff] }
 0xb79   :  { %7090 = vmatpush1.msra.mxu0 %v6723_v50  ;;  %6949 = vmatprep.subr.mxu1 %v6718_v25  ;;  %v6707_v50 = vld [vmem:[#allocation6 + $0x650] sm:$0xff]  ;;  %v6830_v25 = vld [vmem:[#allocation6 + $0xa28] sm:$0xff] }
 0xb7a   :  { %7091 = vmatprep.subr.mxu0 %v6720_v53  ;;  %6950 = vmatpush1.msra.mxu1 %v6717_v13  ;;  %v6832_v53 = vld [vmem:[#allocation6 + $0xa38] sm:$0xff]  ;;  %v6829_v13 = vld [vmem:[#allocation6 + $0xa20] sm:$0xff] }
 0xb7b   :  { %7092 = vmatpush1.msra.mxu0 %v6719_v19  ;;  %6951 = vmatprep.subr.mxu1 %v6714_v41  ;;  %v6831_v19 = vld [vmem:[#allocation6 + $0xa30] sm:$0xff]  ;;  %v6826_v41 = vld [vmem:[#allocation6 + $0xa08] sm:$0xff] }
 0xb7c   :  { %7093 = vmatprep.subr.mxu0 %v6716_v24  ;;  %6952 = vmatpush1.msra.mxu1 %v6713_v15  ;;  %v6828_v24 = vld [vmem:[#allocation6 + $0xa18] sm:$0xff]  ;;  %v6825_v15 = vld [vmem:[#allocation6 + $0xa00] sm:$0xff] }
 0xb7d   :  { %7094 = vmatpush1.msra.mxu0 %v6715_v59  ;;  %6953 = vmatprep.subr.mxu1 %v6710_v22  ;;  %v6827_v59 = vld [vmem:[#allocation6 + $0xa10] sm:$0xff]  ;;  %v6822_v22 = vld [vmem:[#allocation6 + $0x9e8] sm:$0xff] }
 0xb7e   :  { %7095 = vmatprep.subr.mxu0 %v6712_v58  ;;  %6954 = vmatpush1.msra.mxu1 %v6709_v51  ;;  %v6824_v58 = vld [vmem:[#allocation6 + $0x9f8] sm:$0xff]  ;;  %v6821_v51 = vld [vmem:[#allocation6 + $0x9e0] sm:$0xff] }
 0xb7f   :  { %7096 = vmatpush1.msra.mxu0 %v6711_v47  ;;  %6955 = vmatprep.subr.mxu1 %v6706_v46  ;;  %v6823_v47 = vld [vmem:[#allocation6 + $0x9f0] sm:$0xff]  ;;  %v6818_v46 = vld [vmem:[#allocation6 + $0x9c8] sm:$0xff] }
 0xb80   :  { %7097 = vmatprep.subr.mxu0 %v6708_v36  ;;  %6956 = vmatpush1.msra.mxu1 %v6705_v62  ;;  %v6820_v36 = vld [vmem:[#allocation6 + $0x9d8] sm:$0xff]  ;;  %v6817_v62 = vld [vmem:[#allocation6 + $0x9c0] sm:$0xff] }
 0xb81   :  { %7098 = vmatpush1.msra.mxu0 %v6707_v50  ;;  %6957 = vmatprep.subr.mxu1 %v6830_v25  ;;  %v6819_v50 = vld [vmem:[#allocation6 + $0x9d0] sm:$0xff]  ;;  %v6814_v25 = vld [vmem:[#allocation6 + $0x9a8] sm:$0xff] }
 0xb82   :  { %7099 = vmatprep.subr.mxu0 %v6832_v53  ;;  %6958 = vmatpush2.msra.mxu1 %v6829_v13  ;;  %v6816_v53 = vld [vmem:[#allocation6 + $0x9b8] sm:$0xff]  ;;  %v6813_v13 = vld [vmem:[#allocation6 + $0x9a0] sm:$0xff] }
 0xb83   :  { %7100 = vmatpush2.msra.mxu0 %v6831_v19  ;;  %6959 = vmatprep.subr.mxu1 %v6826_v41  ;;  %v6815_v19 = vld [vmem:[#allocation6 + $0x9b0] sm:$0xff]  ;;  %v6810_v41 = vld [vmem:[#allocation6 + $0x988] sm:$0xff] }
 0xb84   :  { %7101 = vmatprep.subr.mxu0 %v6828_v24  ;;  %6960 = vmatpush2.msra.mxu1 %v6825_v15  ;;  %v6812_v24 = vld [vmem:[#allocation6 + $0x998] sm:$0xff]  ;;  %v6809_v15 = vld [vmem:[#allocation6 + $0x980] sm:$0xff] }
 0xb85   :  { %7102 = vmatpush2.msra.mxu0 %v6827_v59  ;;  %6961 = vmatprep.subr.mxu1 %v6822_v22  ;;  %v6811_v59 = vld [vmem:[#allocation6 + $0x990] sm:$0xff]  ;;  %v6806_v22 = vld [vmem:[#allocation6 + $0x968] sm:$0xff] }
 0xb86   :  { %7103 = vmatprep.subr.mxu0 %v6824_v58  ;;  %6962 = vmatpush2.msra.mxu1 %v6821_v51  ;;  %v6808_v58 = vld [vmem:[#allocation6 + $0x978] sm:$0xff]  ;;  %v6805_v51 = vld [vmem:[#allocation6 + $0x960] sm:$0xff] }
 0xb87   :  { %7104 = vmatpush2.msra.mxu0 %v6823_v47  ;;  %6963 = vmatprep.subr.mxu1 %v6818_v46  ;;  %v6807_v47 = vld [vmem:[#allocation6 + $0x970] sm:$0xff]  ;;  %v6802_v46 = vld [vmem:[#allocation6 + $0x948] sm:$0xff] }
 0xb88   :  { %7105 = vmatprep.subr.mxu0 %v6820_v36  ;;  %6964 = vmatpush2.msra.mxu1 %v6817_v62  ;;  %v6804_v36 = vld [vmem:[#allocation6 + $0x958] sm:$0xff]  ;;  %v6801_v62 = vld [vmem:[#allocation6 + $0x940] sm:$0xff] }
 0xb89   :  { %7106 = vmatpush2.msra.mxu0 %v6819_v50  ;;  %6965 = vmatprep.subr.mxu1 %v6814_v25  ;;  %v6803_v50 = vld [vmem:[#allocation6 + $0x950] sm:$0xff]  ;;  %v6798_v25 = vld [vmem:[#allocation6 + $0x928] sm:$0xff] }
 0xb8a   :  { %7107 = vmatprep.subr.mxu0 %v6816_v53  ;;  %6966 = vmatpush2.msra.mxu1 %v6813_v13  ;;  %v6800_v53 = vld [vmem:[#allocation6 + $0x938] sm:$0xff]  ;;  %v6797_v13 = vld [vmem:[#allocation6 + $0x920] sm:$0xff] }
 0xb8b   :  { %7108 = vmatpush2.msra.mxu0 %v6815_v19  ;;  %6967 = vmatprep.subr.mxu1 %v6810_v41  ;;  %v6799_v19 = vld [vmem:[#allocation6 + $0x930] sm:$0xff]  ;;  %v6794_v41 = vld [vmem:[#allocation6 + $0x908] sm:$0xff] }
 0xb8c   :  { %7109 = vmatprep.subr.mxu0 %v6812_v24  ;;  %6968 = vmatpush2.msra.mxu1 %v6809_v15  ;;  %v6796_v24 = vld [vmem:[#allocation6 + $0x918] sm:$0xff]  ;;  %v6793_v15 = vld [vmem:[#allocation6 + $0x900] sm:$0xff] }
 0xb8d   :  { %7110 = vmatpush2.msra.mxu0 %v6811_v59  ;;  %6969 = vmatprep.subr.mxu1 %v6806_v22  ;;  %v6795_v59 = vld [vmem:[#allocation6 + $0x910] sm:$0xff]  ;;  %v6790_v22 = vld [vmem:[#allocation6 + $0x8e8] sm:$0xff] }
 0xb8e   :  { %7111 = vmatprep.subr.mxu0 %v6808_v58  ;;  %6970 = vmatpush2.msra.mxu1 %v6805_v51  ;;  %v6792_v58 = vld [vmem:[#allocation6 + $0x8f8] sm:$0xff]  ;;  %v6789_v51 = vld [vmem:[#allocation6 + $0x8e0] sm:$0xff] }
 0xb8f   :  { %7112 = vmatpush2.msra.mxu0 %v6807_v47  ;;  %6971 = vmatprep.subr.mxu1 %v6802_v46  ;;  %v6791_v47 = vld [vmem:[#allocation6 + $0x8f0] sm:$0xff]  ;;  %v6786_v46 = vld [vmem:[#allocation6 + $0x8c8] sm:$0xff] }
 0xb90   :  { %7113 = vmatprep.subr.mxu0 %v6804_v36  ;;  %6972 = vmatpush2.msra.mxu1 %v6801_v62  ;;  %v6788_v36 = vld [vmem:[#allocation6 + $0x8d8] sm:$0xff]  ;;  %v6785_v62 = vld [vmem:[#allocation6 + $0x8c0] sm:$0xff] }
 0xb91   :  { %7114 = vmatpush2.msra.mxu0 %v6803_v50  ;;  %6973 = vmatprep.subr.mxu1 %v6798_v25  ;;  %v6787_v50 = vld [vmem:[#allocation6 + $0x8d0] sm:$0xff]  ;;  %v6782_v25 = vld [vmem:[#allocation6 + $0x8a8] sm:$0xff] }
 0xb92   :  { %7115 = vmatprep.subr.mxu0 %v6800_v53  ;;  %6974 = vmatpush2.msra.mxu1 %v6797_v13  ;;  %v6784_v53 = vld [vmem:[#allocation6 + $0x8b8] sm:$0xff]  ;;  %v6781_v13 = vld [vmem:[#allocation6 + $0x8a0] sm:$0xff] }
 0xb93   :  { %7116 = vmatpush2.msra.mxu0 %v6799_v19  ;;  %6975 = vmatprep.subr.mxu1 %v6794_v41  ;;  %v6783_v19 = vld [vmem:[#allocation6 + $0x8b0] sm:$0xff]  ;;  %v6778_v41 = vld [vmem:[#allocation6 + $0x888] sm:$0xff] }
 0xb94   :  { %7117 = vmatprep.subr.mxu0 %v6796_v24  ;;  %6976 = vmatpush2.msra.mxu1 %v6793_v15  ;;  %v6780_v24 = vld [vmem:[#allocation6 + $0x898] sm:$0xff]  ;;  %v6777_v15 = vld [vmem:[#allocation6 + $0x880] sm:$0xff] }
 0xb95   :  { %7118 = vmatpush2.msra.mxu0 %v6795_v59  ;;  %6977 = vmatprep.subr.mxu1 %v6790_v22  ;;  %v6779_v59 = vld [vmem:[#allocation6 + $0x890] sm:$0xff]  ;;  %v6774_v22 = vld [vmem:[#allocation6 + $0x868] sm:$0xff] }
 0xb96   :  { %7119 = vmatprep.subr.mxu0 %v6792_v58  ;;  %6978 = vmatpush2.msra.mxu1 %v6789_v51  ;;  %v6776_v58 = vld [vmem:[#allocation6 + $0x878] sm:$0xff]  ;;  %v6773_v51 = vld [vmem:[#allocation6 + $0x860] sm:$0xff] }
 0xb97   :  { %7120 = vmatpush2.msra.mxu0 %v6791_v47  ;;  %6979 = vmatprep.subr.mxu1 %v6786_v46  ;;  %v6775_v47 = vld [vmem:[#allocation6 + $0x870] sm:$0xff]  ;;  %v6770_v46 = vld [vmem:[#allocation6 + $0x848] sm:$0xff] }
 0xb98   :  { %7121 = vmatprep.subr.mxu0 %v6788_v36  ;;  %6980 = vmatpush2.msra.mxu1 %v6785_v62  ;;  %v6772_v36 = vld [vmem:[#allocation6 + $0x858] sm:$0xff]  ;;  %v6769_v62 = vld [vmem:[#allocation6 + $0x840] sm:$0xff] }
 0xb99   :  { %7122 = vmatpush2.msra.mxu0 %v6787_v50  ;;  %6981 = vmatprep.subr.mxu1 %v6782_v25  ;;  %v6771_v50 = vld [vmem:[#allocation6 + $0x850] sm:$0xff]  ;;  %v6894_v25 = vld [vmem:[#allocation6 + $0xc28] sm:$0xff] }
 0xb9a   :  { %7123 = vmatprep.subr.mxu0 %v6784_v53  ;;  %6982 = vmatpush2.msra.mxu1 %v6781_v13 }
 0xb9b   :  { %7124 = vmatpush2.msra.mxu0 %v6783_v19  ;;  %6983 = vmatprep.subr.mxu1 %v6778_v41 }
 0xb9c   :  { %7125 = vmatprep.subr.mxu0 %v6780_v24  ;;  %6984 = vmatpush2.msra.mxu1 %v6777_v15  ;;  %v6893_v15 = vld [vmem:[#allocation6 + $0xc20] sm:$0xff] }
 0xb9d   :  { %7126 = vmatpush2.msra.mxu0 %v6779_v59  ;;  %6985 = vmatprep.subr.mxu1 %v6774_v22  ;;  %v6890_v22 = vld [vmem:[#allocation6 + $0xc08] sm:$0xff] }
 0xb9e   :  { %7127 = vmatprep.subr.mxu0 %v6776_v58  ;;  %6986 = vmatpush2.msra.mxu1 %v6773_v51  ;;  %v6886_v58 = vld [vmem:[#allocation6 + $0xbe8] sm:$0xff]  ;;  %v6885_v51 = vld [vmem:[#allocation6 + $0xbe0] sm:$0xff] }
 0xb9f   :  { %7128 = vmatpush2.msra.mxu0 %v6775_v47  ;;  %6987 = vmatprep.subr.mxu1 %v6770_v46  ;;  %v6882_v47 = vld [vmem:[#allocation6 + $0xbc8] sm:$0xff]  ;;  %v6881_v46 = vld [vmem:[#allocation6 + $0xbc0] sm:$0xff] }
 0xba0   :  { %7129 = vmatprep.subr.mxu0 %v6772_v36  ;;  %6988 = vmatpush2.msra.mxu1 %v6769_v62  ;;  %v6878_v36 = vld [vmem:[#allocation6 + $0xba8] sm:$0xff] }
 0xba1   :  { %7130 = vmatpush2.msra.mxu0 %v6771_v50  ;;  %6996 = vmatprep.subr.mxu1 %v6894_v25  ;;  %v6883_v50 = vld [vmem:[#allocation6 + $0xbd0] sm:$0xff] }
 0xba2   :  { %7282 = vmatprep.subr.mxu0 %v14711_v12  ;;  %v6889_v12 = vld [vmem:[#allocation6 + $0xc00] sm:$0xff]  ;;  %v6879_v25 = vld [vmem:[#allocation6 + $0xbb0] sm:$0xff] }
 0xbd2   :  { %v14738_v53 = vpop.permute.xlu0 %8480  ;;  %v6915_v62 = vpop.permute.xlu1 %6914 }
 0xbd3   :  { %v8483_v13 = vunpack.i.h.bf16 %v14738_v53  ;;  %v8482_v19 = vunpack.i.l.bf16 %v14738_v53  ;;  %v15956_v53 = vld [vmem:[#allocation50_spill] sm:$0xff] }
 0xbd5   :  { %v6918_v41 = vsel %vm6916_vm9, %v8482_v19, %v8483_v13 }
 0xbd6   :  { %v6909_v24 = vpop.permute.xlu0 %6908  ;;  %6989 = vmatprep.mubr.f32.mxu1 %v6918_v41  ;;  %7131 = vmatprep.mubr.f32.mxu0 %v6918_v41  ;;  %v15959_v41 = vld [vmem:[#allocation110_spill] sm:$0xff] }
 0xbd7   :  { %v6917_v59 = vsel %vm6916_vm9, %v6909_v24, %v8482_v19  ;;  %v15958_v19 = vld [vmem:[#allocation137_spill] sm:$0xff]  ;;  %v15960_v24 = vld [vmem:[#allocation90_spill] sm:$0xff] }
 0xbd8   :  { %6990 = vmatmul.mubr.f32.vlgmr.msra.gmra.mxu1 %v6917_v59  ;;  %7132 = vmatmul.mubr.f32.vlgmr.msra.gmra.mxu0 %v6917_v59  ;;  %v6859_v59 = vld [vmem:[#allocation6 + $0xb10] sm:$0xff] }
 0xbd9   :  { %6997 = vmatpush1.msra.mxu1 %v6893_v15  ;;  %7283 = vmatpush1.msra.mxu0 %v14709_v17  ;;  %v6877_v17 = vld [vmem:[#allocation6 + $0xba0] sm:$0xff] }
 0xbda   :  { %6998 = vmatprep.subr.mxu1 %v6890_v22  ;;  %7284 = vmatprep.subr.mxu0 %v14703_v31  ;;  %v6874_v31 = vld [vmem:[#allocation6 + $0xb88] sm:$0xff]  ;;  %v15961_v15 = vld [vmem:[#allocation135_spill] sm:$0xff] }
 0xbdb   :  { %6999 = vmatpush1.msra.mxu1 %v6889_v12  ;;  %7285 = vmatpush1.msra.mxu0 %v14701_v42  ;;  %v6873_v42 = vld [vmem:[#allocation6 + $0xb80] sm:$0xff]  ;;  %v15962_v22 = vld [vmem:[#allocation89_spill] sm:$0xff]  ;;  %v6856_v12 = vld [vmem:[#allocation6 + $0xaf8] sm:$0xff] }
 0xbdc   :  { %7000 = vmatprep.subr.mxu1 %v6886_v58  ;;  %7286 = vmatprep.subr.mxu0 %v14695_v27  ;;  %v6870_v27 = vld [vmem:[#allocation6 + $0xb68] sm:$0xff]  ;;  %v15963_v58 = vld [vmem:[#allocation86_spill] sm:$0xff] }
 0xbdd   :  { %7001 = vmatpush1.msra.mxu1 %v6885_v51  ;;  %7287 = vmatpush1.msra.mxu0 %v14693_v29  ;;  %v6869_v29 = vld [vmem:[#allocation6 + $0xb60] sm:$0xff]  ;;  %v6855_v51 = vld [vmem:[#allocation6 + $0xaf0] sm:$0xff] }
 0xbde   :  { %7002 = vmatprep.subr.mxu1 %v6882_v47  ;;  %7288 = vmatprep.subr.mxu0 %v14687_v21  ;;  %v6866_v21 = vld [vmem:[#allocation6 + $0xb48] sm:$0xff] }
 0xbdf   :  { %7003 = vmatpush1.msra.mxu1 %v6881_v46  ;;  %7289 = vmatpush1.msra.mxu0 %v14685_v43  ;;  %v6865_v43 = vld [vmem:[#allocation6 + $0xb40] sm:$0xff]  ;;  %v15964_v47 = vld [vmem:[#allocation85_spill] sm:$0xff]  ;;  %v6852_v46 = vld [vmem:[#allocation6 + $0xad8] sm:$0xff] }
 0xbe0   :  { %7004 = vmatprep.subr.mxu1 %v6878_v36  ;;  %7290 = vmatprep.subr.mxu0 %v14679_v1  ;;  %v6862_v1 = vld [vmem:[#allocation6 + $0xb28] sm:$0xff] }
 0xbe1   :  { %7005 = vmatpush1.msra.mxu1 %v6877_v17  ;;  %7291 = vmatpush1.msra.mxu0 %v14677_v20  ;;  %v6861_v20 = vld [vmem:[#allocation6 + $0xb20] sm:$0xff]  ;;  %v15965_v36 = vld [vmem:[#allocation49_spill] sm:$0xff] }
 0xbe2   :  { %7006 = vmatprep.subr.mxu1 %v6874_v31  ;;  %7292 = vmatprep.subr.mxu0 %v14671_v10  ;;  %v6858_v10 = vld [vmem:[#allocation6 + $0xb08] sm:$0xff]  ;;  %v6851_v17 = vld [vmem:[#allocation6 + $0xad0] sm:$0xff] }
 0xbe3   :  { %7007 = vmatpush1.msra.mxu1 %v6873_v42  ;;  %7293 = vmatpush1.msra.mxu0 %v14669_v48  ;;  %v6857_v48 = vld [vmem:[#allocation6 + $0xb00] sm:$0xff]  ;;  %v15966_v31 = vld [vmem:[#allocation133_spill] sm:$0xff]  ;;  %v6848_v42 = vld [vmem:[#allocation6 + $0xab8] sm:$0xff] }
 0xbe4   :  { %7008 = vmatprep.subr.mxu1 %v6870_v27  ;;  %7294 = vmatprep.subr.mxu0 %v14663_v63  ;;  %v6854_v63 = vld [vmem:[#allocation6 + $0xae8] sm:$0xff]  ;;  %v15967_v27 = vld [vmem:[#allocation83_spill] sm:$0xff] }
 0xbe5   :  { %7009 = vmatpush1.msra.mxu1 %v6869_v29  ;;  %7295 = vmatpush1.msra.mxu0 %v14661_v49  ;;  %v6853_v49 = vld [vmem:[#allocation6 + $0xae0] sm:$0xff]  ;;  %v6847_v29 = vld [vmem:[#allocation6 + $0xab0] sm:$0xff] }
 0xbe6   :  { %7010 = vmatprep.subr.mxu1 %v6866_v21  ;;  %7296 = vmatprep.subr.mxu0 %v14655_v35  ;;  %v6850_v35 = vld [vmem:[#allocation6 + $0xac8] sm:$0xff]  ;;  %v15968_v21 = vld [vmem:[#allocation47_spill] sm:$0xff] }
 0xbe7   :  { %7011 = vmatpush1.msra.mxu1 %v6865_v43  ;;  %7297 = vmatpush1.msra.mxu0 %v14653_v11  ;;  %v6849_v11 = vld [vmem:[#allocation6 + $0xac0] sm:$0xff]  ;;  %v6844_v43 = vld [vmem:[#allocation6 + $0xa98] sm:$0xff] }
 0xbe8   :  { %7012 = vmatprep.subr.mxu1 %v6862_v1  ;;  %7298 = vmatprep.subr.mxu0 %v14647_v18  ;;  %v6846_v18 = vld [vmem:[#allocation6 + $0xaa8] sm:$0xff] }
 0xbe9   :  { %7013 = vmatpush1.msra.mxu1 %v6861_v20  ;;  %7299 = vmatpush1.msra.mxu0 %v14645_v33  ;;  %v6845_v33 = vld [vmem:[#allocation6 + $0xaa0] sm:$0xff]  ;;  %v6843_v20 = vld [vmem:[#allocation6 + $0xa90] sm:$0xff] }
 0xbea   :  { %7014 = vmatprep.subr.mxu1 %v6858_v10  ;;  %7300 = vmatprep.subr.mxu0 %v14639_v3  ;;  %v6842_v3 = vld [vmem:[#allocation6 + $0xa88] sm:$0xff]  ;;  %v15970_v10 = vld [vmem:[#allocation130_spill] sm:$0xff] }
 0xbeb   :  { %7015 = vmatpush1.msra.mxu1 %v6857_v48  ;;  %7301 = vmatpush1.msra.mxu0 %v14637_v32  ;;  %v6841_v32 = vld [vmem:[#allocation6 + $0xa80] sm:$0xff]  ;;  %v6840_v48 = vld [vmem:[#allocation6 + $0xa78] sm:$0xff] }
 0xbec   :  { %7016 = vmatprep.subr.mxu1 %v6854_v63  ;;  %7302 = vmatprep.subr.mxu0 %v14631_v45  ;;  %v6838_v45 = vld [vmem:[#allocation6 + $0xa68] sm:$0xff] }
 0xbed   :  { %7017 = vmatpush1.msra.mxu1 %v6853_v49  ;;  %7303 = vmatpush1.msra.mxu0 %v14629_v7  ;;  %v6837_v7 = vld [vmem:[#allocation6 + $0xa60] sm:$0xff]  ;;  %v15971_v63 = vld [vmem:[#allocation81_spill] sm:$0xff] }
 0xbee   :  { %7018 = vmatprep.subr.mxu1 %v6850_v35  ;;  %7304 = vmatprep.subr.mxu0 %v14623_v56  ;;  %v6834_v56 = vld [vmem:[#allocation6 + $0xa48] sm:$0xff]  ;;  %v6839_v49 = vld [vmem:[#allocation6 + $0xa70] sm:$0xff] }
 0xbef   :  { %7019 = vmatpush1.msra.mxu1 %v6849_v11  ;;  %7305 = vmatpush1.msra.mxu0 %v14621_v14  ;;  %v6833_v14 = vld [vmem:[#allocation6 + $0xa40] sm:$0xff]  ;;  %v15972_v35 = vld [vmem:[#allocation45_spill] sm:$0xff]  ;;  %v6836_v11 = vld [vmem:[#allocation6 + $0xa58] sm:$0xff] }
 0xbf0   :  { %7020 = vmatprep.subr.mxu1 %v6846_v18  ;;  %7306 = vmatprep.subr.mxu0 %v14615_v8  ;;  %v6902_v8 = vld [vmem:[#allocation6 + $0xc68] sm:$0xff]  ;;  %v15973_v18 = vld [vmem:[#allocation78_spill] sm:$0xff] }
 0xbf1   :  { %7021 = vmatpush1.msra.mxu1 %v6845_v33  ;;  %7307 = vmatpush1.msra.mxu0 %v14613_v9  ;;  %v6901_v9 = vld [vmem:[#allocation6 + $0xc60] sm:$0xff]  ;;  %v6835_v33 = vld [vmem:[#allocation6 + $0xa50] sm:$0xff] }
 0xbf2   :  { %7022 = vmatprep.subr.mxu1 %v6842_v3  ;;  %7308 = vmatprep.subr.mxu0 %v14607_v55  ;;  %v6898_v55 = vld [vmem:[#allocation6 + $0xc48] sm:$0xff] }
 0xbf3   :  { %7023 = vmatpush1.msra.mxu1 %v6841_v32  ;;  %7309 = vmatpush1.msra.mxu0 %v14605_v44  ;;  %v6897_v44 = vld [vmem:[#allocation6 + $0xc40] sm:$0xff]  ;;  %v15974_v3 = vld [vmem:[#allocation129_spill] sm:$0xff]  ;;  %v6904_v32 = vld [vmem:[#allocation6 + $0xc78] sm:$0xff] }
 0xbf4   :  { %7024 = vmatprep.subr.mxu1 %v6838_v45  ;;  %7310 = vmatprep.subr.mxu0 %v14599_v60  ;;  %v6884_v60 = vld [vmem:[#allocation6 + $0xbd8] sm:$0xff]  ;;  %v15969_v1 = vld [vmem:[#allocation80_spill] sm:$0xff] }
 0xbf5   :  { %7025 = vmatpush1.msra.mxu1 %v6837_v7  ;;  %7311 = vmatpush1.msra.mxu0 %v14597_v5  ;;  %v6896_v5 = vld [vmem:[#allocation6 + $0xc38] sm:$0xff]  ;;  %v6903_v7 = vld [vmem:[#allocation6 + $0xc70] sm:$0xff] }
 0xbf6   :  { %7026 = vmatprep.subr.mxu1 %v6834_v56  ;;  %7312 = vmatprep.subr.mxu0 %v14591_v37  ;;  %v14783_v37 = vsel %vm6916_vm9, %v8483_v13, %v6915_v62  ;;  %v15957_v13 = vld [vmem:[#allocation51_spill] sm:$0xff]  ;;  %v15976_v56 = vld [vmem:[#allocation57_spill] sm:$0xff] }
 0xbf7   :  { %7027 = vmatpush1.msra.mxu1 %v6833_v14  ;;  %7313 = vmatpush1.msra.mxu0 %v14589_v0  ;;  %v6895_v0 = vld [vmem:[#allocation6 + $0xc30] sm:$0xff]  ;;  %v15975_v45 = vld [vmem:[#allocation79_spill] sm:$0xff] }
 0xbf8   :  { %7056 = vmatprep.subr.mxu1 %v6902_v8  ;;  %7342 = vmatprep.subr.mxu0 %v14727_v34  ;;  %v6892_v34 = vld [vmem:[#allocation6 + $0xc18] sm:$0xff] }
 0xbf9   :  { %7057 = vmatpush2.msra.mxu1 %v6901_v9  ;;  %7343 = vmatpush2.msra.mxu0 %v14725_v38  ;;  %v6888_v38 = vld [vmem:[#allocation6 + $0xbf8] sm:$0xff]  ;;  %v6899_v9 = vld [vmem:[#allocation6 + $0xc50] sm:$0xff] }
 0xbfa   :  { %7058 = vmatprep.subr.mxu1 %v6898_v55  ;;  %7344 = vmatprep.subr.mxu0 %v14719_v26  ;;  %v6891_v26 = vld [vmem:[#allocation6 + $0xc10] sm:$0xff]  ;;  %v6900_v14 = vld [vmem:[#allocation6 + $0xc58] sm:$0xff] }
 0xbfb   :  { %7059 = vmatpush2.msra.mxu1 %v6897_v44  ;;  %7993 = vmatprep.mubr.msk.f32.mxu1 %vm2289_vm7, %v6915_v62  ;;  %v15977_v8 = vld [vmem:[#allocation127_spill] sm:$0xff] }
 0xbfc   :  { %7345 = vmatpush2.msra.mxu0 %v14717_v30  ;;  %7061 = vmatmul.mubr.f32.vlgmr.msra.gmra.mxu1 %v14783_v37  ;;  %v6887_v30 = vld [vmem:[#allocation6 + $0xbf0] sm:$0xff]  ;;  %v15978_v55 = vld [vmem:[#allocation155_spill] sm:$0xff] }
 0xbfd   :  { %7138 = vmatprep.subr.mxu1 %v6896_v5  ;;  %7995 = vmatprep.mubr.msk.f32.mxu0 %vm2289_vm7, %v14323_v28  ;;  %v15980_v44 = vld [vmem:[#allocation151_spill] sm:$0xff]  ;;  %v15981_v5 = vld [vmem:[#allocation74_spill] sm:$0xff] }
 0xbfe   :  { %7353 = vmatprep.subr.mxu0 %v14459_v23  ;;  %7139 = vmatpush1.msra.mxu1 %v6895_v0  ;;  %v6880_v23 = vld [vmem:[#allocation6 + $0xbb8] sm:$0xff] }
 0xbff   :  { %7994 = vmatprep.mubr.msk.f32.mxu1 %vm2289_vm7, %v6915_v62  ;;  %7347 = vmatmul.mubr.f32.vlgmr.msra.gmra.mxu0 %v14319_v54  ;;  %v15979_v62 = vld [vmem:[#allocation154_spill] sm:$0xff]  ;;  %v15982_v0 = vld [vmem:[#allocation139_spill] sm:$0xff] }
 0xc00   :  { %7354 = vmatpush1.msra.mxu0 %v14457_v4  ;;  %7140 = vmatprep.subr.mxu1 %v6892_v34  ;;  %v6876_v4 = vld [vmem:[#allocation6 + $0xb98] sm:$0xff] }
 0xc01   :  { %7355 = vmatprep.subr.mxu0 %v14451_v2  ;;  %7141 = vmatpush1.msra.mxu1 %v6891_v26  ;;  %v6875_v2 = vld [vmem:[#allocation6 + $0xb90] sm:$0xff]  ;;  %v15984_v26 = vld [vmem:[#allocation112_spill] sm:$0xff] }
 0xc02   :  { %7356 = vmatpush1.msra.mxu0 %v14449_v57  ;;  %7142 = vmatprep.subr.mxu1 %v6888_v38  ;;  %v6872_v57 = vld [vmem:[#allocation6 + $0xb78] sm:$0xff] }
 0xc03   :  { %7357 = vmatprep.subr.mxu0 %v14443_v52  ;;  %7143 = vmatpush1.msra.mxu1 %v6887_v30  ;;  %v6871_v52 = vld [vmem:[#allocation6 + $0xb70] sm:$0xff]  ;;  %v15985_v38 = vld [vmem:[#allocation75_spill] sm:$0xff] }
 0xc04   :  { %7358 = vmatpush1.msra.mxu0 %v14441_v61  ;;  %7144 = vmatprep.subr.mxu1 %v6884_v60  ;;  %v6868_v61 = vld [vmem:[#allocation6 + $0xb58] sm:$0xff]  ;;  %v15987_v60 = vld [vmem:[#allocation72_spill] sm:$0xff] }
 0xc05   :  { %7359 = vmatprep.subr.mxu0 %v14435_v16  ;;  %7145 = vmatpush1.msra.mxu1 %v6883_v50  ;;  %v6867_v16 = vld [vmem:[#allocation6 + $0xb50] sm:$0xff] }
 0xc06   :  { %7360 = vmatpush1.msra.mxu0 %v14433_v6  ;;  %7146 = vmatprep.subr.mxu1 %v6880_v23  ;;  %v6864_v6 = vld [vmem:[#allocation6 + $0xb38] sm:$0xff]  ;;  %v15988_v50 = vld [vmem:[#allocation113_spill] sm:$0xff]  ;;  %v15989_v23 = vld [vmem:[#allocation124_spill] sm:$0xff] }
 0xc07   :  { %7361 = vmatprep.subr.mxu0 %v14427_v39  ;;  %7147 = vmatpush1.msra.mxu1 %v6879_v25  ;;  %v6863_v39 = vld [vmem:[#allocation6 + $0xb30] sm:$0xff]  ;;  %v15990_v25 = vld [vmem:[#allocation115_spill] sm:$0xff] }
 0xc08   :  { %7362 = vmatpush1.msra.mxu0 %v14425_v40  ;;  %7148 = vmatprep.subr.mxu1 %v6876_v4  ;;  %v6860_v40 = vld [vmem:[#allocation6 + $0xb18] sm:$0xff]  ;;  %v15991_v4 = vld [vmem:[#allocation104_spill] sm:$0xff] }
 0xc09   :  { %7363 = vmatprep.subr.mxu0 %v15956_v53  ;;  %7149 = vmatpush1.msra.mxu1 %v6875_v2  ;;  %v15983_v34 = vld [vmem:[#allocation122_spill] sm:$0xff]  ;;  %v15993_v2 = vld [vmem:[#allocation123_spill] sm:$0xff] }
 0xc0a   :  { %7364 = vmatpush1.msra.mxu0 %v15957_v13  ;;  %7150 = vmatprep.subr.mxu1 %v6872_v57  ;;  %v15986_v30 = vld [vmem:[#allocation138_spill] sm:$0xff]  ;;  %v15994_v57 = vld [vmem:[#allocation95_spill] sm:$0xff]  ;;  %v15998_v13 = vld [vmem:[#allocation136_spill] sm:$0xff] }
 0xc0b   :  { %7365 = vmatprep.subr.mxu0 %v15958_v19  ;;  %7151 = vmatpush1.msra.mxu1 %v6871_v52  ;;  %v15995_v52 = vld [vmem:[#allocation73_spill] sm:$0xff]  ;;  %v15996_v53 = vld [vmem:[#allocation94_spill] sm:$0xff]  ;;  %v16000_v19 = vld [vmem:[#allocation92_spill] sm:$0xff] }
 0xc0c   :  { %7366 = vmatpush1.msra.mxu0 %v15959_v41  ;;  %7152 = vmatprep.subr.mxu1 %v6868_v61  ;;  %v15997_v61 = vld [vmem:[#allocation121_spill] sm:$0xff] }
 0xc0d   :  { %7367 = vmatprep.subr.mxu0 %v15960_v24  ;;  %7153 = vmatpush1.msra.mxu1 %v6867_v16  ;;  %v15999_v16 = vld [vmem:[#allocation70_spill] sm:$0xff]  ;;  %v16002_v41 = vld [vmem:[#allocation93_spill] sm:$0xff]  ;;  %v16004_v24 = vld [vmem:[#allocation48_spill] sm:$0xff] }
 0xc0e   :  { %7368 = vmatpush1.msra.mxu0 %v15961_v15  ;;  %7154 = vmatprep.subr.mxu1 %v6864_v6  ;;  %v16001_v6 = vld [vmem:[#allocation149_spill] sm:$0xff]  ;;  %v16006_v15 = vld [vmem:[#allocation134_spill] sm:$0xff] }
 0xc0f   :  { %7369 = vmatprep.subr.mxu0 %v15962_v22  ;;  %7155 = vmatpush1.msra.mxu1 %v6863_v39  ;;  %v16003_v39 = vld [vmem:[#allocation145_spill] sm:$0xff]  ;;  %v16008_v22 = vld [vmem:[#allocation132_spill] sm:$0xff] }
 0xc10   :  { %7370 = vmatpush1.msra.mxu0 %v15963_v58  ;;  %7156 = vmatprep.subr.mxu1 %v6860_v40  ;;  %v16005_v40 = vld [vmem:[#allocation39_spill] sm:$0xff] }
 0xc11   :  { %7371 = vmatprep.subr.mxu0 %v15964_v47  ;;  %7157 = vmatpush1.msra.mxu1 %v6859_v59  ;;  %v16007_v59 = vld [vmem:[#allocation99_spill] sm:$0xff]  ;;  %v16012_v47 = vld [vmem:[#allocation88_spill] sm:$0xff] }
 0xc12   :  { %7372 = vmatpush1.msra.mxu0 %v15965_v36  ;;  %7158 = vmatprep.subr.mxu1 %v6856_v12  ;;  %v16009_v12 = vld [vmem:[#allocation96_spill] sm:$0xff]  ;;  %v16010_v58 = vld [vmem:[#allocation91_spill] sm:$0xff] }
 0xc13   :  { %7373 = vmatprep.subr.mxu0 %v15966_v31  ;;  %7159 = vmatpush1.msra.mxu1 %v6855_v51  ;;  %v16011_v51 = vld [vmem:[#allocation37_spill] sm:$0xff]  ;;  %v16014_v36 = vld [vmem:[#allocation87_spill] sm:$0xff]  ;;  %v16016_v31 = vld [vmem:[#allocation84_spill] sm:$0xff] }
 0xc14   :  { %7374 = vmatpush1.msra.mxu0 %v15967_v27  ;;  %7160 = vmatprep.subr.mxu1 %v6852_v46  ;;  %v16013_v46 = vld [vmem:[#allocation69_spill] sm:$0xff]  ;;  %v16018_v27 = vld [vmem:[#allocation82_spill] sm:$0xff] }
 0xc15   :  { %7375 = vmatprep.subr.mxu0 %v15968_v21  ;;  %7161 = vmatpush1.msra.mxu1 %v6851_v17  ;;  %v16015_v17 = vld [vmem:[#allocation34_spill] sm:$0xff]  ;;  %v16020_v21 = vld [vmem:[#allocation111_spill] sm:$0xff] }
 0xc16   :  { %7376 = vmatpush1.msra.mxu0 %v15969_v1  ;;  %7162 = vmatprep.subr.mxu1 %v6848_v42  ;;  %v16017_v42 = vld [vmem:[#allocation35_spill] sm:$0xff] }
 0xc17   :  { %7377 = vmatprep.subr.mxu0 %v15970_v10  ;;  %7163 = vmatpush1.msra.mxu1 %v6847_v29  ;;  %v16019_v29 = vld [vmem:[#allocation64_spill] sm:$0xff]  ;;  %v16022_v1 = vld [vmem:[#allocation131_spill] sm:$0xff]  ;;  %v16024_v10 = vld [vmem:[#allocation46_spill] sm:$0xff] }
 0xc18   :  { %7378 = vmatpush1.msra.mxu0 %v15971_v63  ;;  %7164 = vmatprep.subr.mxu1 %v6844_v43  ;;  %v16021_v43 = vld [vmem:[#allocation62_spill] sm:$0xff]  ;;  %v16026_v63 = vld [vmem:[#allocation108_spill] sm:$0xff] }
 0xc19   :  { %7379 = vmatprep.subr.mxu0 %v15972_v35  ;;  %7165 = vmatpush1.msra.mxu1 %v6843_v20  ;;  %v16023_v20 = vld [vmem:[#allocation150_spill] sm:$0xff]  ;;  %v16028_v35 = vld [vmem:[#allocation109_spill] sm:$0xff] }
 0xc1a   :  { %7380 = vmatpush1.msra.mxu0 %v15973_v18  ;;  %7166 = vmatprep.subr.mxu1 %v6840_v48  ;;  %v16025_v48 = vld [vmem:[#allocation61_spill] sm:$0xff]  ;;  %v16030_v18 = vld [vmem:[#allocation106_spill] sm:$0xff] }
 0xc1b   :  { %7381 = vmatprep.subr.mxu0 %v15974_v3  ;;  %7167 = vmatpush1.msra.mxu1 %v6839_v49  ;;  %v16027_v49 = vld [vmem:[#allocation58_spill] sm:$0xff]  ;;  %v16032_v3 = vld [vmem:[#allocation128_spill] sm:$0xff] }
 0xc1c   :  { %7382 = vmatpush1.msra.mxu0 %v15975_v45  ;;  %7168 = vmatprep.subr.mxu1 %v6836_v11  ;;  %v16029_v11 = vld [vmem:[#allocation54_spill] sm:$0xff]  ;;  %v16034_v45 = vld [vmem:[#allocation44_spill] sm:$0xff] }
 0xc1d   :  { %7383 = vmatprep.subr.mxu0 %v15976_v56  ;;  %7169 = vmatpush1.msra.mxu1 %v6835_v33  ;;  %v16031_v33 = vld [vmem:[#allocation117_spill] sm:$0xff]  ;;  %v16036_v56 = vld [vmem:[#allocation107_spill] sm:$0xff] }
 0xc1e   :  { %7384 = vmatpush1.msra.mxu0 %v15977_v8  ;;  %7198 = vmatprep.subr.mxu1 %v6904_v32  ;;  %v16033_v32 = vld [vmem:[#allocation142_spill] sm:$0xff]  ;;  %v16038_v8 = vld [vmem:[#allocation76_spill] sm:$0xff] }
 0xc1f   :  { %7385 = vmatprep.subr.mxu0 %v15978_v55  ;;  %7199 = vmatpush2.msra.mxu1 %v6903_v7  ;;  %v16035_v7 = vld [vmem:[#allocation114_spill] sm:$0xff] }
 0xc20   :  { %7386 = vmatpush2.msra.mxu0 %v15979_v62  ;;  %7200 = vmatprep.subr.mxu1 %v6900_v14  ;;  %v16037_v14 = vld [vmem:[#allocation141_spill] sm:$0xff]  ;;  %v16040_v55 = vld [vmem:[#allocation42_spill] sm:$0xff] }
 0xc21   :  { %7387 = vmatprep.subr.mxu0 %v15980_v44  ;;  %7201 = vmatpush2.msra.mxu1 %v6899_v9  ;;  %v16039_v9 = vld [vmem:[#allocation56_spill] sm:$0xff]  ;;  %v16041_v62 = vld [vmem:[#allocation118_spill] sm:$0xff] }
 0xc22   :  { %7388 = vmatpush2.msra.mxu0 %v15981_v5  ;;  %7203 = vmatmul.mubr.f32.vlgmr.msra.gmra.mxu1 %v14783_v37  ;;  %v15992_v37 = vld [vmem:[#allocation53_spill] sm:$0xff]  ;;  %v16042_v44 = vld [vmem:[#allocation126_spill] sm:$0xff] }
 0xc23   :  { %7211 = vmatprep.subr.mxu1 %v15982_v0  ;;  %7389 = vmatprep.subr.mxu0 %v15983_v34  ;;  %v16043_v5 = vld [vmem:[#allocation105_spill] sm:$0xff]  ;;  %v16045_v34 = vld [vmem:[#allocation152_spill] sm:$0xff] }
 0xc24   :  { %7212 = vmatpush1.msra.mxu1 %v15984_v26  ;;  %7390 = vmatpush2.msra.mxu0 %v15985_v38  ;;  %v16044_v0 = vld [vmem:[#allocation153_spill] sm:$0xff]  ;;  %v16047_v38 = vld [vmem:[#allocation102_spill] sm:$0xff] }
 0xc25   :  { %7213 = vmatprep.subr.mxu1 %v15986_v30  ;;  %7391 = vmatprep.subr.mxu0 %v15987_v60  ;;  %v16046_v26 = vld [vmem:[#allocation125_spill] sm:$0xff]  ;;  %v16048_v30 = vld [vmem:[#allocation103_spill] sm:$0xff]  ;;  %v16049_v60 = vld [vmem:[#allocation40_spill] sm:$0xff] }
 0xc26   :  { %7214 = vmatpush1.msra.mxu1 %v15988_v50  ;;  %7392 = vmatpush2.msra.mxu0 %v15989_v23  ;;  %v16050_v50 = vld [vmem:[#allocation43_spill] sm:$0xff]  ;;  %v16051_v23 = vld [vmem:[#allocation77_spill] sm:$0xff] }
 0xc27   :  { %7215 = vmatprep.subr.mxu1 %v15990_v25  ;;  %7393 = vmatprep.subr.mxu0 %v15991_v4  ;;  %v16052_v25 = vld [vmem:[#allocation120_spill] sm:$0xff]  ;;  %v16053_v4 = vld [vmem:[#allocation41_spill] sm:$0xff] }
 0xc28   :  { %7216 = vmatpush1.msra.mxu1 %v15992_v37  ;;  %7394 = vmatpush2.msra.mxu0 %v15993_v2  ;;  %v16054_v37 = vld [vmem:[#allocation100_spill] sm:$0xff]  ;;  %v16055_v2 = vld [vmem:[#allocation101_spill] sm:$0xff] }
 0xc29   :  { %7217 = vmatprep.subr.mxu1 %v15994_v57  ;;  %7395 = vmatprep.subr.mxu0 %v15995_v52  ;;  %v16056_v57 = vld [vmem:[#allocation148_spill] sm:$0xff]  ;;  %v16057_v52 = vld [vmem:[#allocation146_spill] sm:$0xff] }
 0xc2a   :  { %7218 = vmatpush1.msra.mxu1 %v15996_v53  ;;  %7396 = vmatpush2.msra.mxu0 %v15997_v61  ;;  %v16058_v53 = vld [vmem:[#allocation71_spill] sm:$0xff]  ;;  %v16059_v61 = vld [vmem:[#allocation98_spill] sm:$0xff] }
 0xc2b   :  { %7219 = vmatprep.subr.mxu1 %v15998_v13  ;;  %7397 = vmatprep.subr.mxu0 %v15999_v16  ;;  %v16060_v13 = vld [vmem:[#allocation68_spill] sm:$0xff] }
 0xc2c   :  { %7220 = vmatpush1.msra.mxu1 %v16000_v19  ;;  %7398 = vmatpush2.msra.mxu0 %v16001_v6  ;;  %v16061_v16 = vld [vmem:[#allocation36_spill] sm:$0xff]  ;;  %v16062_v19 = vld [vmem:[#allocation97_spill] sm:$0xff]  ;;  %v16063_v6 = vld [vmem:[#allocation66_spill] sm:$0xff] }
 0xc2d   :  { %7221 = vmatprep.subr.mxu1 %v16002_v41  ;;  %7399 = vmatprep.subr.mxu0 %v16003_v39  ;;  %v16064_v41 = vld [vmem:[#allocation67_spill] sm:$0xff] }
 0xc2e   :  { %7222 = vmatpush1.msra.mxu1 %v16004_v24  ;;  %7400 = vmatpush2.msra.mxu0 %v16005_v40  ;;  %v16065_v39 = vld [vmem:[#allocation147_spill] sm:$0xff]  ;;  %v16066_v24 = vld [vmem:[#allocation65_spill] sm:$0xff] }
 0xc2f   :  { %7223 = vmatprep.subr.mxu1 %v16006_v15  ;;  %7401 = vmatprep.subr.mxu0 %v16007_v59  ;;  %v16067_v40 = vld [vmem:[#allocation63_spill] sm:$0xff]  ;;  %v16068_v15 = vld [vmem:[#allocation60_spill] sm:$0xff] }
 0xc30   :  { %7224 = vmatpush1.msra.mxu1 %v16008_v22  ;;  %7402 = vmatpush2.msra.mxu0 %v16009_v12  ;;  %v16069_v59 = vld [vmem:[#allocation116_spill] sm:$0xff]  ;;  %v16070_v22 = vld [vmem:[#allocation59_spill] sm:$0xff] }
 0xc31   :  { %7225 = vmatprep.subr.mxu1 %v16010_v58  ;;  %7403 = vmatprep.subr.mxu0 %v16011_v51  ;;  %v16071_v12 = vld [vmem:[#allocation55_spill] sm:$0xff]  ;;  %v16072_v58 = vld [vmem:[#allocation144_spill] sm:$0xff] }
 0xc32   :  { %7226 = vmatpush1.msra.mxu1 %v16012_v47  ;;  %7404 = vmatpush2.msra.mxu0 %v16013_v46  ;;  %v16073_v51 = vld [vmem:[#allocation52_spill] sm:$0xff]  ;;  %v16074_v47 = vld [vmem:[#allocation143_spill] sm:$0xff] }
 0xc33   :  { %7227 = vmatprep.subr.mxu1 %v16014_v36  ;;  %7405 = vmatprep.subr.mxu0 %v16015_v17  ;;  %v16075_v46 = vld [vmem:[#allocation140_spill] sm:$0xff]  ;;  %v16076_v36 = vld [vmem:[#allocation187_spill] sm:$0xff]  ;;  %v16077_v17 = vld [vmem:[#allocation186_spill] sm:$0xff] }
 0xc34   :  { %7228 = vmatpush1.msra.mxu1 %v16016_v31  ;;  %7406 = vmatpush2.msra.mxu0 %v16017_v42  ;;  %v16078_v31 = vld [vmem:[#allocation185_spill] sm:$0xff]  ;;  %v16079_v42 = vld [vmem:[#allocation184_spill] sm:$0xff] }
 0xc35   :  { %7229 = vmatprep.subr.mxu1 %v16018_v27  ;;  %7407 = vmatprep.subr.mxu0 %v16019_v29  ;;  %v16080_v27 = vld [vmem:[#allocation183_spill] sm:$0xff]  ;;  %v16081_v29 = vld [vmem:[#allocation182_spill] sm:$0xff] }
 0xc36   :  { %7230 = vmatpush1.msra.mxu1 %v16020_v21  ;;  %7408 = vmatpush2.msra.mxu0 %v16021_v43  ;;  %v16082_v21 = vld [vmem:[#allocation181_spill] sm:$0xff]  ;;  %v16083_v43 = vld [vmem:[#allocation180_spill] sm:$0xff] }
 0xc37   :  { %7231 = vmatprep.subr.mxu1 %v16022_v1  ;;  %7409 = vmatprep.subr.mxu0 %v16023_v20  ;;  %v16084_v1 = vld [vmem:[#allocation179_spill] sm:$0xff]  ;;  %v16085_v20 = vld [vmem:[#allocation178_spill] sm:$0xff] }
 0xc38   :  { %7232 = vmatpush1.msra.mxu1 %v16024_v10  ;;  %7410 = vmatpush2.msra.mxu0 %v16025_v48  ;;  %v16086_v10 = vld [vmem:[#allocation177_spill] sm:$0xff]  ;;  %v16087_v48 = vld [vmem:[#allocation176_spill] sm:$0xff] }
 0xc39   :  { %7233 = vmatprep.subr.mxu1 %v16026_v63  ;;  %7411 = vmatprep.subr.mxu0 %v16027_v49  ;;  %v16089_v63 = vld [vmem:[#allocation174_spill] sm:$0xff]  ;;  %v16090_v49 = vld [vmem:[#allocation173_spill] sm:$0xff] }
 0xc3a   :  { %7234 = vmatpush1.msra.mxu1 %v16028_v35  ;;  %7412 = vmatpush2.msra.mxu0 %v16029_v11  ;;  %v16091_v35 = vld [vmem:[#allocation172_spill] sm:$0xff]  ;;  %v16092_v11 = vld [vmem:[#allocation171_spill] sm:$0xff] }
 0xc3b   :  { %7235 = vmatprep.subr.mxu1 %v16030_v18  ;;  %7413 = vmatprep.subr.mxu0 %v16031_v33  ;;  %v16093_v18 = vld [vmem:[#allocation170_spill] sm:$0xff]  ;;  %v16094_v33 = vld [vmem:[#allocation169_spill] sm:$0xff] }
 0xc3c   :  { %7236 = vmatpush1.msra.mxu1 %v16032_v3  ;;  %7414 = vmatpush2.msra.mxu0 %v16033_v32  ;;  %v16095_v3 = vld [vmem:[#allocation168_spill] sm:$0xff]  ;;  %v16096_v32 = vld [vmem:[#allocation167_spill] sm:$0xff] }
 0xc3d   :  { %7237 = vmatprep.subr.mxu1 %v16034_v45  ;;  %7415 = vmatprep.subr.mxu0 %v16035_v7  ;;  %v16097_v45 = vld [vmem:[#allocation166_spill] sm:$0xff]  ;;  %v16098_v7 = vld [vmem:[#allocation165_spill] sm:$0xff] }
 0xc3e   :  { %7238 = vmatpush1.msra.mxu1 %v16036_v56  ;;  %7416 = vmatpush2.msra.mxu0 %v16037_v14  ;;  %v16099_v56 = vld [vmem:[#allocation164_spill] sm:$0xff]  ;;  %v16100_v14 = vld [vmem:[#allocation163_spill] sm:$0xff] }
 0xc3f   :  { %7417 = vmatprep.mubr.f32.mxu0 %v16038_v8  ;;  %7239 = vmatprep.subr.mxu1 %v16039_v9  ;;  %v16102_v9 = vld [vmem:[#allocation161_spill] sm:$0xff] }
 0xc40   :  { %7418 = vmatmul.mubr.f32.vlgmr.msra.gmra.mxu0 %v16040_v55  ;;  %7240 = vmatpush1.msra.mxu1 %v16041_v62  ;;  %v16104_v62 = vld [vmem:[#allocation159_spill] sm:$0xff] }
 0xc41   :  { %7241 = vmatprep.subr.mxu1 %v16042_v44  ;;  %7275 = vmatprep.mubr.f32.mxu1 %v16038_v8  ;;  %v16101_v8 = vld [vmem:[#allocation162_spill] sm:$0xff] }
 0xc42   :  { %7242 = vmatpush1.msra.mxu1 %v16043_v5  ;;  %v16105_v44 = vld [vmem:[#allocation158_spill] sm:$0xff]  ;;  %v16106_v5 = vld [vmem:[#allocation157_spill] sm:$0xff] }
 0xc43   :  { %7243 = vmatprep.subr.mxu1 %v16044_v0  ;;  %v16107_v0 = vld [vmem:[#allocation156_spill] sm:$0xff] }
 0xc44   :  { %7244 = vmatpush2.msra.mxu1 %v16045_v34  ;;  %v16108_v34 = vld [vmem:[#allocation191_spill] sm:$0xff] }
 0xc45   :  { %7245 = vmatprep.subr.mxu1 %v16046_v26  ;;  %v16109_v26 = vld [vmem:[#allocation190_spill] sm:$0xff] }
 0xc46   :  { %7246 = vmatpush2.msra.mxu1 %v16047_v38  ;;  %v16110_v38 = vld [vmem:[#allocation189_spill] sm:$0xff] }
 0xc47   :  { %7247 = vmatprep.subr.mxu1 %v16048_v30  ;;  %v16111_v30 = vld [vmem:[#allocation188_spill] sm:$0xff] }
 0xc48   :  { %7248 = vmatpush2.msra.mxu1 %v16049_v60  ;;  %v7691_v60 = vld [vmem:[%s15241_s10 + $0xf8] sm:$0xff] }
 0xc49   :  { %7249 = vmatprep.subr.mxu1 %v16050_v50  ;;  %8159 = vmatprep.subr.mxu0 %v7691_v60  ;;  %v7675_v50 = vld [vmem:[%s15241_s10 + $0x78] sm:$0xff] }
 0xc4a   :  { %7250 = vmatpush2.msra.mxu1 %v16051_v23  ;;  %8160 = vmatpush3.msra.mxu0 %v7675_v50  ;;  %v7690_v23 = vld [vmem:[%s15241_s10 + $0xf0] sm:$0xff] }
 0xc4b   :  { %7251 = vmatprep.subr.mxu1 %v16052_v25  ;;  %8161 = vmatprep.subr.mxu0 %v7690_v23  ;;  %v7674_v25 = vld [vmem:[%s15241_s10 + $0x70] sm:$0xff] }
 0xc4c   :  { %7252 = vmatpush2.msra.mxu1 %v16053_v4  ;;  %8162 = vmatpush3.msra.mxu0 %v7674_v25  ;;  %v7673_v4 = vld [vmem:[%s15241_s10 + $0x68] sm:$0xff] }
 0xc4d   :  { %7253 = vmatprep.subr.mxu1 %v16054_v37  ;;  %v7688_v37 = vld [vmem:[%s15241_s10 + $0xe0] sm:$0xff] }
 0xc4e   :  { %7254 = vmatpush2.msra.mxu1 %v16055_v2  ;;  %v7672_v2 = vld [vmem:[%s15241_s10 + $0x60] sm:$0xff] }
 0xc4f   :  { %7255 = vmatprep.subr.mxu1 %v16056_v57  ;;  %v7687_v57 = vld [vmem:[%s15241_s10 + $0xd8] sm:$0xff] }
 0xc50   :  { %7256 = vmatpush2.msra.mxu1 %v16057_v52  ;;  %v7671_v52 = vld [vmem:[%s15241_s10 + $0x58] sm:$0xff] }
 0xc51   :  { %7257 = vmatprep.subr.mxu1 %v16058_v53  ;;  %v7686_v53 = vld [vmem:[%s15241_s10 + $0xd0] sm:$0xff] }
 0xc52   :  { %7258 = vmatpush2.msra.mxu1 %v16059_v61  ;;  %v7670_v61 = vld [vmem:[%s15241_s10 + $0x50] sm:$0xff] }
 0xc53   :  { %7259 = vmatprep.subr.mxu1 %v16060_v13  ;;  %v7685_v13 = vld [vmem:[%s15241_s10 + $0xc8] sm:$0xff] }
 0xc54   :  { %7260 = vmatpush2.msra.mxu1 %v16061_v16  ;;  %v7669_v16 = vld [vmem:[%s15241_s10 + $0x48] sm:$0xff] }
 0xc55   :  { %7261 = vmatprep.subr.mxu1 %v16062_v19  ;;  %v7684_v19 = vld [vmem:[%s15241_s10 + $0xc0] sm:$0xff] }
 0xc56   :  { %7262 = vmatpush2.msra.mxu1 %v16063_v6  ;;  %v7668_v6 = vld [vmem:[%s15241_s10 + $0x40] sm:$0xff] }
 0xc57   :  { %7263 = vmatprep.subr.mxu1 %v16064_v41  ;;  %v7683_v41 = vld [vmem:[%s15241_s10 + $0xb8] sm:$0xff] }
 0xc58   :  { %7264 = vmatpush2.msra.mxu1 %v16065_v39  ;;  %v7667_v39 = vld [vmem:[%s15241_s10 + $0x38] sm:$0xff] }
 0xc59   :  { %7265 = vmatprep.subr.mxu1 %v16066_v24  ;;  %v7682_v24 = vld [vmem:[%s15241_s10 + $0xb0] sm:$0xff] }
 0xc5a   :  { %7266 = vmatpush2.msra.mxu1 %v16067_v40  ;;  %v7666_v40 = vld [vmem:[%s15241_s10 + $0x30] sm:$0xff] }
 0xc5b   :  { %7267 = vmatprep.subr.mxu1 %v16068_v15  ;;  %v7681_v15 = vld [vmem:[%s15241_s10 + $0xa8] sm:$0xff] }
 0xc5c   :  { %7268 = vmatpush2.msra.mxu1 %v16069_v59  ;;  %v7665_v59 = vld [vmem:[%s15241_s10 + $0x28] sm:$0xff] }
 0xc5d   :  { %7269 = vmatprep.subr.mxu1 %v16070_v22  ;;  %v7680_v22 = vld [vmem:[%s15241_s10 + $0xa0] sm:$0xff] }
 0xc5e   :  { %7270 = vmatpush2.msra.mxu1 %v16071_v12  ;;  %v7664_v12 = vld [vmem:[%s15241_s10 + $0x20] sm:$0xff] }
 0xc5f   :  { %7271 = vmatprep.subr.mxu1 %v16072_v58  ;;  %v7679_v58 = vld [vmem:[%s15241_s10 + $0x98] sm:$0xff] }
 0xc60   :  { %7272 = vmatpush2.msra.mxu1 %v16073_v51  ;;  %v7663_v51 = vld [vmem:[%s15241_s10 + $0x18] sm:$0xff] }
 0xc61   :  { %7273 = vmatprep.subr.mxu1 %v16074_v47  ;;  %v7678_v47 = vld [vmem:[%s15241_s10 + $0x90] sm:$0xff] }
 0xc62   :  { %7274 = vmatpush2.msra.mxu1 %v16075_v46  ;;  %v7662_v46 = vld [vmem:[%s15241_s10 + $0x10] sm:$0xff] }
 0xc63   :  { %7276 = vmatmul.mubr.f32.vlgmr.msra.gmra.mxu1 %v16040_v55  ;;  %7424 = vmatprep.subr.mxu1 %v16076_v36  ;;  %v16103_v55 = vld [vmem:[#allocation160_spill] sm:$0xff] }
 0xc64   :  { %7425 = vmatpush1.msra.mxu1 %v16077_v17  ;;  %7996 = vmatprep.mubr.msk.f32.mxu1 %vm2289_vm7, %v14323_v28  ;;  %v16088_v28 = vld [vmem:[#allocation175_spill] sm:$0xff]  ;;  %v7677_v36 = vld [vmem:[%s15241_s10 + $0x88] sm:$0xff]  ;;  %vm7497_vm7 = vcmask 1041408  }
 0xc65   :  { %7426 = vmatprep.subr.mxu1 %v16078_v31  ;;  %v7661_v17 = vld [vmem:[%s15241_s10 + $0x8] sm:$0xff]  ;;  %v7676_v31 = vld [vmem:[%s15241_s10 + $0x80] sm:$0xff] }
 0xc66   :  { %7427 = vmatpush1.msra.mxu1 %v16079_v42  ;;  %v7660_v42 = vld [vmem:[%s15241_s10] sm:$0xff] }
 0xc67   :  { %7428 = vmatprep.subr.mxu1 %v16080_v27  ;;  %v16112_v27 = vmov 0.0  }
 0xc68   :  { %7429 = vmatpush1.msra.mxu1 %v16081_v29 }
 0xc69   :  { %7430 = vmatprep.subr.mxu1 %v16082_v21 }
 0xc6a   :  { %7431 = vmatpush1.msra.mxu1 %v16083_v43 }
 0xc6b   :  { %7432 = vmatprep.subr.mxu1 %v16084_v1 }
 0xc6c   :  { %7433 = vmatpush1.msra.mxu1 %v16085_v20 }
 0xc6d   :  { %7434 = vmatprep.subr.mxu1 %v16086_v10 }
 0xc6e   :  { %7435 = vmatpush1.msra.mxu1 %v16087_v48 }
 0xc6f   :  { %7436 = vmatprep.subr.mxu1 %v16088_v28 }
 0xc70   :  { %7437 = vmatpush1.msra.mxu1 %v16089_v63 }
 0xc71   :  { %7438 = vmatprep.subr.mxu1 %v16090_v49 }
 0xc72   :  { %7439 = vmatpush1.msra.mxu1 %v16091_v35 }
 0xc73   :  { %7440 = vmatprep.subr.mxu1 %v16092_v11 }
 0xc74   :  { %7441 = vmatpush1.msra.mxu1 %v16093_v18 }
 0xc75   :  { %7442 = vmatprep.subr.mxu1 %v16094_v33 }
 0xc76   :  { %7443 = vmatpush1.msra.mxu1 %v16095_v3 }
 0xc77   :  { %7444 = vmatprep.subr.mxu1 %v16096_v32 }
 0xc78   :  { %7445 = vmatpush1.msra.mxu1 %v16097_v45 }
 0xc79   :  { %7446 = vmatprep.subr.mxu1 %v16098_v7 }
 0xc7a   :  { %7447 = vmatpush1.msra.mxu1 %v16099_v56 }
 0xc7b   :  { %7448 = vmatprep.subr.mxu1 %v16100_v14 }
 0xc7c   :  { %7449 = vmatpush1.msra.mxu1 %v16101_v8 }
 0xc7d   :  { %7450 = vmatprep.subr.mxu1 %v16102_v9 }
 0xc7e   :  { %7451 = vmatpush1.msra.mxu1 %v16103_v55 }
 0xc7f   :  { %7452 = vmatprep.subr.mxu1 %v16104_v62 }
 0xc80   :  { %7453 = vmatpush1.msra.mxu1 %v16105_v44 }
 0xc81   :  { %7454 = vmatprep.subr.mxu1 %v16106_v5 }
 0xc82   :  { %7455 = vmatpush1.msra.mxu1 %v16107_v0 }
 0xc83   :  { %7484 = vmatprep.subr.mxu1 %v16108_v34 }
 0xc84   :  { %7485 = vmatpush2.msra.mxu1 %v16109_v26 }
 0xc85   :  { %7486 = vmatprep.subr.mxu1 %v16110_v38 }
 0xc86   :  { %7487 = vmatpush2.msra.mxu1 %v16111_v30 }
 0xc87   :  { %7489 = vmatmul.mubr.f32.vlgmr.msra.gmra.mxu1 %v14319_v54  ;;  %v7689_v54 = vld [vmem:[%s15241_s10 + $0xe8] sm:$0xff] }
 0xc88   :  { %8163 = vmatprep.subr.mxu0 %v7689_v54 }
 0xc89   :  { %8164 = vmatpush3.msra.mxu0 %v7673_v4 }
 0xc8a   :  { %8165 = vmatprep.subr.mxu0 %v7688_v37 }
 0xc8b   :  { %8166 = vmatpush3.msra.mxu0 %v7672_v2 }
 0xc8c   :  { %8167 = vmatprep.subr.mxu0 %v7687_v57 }
 0xc8d   :  { %8168 = vmatpush3.msra.mxu0 %v7671_v52 }
 0xc8e   :  { %8169 = vmatprep.subr.mxu0 %v7686_v53 }
 0xc8f   :  { %8170 = vmatpush3.msra.mxu0 %v7670_v61 }
 0xc90   :  { %8171 = vmatprep.subr.mxu0 %v7685_v13 }
 0xc91   :  { %8172 = vmatpush3.msra.mxu0 %v7669_v16 }
 0xc92   :  { %8173 = vmatprep.subr.mxu0 %v7684_v19 }
 0xc93   :  { %8174 = vmatpush3.msra.mxu0 %v7668_v6 }
 0xc94   :  { %8175 = vmatprep.subr.mxu0 %v7683_v41 }
 0xc95   :  { %8176 = vmatpush3.msra.mxu0 %v7667_v39 }
 0xc96   :  { %8177 = vmatprep.subr.mxu0 %v7682_v24 }
 0xc97   :  { %8178 = vmatpush3.msra.mxu0 %v7666_v40 }
 0xc98   :  { %8179 = vmatprep.subr.mxu0 %v7681_v15  ;;  %v6991_v29 = vpop.f32.mrf.mxu1  ;;  %v7133_v20 = vpop.f32.mrf.mxu0 }
 0xc99   :  { %8180 = vmatpush3.msra.mxu0 %v7665_v59 }
 0xc9a   :  { %8181 = vmatprep.subr.mxu0 %v7680_v22  ;;  %v6993_v21 = vpop.f32.mrf.mxu1  ;;  %v7135_v48 = vpop.f32.mrf.mxu0 }
 0xc9b   :  { %8182 = vmatpush3.msra.mxu0 %v7664_v12 }
 0xc9c   :  { %8183 = vmatprep.subr.mxu0 %v7679_v58 }
 0xc9d   :  { %8184 = vmatpush3.msra.mxu0 %v7663_v51 }
 0xc9e   :  { %8185 = vmatprep.subr.mxu0 %v7678_v47 }
 0xc9f   :  { %8186 = vmatpush3.msra.mxu0 %v7662_v46 }
 0xca0   :  { %8187 = vmatprep.subr.mxu0 %v7677_v36 }
 0xca1   :  { %8188 = vmatpush3.msra.mxu0 %v7661_v17 }
 0xca2   :  { %8189 = vmatprep.subr.mxu0 %v7676_v31 }
 0xca3   :  { %8190 = vmatpush3.msra.mxu0 %v7660_v42 }
 0xca4   :  { %7806 = vmatprep.subr.mxu0 %v16112_v27 }
 0xcbc   :  { %v7062_v43 = vpop.f32.mrf.mxu1 }
 0xcbd   :  { %v7063_v63 = vadd.f32 %v7062_v43, %v6991_v29 }
 0xcbe   :  { %v7064_v1 = vpop.f32.mrf.mxu1 }
 0xcbf   :  { %v7348_v49 = vpop.f32.mrf.mxu0  ;;  %v7065_v11 = vadd.f32 %v7064_v1, %v6993_v21 }
 0xcc1   :  { %v7350_v45 = vpop.f32.mrf.mxu0 }
 0xce2   :  { %v7204_v10 = vpop.f32.mrf.mxu1 }
 0xce3   :  { %v7205_v37 = vadd.f32 %v7204_v10, %v7133_v20 }
 0xce4   :  { %v7206_v28 = vpop.f32.mrf.mxu1 }
 0xce5   :  { %v7207_v52 = vadd.f32 %v7206_v28, %v7135_v48 }
 0xd00   :  { %v7419_v25 = vpop.f32.mrf.mxu0 }
 0xd01   :  { %v7420_v53 = vadd.f32 %v7419_v25, %v7205_v37 }
 0xd02   :  { %v7421_v2 = vpop.f32.mrf.mxu0 }
 0xd03   :  { %v7422_v16 = vadd.f32 %v7421_v2, %v7207_v52 }
 0xd23   :  { %v7277_v35 = vpop.f32.mrf.mxu1 }
 0xd24   :  { %v7278_v18 = vadd.f32 %v7277_v35, %v7063_v63 }
 0xd25   :  { %v7279_v33 = vpop.f32.mrf.mxu1 }
 0xd26   :  { %v7349_v3 = vadd.f32 %v7348_v49, %v7278_v18  ;;  %v7280_v32 = vadd.f32 %v7279_v33, %v7065_v11 }
 0xd28   :  { %v7498_v7 = vsel %vm7497_vm7, %v7349_v3, 0.0  ;;  %v7351_v56 = vadd.f32 %v7350_v45, %v7280_v32 }
 0xd29   :  { %v7499_v14 = vrot.slane %v7498_v7, 4 }
 0xd2a   :  { %v7505_v8 = vsel %vm7497_vm7, %v7351_v56, 0.0 }
 0xd2b   :  { %v7500_v9 = vadd.f32 %v7499_v14, %v7498_v7  ;;  %v7506_v55 = vrot.slane %v7505_v8, 4 }
 0xd2d   :  { %v7507_v62 = vadd.f32 %v7506_v55, %v7505_v8  ;;  %v7501_v44 = vrot.slane %v7500_v9, 2 }
 0xd2f   :  { %v7508_v5 = vrot.slane %v7507_v62, 2  ;;  %v7502_v34 = vadd.f32 %v7501_v44, %v7500_v9 }
 0xd31   :  { %v7509_v0 = vadd.f32 %v7508_v5, %v7507_v62  ;;  %v7503_v38 = vrot.slane %v7502_v34, 1 }
 0xd33   :  { %v7510_v26 = vrot.slane %v7509_v0, 1  ;;  %v7504_v60 = vadd.f32 %v7503_v38, %v7502_v34 }
 0xd35   :  { %v7511_v30 = vadd.f32 %v7510_v26, %v7509_v0  ;;  %v7528_v23 = vmul.f32 0.5, %v7504_v60 }
 0xd37   :  { %v7529_v50 = vmul.f32 0.5, %v7511_v30  ;;  %v15065_v4 = vsub.f32 %v7349_v3, %v7528_v23 }
 0xd39   :  { %v15063_v54 = vsub.f32 %v7351_v56, %v7529_v50  ;;  %v7536_v61 = vmul.f32 %v15065_v4, %v15065_v4 }
 0xd3b   :  { %v7537_v57 = vmul.f32 %v15063_v54, %v15063_v54  ;;  %v7540_v40 = vsel %vm7497_vm7, %v7536_v61, 0.0 }
 0xd3c   :  { %v7541_v51 = vrot.slane %v7540_v40, 4 }
 0xd3d   :  { %v7547_v6 = vsel %vm7497_vm7, %v7537_v57, 0.0 }
 0xd3e   :  { %v7548_v59 = vrot.slane %v7547_v6, 4  ;;  %v7542_v42 = vadd.f32 %v7541_v51, %v7540_v40  ;;  %v16113_v40 = vld [vmem:[#allocation38_spill] sm:$0xff] }
 0xd40   :  { %v7549_v36 = vadd.f32 %v7548_v59, %v7547_v6  ;;  %v7543_v10 = vrot.slane %v7542_v42, 2 }
 0xd42   :  { %v7550_v43 = vrot.slane %v7549_v36, 2  ;;  %v7544_v11 = vadd.f32 %v7543_v10, %v7542_v42  ;;  %v7621_v42 = vsub.s32 2, %v16113_v40 }
 0xd44   :  { %v7551_v63 = vadd.f32 %v7550_v43, %v7549_v36  ;;  %v7545_v7 = vrot.slane %v7544_v11, 1  ;;  %v7625_v36 = vsub.s32 3, %v16113_v40  ;;  %v16114_v43 = vld [vmem:[#allocation119_spill] sm:$0xff] }
 0xd46   :  { %v7552_v3 = vrot.slane %v7551_v63, 1  ;;  %v7546_v62 = vadd.f32 %v7545_v7, %v7544_v11  ;;  %v7707_v7 = vld [vmem:[%s15241_s10 + $0x178] sm:$0xff] }
 0xd47   :  { %v7490_v13 = vpop.f32.mrf.mxu1 }
 0xd48   :  { %v7491_v19 = vadd.f32 %v7490_v13, %v7420_v53  ;;  %v7553_v8 = vadd.f32 %v7552_v3, %v7551_v63  ;;  %v7568_v38 = vmul.f32 0.5, %v7546_v62  ;;  %v8741_v13 = vmov 1966171168   ;;  %v7698_v62 = vld [vmem:[%s15241_s10 + $0x130] sm:$0xff] }
 0xd49   :  { %v7492_v41 = vpop.f32.mrf.mxu1 }
 0xd4a   :  { %v7512_v39 = vsel %vm7497_vm7, %v7491_v19, 0.0  ;;  %v7493_v24 = vadd.f32 %v7492_v41, %v7422_v16  ;;  %v7569_v0 = vmul.f32 0.5, %v7553_v8  ;;  %v7572_v37 = vadd.f32 1e-05, %v7568_v38  ;;  %v7701_v8 = vld [vmem:[%s15241_s10 + $0x148] sm:$0xff]  ;;  %v7692_v38 = vld [vmem:[%s15241_s10 + $0x100] sm:$0xff] }
 0xd4b   :  { %v7513_v15 = vrot.slane %v7512_v39, 4  ;;  %v7587_v16 = vunpack.c.l.s4 %v8741_v13  ;;  %v7711_v13 = vld [vmem:[%s15241_s10 + $0x198] sm:$0xff] }
 0xd4c   :  { %v7520_v22 = vsel %vm7519_vm14, %v7493_v24, 0.0  ;;  %v7573_v50 = vadd.f32 1e-05, %v7569_v0  ;;  %v7695_v0 = vld [vmem:[%s15241_s10 + $0x118] sm:$0xff] }
 0xd4d   :  { %v7514_v12 = vadd.f32 %v7513_v15, %v7512_v39  ;;  %v7521_v58 = vrot.slane %v7520_v22, 4 }
 0xd4e   :  { %8484 = vrsqrt.f32 %v7573_v50  ;;  %v7720_v50 = vld [vmem:[%s15241_s10 + $0x1e0] sm:$0xff] }
 0xd4f   :  { %v7515_v47 = vrot.slane %v7514_v12, 2  ;;  %v7522_v46 = vadd.f32 %v7521_v58, %v7520_v22  ;;  %8486 = vrsqrt.f32 %v7572_v37  ;;  %v7717_v37 = vld [vmem:[%s15241_s10 + $0x1c8] sm:$0xff] }
 0xd51   :  { %v7516_v17 = vadd.f32 %v7515_v47, %v7514_v12  ;;  %v7523_v31 = vrot.slane %v7522_v46, 2  ;;  %v7495_v47 = vld [vmem:[#allocation16] sm:$0xf] }
 0xd53   :  { %v7517_v29 = vrot.slane %v7516_v17, 1  ;;  %v7524_v21 = vadd.f32 %v7523_v31, %v7522_v46  ;;  %v7617_v31 = vsub.s32 1, %v16113_v40 }
 0xd55   :  { %v7518_v1 = vadd.f32 %v7517_v29, %v7516_v17  ;;  %v7525_v20 = vrot.slane %v7524_v21, 1  ;;  %v15083_v17 = vld [vmem:[#allocation17] sm:$0xf] }
 0xd56   :  { %v7651_v63 = vrot.slane %v15083_v17, %v7625_v36 }
 0xd57   :  { %v7530_v48 = vmul.f32 0.5, %v7518_v1  ;;  %v7526_v28 = vadd.f32 %v7525_v20, %v7524_v21  ;;  %v7643_v21 = vrot.slane %v15083_v17, %v7617_v31  ;;  %v7639_v1 = vrot.slane %v15083_v17, %v16114_v43 }
 0xd59   :  { %v15075_v49 = vsub.f32 %v7491_v19, %v7530_v48  ;;  %v7531_v35 = vmul.f32 0.5, %v7526_v28  ;;  %v7588_v19 = vunpack.c.0.s8 %v7587_v16  ;;  %v7710_v16 = vld [vmem:[%s15241_s10 + $0x190] sm:$0xff] }
 0xd5b   :  { %v7538_v18 = vmul.f32 %v15075_v49, %v15075_v49  ;;  %v7535_v33 = vsub.f32 %v7493_v24, %v7531_v35  ;;  %v8485_v6 = vpop.eup %8484  ;;  %v7591_v15 = vsub.s32 %v7588_v19, %v16113_v40  ;;  %v7709_v19 = vld [vmem:[%s15241_s10 + $0x188] sm:$0xff]  ;;  %v7997_v40 = vld [vmem:[#allocation19] ss:$0 sm:$0xff] }
 0xd5c   :  { %v8487_v41 = vpop.eup %8486 }
 0xd5d   :  { %v7554_v32 = vsel %vm7497_vm7, %v7538_v18, 0.0  ;;  %v7539_v45 = vmul.f32 %v7535_v33, %v7535_v33  ;;  %v7584_v24 = vcombine.low %v8487_v41, %v8485_v6  ;;  %v7647_v6 = vrot.slane %v15083_v17, %v7621_v42  ;;  %v7708_v41 = vld [vmem:[%s15241_s10 + $0x180] sm:$0xff] }
 0xd5e   :  { %v7555_v56 = vrot.slane %v7554_v32, 4 }
 0xd5f   :  { %v7561_v14 = vsel %vm7519_vm14, %v7539_v45, 0.0  ;;  %v7592_v12 = vrot.slane %v7584_v24, %v7591_v15 }
 0xd60   :  { %v7556_v9 = vadd.f32 %v7555_v56, %v7554_v32  ;;  %v7562_v55 = vrot.slane %v7561_v14, 4 }
 0xd62   :  { %v7557_v44 = vrot.slane %v7556_v9, 2  ;;  %v7563_v5 = vadd.f32 %v7562_v55, %v7561_v14  ;;  %v7702_v14 = vld [vmem:[%s15241_s10 + $0x150] sm:$0xff]  ;;  %v7699_v55 = vld [vmem:[%s15241_s10 + $0x138] sm:$0xff] }
 0xd64   :  { %v7558_v34 = vadd.f32 %v7557_v44, %v7556_v9  ;;  %v7564_v26 = vrot.slane %v7563_v5, 2  ;;  %v7700_v9 = vld [vmem:[%s15241_s10 + $0x140] sm:$0xff]  ;;  %v7697_v44 = vld [vmem:[%s15241_s10 + $0x128] sm:$0xff] }
 0xd66   :  { %v7559_v30 = vrot.slane %v7558_v34, 1  ;;  %v7565_v60 = vadd.f32 %v7564_v26, %v7563_v5  ;;  %v7696_v5 = vld [vmem:[%s15241_s10 + $0x120] sm:$0xff]  ;;  %v7693_v26 = vld [vmem:[%s15241_s10 + $0x108] sm:$0xff] }
 0xd68   :  { %v7560_v23 = vadd.f32 %v7559_v30, %v7558_v34  ;;  %v7566_v25 = vrot.slane %v7565_v60, 1  ;;  %v7694_v34 = vld [vmem:[%s15241_s10 + $0x110] sm:$0xff] }
 0xd69   :  { %v7722_v30 = vld [vmem:[%s15241_s10 + $0x1f0] sm:$0xf] }
 0xd6a   :  { %v7570_v2 = vmul.f32 0.5, %v7560_v23  ;;  %v7567_v57 = vadd.f32 %v7566_v25, %v7565_v60  ;;  %v7721_v60 = vld [vmem:[%s15241_s10 + $0x1e8] sm:$0xff]  ;;  %v7719_v23 = vld [vmem:[%s15241_s10 + $0x1d8] sm:$0xff]  ;;  %v7718_v25 = vld [vmem:[%s15241_s10 + $0x1d0] sm:$0xff] }
 0xd6c   :  { %v7574_v52 = vadd.f32 1e-05, %v7570_v2  ;;  %v7571_v53 = vmul.f32 0.5, %v7567_v57  ;;  %v7716_v2 = vld [vmem:[%s15241_s10 + $0x1c0] sm:$0xff]  ;;  %v7715_v57 = vld [vmem:[%s15241_s10 + $0x1b8] sm:$0xff] }
 0xd6e   :  { %v7575_v61 = vadd.f32 1e-05, %v7571_v53  ;;  %8488 = vrsqrt.f32 %v7574_v52  ;;  %v7714_v52 = vld [vmem:[%s15241_s10 + $0x1b0] sm:$0xff]  ;;  %v7713_v53 = vld [vmem:[%s15241_s10 + $0x1a8] sm:$0xff] }
 0xd70   :  { %8490 = vrsqrt.f32 %v7575_v61  ;;  %v7712_v61 = vld [vmem:[%s15241_s10 + $0x1a0] sm:$0xff] }
 0xd7b   :  { %v8489_v39 = vpop.eup %8488 }
 0xd7d   :  { %v8491_v59 = vpop.eup %8490 }
 0xd7e   :  { %v7585_v22 = vcombine.low %v8489_v39, %v8491_v59 }
 0xd80   :  { %v7599_v58 = vrot.slane %v7585_v22, %v7591_v15 }
 0xd82   :  { %v7600_v51 = vcombine.low %v7592_v12, %v7599_v58 }
 0xd84   :  { %v7607_v46 = vrot.slane %v7600_v51, %v7591_v15 }
 0xd86   :  { %v7609_v29 = vmul.f32 %v7607_v46, %v7495_v47 }
 0xd88   :  { %v7626_v20 = vrot.slane %v7609_v29, %v7625_v36  ;;  %v7618_v10 = vrot.slane %v7609_v29, %v7617_v31  ;;  %v7614_v48 = vrot.slane %v7609_v29, %v16114_v43  ;;  %v7622_v28 = vrot.slane %v7609_v29, %v7621_v42 }
 0xd8a   :  { %v7634_v35 = vmul.f32 %v7626_v20, %v7535_v33  ;;  %v7632_v11 = vmul.f32 %v7618_v10, %v15063_v54  ;;  %v7631_v18 = vmul.f32 %v7614_v48, %v15065_v4  ;;  %v15097_v3 = vmul.f32 %v7622_v28, %v15075_v49  ;;  %v7706_v33 = vld [vmem:[%s15241_s10 + $0x170] sm:$0xff]  ;;  %v7705_v54 = vld [vmem:[%s15241_s10 + $0x168] sm:$0xff]  ;;  %v7704_v4 = vld [vmem:[%s15241_s10 + $0x160] sm:$0xff] }
 0xd8b   :  { %v7703_v49 = vld [vmem:[%s15241_s10 + $0x158] sm:$0xff]  ;;  %s8675_s10 = scalar_lea.vmem %s7885_s14, 32 }
 0xd8c   :  { %v7657_v32 = vadd.f32 %v7643_v21, %v7632_v11  ;;  %v7656_v45 = vadd.f32 %v7639_v1, %v7631_v18  ;;  %v7659_v56 = vadd.f32 %v7651_v63, %v7634_v35  ;;  %v7658_v39 = vadd.f32 %v7647_v6, %v15097_v3  ;;  %p8676_p3 = scmp.ne.s32.totalorder %s7885_s14, %s8675_s10  ;;  %p8681_p5 = scmp.lt.s32.totalorder %s8675_s10, %s8675_s10 }
 0xd8e   :  { %7800 = vmatprep.mubr.f32.mxu0 %v7657_v32  ;;  %p8682_p6 = por %p8681_p5, %p8680_p4 }
 0xd8f   :  { %7801 = vmatmul.mubr.f32.vlgmr.msra.gmra.mxu0 %v7656_v45 }
 0xd90   :  { %7807 = vmatpush1.msra.mxu0 %v7707_v7  ;;  %7999 = vmatprep.mubr.msk.f32.mxu0 %vm5829_vm15, %v7659_v56  ;;  %p8683_p7 = pnand %p8682_p6, %p8676_p3 }
 0xd91   :  { %7808 = vmatprep.subr.mxu0 %v16112_v27 }
 0xd92   :  { %7809 = vmatpush1.msra.mxu0 %v7706_v33 }
 0xd93   :  { %7810 = vmatprep.subr.mxu0 %v16112_v27 }
 0xd94   :  { %7811 = vmatpush1.msra.mxu0 %v7705_v54 }
 0xd95   :  { %7812 = vmatprep.subr.mxu0 %v16112_v27 }
 0xd96   :  { %7813 = vmatpush1.msra.mxu0 %v7704_v4 }
 0xd97   :  { %7814 = vmatprep.subr.mxu0 %v16112_v27 }
 0xd98   :  { %7815 = vmatpush1.msra.mxu0 %v7703_v49 }
 0xd99   :  { %7816 = vmatprep.subr.mxu0 %v16112_v27 }
 0xd9a   :  { %7817 = vmatpush1.msra.mxu0 %v7702_v14 }
 0xd9b   :  { %7818 = vmatprep.subr.mxu0 %v16112_v27 }
 0xd9c   :  { %7819 = vmatpush1.msra.mxu0 %v7701_v8 }
 0xd9d   :  { %7820 = vmatprep.subr.mxu0 %v16112_v27 }
 0xd9e   :  { %7821 = vmatpush1.msra.mxu0 %v7700_v9 }
 0xd9f   :  { %7822 = vmatprep.subr.mxu0 %v16112_v27 }
 0xda0   :  { %7823 = vmatpush1.msra.mxu0 %v7699_v55 }
 0xda1   :  { %7824 = vmatprep.subr.mxu0 %v16112_v27 }
 0xda2   :  { %7825 = vmatpush1.msra.mxu0 %v7698_v62 }
 0xda3   :  { %7826 = vmatprep.subr.mxu0 %v16112_v27 }
 0xda4   :  { %7827 = vmatpush1.msra.mxu0 %v7697_v44 }
 0xda5   :  { %7828 = vmatprep.subr.mxu0 %v16112_v27 }
 0xda6   :  { %7829 = vmatpush1.msra.mxu0 %v7696_v5 }
 0xda7   :  { %7830 = vmatprep.subr.mxu0 %v16112_v27 }
 0xda8   :  { %7831 = vmatpush1.msra.mxu0 %v7695_v0 }
 0xda9   :  { %7832 = vmatprep.subr.mxu0 %v16112_v27 }
 0xdaa   :  { %7833 = vmatpush1.msra.mxu0 %v7694_v34 }
 0xdab   :  { %7834 = vmatprep.subr.mxu0 %v16112_v27 }
 0xdac   :  { %7835 = vmatpush1.msra.mxu0 %v7693_v26 }
 0xdad   :  { %7836 = vmatprep.subr.mxu0 %v16112_v27 }
 0xdae   :  { %7837 = vmatpush1.msra.mxu0 %v7692_v38 }
 0xdaf   :  { %7840 = vmatprep.subr.mxu0 %v16112_v27 }
 0xdb0   :  { %7998 = vmatpush2.msk.msra.mxu0 %vm3680_vm4, %v7722_v30  ;;  %vm7876_vm4 = vcmask 74752  }
 0xdb1   :  { %7842 = vmatprep.subr.mxu0 %v16112_v27 }
 0xdb2   :  { %7843 = vmatpush2.msra.mxu0 %v7721_v60 }
 0xdb3   :  { %7844 = vmatprep.subr.mxu0 %v16112_v27 }
 0xdb4   :  { %7845 = vmatpush2.msra.mxu0 %v7720_v50 }
 0xdb5   :  { %7846 = vmatprep.subr.mxu0 %v16112_v27 }
 0xdb6   :  { %7847 = vmatpush2.msra.mxu0 %v7719_v23 }
 0xdb7   :  { %7848 = vmatprep.subr.mxu0 %v16112_v27 }
 0xdb8   :  { %7849 = vmatpush2.msra.mxu0 %v7718_v25 }
 0xdb9   :  { %7850 = vmatprep.subr.mxu0 %v16112_v27 }
 0xdba   :  { %7851 = vmatpush2.msra.mxu0 %v7717_v37 }
 0xdbb   :  { %7852 = vmatprep.subr.mxu0 %v16112_v27 }
 0xdbc   :  { %7853 = vmatpush2.msra.mxu0 %v7716_v2 }
 0xdbd   :  { %7854 = vmatprep.subr.mxu0 %v16112_v27 }
 0xdbe   :  { %7855 = vmatpush2.msra.mxu0 %v7715_v57 }
 0xdbf   :  { %7856 = vmatprep.subr.mxu0 %v16112_v27 }
 0xdc0   :  { %7857 = vmatpush2.msra.mxu0 %v7714_v52 }
 0xdc1   :  { %7858 = vmatprep.subr.mxu0 %v16112_v27 }
 0xdc2   :  { %7859 = vmatpush2.msra.mxu0 %v7713_v53 }
 0xdc3   :  { %7860 = vmatprep.subr.mxu0 %v16112_v27 }
 0xdc4   :  { %7861 = vmatpush2.msra.mxu0 %v7712_v61 }
 0xdc5   :  { %7862 = vmatprep.subr.mxu0 %v16112_v27 }
 0xdc6   :  { %7863 = vmatpush2.msra.mxu0 %v7711_v13 }
 0xdc7   :  { %7864 = vmatprep.subr.mxu0 %v16112_v27 }
 0xdc8   :  { %7865 = vmatpush2.msra.mxu0 %v7710_v16 }
 0xdc9   :  { %7866 = vmatprep.subr.mxu0 %v16112_v27 }
 0xdca   :  { %7867 = vmatpush2.msra.mxu0 %v7709_v19 }
 0xdcb   :  { %7868 = vmatprep.subr.mxu0 %v16112_v27 }
 0xdcc   :  { %7869 = vmatpush2.msra.mxu0 %v7708_v41 }
 0xdcd   :  { %7871 = vmatmul.mubr.f32.vlgmr.msra.gmra.mxu0 %v7658_v39 }
 0xe4f   :  { %v8191_v24 = vpop.f32.mrf.mxu0 }
 0xe51   :  { %v8192_v15 = vpop.f32.mrf.mxu0 }
 0xe52   :  { %v8193_v59 = vadd.f32 %v8192_v15, %v8191_v24 }
 0xe54   :  { %v7803_v22 = vadd.f32 %v8193_v59, %v7997_v40 }
 0xe8d   :  { %v7872_v12 = vpop.f32.mrf.mxu0 }
 0xe8e   :  { %v7873_v58 = vadd.f32 %v7872_v12, %v7803_v22 }
 0xe8f   :  { %v7874_v51 = vpop.f32.mrf.mxu0 }
 0xe90   :  { %7877 = vst.msk [vmem:[#allocation20] sm:$0x3] %vm7876_vm4, %v7873_v58 }
 0xe91   :  { %8686 = shalt.err (!%p8683_p7)
}
 0xe92   :  { %7887 = dma.vmem_to_hbm [thread:$0]  %s7885_s14, 32, %s15243_s12, [#allocation10]  }
 0xe93   :  { %8707 = dma.done.wait [#allocation10], 32  }
 0xe94   :  { %8708 = vsyncadd [#allocation10], 4294967264 }
 0xe95   :  { %7891 = vsyncpa [#allocation9], 1 }
 0xe96   :  { %7892 = vsyncpa [#allocation12], 1 }
 0xe97   :  { %7893 = vsyncpa [#allocation15], 1 }
 0xe98   :  { %7894 = vsyncpa [#allocation18], 1 }
 0xe99   :  { %7895 = vsyncpa [#allocation10], 1 }
 0xe9a   :  { %7896 = vsyncmov [#allocation7] }
 0xe9d   :  { %s7897_s0 = vpop.sfrf %7896 }
 0xe9e   :  { %p8000_p8 = scmp.ne.s32.totalorder %s7897_s0, 0 }
 0xea0   :  { %7901 = shalt.err (%p8000_p8)  }
 0xea1   :  { %7903 = vsyncmov [#allocation7 + $0x1] }
 0xea4   :  { %s7904_s22 = vpop.sfrf %7903 }
 0xea5   :  { %p8001_p9 = scmp.ne.s32.totalorder %s7904_s22, 0 }
 0xea7   :  { %7908 = shalt.err (%p8001_p9)  }

</bundles_post_ra>
